<compile_context>
chip_gen: v6e
topology: v6e:2x2x1
jax: 0.10.0
libtpu: 0.0.40
codegen_flags: <defaults>
</compile_context>

<pallas_src>
import numpy as np
import jax
import jax.numpy as jnp
from jax.experimental import pallas as pl
from jax.experimental.pallas import tpu as pltpu


# ----------------------------------------------------------------------------
# Config (small shapes consistent with the module; n_patches=8 is implied by
# the hard-coded `height // 8` inside get_patches_fast).
IMAGE_SHAPE = (16, 16, 4)        # (H, W, C)
N_PATCHES = 8
N_EMBD = 32
N_HEAD = 4
N_BLOCKS = 2
ACTION_BINS = 10
BATCH = 2
# TODO(synk): dropout layers are identity at inference; not modeled in-kernel.

PATCH = IMAGE_SHAPE[0] // N_PATCHES              # 2
SEQ = N_PATCHES ** 2 + 1                         # 65 tokens (class + 64 patches)
INPUT_D = IMAGE_SHAPE[2] * PATCH * PATCH         # 16
HEAD_SIZE = N_EMBD // N_HEAD                     # 8
FF_D = 4 * N_EMBD                                # 128
LN_EPS = 1e-5
HEAD_PAD = 128                                   # lane-dense padded head width
ATTN_SCALE = float(N_EMBD) ** -0.5               # torch: wei = q @ k^T * C**-0.5


# ----------------------------------------------------------------------------
# Pure-python / glue pieces (positional embeddings, patchify reshape).

def calc_positional_embeddings(sequence_length, d):
    result = np.ones((sequence_length, d), dtype=np.float32)
    for i in range(sequence_length):
        for j in range(d):
            result[i, j] = (np.sin(i / 10000 ** (j / d)) if j % 2 == 0
                            else np.cos(i / 10000 ** ((j - 1) / d)))
    return jnp.asarray(result, dtype=jnp.float32)


def get_patches_fast(images):
    # exact reproduction of rearrange(x, 'b (h p1) (w p2) c -> b (h w) (p1 p2 c)')
    b, d1, d2, d3 = images.shape
    p = d2 // 8                      # torch: patch_size = images.shape[2] // 8
    h, w = d1 // p, d2 // p
    x = images.reshape(b, h, p, w, p, d3)
    x = jnp.transpose(x, (0, 1, 3, 2, 4, 5))
    return x.reshape(b, h * w, p * p * d3)


# ----------------------------------------------------------------------------
# Fused per-image kernel: embed -> N_BLOCKS transformer blocks -> cls head.
# One grid program == one image; all activations stay in vregs (no scratch).

def _vit_fused_kernel(p_ref,                       # (1, SEQ, INPUT_D+1)
                      wlin_ref,                    # (INPUT_D+1, D)  incl. cls row
                      pos_ref,                     # (SEQ, D)
                      ln1g_ref, ln1b_ref,          # (NB, 1, D)
                      wqkv_ref,                    # (NB, D, 3D)  Q cols pre-scaled
                      wp_ref, bp_ref,              # (NB, D, D), (NB, 1, D)
                      ln2g_ref, ln2b_ref,          # (NB, 1, D)
                      w1_ref, b1_ref,              # (NB, D, 4D), (NB, 1, 4D)
                      w2_ref, b2_ref,              # (NB, 4D, D), (NB, 1, D)
                      wh_ref, bh_ref,              # (D, 128), (1, 128)
                      out_ref):                    # (1, 1, 128)

    def layer_norm(v, g, b):
        mu = jnp.mean(v, axis=-1, keepdims=True)
        var = jnp.mean((v - mu) ** 2, axis=-1, keepdims=True)
        return (v - mu) * jax.lax.rsqrt(var + LN_EPS) * g + b

    # ---- embedding: (class token + patch projection) as ONE matmul ----
    x = jnp.dot(p_ref[0], wlin_ref[...],
                preferred_element_type=jnp.float32) + pos_ref[...]   # (SEQ, D)

    for blk in range(N_BLOCKS):                                      # static unroll
        # ---- multi-head self-attention on LN1(x) ----
        h1 = layer_norm(x, ln1g_ref[blk], ln1b_ref[blk])
        qkv = jnp.dot(h1, wqkv_ref[blk],
                      preferred_element_type=jnp.float32)            # (SEQ, 3D)
        wp = wp_ref[blk]                                             # (D, D)
        sa = None
        for h in range(N_HEAD):                                      # static unroll
            c0 = h * HEAD_SIZE
            qh = qkv[:, c0:c0 + HEAD_SIZE]                           # scale pre-folded
            kh = qkv[:, N_EMBD + c0:N_EMBD + c0 + HEAD_SIZE]
            vh = qkv[:, 2 * N_EMBD + c0:2 * N_EMBD + c0 + HEAD_SIZE]
            wei = jax.lax.dot_general(
                qh, kh, (((1,), (1,)), ((), ())),
                preferred_element_type=jnp.float32)                  # (SEQ, SEQ)
            wei = wei - jnp.max(wei, axis=-1, keepdims=True)
            e = jnp.exp(wei)
            p = e * pl.reciprocal(jnp.sum(e, axis=-1, keepdims=True),
                                  approx=True)
            oh = jnp.dot(p, vh, preferred_element_type=jnp.float32)  # (SEQ, HS)
            # concat(heads) @ Wp == sum_h head_h @ Wp[h*HS:(h+1)*HS, :]
            contrib = jnp.dot(oh, wp[c0:c0 + HEAD_SIZE, :],
                              preferred_element_type=jnp.float32)    # (SEQ, D)
            sa = contrib if sa is None else sa + contrib
        x = x + sa + bp_ref[blk]

        # ---- feed-forward on LN2(x) ----
        h2 = layer_norm(x, ln2g_ref[blk], ln2b_ref[blk])
        f = jnp.dot(h2, w1_ref[blk],
                    preferred_element_type=jnp.float32) + b1_ref[blk]
        f = jnp.maximum(f, 0.0)
        x = x + jnp.dot(f, w2_ref[blk],
                        preferred_element_type=jnp.float32) + b2_ref[blk]

    # ---- classification head + softmax on the class-token row ----
    cls_row = x[0:1, :]                                              # (1, D)
    lg = jnp.dot(cls_row, wh_ref[...],
                 preferred_element_type=jnp.float32) + bh_ref[...]   # (1, 128)
    lg = lg - jnp.max(lg, axis=-1, keepdims=True)                    # pad lanes ~ -1e30
    e = jnp.exp(lg)                                                  # pad lanes -> 0
    out_ref[0] = e / jnp.sum(e, axis=-1, keepdims=True)              # (1, 128) store


# ----------------------------------------------------------------------------
# pallas_call wrapper.

def _const_spec(shape):
    nd = len(shape)
    return pl.BlockSpec(shape, lambda b: (0,) * nd)


@jax.jit
def vit_forward(images, params, targets=None):
    """Returns (probs, loss); loss is None (targets=None path of the module)."""
    patches = get_patches_fast(images).astype(jnp.float32)          # (n, 64, INPUT_D)
    n = patches.shape[0]

    # Augment patches: prepend a class-token row and append a one-hot feature
    # column so the class token is produced by the same matmul as the patch
    # embedding (the matching weight row holds the learned class token).
    patch_rows = jnp.pad(patches, ((0, 0), (0, 0), (0, 1)))          # (n, 64, 17)
    cls_rows = jnp.zeros((n, 1, INPUT_D + 1),
                         jnp.float32).at[:, :, INPUT_D].set(1.0)     # (n, 1, 17)
    patches_aug = jnp.concatenate([cls_rows, patch_rows], axis=1)    # (n, SEQ, 17)

    bw = params["blocks"]
    operands = (patches_aug, params["w_lin_cls"], params["pos"],
                bw["ln1_g"], bw["ln1_b"], bw["wqkv"], bw["wp"], bw["bp"],
                bw["ln2_g"], bw["ln2_b"], bw["w1"], bw["b1"], bw["w2"],
                bw["b2"], params["w_head_pad"], params["b_head_pad"])

    in_specs = [pl.BlockSpec((1, SEQ, INPUT_D + 1), lambda b: (b, 0, 0))]
    in_specs += [_const_spec(op.shape) for op in operands[1:]]

    out = pl.pallas_call(
        _vit_fused_kernel,
        out_shape=jax.ShapeDtypeStruct((n, 1, HEAD_PAD), jnp.float32),
        grid=(n,),
        in_specs=in_specs,
        out_specs=pl.BlockSpec((1, 1, HEAD_PAD), lambda b: (b, 0, 0)),
        compiler_params=pltpu.CompilerParams(
            dimension_semantics=("parallel",)),
    )(*operands)

    logits = out[:, 0, :ACTION_BINS]                                 # (n, ACTION_BINS)
    loss = None  # TODO(synk): cross-entropy loss path not taken (targets=None)
    return logits, loss


# ----------------------------------------------------------------------------
# Parameter init (deterministic, synthetic), already in kernel-ready form:
#   * Wq/Wk/Wv fused into one (D, 3D) weight, Q columns pre-scaled by C**-0.5
#   * class token appended as an extra row of the patch-embedding weight
#   * head weight/bias padded to 128 lanes (pad bias = -1e30)
#   * block params stacked along a leading N_BLOCKS axis

def init_params(key):
    keys = jax.random.split(key, 4 + N_BLOCKS)
    s = 0.02
    cls = jax.random.uniform(keys[0], (1, N_EMBD), jnp.float32)       # torch.rand
    w_lin = jax.random.normal(keys[1], (INPUT_D, N_EMBD), jnp.float32) * s
    w_head = jax.random.normal(keys[2], (N_EMBD, ACTION_BINS), jnp.float32) * s
    b_head = jax.random.normal(keys[3], (1, ACTION_BINS), jnp.float32) * s

    params = {
        "pos": calc_positional_embeddings(SEQ, N_EMBD),
        "w_lin_cls": jnp.concatenate([w_lin, cls], axis=0),           # (INPUT_D+1, D)
        "w_head_pad": jnp.zeros((N_EMBD, HEAD_PAD), jnp.float32)
                         .at[:, :ACTION_BINS].set(w_head),
        "b_head_pad": jnp.full((1, HEAD_PAD), -1e30, jnp.float32)
                         .at[:, :ACTION_BINS].set(b_head),
    }

    names = ("ln1_g", "ln1_b", "wqkv", "wp", "bp",
             "ln2_g", "ln2_b", "w1", "b1", "w2", "b2")
    blocks = {k: [] for k in names}
    for i in range(N_BLOCKS):
        bk = jax.random.split(keys[4 + i], 8)
        # per-head query/key/value weights live in contiguous 8-column groups,
        # matching torch's concat-of-heads ordering; attention scale folded
        # into the Q columns (wei = (x Wq * scale) (x Wk)^T == (x Wq)(x Wk)^T * scale)
        wq = jax.random.normal(bk[0], (N_EMBD, N_EMBD), jnp.float32) * s
        wk = jax.random.normal(bk[1], (N_EMBD, N_EMBD), jnp.float32) * s
        wv = jax.random.normal(bk[2], (N_EMBD, N_EMBD), jnp.float32) * s
        blocks["ln1_g"].append(jnp.ones((1, N_EMBD), jnp.float32))
        blocks["ln1_b"].append(jnp.zeros((1, N_EMBD), jnp.float32))
        blocks["wqkv"].append(jnp.concatenate([wq * ATTN_SCALE, wk, wv], axis=1))
        blocks["wp"].append(jax.random.normal(bk[3], (N_EMBD, N_EMBD), jnp.float32) * s)
        blocks["bp"].append(jax.random.normal(bk[4], (1, N_EMBD), jnp.float32) * s)
        blocks["ln2_g"].append(jnp.ones((1, N_EMBD), jnp.float32))
        blocks["ln2_b"].append(jnp.zeros((1, N_EMBD), jnp.float32))
        blocks["w1"].append(jax.random.normal(bk[5], (N_EMBD, FF_D), jnp.float32) * s)
        blocks["b1"].append(jax.random.normal(bk[6], (1, FF_D), jnp.float32) * s)
        blocks["w2"].append(jax.random.normal(bk[7], (FF_D, N_EMBD), jnp.float32) * s)
        blocks["b2"].append(jnp.zeros((1, N_EMBD), jnp.float32))
    params["blocks"] = {k: jnp.stack(v, axis=0) for k, v in blocks.items()}
    return params


# ----------------------------------------------------------------------------
if __name__ == "__main__":
    key = jax.random.PRNGKey(0)
    pkey, xkey = jax.random.split(key)
    params = init_params(pkey)
    images = jax.random.normal(xkey, (BATCH,) + IMAGE_SHAPE, jnp.float32)  # NHWC
    logits, loss = vit_forward(images, params)
    logits = jax.block_until_ready(logits)
    assert logits.shape == (BATCH, ACTION_BINS)
    assert loss is None
    assert bool(jnp.all(jnp.isfinite(logits)))
    assert bool(jnp.allclose(jnp.sum(logits, axis=-1), 1.0, atol=1e-5))  # softmax rows
    print("KERNEL_OK")
</pallas_src>

<mosaic_0001>
module attributes {stable_mosaic.version = 11 : i64} {
  func.func @_vit_fused_kernel(%arg0: i32, %arg1: memref<1x65x17xf32, #tpu.memory_space<vmem>>, %arg2: memref<17x32xf32, #tpu.memory_space<vmem>>, %arg3: memref<65x32xf32, #tpu.memory_space<vmem>>, %arg4: memref<2x1x32xf32, #tpu.memory_space<vmem>>, %arg5: memref<2x1x32xf32, #tpu.memory_space<vmem>>, %arg6: memref<2x32x96xf32, #tpu.memory_space<vmem>>, %arg7: memref<2x32x32xf32, #tpu.memory_space<vmem>>, %arg8: memref<2x1x32xf32, #tpu.memory_space<vmem>>, %arg9: memref<2x1x32xf32, #tpu.memory_space<vmem>>, %arg10: memref<2x1x32xf32, #tpu.memory_space<vmem>>, %arg11: memref<2x32x128xf32, #tpu.memory_space<vmem>>, %arg12: memref<2x1x128xf32, #tpu.memory_space<vmem>>, %arg13: memref<2x128x32xf32, #tpu.memory_space<vmem>>, %arg14: memref<2x1x32xf32, #tpu.memory_space<vmem>>, %arg15: memref<32x128xf32, #tpu.memory_space<vmem>>, %arg16: memref<1x128xf32, #tpu.memory_space<vmem>>, %arg17: memref<1x1x128xf32, #tpu.memory_space<vmem>>) attributes {dimension_semantics = [#tpu.dimension_semantics<parallel>], iteration_bounds = array<i64: 2>, scalar_prefetch = 0 : i64, scratch_operands = 0 : i64, tpu.core_type = #tpu.core_type<tc>, window_params = [{transform_indices = @transform_0, window_bounds = array<i64: 1, 65, 17>}, {pipeline_mode = #tpu.pipeline_mode<synchronous>, transform_indices = @transform_1, window_bounds = array<i64: 17, 32>}, {pipeline_mode = #tpu.pipeline_mode<synchronous>, transform_indices = @transform_2, window_bounds = array<i64: 65, 32>}, {pipeline_mode = #tpu.pipeline_mode<synchronous>, transform_indices = @transform_3, window_bounds = array<i64: 2, 1, 32>}, {pipeline_mode = #tpu.pipeline_mode<synchronous>, transform_indices = @transform_4, window_bounds = array<i64: 2, 1, 32>}, {pipeline_mode = #tpu.pipeline_mode<synchronous>, transform_indices = @transform_5, window_bounds = array<i64: 2, 32, 96>}, {pipeline_mode = #tpu.pipeline_mode<synchronous>, transform_indices = @transform_6, window_bounds = array<i64: 2, 32, 32>}, {pipeline_mode = #tpu.pipeline_mode<synchronous>, transform_indices = @transform_7, window_bounds = array<i64: 2, 1, 32>}, {pipeline_mode = #tpu.pipeline_mode<synchronous>, transform_indices = @transform_8, window_bounds = array<i64: 2, 1, 32>}, {pipeline_mode = #tpu.pipeline_mode<synchronous>, transform_indices = @transform_9, window_bounds = array<i64: 2, 1, 32>}, {pipeline_mode = #tpu.pipeline_mode<synchronous>, transform_indices = @transform_10, window_bounds = array<i64: 2, 32, 128>}, {pipeline_mode = #tpu.pipeline_mode<synchronous>, transform_indices = @transform_11, window_bounds = array<i64: 2, 1, 128>}, {pipeline_mode = #tpu.pipeline_mode<synchronous>, transform_indices = @transform_12, window_bounds = array<i64: 2, 128, 32>}, {pipeline_mode = #tpu.pipeline_mode<synchronous>, transform_indices = @transform_13, window_bounds = array<i64: 2, 1, 32>}, {pipeline_mode = #tpu.pipeline_mode<synchronous>, transform_indices = @transform_14, window_bounds = array<i64: 32, 128>}, {pipeline_mode = #tpu.pipeline_mode<synchronous>, transform_indices = @transform_15, window_bounds = array<i64: 1, 128>}, {transform_indices = @transform_16, window_bounds = array<i64: 1, 1, 128>}]} {
    %c0 = arith.constant 0 : index
    %c0_0 = arith.constant 0 : index
    %c0_1 = arith.constant 0 : index
    %0 = vector.load %arg1[%c0, %c0_0, %c0_1] : memref<1x65x17xf32, #tpu.memory_space<vmem>>, vector<1x65x17xf32>
    %1 = vector.shape_cast %0 : vector<1x65x17xf32> to vector<65x17xf32>
    %c0_2 = arith.constant 0 : index
    %c0_3 = arith.constant 0 : index
    %2 = vector.load %arg2[%c0_2, %c0_3] : memref<17x32xf32, #tpu.memory_space<vmem>>, vector<17x32xf32>
    %cst = arith.constant dense<0.000000e+00> : vector<65x32xf32>
    %3 = tpu.matmul %1, %2, %cst {dimension_numbers = #tpu.dot_dimension_numbers<[1], [0], [0], [1], [0, 0, 1, 1], [], []>} : vector<65x17xf32>, vector<17x32xf32>, vector<65x32xf32> -> vector<65x32xf32>
    %c0_4 = arith.constant 0 : index
    %c0_5 = arith.constant 0 : index
    %4 = vector.load %arg3[%c0_4, %c0_5] : memref<65x32xf32, #tpu.memory_space<vmem>>, vector<65x32xf32>
    %5 = arith.addf %3, %4 : vector<65x32xf32>
    %c0_6 = arith.constant 0 : index
    %c0_7 = arith.constant 0 : index
    %c0_8 = arith.constant 0 : index
    %6 = vector.load %arg4[%c0_6, %c0_7, %c0_8] : memref<2x1x32xf32, #tpu.memory_space<vmem>>, vector<1x1x32xf32>
    %7 = vector.shape_cast %6 : vector<1x1x32xf32> to vector<1x32xf32>
    %c0_9 = arith.constant 0 : index
    %c0_10 = arith.constant 0 : index
    %c0_11 = arith.constant 0 : index
    %8 = vector.load %arg5[%c0_9, %c0_10, %c0_11] : memref<2x1x32xf32, #tpu.memory_space<vmem>>, vector<1x1x32xf32>
    %9 = vector.shape_cast %8 : vector<1x1x32xf32> to vector<1x32xf32>
    %cst_12 = arith.constant dense<0.000000e+00> : vector<65xf32>
    %10 = vector.multi_reduction <add>, %5, %cst_12 [1] : vector<65x32xf32> to vector<65xf32>
    %11 = vector.shape_cast %10 : vector<65xf32> to vector<65x1xf32>
    %cst_13 = arith.constant 3.200000e+01 : f32
    %12 = vector.broadcast %cst_13 : f32 to vector<65x1xf32>
    %13 = arith.divf %11, %12 : vector<65x1xf32>
    %14 = vector.broadcast %13 : vector<65x1xf32> to vector<65x32xf32>
    %15 = arith.subf %5, %14 : vector<65x32xf32>
    %16 = arith.mulf %15, %15 : vector<65x32xf32>
    %cst_14 = arith.constant dense<0.000000e+00> : vector<65xf32>
    %17 = vector.multi_reduction <add>, %16, %cst_14 [1] : vector<65x32xf32> to vector<65xf32>
    %18 = vector.shape_cast %17 : vector<65xf32> to vector<65x1xf32>
    %cst_15 = arith.constant 3.200000e+01 : f32
    %19 = vector.broadcast %cst_15 : f32 to vector<65x1xf32>
    %20 = arith.divf %18, %19 : vector<65x1xf32>
    %21 = vector.broadcast %13 : vector<65x1xf32> to vector<65x32xf32>
    %22 = arith.subf %5, %21 : vector<65x32xf32>
    %cst_16 = arith.constant 9.99999974E-6 : f32
    %23 = vector.broadcast %cst_16 : f32 to vector<65x1xf32>
    %24 = arith.addf %20, %23 : vector<65x1xf32>
    %25 = math.rsqrt %24 : vector<65x1xf32>
    %26 = vector.broadcast %25 : vector<65x1xf32> to vector<65x32xf32>
    %27 = arith.mulf %22, %26 : vector<65x32xf32>
    %28 = vector.broadcast %7 : vector<1x32xf32> to vector<65x32xf32>
    %29 = arith.mulf %27, %28 : vector<65x32xf32>
    %30 = vector.broadcast %9 : vector<1x32xf32> to vector<65x32xf32>
    %31 = arith.addf %29, %30 : vector<65x32xf32>
    %c0_17 = arith.constant 0 : index
    %c0_18 = arith.constant 0 : index
    %c0_19 = arith.constant 0 : index
    %32 = vector.load %arg6[%c0_17, %c0_18, %c0_19] : memref<2x32x96xf32, #tpu.memory_space<vmem>>, vector<1x32x96xf32>
    %33 = vector.shape_cast %32 : vector<1x32x96xf32> to vector<32x96xf32>
    %cst_20 = arith.constant dense<0.000000e+00> : vector<65x96xf32>
    %34 = tpu.matmul %31, %33, %cst_20 {dimension_numbers = #tpu.dot_dimension_numbers<[1], [0], [0], [1], [0, 0, 1, 1], [], []>} : vector<65x32xf32>, vector<32x96xf32>, vector<65x96xf32> -> vector<65x96xf32>
    %c0_21 = arith.constant 0 : index
    %c0_22 = arith.constant 0 : index
    %c0_23 = arith.constant 0 : index
    %35 = vector.load %arg7[%c0_21, %c0_22, %c0_23] : memref<2x32x32xf32, #tpu.memory_space<vmem>>, vector<1x32x32xf32>
    %36 = vector.shape_cast %35 : vector<1x32x32xf32> to vector<32x32xf32>
    %37 = vector.extract_strided_slice %34 {offsets = [0, 0], sizes = [65, 8], strides = [1, 1]} : vector<65x96xf32> to vector<65x8xf32>
    %38 = vector.extract_strided_slice %34 {offsets = [0, 32], sizes = [65, 8], strides = [1, 1]} : vector<65x96xf32> to vector<65x8xf32>
    %39 = vector.extract_strided_slice %34 {offsets = [0, 64], sizes = [65, 8], strides = [1, 1]} : vector<65x96xf32> to vector<65x8xf32>
    %cst_24 = arith.constant dense<0.000000e+00> : vector<65x65xf32>
    %40 = tpu.matmul %37, %38, %cst_24 {dimension_numbers = #tpu.dot_dimension_numbers<[1], [1], [0], [0], [0, 0, 1, 0], [], []>} : vector<65x8xf32>, vector<65x8xf32>, vector<65x65xf32> -> vector<65x65xf32>
    %cst_25 = arith.constant dense<0xFF800000> : vector<65xf32>
    %41 = vector.multi_reduction <maximumf>, %40, %cst_25 [1] : vector<65x65xf32> to vector<65xf32>
    %42 = vector.shape_cast %41 : vector<65xf32> to vector<65x1xf32>
    %43 = vector.broadcast %42 : vector<65x1xf32> to vector<65x65xf32>
    %44 = arith.subf %40, %43 : vector<65x65xf32>
    %45 = math.exp %44 : vector<65x65xf32>
    %cst_26 = arith.constant dense<0.000000e+00> : vector<65xf32>
    %46 = vector.multi_reduction <add>, %45, %cst_26 [1] : vector<65x65xf32> to vector<65xf32>
    %47 = vector.shape_cast %46 : vector<65xf32> to vector<65x1xf32>
    %48 = tpu.reciprocal %47 {approx = true} : vector<65x1xf32> -> vector<65x1xf32>
    %49 = vector.broadcast %48 : vector<65x1xf32> to vector<65x65xf32>
    %50 = arith.mulf %45, %49 : vector<65x65xf32>
    %cst_27 = arith.constant dense<0.000000e+00> : vector<65x8xf32>
    %51 = tpu.matmul %50, %39, %cst_27 {dimension_numbers = #tpu.dot_dimension_numbers<[1], [0], [0], [1], [0, 0, 1, 1], [], []>} : vector<65x65xf32>, vector<65x8xf32>, vector<65x8xf32> -> vector<65x8xf32>
    %52 = vector.extract_strided_slice %36 {offsets = [0, 0], sizes = [8, 32], strides = [1, 1]} : vector<32x32xf32> to vector<8x32xf32>
    %cst_28 = arith.constant dense<0.000000e+00> : vector<65x32xf32>
    %53 = tpu.matmul %51, %52, %cst_28 {dimension_numbers = #tpu.dot_dimension_numbers<[1], [0], [0], [1], [0, 0, 1, 1], [], []>} : vector<65x8xf32>, vector<8x32xf32>, vector<65x32xf32> -> vector<65x32xf32>
    %54 = vector.extract_strided_slice %34 {offsets = [0, 8], sizes = [65, 8], strides = [1, 1]} : vector<65x96xf32> to vector<65x8xf32>
    %55 = vector.extract_strided_slice %34 {offsets = [0, 40], sizes = [65, 8], strides = [1, 1]} : vector<65x96xf32> to vector<65x8xf32>
    %56 = vector.extract_strided_slice %34 {offsets = [0, 72], sizes = [65, 8], strides = [1, 1]} : vector<65x96xf32> to vector<65x8xf32>
    %cst_29 = arith.constant dense<0.000000e+00> : vector<65x65xf32>
    %57 = tpu.matmul %54, %55, %cst_29 {dimension_numbers = #tpu.dot_dimension_numbers<[1], [1], [0], [0], [0, 0, 1, 0], [], []>} : vector<65x8xf32>, vector<65x8xf32>, vector<65x65xf32> -> vector<65x65xf32>
    %cst_30 = arith.constant dense<0xFF800000> : vector<65xf32>
    %58 = vector.multi_reduction <maximumf>, %57, %cst_30 [1] : vector<65x65xf32> to vector<65xf32>
    %59 = vector.shape_cast %58 : vector<65xf32> to vector<65x1xf32>
    %60 = vector.broadcast %59 : vector<65x1xf32> to vector<65x65xf32>
    %61 = arith.subf %57, %60 : vector<65x65xf32>
    %62 = math.exp %61 : vector<65x65xf32>
    %cst_31 = arith.constant dense<0.000000e+00> : vector<65xf32>
    %63 = vector.multi_reduction <add>, %62, %cst_31 [1] : vector<65x65xf32> to vector<65xf32>
    %64 = vector.shape_cast %63 : vector<65xf32> to vector<65x1xf32>
    %65 = tpu.reciprocal %64 {approx = true} : vector<65x1xf32> -> vector<65x1xf32>
    %66 = vector.broadcast %65 : vector<65x1xf32> to vector<65x65xf32>
    %67 = arith.mulf %62, %66 : vector<65x65xf32>
    %cst_32 = arith.constant dense<0.000000e+00> : vector<65x8xf32>
    %68 = tpu.matmul %67, %56, %cst_32 {dimension_numbers = #tpu.dot_dimension_numbers<[1], [0], [0], [1], [0, 0, 1, 1], [], []>} : vector<65x65xf32>, vector<65x8xf32>, vector<65x8xf32> -> vector<65x8xf32>
    %69 = vector.extract_strided_slice %36 {offsets = [8, 0], sizes = [8, 32], strides = [1, 1]} : vector<32x32xf32> to vector<8x32xf32>
    %cst_33 = arith.constant dense<0.000000e+00> : vector<65x32xf32>
    %70 = tpu.matmul %68, %69, %cst_33 {dimension_numbers = #tpu.dot_dimension_numbers<[1], [0], [0], [1], [0, 0, 1, 1], [], []>} : vector<65x8xf32>, vector<8x32xf32>, vector<65x32xf32> -> vector<65x32xf32>
    %71 = arith.addf %53, %70 : vector<65x32xf32>
    %72 = vector.extract_strided_slice %34 {offsets = [0, 16], sizes = [65, 8], strides = [1, 1]} : vector<65x96xf32> to vector<65x8xf32>
    %73 = vector.extract_strided_slice %34 {offsets = [0, 48], sizes = [65, 8], strides = [1, 1]} : vector<65x96xf32> to vector<65x8xf32>
    %74 = vector.extract_strided_slice %34 {offsets = [0, 80], sizes = [65, 8], strides = [1, 1]} : vector<65x96xf32> to vector<65x8xf32>
    %cst_34 = arith.constant dense<0.000000e+00> : vector<65x65xf32>
    %75 = tpu.matmul %72, %73, %cst_34 {dimension_numbers = #tpu.dot_dimension_numbers<[1], [1], [0], [0], [0, 0, 1, 0], [], []>} : vector<65x8xf32>, vector<65x8xf32>, vector<65x65xf32> -> vector<65x65xf32>
    %cst_35 = arith.constant dense<0xFF800000> : vector<65xf32>
    %76 = vector.multi_reduction <maximumf>, %75, %cst_35 [1] : vector<65x65xf32> to vector<65xf32>
    %77 = vector.shape_cast %76 : vector<65xf32> to vector<65x1xf32>
    %78 = vector.broadcast %77 : vector<65x1xf32> to vector<65x65xf32>
    %79 = arith.subf %75, %78 : vector<65x65xf32>
    %80 = math.exp %79 : vector<65x65xf32>
    %cst_36 = arith.constant dense<0.000000e+00> : vector<65xf32>
    %81 = vector.multi_reduction <add>, %80, %cst_36 [1] : vector<65x65xf32> to vector<65xf32>
    %82 = vector.shape_cast %81 : vector<65xf32> to vector<65x1xf32>
    %83 = tpu.reciprocal %82 {approx = true} : vector<65x1xf32> -> vector<65x1xf32>
    %84 = vector.broadcast %83 : vector<65x1xf32> to vector<65x65xf32>
    %85 = arith.mulf %80, %84 : vector<65x65xf32>
    %cst_37 = arith.constant dense<0.000000e+00> : vector<65x8xf32>
    %86 = tpu.matmul %85, %74, %cst_37 {dimension_numbers = #tpu.dot_dimension_numbers<[1], [0], [0], [1], [0, 0, 1, 1], [], []>} : vector<65x65xf32>, vector<65x8xf32>, vector<65x8xf32> -> vector<65x8xf32>
    %87 = vector.extract_strided_slice %36 {offsets = [16, 0], sizes = [8, 32], strides = [1, 1]} : vector<32x32xf32> to vector<8x32xf32>
    %cst_38 = arith.constant dense<0.000000e+00> : vector<65x32xf32>
    %88 = tpu.matmul %86, %87, %cst_38 {dimension_numbers = #tpu.dot_dimension_numbers<[1], [0], [0], [1], [0, 0, 1, 1], [], []>} : vector<65x8xf32>, vector<8x32xf32>, vector<65x32xf32> -> vector<65x32xf32>
    %89 = arith.addf %71, %88 : vector<65x32xf32>
    %90 = vector.extract_strided_slice %34 {offsets = [0, 24], sizes = [65, 8], strides = [1, 1]} : vector<65x96xf32> to vector<65x8xf32>
    %91 = vector.extract_strided_slice %34 {offsets = [0, 56], sizes = [65, 8], strides = [1, 1]} : vector<65x96xf32> to vector<65x8xf32>
    %92 = vector.extract_strided_slice %34 {offsets = [0, 88], sizes = [65, 8], strides = [1, 1]} : vector<65x96xf32> to vector<65x8xf32>
    %cst_39 = arith.constant dense<0.000000e+00> : vector<65x65xf32>
    %93 = tpu.matmul %90, %91, %cst_39 {dimension_numbers = #tpu.dot_dimension_numbers<[1], [1], [0], [0], [0, 0, 1, 0], [], []>} : vector<65x8xf32>, vector<65x8xf32>, vector<65x65xf32> -> vector<65x65xf32>
    %cst_40 = arith.constant dense<0xFF800000> : vector<65xf32>
    %94 = vector.multi_reduction <maximumf>, %93, %cst_40 [1] : vector<65x65xf32> to vector<65xf32>
    %95 = vector.shape_cast %94 : vector<65xf32> to vector<65x1xf32>
    %96 = vector.broadcast %95 : vector<65x1xf32> to vector<65x65xf32>
    %97 = arith.subf %93, %96 : vector<65x65xf32>
    %98 = math.exp %97 : vector<65x65xf32>
    %cst_41 = arith.constant dense<0.000000e+00> : vector<65xf32>
    %99 = vector.multi_reduction <add>, %98, %cst_41 [1] : vector<65x65xf32> to vector<65xf32>
    %100 = vector.shape_cast %99 : vector<65xf32> to vector<65x1xf32>
    %101 = tpu.reciprocal %100 {approx = true} : vector<65x1xf32> -> vector<65x1xf32>
    %102 = vector.broadcast %101 : vector<65x1xf32> to vector<65x65xf32>
    %103 = arith.mulf %98, %102 : vector<65x65xf32>
    %cst_42 = arith.constant dense<0.000000e+00> : vector<65x8xf32>
    %104 = tpu.matmul %103, %92, %cst_42 {dimension_numbers = #tpu.dot_dimension_numbers<[1], [0], [0], [1], [0, 0, 1, 1], [], []>} : vector<65x65xf32>, vector<65x8xf32>, vector<65x8xf32> -> vector<65x8xf32>
    %105 = vector.extract_strided_slice %36 {offsets = [24, 0], sizes = [8, 32], strides = [1, 1]} : vector<32x32xf32> to vector<8x32xf32>
    %cst_43 = arith.constant dense<0.000000e+00> : vector<65x32xf32>
    %106 = tpu.matmul %104, %105, %cst_43 {dimension_numbers = #tpu.dot_dimension_numbers<[1], [0], [0], [1], [0, 0, 1, 1], [], []>} : vector<65x8xf32>, vector<8x32xf32>, vector<65x32xf32> -> vector<65x32xf32>
    %107 = arith.addf %89, %106 : vector<65x32xf32>
    %108 = arith.addf %5, %107 : vector<65x32xf32>
    %c0_44 = arith.constant 0 : index
    %c0_45 = arith.constant 0 : index
    %c0_46 = arith.constant 0 : index
    %109 = vector.load %arg8[%c0_44, %c0_45, %c0_46] : memref<2x1x32xf32, #tpu.memory_space<vmem>>, vector<1x1x32xf32>
    %110 = vector.shape_cast %109 : vector<1x1x32xf32> to vector<1x32xf32>
    %111 = vector.broadcast %110 : vector<1x32xf32> to vector<65x32xf32>
    %112 = arith.addf %108, %111 : vector<65x32xf32>
    %c0_47 = arith.constant 0 : index
    %c0_48 = arith.constant 0 : index
    %c0_49 = arith.constant 0 : index
    %113 = vector.load %arg9[%c0_47, %c0_48, %c0_49] : memref<2x1x32xf32, #tpu.memory_space<vmem>>, vector<1x1x32xf32>
    %114 = vector.shape_cast %113 : vector<1x1x32xf32> to vector<1x32xf32>
    %c0_50 = arith.constant 0 : index
    %c0_51 = arith.constant 0 : index
    %c0_52 = arith.constant 0 : index
    %115 = vector.load %arg10[%c0_50, %c0_51, %c0_52] : memref<2x1x32xf32, #tpu.memory_space<vmem>>, vector<1x1x32xf32>
    %116 = vector.shape_cast %115 : vector<1x1x32xf32> to vector<1x32xf32>
    %cst_53 = arith.constant dense<0.000000e+00> : vector<65xf32>
    %117 = vector.multi_reduction <add>, %112, %cst_53 [1] : vector<65x32xf32> to vector<65xf32>
    %118 = vector.shape_cast %117 : vector<65xf32> to vector<65x1xf32>
    %cst_54 = arith.constant 3.200000e+01 : f32
    %119 = vector.broadcast %cst_54 : f32 to vector<65x1xf32>
    %120 = arith.divf %118, %119 : vector<65x1xf32>
    %121 = vector.broadcast %120 : vector<65x1xf32> to vector<65x32xf32>
    %122 = arith.subf %112, %121 : vector<65x32xf32>
    %123 = arith.mulf %122, %122 : vector<65x32xf32>
    %cst_55 = arith.constant dense<0.000000e+00> : vector<65xf32>
    %124 = vector.multi_reduction <add>, %123, %cst_55 [1] : vector<65x32xf32> to vector<65xf32>
    %125 = vector.shape_cast %124 : vector<65xf32> to vector<65x1xf32>
    %cst_56 = arith.constant 3.200000e+01 : f32
    %126 = vector.broadcast %cst_56 : f32 to vector<65x1xf32>
    %127 = arith.divf %125, %126 : vector<65x1xf32>
    %128 = vector.broadcast %120 : vector<65x1xf32> to vector<65x32xf32>
    %129 = arith.subf %112, %128 : vector<65x32xf32>
    %cst_57 = arith.constant 9.99999974E-6 : f32
    %130 = vector.broadcast %cst_57 : f32 to vector<65x1xf32>
    %131 = arith.addf %127, %130 : vector<65x1xf32>
    %132 = math.rsqrt %131 : vector<65x1xf32>
    %133 = vector.broadcast %132 : vector<65x1xf32> to vector<65x32xf32>
    %134 = arith.mulf %129, %133 : vector<65x32xf32>
    %135 = vector.broadcast %114 : vector<1x32xf32> to vector<65x32xf32>
    %136 = arith.mulf %134, %135 : vector<65x32xf32>
    %137 = vector.broadcast %116 : vector<1x32xf32> to vector<65x32xf32>
    %138 = arith.addf %136, %137 : vector<65x32xf32>
    %c0_58 = arith.constant 0 : index
    %c0_59 = arith.constant 0 : index
    %c0_60 = arith.constant 0 : index
    %139 = vector.load %arg11[%c0_58, %c0_59, %c0_60] : memref<2x32x128xf32, #tpu.memory_space<vmem>>, vector<1x32x128xf32>
    %140 = vector.shape_cast %139 : vector<1x32x128xf32> to vector<32x128xf32>
    %cst_61 = arith.constant dense<0.000000e+00> : vector<65x128xf32>
    %141 = tpu.matmul %138, %140, %cst_61 {dimension_numbers = #tpu.dot_dimension_numbers<[1], [0], [0], [1], [0, 0, 1, 1], [], []>} : vector<65x32xf32>, vector<32x128xf32>, vector<65x128xf32> -> vector<65x128xf32>
    %c0_62 = arith.constant 0 : index
    %c0_63 = arith.constant 0 : index
    %c0_64 = arith.constant 0 : index
    %142 = vector.load %arg12[%c0_62, %c0_63, %c0_64] : memref<2x1x128xf32, #tpu.memory_space<vmem>>, vector<1x1x128xf32>
    %143 = vector.shape_cast %142 : vector<1x1x128xf32> to vector<1x128xf32>
    %144 = vector.broadcast %143 : vector<1x128xf32> to vector<65x128xf32>
    %145 = arith.addf %141, %144 : vector<65x128xf32>
    %cst_65 = arith.constant 0.000000e+00 : f32
    %146 = vector.broadcast %cst_65 : f32 to vector<65x128xf32>
    %147 = arith.maximumf %145, %146 : vector<65x128xf32>
    %c0_66 = arith.constant 0 : index
    %c0_67 = arith.constant 0 : index
    %c0_68 = arith.constant 0 : index
    %148 = vector.load %arg13[%c0_66, %c0_67, %c0_68] : memref<2x128x32xf32, #tpu.memory_space<vmem>>, vector<1x128x32xf32>
    %149 = vector.shape_cast %148 : vector<1x128x32xf32> to vector<128x32xf32>
    %cst_69 = arith.constant dense<0.000000e+00> : vector<65x32xf32>
    %150 = tpu.matmul %147, %149, %cst_69 {dimension_numbers = #tpu.dot_dimension_numbers<[1], [0], [0], [1], [0, 0, 1, 1], [], []>} : vector<65x128xf32>, vector<128x32xf32>, vector<65x32xf32> -> vector<65x32xf32>
    %151 = arith.addf %112, %150 : vector<65x32xf32>
    %c0_70 = arith.constant 0 : index
    %c0_71 = arith.constant 0 : index
    %c0_72 = arith.constant 0 : index
    %152 = vector.load %arg14[%c0_70, %c0_71, %c0_72] : memref<2x1x32xf32, #tpu.memory_space<vmem>>, vector<1x1x32xf32>
    %153 = vector.shape_cast %152 : vector<1x1x32xf32> to vector<1x32xf32>
    %154 = vector.broadcast %153 : vector<1x32xf32> to vector<65x32xf32>
    %155 = arith.addf %151, %154 : vector<65x32xf32>
    %c1 = arith.constant 1 : index
    %c0_73 = arith.constant 0 : index
    %c0_74 = arith.constant 0 : index
    %156 = vector.load %arg4[%c1, %c0_73, %c0_74] : memref<2x1x32xf32, #tpu.memory_space<vmem>>, vector<1x1x32xf32>
    %157 = vector.shape_cast %156 : vector<1x1x32xf32> to vector<1x32xf32>
    %c1_75 = arith.constant 1 : index
    %c0_76 = arith.constant 0 : index
    %c0_77 = arith.constant 0 : index
    %158 = vector.load %arg5[%c1_75, %c0_76, %c0_77] : memref<2x1x32xf32, #tpu.memory_space<vmem>>, vector<1x1x32xf32>
    %159 = vector.shape_cast %158 : vector<1x1x32xf32> to vector<1x32xf32>
    %cst_78 = arith.constant dense<0.000000e+00> : vector<65xf32>
    %160 = vector.multi_reduction <add>, %155, %cst_78 [1] : vector<65x32xf32> to vector<65xf32>
    %161 = vector.shape_cast %160 : vector<65xf32> to vector<65x1xf32>
    %cst_79 = arith.constant 3.200000e+01 : f32
    %162 = vector.broadcast %cst_79 : f32 to vector<65x1xf32>
    %163 = arith.divf %161, %162 : vector<65x1xf32>
    %164 = vector.broadcast %163 : vector<65x1xf32> to vector<65x32xf32>
    %165 = arith.subf %155, %164 : vector<65x32xf32>
    %166 = arith.mulf %165, %165 : vector<65x32xf32>
    %cst_80 = arith.constant dense<0.000000e+00> : vector<65xf32>
    %167 = vector.multi_reduction <add>, %166, %cst_80 [1] : vector<65x32xf32> to vector<65xf32>
    %168 = vector.shape_cast %167 : vector<65xf32> to vector<65x1xf32>
    %cst_81 = arith.constant 3.200000e+01 : f32
    %169 = vector.broadcast %cst_81 : f32 to vector<65x1xf32>
    %170 = arith.divf %168, %169 : vector<65x1xf32>
    %171 = vector.broadcast %163 : vector<65x1xf32> to vector<65x32xf32>
    %172 = arith.subf %155, %171 : vector<65x32xf32>
    %cst_82 = arith.constant 9.99999974E-6 : f32
    %173 = vector.broadcast %cst_82 : f32 to vector<65x1xf32>
    %174 = arith.addf %170, %173 : vector<65x1xf32>
    %175 = math.rsqrt %174 : vector<65x1xf32>
    %176 = vector.broadcast %175 : vector<65x1xf32> to vector<65x32xf32>
    %177 = arith.mulf %172, %176 : vector<65x32xf32>
    %178 = vector.broadcast %157 : vector<1x32xf32> to vector<65x32xf32>
    %179 = arith.mulf %177, %178 : vector<65x32xf32>
    %180 = vector.broadcast %159 : vector<1x32xf32> to vector<65x32xf32>
    %181 = arith.addf %179, %180 : vector<65x32xf32>
    %c1_83 = arith.constant 1 : index
    %c0_84 = arith.constant 0 : index
    %c0_85 = arith.constant 0 : index
    %182 = vector.load %arg6[%c1_83, %c0_84, %c0_85] : memref<2x32x96xf32, #tpu.memory_space<vmem>>, vector<1x32x96xf32>
    %183 = vector.shape_cast %182 : vector<1x32x96xf32> to vector<32x96xf32>
    %cst_86 = arith.constant dense<0.000000e+00> : vector<65x96xf32>
    %184 = tpu.matmul %181, %183, %cst_86 {dimension_numbers = #tpu.dot_dimension_numbers<[1], [0], [0], [1], [0, 0, 1, 1], [], []>} : vector<65x32xf32>, vector<32x96xf32>, vector<65x96xf32> -> vector<65x96xf32>
    %c1_87 = arith.constant 1 : index
    %c0_88 = arith.constant 0 : index
    %c0_89 = arith.constant 0 : index
    %185 = vector.load %arg7[%c1_87, %c0_88, %c0_89] : memref<2x32x32xf32, #tpu.memory_space<vmem>>, vector<1x32x32xf32>
    %186 = vector.shape_cast %185 : vector<1x32x32xf32> to vector<32x32xf32>
    %187 = vector.extract_strided_slice %184 {offsets = [0, 0], sizes = [65, 8], strides = [1, 1]} : vector<65x96xf32> to vector<65x8xf32>
    %188 = vector.extract_strided_slice %184 {offsets = [0, 32], sizes = [65, 8], strides = [1, 1]} : vector<65x96xf32> to vector<65x8xf32>
    %189 = vector.extract_strided_slice %184 {offsets = [0, 64], sizes = [65, 8], strides = [1, 1]} : vector<65x96xf32> to vector<65x8xf32>
    %cst_90 = arith.constant dense<0.000000e+00> : vector<65x65xf32>
    %190 = tpu.matmul %187, %188, %cst_90 {dimension_numbers = #tpu.dot_dimension_numbers<[1], [1], [0], [0], [0, 0, 1, 0], [], []>} : vector<65x8xf32>, vector<65x8xf32>, vector<65x65xf32> -> vector<65x65xf32>
    %cst_91 = arith.constant dense<0xFF800000> : vector<65xf32>
    %191 = vector.multi_reduction <maximumf>, %190, %cst_91 [1] : vector<65x65xf32> to vector<65xf32>
    %192 = vector.shape_cast %191 : vector<65xf32> to vector<65x1xf32>
    %193 = vector.broadcast %192 : vector<65x1xf32> to vector<65x65xf32>
    %194 = arith.subf %190, %193 : vector<65x65xf32>
    %195 = math.exp %194 : vector<65x65xf32>
    %cst_92 = arith.constant dense<0.000000e+00> : vector<65xf32>
    %196 = vector.multi_reduction <add>, %195, %cst_92 [1] : vector<65x65xf32> to vector<65xf32>
    %197 = vector.shape_cast %196 : vector<65xf32> to vector<65x1xf32>
    %198 = tpu.reciprocal %197 {approx = true} : vector<65x1xf32> -> vector<65x1xf32>
    %199 = vector.broadcast %198 : vector<65x1xf32> to vector<65x65xf32>
    %200 = arith.mulf %195, %199 : vector<65x65xf32>
    %cst_93 = arith.constant dense<0.000000e+00> : vector<65x8xf32>
    %201 = tpu.matmul %200, %189, %cst_93 {dimension_numbers = #tpu.dot_dimension_numbers<[1], [0], [0], [1], [0, 0, 1, 1], [], []>} : vector<65x65xf32>, vector<65x8xf32>, vector<65x8xf32> -> vector<65x8xf32>
    %202 = vector.extract_strided_slice %186 {offsets = [0, 0], sizes = [8, 32], strides = [1, 1]} : vector<32x32xf32> to vector<8x32xf32>
    %cst_94 = arith.constant dense<0.000000e+00> : vector<65x32xf32>
    %203 = tpu.matmul %201, %202, %cst_94 {dimension_numbers = #tpu.dot_dimension_numbers<[1], [0], [0], [1], [0, 0, 1, 1], [], []>} : vector<65x8xf32>, vector<8x32xf32>, vector<65x32xf32> -> vector<65x32xf32>
    %204 = vector.extract_strided_slice %184 {offsets = [0, 8], sizes = [65, 8], strides = [1, 1]} : vector<65x96xf32> to vector<65x8xf32>
    %205 = vector.extract_strided_slice %184 {offsets = [0, 40], sizes = [65, 8], strides = [1, 1]} : vector<65x96xf32> to vector<65x8xf32>
    %206 = vector.extract_strided_slice %184 {offsets = [0, 72], sizes = [65, 8], strides = [1, 1]} : vector<65x96xf32> to vector<65x8xf32>
    %cst_95 = arith.constant dense<0.000000e+00> : vector<65x65xf32>
    %207 = tpu.matmul %204, %205, %cst_95 {dimension_numbers = #tpu.dot_dimension_numbers<[1], [1], [0], [0], [0, 0, 1, 0], [], []>} : vector<65x8xf32>, vector<65x8xf32>, vector<65x65xf32> -> vector<65x65xf32>
    %cst_96 = arith.constant dense<0xFF800000> : vector<65xf32>
    %208 = vector.multi_reduction <maximumf>, %207, %cst_96 [1] : vector<65x65xf32> to vector<65xf32>
    %209 = vector.shape_cast %208 : vector<65xf32> to vector<65x1xf32>
    %210 = vector.broadcast %209 : vector<65x1xf32> to vector<65x65xf32>
    %211 = arith.subf %207, %210 : vector<65x65xf32>
    %212 = math.exp %211 : vector<65x65xf32>
    %cst_97 = arith.constant dense<0.000000e+00> : vector<65xf32>
    %213 = vector.multi_reduction <add>, %212, %cst_97 [1] : vector<65x65xf32> to vector<65xf32>
    %214 = vector.shape_cast %213 : vector<65xf32> to vector<65x1xf32>
    %215 = tpu.reciprocal %214 {approx = true} : vector<65x1xf32> -> vector<65x1xf32>
    %216 = vector.broadcast %215 : vector<65x1xf32> to vector<65x65xf32>
    %217 = arith.mulf %212, %216 : vector<65x65xf32>
    %cst_98 = arith.constant dense<0.000000e+00> : vector<65x8xf32>
    %218 = tpu.matmul %217, %206, %cst_98 {dimension_numbers = #tpu.dot_dimension_numbers<[1], [0], [0], [1], [0, 0, 1, 1], [], []>} : vector<65x65xf32>, vector<65x8xf32>, vector<65x8xf32> -> vector<65x8xf32>
    %219 = vector.extract_strided_slice %186 {offsets = [8, 0], sizes = [8, 32], strides = [1, 1]} : vector<32x32xf32> to vector<8x32xf32>
    %cst_99 = arith.constant dense<0.000000e+00> : vector<65x32xf32>
    %220 = tpu.matmul %218, %219, %cst_99 {dimension_numbers = #tpu.dot_dimension_numbers<[1], [0], [0], [1], [0, 0, 1, 1], [], []>} : vector<65x8xf32>, vector<8x32xf32>, vector<65x32xf32> -> vector<65x32xf32>
    %221 = arith.addf %203, %220 : vector<65x32xf32>
    %222 = vector.extract_strided_slice %184 {offsets = [0, 16], sizes = [65, 8], strides = [1, 1]} : vector<65x96xf32> to vector<65x8xf32>
    %223 = vector.extract_strided_slice %184 {offsets = [0, 48], sizes = [65, 8], strides = [1, 1]} : vector<65x96xf32> to vector<65x8xf32>
    %224 = vector.extract_strided_slice %184 {offsets = [0, 80], sizes = [65, 8], strides = [1, 1]} : vector<65x96xf32> to vector<65x8xf32>
    %cst_100 = arith.constant dense<0.000000e+00> : vector<65x65xf32>
    %225 = tpu.matmul %222, %223, %cst_100 {dimension_numbers = #tpu.dot_dimension_numbers<[1], [1], [0], [0], [0, 0, 1, 0], [], []>} : vector<65x8xf32>, vector<65x8xf32>, vector<65x65xf32> -> vector<65x65xf32>
    %cst_101 = arith.constant dense<0xFF800000> : vector<65xf32>
    %226 = vector.multi_reduction <maximumf>, %225, %cst_101 [1] : vector<65x65xf32> to vector<65xf32>
    %227 = vector.shape_cast %226 : vector<65xf32> to vector<65x1xf32>
    %228 = vector.broadcast %227 : vector<65x1xf32> to vector<65x65xf32>
    %229 = arith.subf %225, %228 : vector<65x65xf32>
    %230 = math.exp %229 : vector<65x65xf32>
    %cst_102 = arith.constant dense<0.000000e+00> : vector<65xf32>
    %231 = vector.multi_reduction <add>, %230, %cst_102 [1] : vector<65x65xf32> to vector<65xf32>
    %232 = vector.shape_cast %231 : vector<65xf32> to vector<65x1xf32>
    %233 = tpu.reciprocal %232 {approx = true} : vector<65x1xf32> -> vector<65x1xf32>
    %234 = vector.broadcast %233 : vector<65x1xf32> to vector<65x65xf32>
    %235 = arith.mulf %230, %234 : vector<65x65xf32>
    %cst_103 = arith.constant dense<0.000000e+00> : vector<65x8xf32>
    %236 = tpu.matmul %235, %224, %cst_103 {dimension_numbers = #tpu.dot_dimension_numbers<[1], [0], [0], [1], [0, 0, 1, 1], [], []>} : vector<65x65xf32>, vector<65x8xf32>, vector<65x8xf32> -> vector<65x8xf32>
    %237 = vector.extract_strided_slice %186 {offsets = [16, 0], sizes = [8, 32], strides = [1, 1]} : vector<32x32xf32> to vector<8x32xf32>
    %cst_104 = arith.constant dense<0.000000e+00> : vector<65x32xf32>
    %238 = tpu.matmul %236, %237, %cst_104 {dimension_numbers = #tpu.dot_dimension_numbers<[1], [0], [0], [1], [0, 0, 1, 1], [], []>} : vector<65x8xf32>, vector<8x32xf32>, vector<65x32xf32> -> vector<65x32xf32>
    %239 = arith.addf %221, %238 : vector<65x32xf32>
    %240 = vector.extract_strided_slice %184 {offsets = [0, 24], sizes = [65, 8], strides = [1, 1]} : vector<65x96xf32> to vector<65x8xf32>
    %241 = vector.extract_strided_slice %184 {offsets = [0, 56], sizes = [65, 8], strides = [1, 1]} : vector<65x96xf32> to vector<65x8xf32>
    %242 = vector.extract_strided_slice %184 {offsets = [0, 88], sizes = [65, 8], strides = [1, 1]} : vector<65x96xf32> to vector<65x8xf32>
    %cst_105 = arith.constant dense<0.000000e+00> : vector<65x65xf32>
    %243 = tpu.matmul %240, %241, %cst_105 {dimension_numbers = #tpu.dot_dimension_numbers<[1], [1], [0], [0], [0, 0, 1, 0], [], []>} : vector<65x8xf32>, vector<65x8xf32>, vector<65x65xf32> -> vector<65x65xf32>
    %cst_106 = arith.constant dense<0xFF800000> : vector<65xf32>
    %244 = vector.multi_reduction <maximumf>, %243, %cst_106 [1] : vector<65x65xf32> to vector<65xf32>
    %245 = vector.shape_cast %244 : vector<65xf32> to vector<65x1xf32>
    %246 = vector.broadcast %245 : vector<65x1xf32> to vector<65x65xf32>
    %247 = arith.subf %243, %246 : vector<65x65xf32>
    %248 = math.exp %247 : vector<65x65xf32>
    %cst_107 = arith.constant dense<0.000000e+00> : vector<65xf32>
    %249 = vector.multi_reduction <add>, %248, %cst_107 [1] : vector<65x65xf32> to vector<65xf32>
    %250 = vector.shape_cast %249 : vector<65xf32> to vector<65x1xf32>
    %251 = tpu.reciprocal %250 {approx = true} : vector<65x1xf32> -> vector<65x1xf32>
    %252 = vector.broadcast %251 : vector<65x1xf32> to vector<65x65xf32>
    %253 = arith.mulf %248, %252 : vector<65x65xf32>
    %cst_108 = arith.constant dense<0.000000e+00> : vector<65x8xf32>
    %254 = tpu.matmul %253, %242, %cst_108 {dimension_numbers = #tpu.dot_dimension_numbers<[1], [0], [0], [1], [0, 0, 1, 1], [], []>} : vector<65x65xf32>, vector<65x8xf32>, vector<65x8xf32> -> vector<65x8xf32>
    %255 = vector.extract_strided_slice %186 {offsets = [24, 0], sizes = [8, 32], strides = [1, 1]} : vector<32x32xf32> to vector<8x32xf32>
    %cst_109 = arith.constant dense<0.000000e+00> : vector<65x32xf32>
    %256 = tpu.matmul %254, %255, %cst_109 {dimension_numbers = #tpu.dot_dimension_numbers<[1], [0], [0], [1], [0, 0, 1, 1], [], []>} : vector<65x8xf32>, vector<8x32xf32>, vector<65x32xf32> -> vector<65x32xf32>
    %257 = arith.addf %239, %256 : vector<65x32xf32>
    %258 = arith.addf %155, %257 : vector<65x32xf32>
    %c1_110 = arith.constant 1 : index
    %c0_111 = arith.constant 0 : index
    %c0_112 = arith.constant 0 : index
    %259 = vector.load %arg8[%c1_110, %c0_111, %c0_112] : memref<2x1x32xf32, #tpu.memory_space<vmem>>, vector<1x1x32xf32>
    %260 = vector.shape_cast %259 : vector<1x1x32xf32> to vector<1x32xf32>
    %261 = vector.broadcast %260 : vector<1x32xf32> to vector<65x32xf32>
    %262 = arith.addf %258, %261 : vector<65x32xf32>
    %c1_113 = arith.constant 1 : index
    %c0_114 = arith.constant 0 : index
    %c0_115 = arith.constant 0 : index
    %263 = vector.load %arg9[%c1_113, %c0_114, %c0_115] : memref<2x1x32xf32, #tpu.memory_space<vmem>>, vector<1x1x32xf32>
    %264 = vector.shape_cast %263 : vector<1x1x32xf32> to vector<1x32xf32>
    %c1_116 = arith.constant 1 : index
    %c0_117 = arith.constant 0 : index
    %c0_118 = arith.constant 0 : index
    %265 = vector.load %arg10[%c1_116, %c0_117, %c0_118] : memref<2x1x32xf32, #tpu.memory_space<vmem>>, vector<1x1x32xf32>
    %266 = vector.shape_cast %265 : vector<1x1x32xf32> to vector<1x32xf32>
    %cst_119 = arith.constant dense<0.000000e+00> : vector<65xf32>
    %267 = vector.multi_reduction <add>, %262, %cst_119 [1] : vector<65x32xf32> to vector<65xf32>
    %268 = vector.shape_cast %267 : vector<65xf32> to vector<65x1xf32>
    %cst_120 = arith.constant 3.200000e+01 : f32
    %269 = vector.broadcast %cst_120 : f32 to vector<65x1xf32>
    %270 = arith.divf %268, %269 : vector<65x1xf32>
    %271 = vector.broadcast %270 : vector<65x1xf32> to vector<65x32xf32>
    %272 = arith.subf %262, %271 : vector<65x32xf32>
    %273 = arith.mulf %272, %272 : vector<65x32xf32>
    %cst_121 = arith.constant dense<0.000000e+00> : vector<65xf32>
    %274 = vector.multi_reduction <add>, %273, %cst_121 [1] : vector<65x32xf32> to vector<65xf32>
    %275 = vector.shape_cast %274 : vector<65xf32> to vector<65x1xf32>
    %cst_122 = arith.constant 3.200000e+01 : f32
    %276 = vector.broadcast %cst_122 : f32 to vector<65x1xf32>
    %277 = arith.divf %275, %276 : vector<65x1xf32>
    %278 = vector.broadcast %270 : vector<65x1xf32> to vector<65x32xf32>
    %279 = arith.subf %262, %278 : vector<65x32xf32>
    %cst_123 = arith.constant 9.99999974E-6 : f32
    %280 = vector.broadcast %cst_123 : f32 to vector<65x1xf32>
    %281 = arith.addf %277, %280 : vector<65x1xf32>
    %282 = math.rsqrt %281 : vector<65x1xf32>
    %283 = vector.broadcast %282 : vector<65x1xf32> to vector<65x32xf32>
    %284 = arith.mulf %279, %283 : vector<65x32xf32>
    %285 = vector.broadcast %264 : vector<1x32xf32> to vector<65x32xf32>
    %286 = arith.mulf %284, %285 : vector<65x32xf32>
    %287 = vector.broadcast %266 : vector<1x32xf32> to vector<65x32xf32>
    %288 = arith.addf %286, %287 : vector<65x32xf32>
    %c1_124 = arith.constant 1 : index
    %c0_125 = arith.constant 0 : index
    %c0_126 = arith.constant 0 : index
    %289 = vector.load %arg11[%c1_124, %c0_125, %c0_126] : memref<2x32x128xf32, #tpu.memory_space<vmem>>, vector<1x32x128xf32>
    %290 = vector.shape_cast %289 : vector<1x32x128xf32> to vector<32x128xf32>
    %cst_127 = arith.constant dense<0.000000e+00> : vector<65x128xf32>
    %291 = tpu.matmul %288, %290, %cst_127 {dimension_numbers = #tpu.dot_dimension_numbers<[1], [0], [0], [1], [0, 0, 1, 1], [], []>} : vector<65x32xf32>, vector<32x128xf32>, vector<65x128xf32> -> vector<65x128xf32>
    %c1_128 = arith.constant 1 : index
    %c0_129 = arith.constant 0 : index
    %c0_130 = arith.constant 0 : index
    %292 = vector.load %arg12[%c1_128, %c0_129, %c0_130] : memref<2x1x128xf32, #tpu.memory_space<vmem>>, vector<1x1x128xf32>
    %293 = vector.shape_cast %292 : vector<1x1x128xf32> to vector<1x128xf32>
    %294 = vector.broadcast %293 : vector<1x128xf32> to vector<65x128xf32>
    %295 = arith.addf %291, %294 : vector<65x128xf32>
    %cst_131 = arith.constant 0.000000e+00 : f32
    %296 = vector.broadcast %cst_131 : f32 to vector<65x128xf32>
    %297 = arith.maximumf %295, %296 : vector<65x128xf32>
    %c1_132 = arith.constant 1 : index
    %c0_133 = arith.constant 0 : index
    %c0_134 = arith.constant 0 : index
    %298 = vector.load %arg13[%c1_132, %c0_133, %c0_134] : memref<2x128x32xf32, #tpu.memory_space<vmem>>, vector<1x128x32xf32>
    %299 = vector.shape_cast %298 : vector<1x128x32xf32> to vector<128x32xf32>
    %cst_135 = arith.constant dense<0.000000e+00> : vector<65x32xf32>
    %300 = tpu.matmul %297, %299, %cst_135 {dimension_numbers = #tpu.dot_dimension_numbers<[1], [0], [0], [1], [0, 0, 1, 1], [], []>} : vector<65x128xf32>, vector<128x32xf32>, vector<65x32xf32> -> vector<65x32xf32>
    %301 = arith.addf %262, %300 : vector<65x32xf32>
    %c1_136 = arith.constant 1 : index
    %c0_137 = arith.constant 0 : index
    %c0_138 = arith.constant 0 : index
    %302 = vector.load %arg14[%c1_136, %c0_137, %c0_138] : memref<2x1x32xf32, #tpu.memory_space<vmem>>, vector<1x1x32xf32>
    %303 = vector.shape_cast %302 : vector<1x1x32xf32> to vector<1x32xf32>
    %304 = vector.broadcast %303 : vector<1x32xf32> to vector<65x32xf32>
    %305 = arith.addf %301, %304 : vector<65x32xf32>
    %306 = vector.extract_strided_slice %305 {offsets = [0, 0], sizes = [1, 32], strides = [1, 1]} : vector<65x32xf32> to vector<1x32xf32>
    %c0_139 = arith.constant 0 : index
    %c0_140 = arith.constant 0 : index
    %307 = vector.load %arg15[%c0_139, %c0_140] : memref<32x128xf32, #tpu.memory_space<vmem>>, vector<32x128xf32>
    %cst_141 = arith.constant dense<0.000000e+00> : vector<1x128xf32>
    %308 = tpu.matmul %306, %307, %cst_141 {dimension_numbers = #tpu.dot_dimension_numbers<[1], [0], [0], [1], [0, 0, 1, 1], [], []>} : vector<1x32xf32>, vector<32x128xf32>, vector<1x128xf32> -> vector<1x128xf32>
    %c0_142 = arith.constant 0 : index
    %c0_143 = arith.constant 0 : index
    %309 = vector.load %arg16[%c0_142, %c0_143] : memref<1x128xf32, #tpu.memory_space<vmem>>, vector<1x128xf32>
    %310 = arith.addf %308, %309 : vector<1x128xf32>
    %cst_144 = arith.constant dense<0xFF800000> : vector<1xf32>
    %311 = vector.multi_reduction <maximumf>, %310, %cst_144 [1] : vector<1x128xf32> to vector<1xf32>
    %312 = vector.shape_cast %311 : vector<1xf32> to vector<1x1xf32>
    %313 = vector.broadcast %312 : vector<1x1xf32> to vector<1x128xf32>
    %314 = arith.subf %310, %313 : vector<1x128xf32>
    %315 = math.exp %314 : vector<1x128xf32>
    %cst_145 = arith.constant dense<0.000000e+00> : vector<1xf32>
    %316 = vector.multi_reduction <add>, %315, %cst_145 [1] : vector<1x128xf32> to vector<1xf32>
    %317 = vector.shape_cast %316 : vector<1xf32> to vector<1x1xf32>
    %318 = vector.broadcast %317 : vector<1x1xf32> to vector<1x128xf32>
    %319 = arith.divf %315, %318 : vector<1x128xf32>
    %c0_146 = arith.constant 0 : index
    %c0_147 = arith.constant 0 : index
    %c0_148 = arith.constant 0 : index
    %320 = vector.load %arg17[%c0_146, %c0_147, %c0_148] : memref<1x1x128xf32, #tpu.memory_space<vmem>>, vector<1x1x128xf32>
    %321 = vector.shape_cast %320 : vector<1x1x128xf32> to vector<1x128xf32>
    %322 = vector.shape_cast %319 : vector<1x128xf32> to vector<1x1x128xf32>
    tpu.vector_store %arg17[%c0_146, %c0_147, %c0_148], %322 {strides = array<i32>} : memref<1x1x128xf32, #tpu.memory_space<vmem>>, vector<1x1x128xf32>,
    return
  }
  func.func @transform_0(%arg0: i32) -> (i32, i32, i32) {
    %c0_i32 = arith.constant 0 : i32
    %c0_i32_0 = arith.constant 0 : i32
    %c0_i32_1 = arith.constant 0 : i32
    return %arg0, %c0_i32, %c0_i32_0 : i32, i32, i32
  }
  func.func @transform_1(%arg0: i32) -> (i32, i32) {
    %c0_i32 = arith.constant 0 : i32
    %c0_i32_0 = arith.constant 0 : i32
    %c0_i32_1 = arith.constant 0 : i32
    return %c0_i32, %c0_i32_0 : i32, i32
  }
  func.func @transform_2(%arg0: i32) -> (i32, i32) {
    %c0_i32 = arith.constant 0 : i32
    %c0_i32_0 = arith.constant 0 : i32
    %c0_i32_1 = arith.constant 0 : i32
    return %c0_i32, %c0_i32_0 : i32, i32
  }
  func.func @transform_3(%arg0: i32) -> (i32, i32, i32) {
    %c0_i32 = arith.constant 0 : i32
    %c0_i32_0 = arith.constant 0 : i32
    %c0_i32_1 = arith.constant 0 : i32
    %c0_i32_2 = arith.constant 0 : i32
    return %c0_i32, %c0_i32_0, %c0_i32_1 : i32, i32, i32
  }
  func.func @transform_4(%arg0: i32) -> (i32, i32, i32) {
    %c0_i32 = arith.constant 0 : i32
    %c0_i32_0 = arith.constant 0 : i32
    %c0_i32_1 = arith.constant 0 : i32
    %c0_i32_2 = arith.constant 0 : i32
    return %c0_i32, %c0_i32_0, %c0_i32_1 : i32, i32, i32
  }
  func.func @transform_5(%arg0: i32) -> (i32, i32, i32) {
    %c0_i32 = arith.constant 0 : i32
    %c0_i32_0 = arith.constant 0 : i32
    %c0_i32_1 = arith.constant 0 : i32
    %c0_i32_2 = arith.constant 0 : i32
    return %c0_i32, %c0_i32_0, %c0_i32_1 : i32, i32, i32
  }
  func.func @transform_6(%arg0: i32) -> (i32, i32, i32) {
    %c0_i32 = arith.constant 0 : i32
    %c0_i32_0 = arith.constant 0 : i32
    %c0_i32_1 = arith.constant 0 : i32
    %c0_i32_2 = arith.constant 0 : i32
    return %c0_i32, %c0_i32_0, %c0_i32_1 : i32, i32, i32
  }
  func.func @transform_7(%arg0: i32) -> (i32, i32, i32) {
    %c0_i32 = arith.constant 0 : i32
    %c0_i32_0 = arith.constant 0 : i32
    %c0_i32_1 = arith.constant 0 : i32
    %c0_i32_2 = arith.constant 0 : i32
    return %c0_i32, %c0_i32_0, %c0_i32_1 : i32, i32, i32
  }
  func.func @transform_8(%arg0: i32) -> (i32, i32, i32) {
    %c0_i32 = arith.constant 0 : i32
    %c0_i32_0 = arith.constant 0 : i32
    %c0_i32_1 = arith.constant 0 : i32
    %c0_i32_2 = arith.constant 0 : i32
    return %c0_i32, %c0_i32_0, %c0_i32_1 : i32, i32, i32
  }
  func.func @transform_9(%arg0: i32) -> (i32, i32, i32) {
    %c0_i32 = arith.constant 0 : i32
    %c0_i32_0 = arith.constant 0 : i32
    %c0_i32_1 = arith.constant 0 : i32
    %c0_i32_2 = arith.constant 0 : i32
    return %c0_i32, %c0_i32_0, %c0_i32_1 : i32, i32, i32
  }
  func.func @transform_10(%arg0: i32) -> (i32, i32, i32) {
    %c0_i32 = arith.constant 0 : i32
    %c0_i32_0 = arith.constant 0 : i32
    %c0_i32_1 = arith.constant 0 : i32
    %c0_i32_2 = arith.constant 0 : i32
    return %c0_i32, %c0_i32_0, %c0_i32_1 : i32, i32, i32
  }
  func.func @transform_11(%arg0: i32) -> (i32, i32, i32) {
    %c0_i32 = arith.constant 0 : i32
    %c0_i32_0 = arith.constant 0 : i32
    %c0_i32_1 = arith.constant 0 : i32
    %c0_i32_2 = arith.constant 0 : i32
    return %c0_i32, %c0_i32_0, %c0_i32_1 : i32, i32, i32
  }
  func.func @transform_12(%arg0: i32) -> (i32, i32, i32) {
    %c0_i32 = arith.constant 0 : i32
    %c0_i32_0 = arith.constant 0 : i32
    %c0_i32_1 = arith.constant 0 : i32
    %c0_i32_2 = arith.constant 0 : i32
    return %c0_i32, %c0_i32_0, %c0_i32_1 : i32, i32, i32
  }
  func.func @transform_13(%arg0: i32) -> (i32, i32, i32) {
    %c0_i32 = arith.constant 0 : i32
    %c0_i32_0 = arith.constant 0 : i32
    %c0_i32_1 = arith.constant 0 : i32
    %c0_i32_2 = arith.constant 0 : i32
    return %c0_i32, %c0_i32_0, %c0_i32_1 : i32, i32, i32
  }
  func.func @transform_14(%arg0: i32) -> (i32, i32) {
    %c0_i32 = arith.constant 0 : i32
    %c0_i32_0 = arith.constant 0 : i32
    %c0_i32_1 = arith.constant 0 : i32
    return %c0_i32, %c0_i32_0 : i32, i32
  }
  func.func @transform_15(%arg0: i32) -> (i32, i32) {
    %c0_i32 = arith.constant 0 : i32
    %c0_i32_0 = arith.constant 0 : i32
    %c0_i32_1 = arith.constant 0 : i32
    return %c0_i32, %c0_i32_0 : i32, i32
  }
  func.func @transform_16(%arg0: i32) -> (i32, i32, i32) {
    %c0_i32 = arith.constant 0 : i32
    %c0_i32_0 = arith.constant 0 : i32
    %c0_i32_1 = arith.constant 0 : i32
    return %arg0, %c0_i32, %c0_i32_0 : i32, i32, i32
  }
}

</mosaic_0001>

<bundles_post_ra>
// kernel: vit_forward.1
= control target key start
LH: loop header
LB: loop body
LE: loop exit
PB: predicated region body
PF: predicated region fallthrough
CT: control target
= control target key end

     0   :  { %s13116_s0 = inlined_call_operand.vmem [shape: f32[2,65,17], index: 0, kind: input, shape index: {}]   ;;  %s13117_s1 = inlined_call_operand.vmem [shape: f32[17,32], index: 1, kind: input, shape index: {}]   ;;  %s13118_s2 = inlined_call_operand.vmem [shape: f32[65,32], index: 2, kind: input, shape index: {}]   ;;  %s13119_s3 = inlined_call_operand.vmem [shape: f32[2,1,32], index: 3, kind: input, shape index: {}]   ;;  %s13120_s4 = inlined_call_operand.vmem [shape: f32[2,1,32], index: 4, kind: input, shape index: {}]   ;;  %s13121_s5 = inlined_call_operand.vmem [shape: f32[2,32,96], index: 5, kind: input, shape index: {}]   ;;  %s13122_s6 = inlined_call_operand.vmem [shape: f32[2,32,32], index: 6, kind: input, shape index: {}]   ;;  %s13123_s7 = inlined_call_operand.vmem [shape: f32[2,1,32], index: 7, kind: input, shape index: {}]   ;;  %s13124_s8 = inlined_call_operand.vmem [shape: f32[2,1,32], index: 8, kind: input, shape index: {}]   ;;  %s13125_s9 = inlined_call_operand.vmem [shape: f32[2,1,32], index: 9, kind: input, shape index: {}]   ;;  %s13126_s10 = inlined_call_operand.vmem [shape: f32[2,32,128], index: 10, kind: input, shape index: {}]   ;;  %s13127_s11 = inlined_call_operand.vmem [shape: f32[2,1,128], index: 11, kind: input, shape index: {}]   ;;  %s13128_s12 = inlined_call_operand.vmem [shape: f32[2,128,32], index: 12, kind: input, shape index: {}]   ;;  %s13129_s13 = inlined_call_operand.vmem [shape: f32[2,1,32], index: 13, kind: input, shape index: {}]   ;;  %s13130_s14 = inlined_call_operand.vmem [shape: f32[32,128], index: 14, kind: input, shape index: {}]   ;;  %s13131_s15 = inlined_call_operand.vmem [shape: f32[1,128], index: 15, kind: input, shape index: {}]   ;;  %s13132_s16 = inlined_call_operand.hbm [shape: f32[2,1,128], index: 16, kind: output, shape index: {}]  }
   0x1   :  { %13156 = sst [smem:[#allocation7_spill]] %s13116_s0 }
   0x2   :  { %13157 = sst [smem:[#allocation8_spill]] %s13117_s1 }
   0x3   :  { %13158 = sst [smem:[#allocation9_spill]] %s13118_s2 }
   0x4   :  { %13159 = sst [smem:[#allocation10_spill]] %s13119_s3 }
   0x5   :  { %13160 = sst [smem:[#allocation11_spill]] %s13120_s4 }
   0x6   :  { %21 = vsyncpa [#allocation3], 0 }
   0x7   :  { %23 = vsyncpa [#allocation3 + $0x1], 0  ;;  %s9804_s21 = smov 0   ;;  %s9806_s22 = smov 0  }
   0x8   :  { %s9808_s23 = smov 0   ;;  %s9810_s24 = smov 0  }
   0x9 LB: > { %13161 = sst [smem:[#allocation5_spill]] %s9699_s23  ;;  %s9825_s25 = sadd.s32 4294967295, %s9703_s24   ;;  %s9703_s24 = sphi %s9810_s24, %s13185_s24   ;;  %s9699_s23 = sphi %s9808_s23, %s13182_s23   ;;  %s9695_s22 = sphi %s9806_s22, %s13184_s22   ;;  %s9691_s21 = sphi %s9804_s21, %s13183_s21  }
   0xa   : > { %s7067_s26 = sadd.s32 4294967294, %s9703_s24   ;;  %s9829_s27 = sadd.s32 1, %s9703_s24  }
   0xb   : > { %s377_s28 = sadd.s32 1, %s9699_s23  ;;  %s374_s29 = ssub.s32 %s9703_s24, %s9829_s27 }
   0xc   : > { %p387_p0 = scmp.ne.s32.totalorder %s9699_s23, %s9695_s22  ;;  %p375_p1 = scmp.eq.s32.totalorder %s374_s29, 0 }
   0xd   : > { %p388_p2 = scmp.eq.s32.totalorder %s9825_s25, 1  ;;  %p393_p3 = scmp.ne.s32.totalorder %s9695_s22, %s9691_s21 }
   0xe   : > { %p394_p4 = scmp.eq.s32.totalorder %s7067_s26, 1  ;;  %p7070_p7 = scmp.ge.s32.totalorder %s9703_s24, 1 }
   0xf   : > { %s9840_s30 = scalar_select %p375_p1, %s9699_s23, %s377_s28  }
  0x10   : > { %p9842_p5 = por %p388_p2, %p387_p0  ;;  %p9846_p6 = por %p394_p4, %p393_p3 }
  0x11   : > { %13162 = sst [smem:[#allocation6_spill]] %s9840_s30  ;;  %p465_p8 = scmp.lt.s32.totalorder %s9703_s24, 3 }
  0x13   : > { %p466_p9 = pnand %p7070_p7, %p465_p8 }
  0x14   : > { %s13165_s1 = sld [smem:[#allocation8_spill]] (!%p466_p9)  ;;  %p514_p10 = scmp.lt.s32.totalorder (!%p466_p9), %s9825_s25, 1 }
  0x15   : > { %469 = sbr.rel (%p466_p9) target bundleno = 8475 (0x211b), region = 84  ;;  %s13166_s30 = sld [smem:[#allocation7_spill]] (!%p466_p9) }
  0x16   : > { %s13167_s2 = sld [smem:[#allocation9_spill]] (!%p466_p9)  ;;  %s13154_s20 = smov (!%p466_p9), 96  }
  0x17   : > { %s13168_s3 = sld [smem:[#allocation10_spill]] (!%p466_p9)  ;;  %s13152_s26 = smov (!%p466_p9), 88  }
  0x18   : > { %s13169_s4 = sld [smem:[#allocation11_spill]] (!%p466_p9)  ;;  %s13148_s28 = smov (!%p466_p9), 64  }
  0x19   : > { %s13138_s29 = smov (!%p466_p9), 56  }
  0x1a   : > { %v530_v0 = vld [vmem:[%s13165_s1 + $0x10] sm:$0x1]  ;;  %vm568_vm0 = vcmask 1040384   ;;  %v9705_v1 = vmov 0.0   ;;  %v529_v2 = vld [vmem:[%s13165_s1 + $0x8] sm:$0xff]  ;;  %vm9706_vm1 = vmmov 0  }
  0x1b   : > { %7954 = vmatprep.subr.mxu0 %v9705_v1  ;;  %7987 = vmatprep.subr.mxu1 %v9705_v1  ;;  %v528_v3 = vld [vmem:[%s13165_s1] sm:$0xff]  ;;  %s515_s18 = scalar_select %p514_p10, %s9825_s25, 1  ;;  %vm540_vm2 = vcmask 138240   ;;  %vm684_vm3 = vcmask 261120   ;;  %vm709_vm4 = vcmask 253952   ;;  %vm1006_vm5 = vcmask 64512  }
  0x1c   : > { %7955 = vmatpush3.msk.msra.mxu0 %vm568_vm0, %v530_v0  ;;  %7960 = vmatprep.mubr.msk.f32.mxu0 %vm9706_vm1, %v9705_v1  ;;  %v531_v13 = vld [vmem:[%s13167_s2] sm:$0xff]  ;;  %v532_v17 = vld [vmem:[%s13167_s2 + $0x8] sm:$0xff]  ;;  %v533_v22 = vld [vmem:[%s13167_s2 + $0x10] sm:$0xff]  ;;  %vm1153_vm6 = vcmask 531456   ;;  %vm1178_vm7 = vcmask 524288  }
  0x1d   : > { %7956 = vmatprep.subr.mxu0 %v9705_v1  ;;  %7995 = vmatprep.mubr.msk.f32.mxu1 %vm9706_vm1, %v9705_v1  ;;  %s9226_s19 = smul.u32 72, %s515_s18  ;;  %v534_v27 = vld [vmem:[%s13167_s2 + $0x18] sm:$0xff]  ;;  %v535_v32 = vld [vmem:[%s13167_s2 + $0x20] sm:$0xff]  ;;  %v536_v37 = vld [vmem:[%s13167_s2 + $0x28] sm:$0xff]  ;;  %s13134_s18 = smov 80  }
  0x1e   : > { %7957 = vmatpush3.msra.mxu0 %v529_v2  ;;  %v537_v42 = vld [vmem:[%s13167_s2 + $0x30] sm:$0xff]  ;;  %v538_v47 = vld [vmem:[%s13167_s2 + $0x38] sm:$0xff]  ;;  %v539_v52 = vld [vmem:[%s13167_s2 + $0x40] sm:$0x1]  ;;  %s9718_s2 = smov [#allocation2]  }
  0x1f   : > { %7958 = vmatprep.subr.mxu0 %v9705_v1  ;;  %s518_s23 = scalar_lea.vmem %s13166_s30, %s9226_s19  ;;  %s13150_s30 = smov 120  }
  0x20   : > { %7959 = vmatpush3.msra.mxu0 %v528_v3  ;;  %v519_v4 = vld [vmem:[%s518_s23] sm:$0xff]  ;;  %v520_v5 = vld [vmem:[%s518_s23 + $0x8] sm:$0xff]  ;;  %v521_v6 = vld [vmem:[%s518_s23 + $0x10] sm:$0xff]  ;;  %s13144_s19 = smov 40  }
  0x21   : > { %8022 = vmatprep.subr.mxu0 %v9705_v1  ;;  %7961 = vmatmul.mubr.msk.f32.vlgmr.msra.gmra.mxu0 %vm540_vm2, %v519_v4  ;;  %v522_v7 = vld [vmem:[%s518_s23 + $0x18] sm:$0xff]  ;;  %v523_v8 = vld [vmem:[%s518_s23 + $0x20] sm:$0xff]  ;;  %v524_v9 = vld [vmem:[%s518_s23 + $0x28] sm:$0xff] }
  0x22   : > { %7963 = vmatprep.mubr.msk.f32.mxu0 %vm9706_vm1, %v9705_v1  ;;  %v525_v10 = vld [vmem:[%s518_s23 + $0x30] sm:$0xff]  ;;  %v526_v11 = vld [vmem:[%s518_s23 + $0x38] sm:$0xff]  ;;  %v527_v12 = vld [vmem:[%s518_s23 + $0x40] sm:$0x1]  ;;  %s13136_s23 = smov 112  }
  0x25   : > { %7964 = vmatmul.mubr.msk.f32.gmra.mxu0 %vm540_vm2, %v520_v5 }
  0x26   : > { %7966 = vmatprep.mubr.msk.f32.mxu0 %vm9706_vm1, %v9705_v1 }
  0x29   : > { %7967 = vmatmul.mubr.msk.f32.gmra.mxu0 %vm540_vm2, %v521_v6 }
  0x2a   : > { %7969 = vmatprep.mubr.msk.f32.mxu0 %vm9706_vm1, %v9705_v1 }
  0x2d   : > { %7970 = vmatmul.mubr.msk.f32.gmra.mxu0 %vm540_vm2, %v522_v7 }
  0x2e   : > { %7972 = vmatprep.mubr.msk.f32.mxu0 %vm9706_vm1, %v9705_v1 }
  0x31   : > { %7973 = vmatmul.mubr.msk.f32.gmra.mxu0 %vm540_vm2, %v523_v8 }
  0x32   : > { %7975 = vmatprep.mubr.msk.f32.mxu0 %vm9706_vm1, %v9705_v1 }
  0x35   : > { %7976 = vmatmul.mubr.msk.f32.gmra.mxu0 %vm540_vm2, %v524_v9 }
  0x36   : > { %7978 = vmatprep.mubr.msk.f32.mxu0 %vm9706_vm1, %v9705_v1 }
  0x39   : > { %7979 = vmatmul.mubr.msk.f32.gmra.mxu0 %vm540_vm2, %v525_v10 }
  0x3a   : > { %7981 = vmatprep.mubr.msk.f32.mxu0 %vm9706_vm1, %v9705_v1 }
  0x3d   : > { %7982 = vmatmul.mubr.msk.f32.gmra.mxu0 %vm540_vm2, %v526_v11 }
  0x3e   : > { %7984 = vmatprep.mubr.msk.f32.mxu0 %vm9706_vm1, %v9705_v1 }
  0x41   : > { %7985 = vmatmul.mubr.msk.f32.gmra.mxu0 %vm540_vm2, %v527_v12 }
  0x42   : > { %8040 = vmatprep.mubr.msk.f32.mxu0 %vm9706_vm1, %v9705_v1 }
  0xe1   : > { %v638_v14 = vpop.f32.mrf.mxu0 }
  0xe2   : > { %v9906_v15 = vadd.f32 %v638_v14, %v531_v13 }
  0xe3   : > { %v7962_v16 = vpop.f32.mrf.mxu0 }
  0xe4   : > { %v685_v18 = vsel %vm684_vm3, %v9906_v15, 0.0 }
  0xe5   : > { %686 = vadd.xlane.f32.xlu0 %v685_v18  ;;  %v643_v19 = vpop.f32.mrf.mxu0 }
  0xe6   : > { %v9913_v20 = vadd.f32 %v643_v19, %v532_v17 }
  0xe7   : > { %v7965_v21 = vpop.f32.mrf.mxu0 }
  0xe8   : > { %v688_v23 = vsel %vm684_vm3, %v9913_v20, 0.0 }
  0xe9   : > { %689 = vadd.xlane.f32.xlu0 %v688_v23  ;;  %v648_v24 = vpop.f32.mrf.mxu0 }
  0xea   : > { %v9920_v25 = vadd.f32 %v648_v24, %v533_v22 }
  0xeb   : > { %v7968_v26 = vpop.f32.mrf.mxu0 }
  0xec   : > { %v691_v28 = vsel %vm684_vm3, %v9920_v25, 0.0 }
  0xed   : > { %692 = vadd.xlane.f32.xlu1 %v691_v28  ;;  %v653_v29 = vpop.f32.mrf.mxu0 }
  0xee   : > { %v9927_v30 = vadd.f32 %v653_v29, %v534_v27 }
  0xef   : > { %v7971_v31 = vpop.f32.mrf.mxu0 }
  0xf0   : > { %v694_v33 = vsel %vm684_vm3, %v9927_v30, 0.0 }
  0xf1   : > { %695 = vadd.xlane.f32.xlu1 %v694_v33  ;;  %v658_v34 = vpop.f32.mrf.mxu0 }
  0xf2   : > { %v9934_v35 = vadd.f32 %v658_v34, %v535_v32 }
  0xf3   : > { %v7974_v36 = vpop.f32.mrf.mxu0 }
  0xf4   : > { %v697_v38 = vsel %vm684_vm3, %v9934_v35, 0.0 }
  0xf5   : > { %698 = vadd.xlane.f32.xlu0 %v697_v38  ;;  %v663_v39 = vpop.f32.mrf.mxu0 }
  0xf6   : > { %v9941_v40 = vadd.f32 %v663_v39, %v536_v37 }
  0xf7   : > { %v7977_v41 = vpop.f32.mrf.mxu0 }
  0xf8   : > { %v700_v43 = vsel %vm684_vm3, %v9941_v40, 0.0 }
  0xf9   : > { %701 = vadd.xlane.f32.xlu1 %v700_v43  ;;  %v668_v44 = vpop.f32.mrf.mxu0 }
  0xfa   : > { %v9948_v45 = vadd.f32 %v668_v44, %v537_v42  ;;  %v837_v42 = vld [vmem:[%s13121_s5 + $0x18] sm:$0xff] }
  0xfb   : > { %v7980_v46 = vpop.f32.mrf.mxu0  ;;  %7988 = vmatpush3.msra.mxu1 %v837_v42 }
  0xfc   : > { %v703_v48 = vsel %vm684_vm3, %v9948_v45, 0.0  ;;  %7989 = vmatprep.subr.mxu1 %v9705_v1  ;;  %v836_v46 = vld [vmem:[%s13121_s5 + $0x10] sm:$0xff] }
  0xfd   : > { %704 = vadd.xlane.f32.xlu0 %v703_v48  ;;  %v673_v49 = vpop.f32.mrf.mxu0  ;;  %7990 = vmatpush3.msra.mxu1 %v836_v46  ;;  %v835_v48 = vld [vmem:[%s13121_s5 + $0x8] sm:$0xff] }
  0xfe   : > { %v9955_v50 = vadd.f32 %v673_v49, %v538_v47  ;;  %7991 = vmatprep.subr.mxu1 %v9705_v1 }
  0xff   : > { %v7983_v51 = vpop.f32.mrf.mxu0  ;;  %7992 = vmatpush3.msra.mxu1 %v835_v48 }
 0x100   : > { %v706_v53 = vsel %vm684_vm3, %v9955_v50, 0.0  ;;  %7993 = vmatprep.subr.mxu1 %v9705_v1  ;;  %v834_v51 = vld [vmem:[%s13121_s5] sm:$0xff] }
 0x101   : > { %707 = vadd.xlane.f32.xlu1 %v706_v53  ;;  %v678_v54 = vpop.f32.mrf.mxu0  ;;  %7994 = vmatpush3.msra.mxu1 %v834_v51 }
 0x102   : > { %v9962_v55 = vadd.f32 %v678_v54, %v539_v52  ;;  %8067 = vmatprep.subr.mxu1 %v9705_v1 }
 0x103   : > { %v7986_v56 = vpop.f32.mrf.mxu0 }
 0x104   : > { %v710_v57 = vsel %vm709_vm4, %v9962_v55, 0.0 }
 0x105   : > { %711 = vadd.xlane.f32.xlu0 %v710_v57 }
 0x16e   : > { %v687_v58 = vpop.xlane.xlu0 %686 }
 0x16f   : > { %v714_v59 = vmul.f32 0.03125, %v687_v58 }
 0x171   : > { %v9967_v60 = vsub.f32 %v9906_v15, %v714_v59 }
 0x172   : > { %v690_v61 = vpop.xlane.xlu0 %689 }
 0x173   : > { %v715_v62 = vmul.f32 0.03125, %v690_v61  ;;  %v732_v63 = vmul.f32 %v9967_v60, %v9967_v60 }
 0x175   : > { %v9972_v0 = vsub.f32 %v9913_v20, %v715_v62  ;;  %v741_v2 = vsel %vm684_vm3, %v732_v63, 0.0 }
 0x176   : > { %v693_v3 = vpop.xlane.xlu1 %692  ;;  %742 = vadd.xlane.f32.xlu1 %v741_v2 }
 0x177   : > { %v716_v4 = vmul.f32 0.03125, %v693_v3  ;;  %v733_v5 = vmul.f32 %v9972_v0, %v9972_v0 }
 0x179   : > { %v9978_v6 = vsub.f32 %v9920_v25, %v716_v4  ;;  %v744_v7 = vsel %vm684_vm3, %v733_v5, 0.0 }
 0x17a   : > { %v696_v8 = vpop.xlane.xlu1 %695  ;;  %745 = vadd.xlane.f32.xlu0 %v744_v7 }
 0x17b   : > { %v717_v9 = vmul.f32 0.03125, %v696_v8  ;;  %v734_v10 = vmul.f32 %v9978_v6, %v9978_v6  ;;  %v10039_v8 = vld [vmem:[%s13168_s3] ss:$0 sm:$0xff] }
 0x17d   : > { %v9984_v11 = vsub.f32 %v9927_v30, %v717_v9  ;;  %v747_v12 = vsel %vm684_vm3, %v734_v10, 0.0 }
 0x17e   : > { %v699_v13 = vpop.xlane.xlu0 %698  ;;  %748 = vadd.xlane.f32.xlu1 %v747_v12 }
 0x17f   : > { %v718_v14 = vmul.f32 0.03125, %v699_v13  ;;  %v735_v16 = vmul.f32 %v9984_v11, %v9984_v11  ;;  %v10045_v13 = vld [vmem:[%s13169_s4] ss:$0 sm:$0xff] }
 0x181   : > { %v9990_v17 = vsub.f32 %v9934_v35, %v718_v14  ;;  %v750_v18 = vsel %vm684_vm3, %v735_v16, 0.0 }
 0x182   : > { %v702_v19 = vpop.xlane.xlu1 %701  ;;  %751 = vadd.xlane.f32.xlu0 %v750_v18 }
 0x183   : > { %v719_v21 = vmul.f32 0.03125, %v702_v19  ;;  %v736_v22 = vmul.f32 %v9990_v17, %v9990_v17 }
 0x185   : > { %v9996_v23 = vsub.f32 %v9941_v40, %v719_v21  ;;  %v753_v24 = vsel %vm684_vm3, %v736_v22, 0.0 }
 0x186   : > { %v705_v26 = vpop.xlane.xlu0 %704  ;;  %754 = vadd.xlane.f32.xlu1 %v753_v24 }
 0x187   : > { %v720_v27 = vmul.f32 0.03125, %v705_v26  ;;  %v737_v28 = vmul.f32 %v9996_v23, %v9996_v23 }
 0x189   : > { %v10002_v29 = vsub.f32 %v9948_v45, %v720_v27  ;;  %v756_v31 = vsel %vm684_vm3, %v737_v28, 0.0 }
 0x18a   : > { %v708_v32 = vpop.xlane.xlu1 %707  ;;  %757 = vadd.xlane.f32.xlu0 %v756_v31 }
 0x18b   : > { %v721_v33 = vmul.f32 0.03125, %v708_v32  ;;  %v738_v34 = vmul.f32 %v10002_v29, %v10002_v29 }
 0x18d   : > { %v10008_v36 = vsub.f32 %v9955_v50, %v721_v33  ;;  %v759_v37 = vsel %vm684_vm3, %v738_v34, 0.0 }
 0x18e   : > { %760 = vadd.xlane.f32.xlu1 %v759_v37  ;;  %v712_v38 = vpop.xlane.xlu0 %711 }
 0x18f   : > { %v722_v39 = vmul.f32 0.03125, %v712_v38  ;;  %v739_v41 = vmul.f32 %v10008_v36, %v10008_v36 }
 0x191   : > { %v10017_v43 = vsub.f32 %v9962_v55, %v722_v39  ;;  %v762_v44 = vsel %vm684_vm3, %v739_v41, 0.0 }
 0x192   : > { %763 = vadd.xlane.f32.xlu0 %v762_v44 }
 0x193   : > { %v740_v47 = vmul.f32 %v10017_v43, %v10017_v43 }
 0x195   : > { %v765_v49 = vsel %vm709_vm4, %v740_v47, 0.0 }
 0x196   : > { %766 = vadd.xlane.f32.xlu1 %v765_v49 }
 0x1ff   : > { %v743_v52 = vpop.xlane.xlu1 %742 }
 0x200   : > { %v768_v53 = vmul.f32 0.03125, %v743_v52 }
 0x202   : > { %v777_v54 = vadd.f32 1e-05, %v768_v53 }
 0x203   : > { %v746_v56 = vpop.xlane.xlu0 %745 }
 0x204   : > { %9279 = vrsqrt.f32 %v777_v54  ;;  %v769_v57 = vmul.f32 0.03125, %v746_v56 }
 0x206   : > { %v778_v58 = vadd.f32 1e-05, %v769_v57 }
 0x207   : > { %v749_v59 = vpop.xlane.xlu1 %748 }
 0x208   : > { %9281 = vrsqrt.f32 %v778_v58  ;;  %v770_v61 = vmul.f32 0.03125, %v749_v59 }
 0x20a   : > { %v779_v62 = vadd.f32 1e-05, %v770_v61 }
 0x20b   : > { %v752_v63 = vpop.xlane.xlu0 %751 }
 0x20c   : > { %9283 = vrsqrt.f32 %v779_v62  ;;  %v771_v2 = vmul.f32 0.03125, %v752_v63 }
 0x20e   : > { %v780_v3 = vadd.f32 1e-05, %v771_v2 }
 0x20f   : > { %v755_v4 = vpop.xlane.xlu1 %754 }
 0x210   : > { %9285 = vrsqrt.f32 %v780_v3  ;;  %v772_v5 = vmul.f32 0.03125, %v755_v4 }
 0x211   : > { %v9280_v7 = vpop.eup %9279 }
 0x212   : > { %v781_v9 = vadd.f32 1e-05, %v772_v5  ;;  %v795_v10 = vmul.f32 %v9280_v7, %v9967_v60 }
 0x213   : > { %v758_v12 = vpop.xlane.xlu0 %757 }
 0x214   : > { %9287 = vrsqrt.f32 %v781_v9  ;;  %v773_v14 = vmul.f32 0.03125, %v758_v12  ;;  %v810_v16 = vmul.f32 %v10039_v8, %v795_v10 }
 0x215   : > { %v9282_v18 = vpop.eup %9281 }
 0x216   : > { %v782_v19 = vadd.f32 1e-05, %v773_v14  ;;  %v825_v21 = vadd.f32 %v10045_v13, %v810_v16  ;;  %v796_v22 = vmul.f32 %v9282_v18, %v9972_v0 }
 0x217   : > { %v761_v24 = vpop.xlane.xlu1 %760 }
 0x218   : > { %9289 = vrsqrt.f32 %v782_v19  ;;  %v774_v26 = vmul.f32 0.03125, %v761_v24  ;;  %7996 = vmatmul.mubr.msk.f32.vlgmr.msra.gmra.mxu1 %vm684_vm3, %v825_v21  ;;  %v811_v60 = vmul.f32 %v10039_v8, %v796_v22 }
 0x219   : > { %v9284_v27 = vpop.eup %9283  ;;  %7998 = vmatprep.mubr.msk.f32.mxu1 %vm9706_vm1, %v9705_v1 }
 0x21a   : > { %v783_v28 = vadd.f32 1e-05, %v774_v26  ;;  %v826_v31 = vadd.f32 %v10045_v13, %v811_v60  ;;  %v797_v32 = vmul.f32 %v9284_v27, %v9978_v6 }
 0x21b   : > { %v764_v33 = vpop.xlane.xlu0 %763 }
 0x21c   : > { %9291 = vrsqrt.f32 %v783_v28  ;;  %v775_v34 = vmul.f32 0.03125, %v764_v33  ;;  %7999 = vmatmul.mubr.msk.f32.gmra.mxu1 %vm684_vm3, %v826_v31  ;;  %v812_v0 = vmul.f32 %v10039_v8, %v797_v32 }
 0x21d   : > { %v9286_v37 = vpop.eup %9285  ;;  %8001 = vmatprep.mubr.msk.f32.mxu1 %vm9706_vm1, %v9705_v1 }
 0x21e   : > { %v784_v38 = vadd.f32 1e-05, %v775_v34  ;;  %v827_v39 = vadd.f32 %v10045_v13, %v812_v0  ;;  %v798_v41 = vmul.f32 %v9286_v37, %v9984_v11 }
 0x21f   : > { %v767_v42 = vpop.xlane.xlu1 %766 }
 0x220   : > { %9293 = vrsqrt.f32 %v784_v38  ;;  %v776_v44 = vmul.f32 0.03125, %v767_v42  ;;  %8002 = vmatmul.mubr.msk.f32.gmra.mxu1 %vm684_vm3, %v827_v39  ;;  %v813_v6 = vmul.f32 %v10039_v8, %v798_v41 }
 0x221   : > { %v9288_v46 = vpop.eup %9287  ;;  %8004 = vmatprep.mubr.msk.f32.mxu1 %vm9706_vm1, %v9705_v1 }
 0x222   : > { %v785_v47 = vadd.f32 1e-05, %v776_v44  ;;  %v828_v48 = vadd.f32 %v10045_v13, %v813_v6  ;;  %v799_v49 = vmul.f32 %v9288_v46, %v9990_v17 }
 0x224   : > { %9295 = vrsqrt.f32 %v785_v47  ;;  %8005 = vmatmul.mubr.msk.f32.gmra.mxu1 %vm684_vm3, %v828_v48  ;;  %v814_v11 = vmul.f32 %v10039_v8, %v799_v49 }
 0x225   : > { %v9290_v51 = vpop.eup %9289  ;;  %8007 = vmatprep.mubr.msk.f32.mxu1 %vm9706_vm1, %v9705_v1 }
 0x226   : > { %v829_v52 = vadd.f32 %v10045_v13, %v814_v11  ;;  %v800_v53 = vmul.f32 %v9290_v51, %v9996_v23 }
 0x228   : > { %8008 = vmatmul.mubr.msk.f32.gmra.mxu1 %vm684_vm3, %v829_v52  ;;  %v815_v54 = vmul.f32 %v10039_v8, %v800_v53 }
 0x229   : > { %v9292_v56 = vpop.eup %9291  ;;  %8010 = vmatprep.mubr.msk.f32.mxu1 %vm9706_vm1, %v9705_v1 }
 0x22a   : > { %v830_v17 = vadd.f32 %v10045_v13, %v815_v54  ;;  %v801_v57 = vmul.f32 %v9292_v56, %v10002_v29 }
 0x22c   : > { %8011 = vmatmul.mubr.msk.f32.gmra.mxu1 %vm684_vm3, %v830_v17  ;;  %v816_v58 = vmul.f32 %v10039_v8, %v801_v57 }
 0x22d   : > { %v9294_v59 = vpop.eup %9293  ;;  %8013 = vmatprep.mubr.msk.f32.mxu1 %vm9706_vm1, %v9705_v1 }
 0x22e   : > { %v831_v23 = vadd.f32 %v10045_v13, %v816_v58  ;;  %v802_v61 = vmul.f32 %v9294_v59, %v10008_v36 }
 0x230   : > { %8014 = vmatmul.mubr.msk.f32.gmra.mxu1 %vm684_vm3, %v831_v23  ;;  %v817_v62 = vmul.f32 %v10039_v8, %v802_v61 }
 0x231   : > { %v9296_v63 = vpop.eup %9295  ;;  %8016 = vmatprep.mubr.msk.f32.mxu1 %vm9706_vm1, %v9705_v1 }
 0x232   : > { %v832_v29 = vadd.f32 %v10045_v13, %v817_v62  ;;  %v803_v2 = vmul.f32 %v9296_v63, %v10017_v43 }
 0x234   : > { %8017 = vmatmul.mubr.msk.f32.gmra.mxu1 %vm684_vm3, %v832_v29  ;;  %v818_v3 = vmul.f32 %v10039_v8, %v803_v2 }
 0x235   : > { %8019 = vmatprep.mubr.msk.f32.mxu1 %vm9706_vm1, %v9705_v1 }
 0x236   : > { %v833_v36 = vadd.f32 %v10045_v13, %v818_v3 }
 0x238   : > { %8020 = vmatmul.mubr.msk.f32.gmra.mxu1 %vm684_vm3, %v833_v36 }
 0x239   : > { %8085 = vmatprep.mubr.msk.f32.mxu1 %vm9706_vm1, %v9705_v1 }
 0x2d8   : > { %v10100_v4 = vpop.f32.mrf.mxu1 }
 0x2da   : > { %v7997_v5 = vpop.f32.mrf.mxu1 }
 0x2dc   : > { %v10102_v7 = vpop.f32.mrf.mxu1 }
 0x2de   : > { %v8000_v43 = vpop.f32.mrf.mxu1 }
 0x2e0   : > { %v10104_v9 = vpop.f32.mrf.mxu1 }
 0x2e2   : > { %v8003_v10 = vpop.f32.mrf.mxu1 }
 0x2e4   : > { %v10106_v8 = vpop.f32.mrf.mxu1 }
 0x2e6   : > { %v8006_v12 = vpop.f32.mrf.mxu1 }
 0x2e8   : > { %v10108_v14 = vpop.f32.mrf.mxu1 }
 0x2ea   : > { %v8009_v13 = vpop.f32.mrf.mxu1 }
 0x2ec   : > { %v10110_v16 = vpop.f32.mrf.mxu1 }
 0x2ee   : > { %v8012_v18 = vpop.f32.mrf.mxu1 }
 0x2f0   : > { %v10112_v19 = vpop.f32.mrf.mxu1 }
 0x2f2   : > { %v8015_v21 = vpop.f32.mrf.mxu1 }
 0x2f4   : > { %v10114_v22 = vpop.f32.mrf.mxu1 }
 0x2f5   : > { %1002 = vrot.lane.b32.xlu1 %v10114_v22, %s13154_s20 }
 0x2f6   : > { %v8018_v24 = vpop.f32.mrf.mxu1 }
 0x2f8   : > { %v10118_v26 = vpop.f32.mrf.mxu1 }
 0x2f9   : > { %1000 = vrot.lane.b32.xlu1 %v10112_v19, %s13154_s20  ;;  %1004 = vrot.lane.b32.xlu0 %v10118_v26, %s13154_s20 }
 0x2fa   : > { %v8021_v60 = vpop.f32.mrf.mxu1 }
 0x2fd   : > { %998 = vrot.lane.b32.xlu1 %v10110_v16, %s13154_s20  ;;  %996 = vrot.lane.b32.xlu0 %v10108_v14, %s13154_s20 }
 0x301   : > { %994 = vrot.lane.b32.xlu1 %v10106_v8, %s13154_s20  ;;  %992 = vrot.lane.b32.xlu0 %v10104_v9, %s13154_s20 }
 0x305   : > { %990 = vrot.lane.b32.xlu1 %v10102_v7, %s13154_s20  ;;  %988 = vrot.lane.b32.xlu0 %v10100_v4, %s13154_s20  ;;  %s13171_s20 = smov 88  }
 0x309   : > { %1453 = vrot.lane.b32.xlu1 %v10118_v26, %s13152_s26  ;;  %1451 = vrot.lane.b32.xlu0 %v10114_v22, %s13152_s26 }
 0x30d   : > { %1449 = vrot.lane.b32.xlu1 %v10112_v19, %s13152_s26  ;;  %1447 = vrot.lane.b32.xlu0 %v10110_v16, %s13152_s26 }
 0x311   : > { %1445 = vrot.lane.b32.xlu1 %v10108_v14, %s13152_s26  ;;  %1443 = vrot.lane.b32.xlu0 %v10106_v8, %s13152_s26 }
 0x315   : > { %1441 = vrot.lane.b32.xlu1 %v10104_v9, %s13152_s26  ;;  %1439 = vrot.lane.b32.xlu0 %v10102_v7, %s13152_s26 }
 0x319   : > { %1437 = vrot.lane.b32.xlu1 %v10100_v4, %s13152_s26  ;;  %1419 = vrot.lane.b32.xlu0 %v10100_v4, %s13150_s30  ;;  %s13174_s26 = smov 56  }
 0x31d   : > { %1421 = vrot.lane.b32.xlu1 %v10102_v7, %s13150_s30  ;;  %1423 = vrot.lane.b32.xlu0 %v10104_v9, %s13150_s30 }
 0x321   : > { %1425 = vrot.lane.b32.xlu1 %v10106_v8, %s13150_s30  ;;  %1427 = vrot.lane.b32.xlu0 %v10108_v14, %s13150_s30 }
 0x325   : > { %1429 = vrot.lane.b32.xlu1 %v10110_v16, %s13150_s30  ;;  %1431 = vrot.lane.b32.xlu0 %v10112_v19, %s13150_s30 }
 0x329   : > { %1433 = vrot.lane.b32.xlu1 %v10114_v22, %s13150_s30  ;;  %1435 = vrot.lane.b32.xlu0 %v10118_v26, %s13150_s30  ;;  %s13175_s30 = smov 80  }
 0x32d   : > { %1268 = vrot.lane.b32.xlu1 %v10114_v22, %s13148_s28  ;;  %1260 = vrot.lane.b32.xlu0 %v10106_v8, %s13148_s28 }
 0x331   : > { %1266 = vrot.lane.b32.xlu1 %v10112_v19, %s13148_s28  ;;  %1270 = vrot.lane.b32.xlu0 %v10118_v26, %s13148_s28 }
 0x335   : > { %1264 = vrot.lane.b32.xlu1 %v10110_v16, %s13148_s28  ;;  %1716 = vrot.lane.b32.xlu0 %v10118_v26, %s13138_s29 }
 0x339   : > { %1262 = vrot.lane.b32.xlu1 %v10108_v14, %s13148_s28 }
 0x33d   : > { %1258 = vrot.lane.b32.xlu1 %v10104_v9, %s13148_s28 }
 0x341   : > { %1256 = vrot.lane.b32.xlu1 %v10102_v7, %s13148_s28 }
 0x345   : > { %1254 = vrot.lane.b32.xlu1 %v10100_v4, %s13148_s28  ;;  %s13176_s28 = smov 112  }
 0x349   : > { %1714 = vrot.lane.b32.xlu1 %v10114_v22, %s13138_s29 }
 0x367   : > { %v1003_v27 = vpop.permute.xlu1 %1002 }
 0x36b   : > { %v1001_v28 = vpop.permute.xlu1 %1000  ;;  %v1005_v31 = vpop.permute.xlu0 %1004 }
 0x36c   : > { %8023 = vmatpush3.xpose.msk.msra.mxu0 %vm1006_vm5, %v1005_v31 }
 0x36d   : > { %8024 = vmatprep.subr.mxu0 %v9705_v1 }
 0x36f   : > { %v999_v32 = vpop.permute.xlu1 %998  ;;  %v997_v33 = vpop.permute.xlu0 %996 }
 0x370   : > { %8025 = vmatpush3.xpose.msk.msra.mxu0 %vm1006_vm5, %v1003_v27 }
 0x371   : > { %8026 = vmatprep.subr.mxu0 %v9705_v1 }
 0x373   : > { %v995_v34 = vpop.permute.xlu1 %994  ;;  %v993_v0 = vpop.permute.xlu0 %992 }
 0x374   : > { %8027 = vmatpush3.xpose.msk.msra.mxu0 %vm1006_vm5, %v1001_v28 }
 0x375   : > { %8028 = vmatprep.subr.mxu0 %v9705_v1 }
 0x377   : > { %v991_v37 = vpop.permute.xlu1 %990  ;;  %v989_v38 = vpop.permute.xlu0 %988 }
 0x378   : > { %8029 = vmatpush3.xpose.msk.msra.mxu0 %vm1006_vm5, %v999_v32 }
 0x379   : > { %8030 = vmatprep.subr.mxu0 %v9705_v1 }
 0x37b   : > { %v1454_v39 = vpop.permute.xlu1 %1453  ;;  %v1452_v41 = vpop.permute.xlu0 %1451 }
 0x37c   : > { %8031 = vmatpush3.xpose.msk.msra.mxu0 %vm1006_vm5, %v997_v33 }
 0x37d   : > { %8032 = vmatprep.subr.mxu0 %v9705_v1 }
 0x37f   : > { %v1450_v42 = vpop.permute.xlu1 %1449  ;;  %v1448_v44 = vpop.permute.xlu0 %1447 }
 0x380   : > { %8033 = vmatpush3.xpose.msk.msra.mxu0 %vm1006_vm5, %v995_v34 }
 0x381   : > { %8034 = vmatprep.subr.mxu0 %v9705_v1 }
 0x383   : > { %v1446_v6 = vpop.permute.xlu1 %1445  ;;  %v1444_v46 = vpop.permute.xlu0 %1443 }
 0x384   : > { %8035 = vmatpush3.xpose.msk.msra.mxu0 %vm1006_vm5, %v993_v0 }
 0x385   : > { %8036 = vmatprep.subr.mxu0 %v9705_v1 }
 0x387   : > { %v1442_v47 = vpop.permute.xlu1 %1441  ;;  %v1440_v48 = vpop.permute.xlu0 %1439 }
 0x388   : > { %8037 = vmatpush3.xpose.msk.msra.mxu0 %vm1006_vm5, %v991_v37 }
 0x389   : > { %8038 = vmatprep.subr.mxu0 %v9705_v1 }
 0x38b   : > { %v10210_v49 = vpop.permute.xlu1 %1437  ;;  %v10212_v11 = vpop.permute.xlu0 %1419 }
 0x38c   : > { %8039 = vmatpush3.xpose.msk.msra.mxu0 %vm1006_vm5, %v989_v38 }
 0x38d   : > { %8112 = vmatprep.subr.mxu0 %v9705_v1 }
 0x38f   : > { %v10216_v51 = vpop.permute.xlu1 %1421  ;;  %8041 = vmatmul.mubr.msk.f32.vlgmr.msra.gmra.mxu0 %vm1006_vm5, %v10100_v4  ;;  %v10220_v52 = vpop.permute.xlu0 %1423 }
 0x390   : > { %8113 = vmatpush3.xpose.msk.msra.mxu0 %vm1006_vm5, %v1454_v39  ;;  %8043 = vmatprep.mubr.msk.f32.mxu0 %vm9706_vm1, %v9705_v1 }
 0x391   : > { %8114 = vmatprep.subr.mxu0 %v9705_v1 }
 0x393   : > { %v10226_v53 = vpop.permute.xlu1 %1425  ;;  %8044 = vmatmul.mubr.msk.f32.gmra.mxu0 %vm1006_vm5, %v10102_v7  ;;  %v10230_v54 = vpop.permute.xlu0 %1427 }
 0x394   : > { %8115 = vmatpush3.xpose.msk.msra.mxu0 %vm1006_vm5, %v1452_v41  ;;  %8046 = vmatprep.mubr.msk.f32.mxu0 %vm9706_vm1, %v9705_v1 }
 0x395   : > { %8116 = vmatprep.subr.mxu0 %v9705_v1 }
 0x397   : > { %v10236_v56 = vpop.permute.xlu1 %1429  ;;  %8047 = vmatmul.mubr.msk.f32.gmra.mxu0 %vm1006_vm5, %v10104_v9  ;;  %v10240_v17 = vpop.permute.xlu0 %1431 }
 0x398   : > { %8117 = vmatpush3.xpose.msk.msra.mxu0 %vm1006_vm5, %v1450_v42  ;;  %8049 = vmatprep.mubr.msk.f32.mxu0 %vm9706_vm1, %v9705_v1 }
 0x399   : > { %8118 = vmatprep.subr.mxu0 %v9705_v1 }
 0x39b   : > { %v10246_v57 = vpop.permute.xlu1 %1433  ;;  %8050 = vmatmul.mubr.msk.f32.gmra.mxu0 %vm1006_vm5, %v10106_v8  ;;  %v10250_v58 = vpop.permute.xlu0 %1435 }
 0x39c   : > { %8119 = vmatpush3.xpose.msk.msra.mxu0 %vm1006_vm5, %v1448_v44  ;;  %8052 = vmatprep.mubr.msk.f32.mxu0 %vm9706_vm1, %v9705_v1 }
 0x39d   : > { %8120 = vmatprep.subr.mxu0 %v9705_v1 }
 0x39f   : > { %v1269_v59 = vpop.permute.xlu1 %1268  ;;  %8053 = vmatmul.mubr.msk.f32.gmra.mxu0 %vm1006_vm5, %v10108_v14  ;;  %v1261_v23 = vpop.permute.xlu0 %1260 }
 0x3a0   : > { %8121 = vmatpush3.xpose.msk.msra.mxu0 %vm1006_vm5, %v1446_v6  ;;  %8055 = vmatprep.mubr.msk.f32.mxu0 %vm9706_vm1, %v9705_v1 }
 0x3a1   : > { %8122 = vmatprep.subr.mxu0 %v9705_v1 }
 0x3a3   : > { %v1267_v61 = vpop.permute.xlu1 %1266  ;;  %8056 = vmatmul.mubr.msk.f32.gmra.mxu0 %vm1006_vm5, %v10110_v16  ;;  %v1271_v62 = vpop.permute.xlu0 %1270 }
 0x3a4   : > { %8068 = vmatpush3.msk.msra.mxu1 %vm568_vm0, %v1271_v62  ;;  %8123 = vmatpush3.xpose.msk.msra.mxu0 %vm1006_vm5, %v1444_v46 }
 0x3a5   : > { %8069 = vmatprep.subr.mxu1 %v9705_v1  ;;  %8058 = vmatprep.mubr.msk.f32.mxu0 %vm9706_vm1, %v9705_v1 }
 0x3a6   : > { %8070 = vmatpush3.msra.mxu1 %v1269_v59  ;;  %8124 = vmatprep.subr.mxu0 %v9705_v1 }
 0x3a7   : > { %v1265_v63 = vpop.permute.xlu1 %1264  ;;  %8059 = vmatmul.mubr.msk.f32.gmra.mxu0 %vm1006_vm5, %v10112_v19  ;;  %8071 = vmatprep.subr.mxu1 %v9705_v1 }
 0x3a8   : > { %8072 = vmatpush3.msra.mxu1 %v1267_v61  ;;  %8125 = vmatpush3.xpose.msk.msra.mxu0 %vm1006_vm5, %v1442_v47 }
 0x3a9   : > { %8073 = vmatprep.subr.mxu1 %v9705_v1  ;;  %8061 = vmatprep.mubr.msk.f32.mxu0 %vm9706_vm1, %v9705_v1 }
 0x3aa   : > { %8074 = vmatpush3.msra.mxu1 %v1265_v63  ;;  %8126 = vmatprep.subr.mxu0 %v9705_v1 }
 0x3ab   : > { %v1263_v29 = vpop.permute.xlu1 %1262  ;;  %8062 = vmatmul.mubr.msk.f32.gmra.mxu0 %vm1006_vm5, %v10114_v22  ;;  %8075 = vmatprep.subr.mxu1 %v9705_v1 }
 0x3ac   : > { %8076 = vmatpush3.msra.mxu1 %v1263_v29  ;;  %8127 = vmatpush3.xpose.msk.msra.mxu0 %vm1006_vm5, %v1440_v48 }
 0x3ad   : > { %8077 = vmatprep.subr.mxu1 %v9705_v1  ;;  %8064 = vmatprep.mubr.msk.f32.mxu0 %vm9706_vm1, %v9705_v1 }
 0x3ae   : > { %8078 = vmatpush3.msra.mxu1 %v1261_v23  ;;  %8128 = vmatprep.subr.mxu0 %v9705_v1 }
 0x3af   : > { %v1259_v2 = vpop.permute.xlu1 %1258  ;;  %8065 = vmatmul.mubr.msk.f32.gmra.mxu0 %vm1006_vm5, %v10118_v26  ;;  %8079 = vmatprep.subr.mxu1 %v9705_v1 }
 0x3b0   : > { %8080 = vmatpush3.msra.mxu1 %v1259_v2  ;;  %8129 = vmatpush3.xpose.msk.msra.mxu0 %vm1006_vm5, %v10210_v49 }
 0x3b1   : > { %8130 = vmatprep.mubr.msk.f32.mxu0 %vm9706_vm1, %v9705_v1  ;;  %8081 = vmatprep.subr.mxu1 %v9705_v1 }
 0x3b2   : > { %8202 = vmatprep.subr.mxu0 %v9705_v1 }
 0x3b3   : > { %v1257_v3 = vpop.permute.xlu1 %1256  ;;  %8131 = vmatmul.mubr.msk.f32.vlgmr.msra.gmra.mxu0 %vm1006_vm5, %v10212_v11 }
 0x3b4   : > { %8082 = vmatpush3.msra.mxu1 %v1257_v3  ;;  %8133 = vmatprep.mubr.msk.f32.mxu0 %vm9706_vm1, %v9705_v1 }
 0x3b5   : > { %8083 = vmatprep.subr.mxu1 %v9705_v1 }
 0x3b7   : > { %v1255_v36 = vpop.permute.xlu1 %1254  ;;  %8134 = vmatmul.mubr.msk.f32.gmra.mxu0 %vm1006_vm5, %v10216_v51 }
 0x3b8   : > { %8084 = vmatpush3.msra.mxu1 %v1255_v36  ;;  %8136 = vmatprep.mubr.msk.f32.mxu0 %vm9706_vm1, %v9705_v1 }
 0x3b9   : > { %8157 = vmatprep.subr.mxu1 %v9705_v1 }
 0x3bb   : > { %8137 = vmatmul.mubr.msk.f32.gmra.mxu0 %vm1006_vm5, %v10220_v52 }
 0x3bc   : > { %8139 = vmatprep.mubr.msk.f32.mxu0 %vm9706_vm1, %v9705_v1 }
 0x3bf   : > { %8140 = vmatmul.mubr.msk.f32.gmra.mxu0 %vm1006_vm5, %v10226_v53 }
 0x3c0   : > { %8142 = vmatprep.mubr.msk.f32.mxu0 %vm9706_vm1, %v9705_v1 }
 0x3c3   : > { %8143 = vmatmul.mubr.msk.f32.gmra.mxu0 %vm1006_vm5, %v10230_v54 }
 0x3c4   : > { %8145 = vmatprep.mubr.msk.f32.mxu0 %vm9706_vm1, %v9705_v1 }
 0x3c7   : > { %8146 = vmatmul.mubr.msk.f32.gmra.mxu0 %vm1006_vm5, %v10236_v56 }
 0x3c8   : > { %8148 = vmatprep.mubr.msk.f32.mxu0 %vm9706_vm1, %v9705_v1 }
 0x3cb   : > { %8149 = vmatmul.mubr.msk.f32.gmra.mxu0 %vm1006_vm5, %v10240_v17 }
 0x3cc   : > { %8151 = vmatprep.mubr.msk.f32.mxu0 %vm9706_vm1, %v9705_v1 }
 0x3cf   : > { %8152 = vmatmul.mubr.msk.f32.gmra.mxu0 %vm1006_vm5, %v10246_v57 }
 0x3d0   : > { %8154 = vmatprep.mubr.msk.f32.mxu0 %vm9706_vm1, %v9705_v1 }
 0x3d3   : > { %8155 = vmatmul.mubr.msk.f32.gmra.mxu0 %vm1006_vm5, %v10250_v58 }
 0x3d4   : > { %8204 = vmatprep.mubr.msk.f32.mxu0 %vm9706_vm1, %v9705_v1 }
 0x44f   : > { %v10333_v5 = vpop.f32.mrf.mxu0 }
 0x450   : > { %v1154_v43 = vsel %vm1153_vm6, %v10333_v5, -inf }
 0x451   : > { %1155 = vmax.xlane.f32.xlu1 %v1154_v43  ;;  %v8042_v10 = vpop.f32.mrf.mxu0 }
 0x453   : > { %v10337_v12 = vpop.f32.mrf.mxu0 }
 0x454   : > { %v1157_v13 = vsel %vm1153_vm6, %v10337_v12, -inf }
 0x455   : > { %1158 = vmax.xlane.f32.xlu0 %v1157_v13  ;;  %v8045_v18 = vpop.f32.mrf.mxu0 }
 0x457   : > { %v10341_v21 = vpop.f32.mrf.mxu0 }
 0x458   : > { %v1160_v24 = vsel %vm1153_vm6, %v10341_v21, -inf }
 0x459   : > { %1161 = vmax.xlane.f32.xlu0 %v1160_v24  ;;  %v8048_v60 = vpop.f32.mrf.mxu0 }
 0x45b   : > { %v10345_v27 = vpop.f32.mrf.mxu0 }
 0x45c   : > { %v1163_v28 = vsel %vm1153_vm6, %v10345_v27, -inf }
 0x45d   : > { %1164 = vmax.xlane.f32.xlu0 %v1163_v28  ;;  %v8051_v31 = vpop.f32.mrf.mxu0 }
 0x45f   : > { %v10349_v32 = vpop.f32.mrf.mxu0 }
 0x460   : > { %v1166_v33 = vsel %vm1153_vm6, %v10349_v32, -inf }
 0x461   : > { %1167 = vmax.xlane.f32.xlu1 %v1166_v33  ;;  %v8054_v34 = vpop.f32.mrf.mxu0 }
 0x462   : > { %v10411_v34 = vpop.permute.xlu1 %1714 }
 0x463   : > { %v10353_v0 = vpop.f32.mrf.mxu0 }
 0x464   : > { %v1169_v37 = vsel %vm1153_vm6, %v10353_v0, -inf }
 0x465   : > { %1170 = vmax.xlane.f32.xlu0 %v1169_v37  ;;  %v8057_v38 = vpop.f32.mrf.mxu0  ;;  %v10413_v37 = vpop.permute.xlu0 %1716 }
 0x467   : > { %v10357_v39 = vpop.f32.mrf.mxu0 }
 0x468   : > { %v1172_v41 = vsel %vm1153_vm6, %v10357_v39, -inf }
 0x469   : > { %1173 = vmax.xlane.f32.xlu1 %v1172_v41  ;;  %v8060_v42 = vpop.f32.mrf.mxu0 }
 0x46b   : > { %v10361_v44 = vpop.f32.mrf.mxu0 }
 0x46c   : > { %v1175_v6 = vsel %vm1153_vm6, %v10361_v44, -inf }
 0x46d   : > { %1176 = vmax.xlane.f32.xlu0 %v1175_v6  ;;  %v8063_v46 = vpop.f32.mrf.mxu0 }
 0x46f   : > { %v10365_v47 = vpop.f32.mrf.mxu0 }
 0x470   : > { %v1179_v48 = vsel %vm1178_vm7, %v10365_v47, -inf }
 0x471   : > { %1180 = vmax.xlane.f32.xlu1 %v1179_v48  ;;  %v8066_v49 = vpop.f32.mrf.mxu0 }
 0x473   : > { %v10369_v11 = vpop.f32.mrf.mxu0 }
 0x474   : > { %v1601_v51 = vsel %vm1153_vm6, %v10369_v11, -inf }
 0x475   : > { %1602 = vmax.xlane.f32.xlu0 %v1601_v51  ;;  %v8132_v52 = vpop.f32.mrf.mxu0 }
 0x477   : > { %v10373_v53 = vpop.f32.mrf.mxu0 }
 0x478   : > { %v1604_v54 = vsel %vm1153_vm6, %v10373_v53, -inf }
 0x479   : > { %1605 = vmax.xlane.f32.xlu1 %v1604_v54  ;;  %v8135_v56 = vpop.f32.mrf.mxu0 }
 0x47b   : > { %v10377_v17 = vpop.f32.mrf.mxu0 }
 0x47c   : > { %v1607_v57 = vsel %vm1153_vm6, %v10377_v17, -inf }
 0x47d   : > { %1608 = vmax.xlane.f32.xlu0 %v1607_v57  ;;  %v8138_v58 = vpop.f32.mrf.mxu0 }
 0x47f   : > { %v10381_v59 = vpop.f32.mrf.mxu0 }
 0x480   : > { %v1610_v23 = vsel %vm1153_vm6, %v10381_v59, -inf }
 0x481   : > { %1611 = vmax.xlane.f32.xlu1 %v1610_v23  ;;  %v8141_v61 = vpop.f32.mrf.mxu0 }
 0x483   : > { %v10385_v62 = vpop.f32.mrf.mxu0 }
 0x484   : > { %v1613_v63 = vsel %vm1153_vm6, %v10385_v62, -inf }
 0x485   : > { %1614 = vmax.xlane.f32.xlu0 %v1613_v63  ;;  %v8144_v29 = vpop.f32.mrf.mxu0 }
 0x487   : > { %v10389_v2 = vpop.f32.mrf.mxu0 }
 0x488   : > { %v1616_v60 = vsel %vm1153_vm6, %v10389_v2, -inf }
 0x489   : > { %v8147_v3 = vpop.f32.mrf.mxu0 }
 0x48b   : > { %v10391_v36 = vpop.f32.mrf.mxu0 }
 0x48c   : > { %v1619_v28 = vsel %vm1153_vm6, %v10391_v36, -inf }
 0x48d   : > { %v8150_v43 = vpop.f32.mrf.mxu0 }
 0x48f   : > { %v10393_v10 = vpop.f32.mrf.mxu0 }
 0x490   : > { %v1622_v31 = vsel %vm1153_vm6, %v10393_v10, -inf }
 0x491   : > { %v8153_v13 = vpop.f32.mrf.mxu0 }
 0x492   : > { %1710 = vrot.lane.b32.xlu1 %v10110_v16, %s13138_s29 }
 0x493   : > { %v10397_v18 = vpop.f32.mrf.mxu0 }
 0x494   : > { %v1625_v33 = vsel %vm1178_vm7, %v10397_v18, -inf }
 0x495   : > { %v8156_v24 = vpop.f32.mrf.mxu0 }
 0x496   : > { %1708 = vrot.lane.b32.xlu1 %v10108_v14, %s13138_s29 }
 0x49b   : > { %1712 = vrot.lane.b32.xlu0 %v10112_v19, %s13138_s29 }
 0x4ba   : > { %1617 = vmax.xlane.f32.xlu1 %v1616_v60  ;;  %1620 = vmax.xlane.f32.xlu0 %v1619_v28 }
 0x4be   : > { %1623 = vmax.xlane.f32.xlu1 %v1622_v31  ;;  %1626 = vmax.xlane.f32.xlu0 %v1625_v33 }
 0x4da   : > { %v1156_v38 = vpop.xlane.xlu1 %1155 }
 0x4db   : > { %v1182_v41 = vsub.f32 %v10333_v5, %v1156_v38 }
 0x4dd   : > { %v1191_v42 = vmul.f32 1.442695, %v1182_v41 }
 0x4de   : > { %v1159_v6 = vpop.xlane.xlu0 %1158 }
 0x4df   : > { %9297 = vpow2.f32 %v1191_v42  ;;  %v1183_v46 = vsub.f32 %v10337_v12, %v1159_v6 }
 0x4e1   : > { %v1193_v48 = vmul.f32 1.442695, %v1183_v46 }
 0x4e2   : > { %v1162_v49 = vpop.xlane.xlu0 %1161 }
 0x4e3   : > { %9299 = vpow2.f32 %v1193_v48  ;;  %v1184_v51 = vsub.f32 %v10341_v21, %v1162_v49 }
 0x4e5   : > { %v1195_v52 = vmul.f32 1.442695, %v1184_v51 }
 0x4e6   : > { %v1165_v54 = vpop.xlane.xlu0 %1164 }
 0x4e7   : > { %9301 = vpow2.f32 %v1195_v52  ;;  %v1185_v56 = vsub.f32 %v10345_v27, %v1165_v54 }
 0x4e9   : > { %v1197_v57 = vmul.f32 1.442695, %v1185_v56 }
 0x4ea   : > { %v1168_v58 = vpop.xlane.xlu1 %1167 }
 0x4eb   : > { %9303 = vpow2.f32 %v1197_v57  ;;  %v1186_v5 = vsub.f32 %v10349_v32, %v1168_v58 }
 0x4ec   : > { %v10420_v23 = vpop.eup %9297 }
 0x4ed   : > { %v1199_v61 = vmul.f32 1.442695, %v1186_v5  ;;  %v1209_v12 = vsel %vm1153_vm6, %v10420_v23, 0.0 }
 0x4ee   : > { %v1171_v63 = vpop.xlane.xlu0 %1170  ;;  %1210 = vadd.xlane.f32.xlu1 %v1209_v12 }
 0x4ef   : > { %9305 = vpow2.f32 %v1199_v61  ;;  %v1187_v21 = vsub.f32 %v10353_v0, %v1171_v63 }
 0x4f0   : > { %v10425_v29 = vpop.eup %9299 }
 0x4f1   : > { %v1201_v3 = vmul.f32 1.442695, %v1187_v21  ;;  %v1212_v27 = vsel %vm1153_vm6, %v10425_v29, 0.0 }
 0x4f2   : > { %v1174_v43 = vpop.xlane.xlu1 %1173  ;;  %1213 = vadd.xlane.f32.xlu0 %v1212_v27 }
 0x4f3   : > { %9307 = vpow2.f32 %v1201_v3  ;;  %v1188_v32 = vsub.f32 %v10357_v39, %v1174_v43 }
 0x4f4   : > { %v10430_v13 = vpop.eup %9301 }
 0x4f5   : > { %v1203_v24 = vmul.f32 1.442695, %v1188_v32  ;;  %v1215_v60 = vsel %vm1153_vm6, %v10430_v13, 0.0 }
 0x4f6   : > { %v1177_v28 = vpop.xlane.xlu0 %1176  ;;  %1216 = vadd.xlane.f32.xlu1 %v1215_v60 }
 0x4f7   : > { %9309 = vpow2.f32 %v1203_v24  ;;  %v1189_v0 = vsub.f32 %v10361_v44, %v1177_v28 }
 0x4f8   : > { %v10435_v31 = vpop.eup %9303 }
 0x4f9   : > { %v1205_v33 = vmul.f32 1.442695, %v1189_v0  ;;  %v1218_v38 = vsel %vm1153_vm6, %v10435_v31, 0.0 }
 0x4fa   : > { %v1181_v41 = vpop.xlane.xlu1 %1180  ;;  %1219 = vadd.xlane.f32.xlu1 %v1218_v38 }
 0x4fb   : > { %9311 = vpow2.f32 %v1205_v33  ;;  %v1190_v39 = vsub.f32 %v10365_v47, %v1181_v41 }
 0x4fc   : > { %v10440_v42 = vpop.eup %9305 }
 0x4fd   : > { %v1207_v6 = vmul.f32 1.442695, %v1190_v39  ;;  %v1221_v46 = vsel %vm1153_vm6, %v10440_v42, 0.0 }
 0x4fe   : > { %v1603_v48 = vpop.xlane.xlu0 %1602  ;;  %1222 = vadd.xlane.f32.xlu0 %v1221_v46 }
 0x4ff   : > { %9313 = vpow2.f32 %v1207_v6  ;;  %v1628_v44 = vsub.f32 %v10369_v11, %v1603_v48 }
 0x500   : > { %v10445_v49 = vpop.eup %9307 }
 0x501   : > { %v1637_v51 = vmul.f32 1.442695, %v1628_v44  ;;  %v1224_v52 = vsel %vm1153_vm6, %v10445_v49, 0.0 }
 0x502   : > { %v1606_v54 = vpop.xlane.xlu1 %1605  ;;  %1225 = vadd.xlane.f32.xlu1 %v1224_v52 }
 0x503   : > { %9315 = vpow2.f32 %v1637_v51  ;;  %v1629_v47 = vsub.f32 %v10373_v53, %v1606_v54 }
 0x504   : > { %v10450_v56 = vpop.eup %9309 }
 0x505   : > { %v1639_v57 = vmul.f32 1.442695, %v1629_v47  ;;  %v1227_v58 = vsel %vm1153_vm6, %v10450_v56, 0.0 }
 0x506   : > { %v1609_v5 = vpop.xlane.xlu0 %1608  ;;  %1228 = vadd.xlane.f32.xlu0 %v1227_v58 }
 0x507   : > { %9317 = vpow2.f32 %v1639_v57  ;;  %v1630_v11 = vsub.f32 %v10377_v17, %v1609_v5 }
 0x508   : > { %v10455_v61 = vpop.eup %9311 }
 0x509   : > { %v1641_v12 = vmul.f32 1.442695, %v1630_v11  ;;  %v1230_v63 = vsel %vm1153_vm6, %v10455_v61, 0.0 }
 0x50a   : > { %v1612_v21 = vpop.xlane.xlu1 %1611  ;;  %1231 = vadd.xlane.f32.xlu1 %v1230_v63 }
 0x50b   : > { %9319 = vpow2.f32 %v1641_v12  ;;  %v1631_v53 = vsub.f32 %v10381_v59, %v1612_v21 }
 0x50c   : > { %v10460_v3 = vpop.eup %9313 }
 0x50d   : > { %v1643_v27 = vmul.f32 1.442695, %v1631_v53  ;;  %v1233_v43 = vsel %vm1178_vm7, %v10460_v3, 0.0 }
 0x50e   : > { %v1615_v32 = vpop.xlane.xlu0 %1614  ;;  %1234 = vadd.xlane.f32.xlu0 %v1233_v43  ;;  %v10489_v46 = vpop.permute.xlu1 %1710 }
 0x50f   : > { %9321 = vpow2.f32 %v1643_v27  ;;  %v1632_v17 = vsub.f32 %v10385_v62, %v1615_v32 }
 0x510   : > { %v10465_v24 = vpop.eup %9315 }
 0x511   : > { %v1645_v60 = vmul.f32 1.442695, %v1632_v17  ;;  %v1655_v28 = vsel %vm1153_vm6, %v10465_v24, 0.0 }
 0x512   : > { %1656 = vadd.xlane.f32.xlu0 %v1655_v28  ;;  %v10491_v48 = vpop.permute.xlu1 %1708  ;;  %v1713_v44 = vpop.permute.xlu0 %1712 }
 0x513   : > { %9323 = vpow2.f32 %v1645_v60 }
 0x514   : > { %v10469_v59 = vpop.eup %9317 }
 0x515   : > { %v1658_v0 = vsel %vm1153_vm6, %v10469_v59, 0.0 }
 0x516   : > { %1659 = vadd.xlane.f32.xlu0 %v1658_v0 }
 0x518   : > { %v10473_v33 = vpop.eup %9319 }
 0x519   : > { %v1661_v38 = vsel %vm1153_vm6, %v10473_v33, 0.0 }
 0x51a   : > { %1662 = vadd.xlane.f32.xlu0 %v1661_v38 }
 0x51c   : > { %v10477_v62 = vpop.eup %9321 }
 0x51d   : > { %v1664_v41 = vsel %vm1153_vm6, %v10477_v62, 0.0 }
 0x51e   : > { %1665 = vadd.xlane.f32.xlu1 %v1664_v41 }
 0x520   : > { %v10481_v39 = vpop.eup %9323 }
 0x521   : > { %v1667_v6 = vsel %vm1153_vm6, %v10481_v39, 0.0 }
 0x522   : > { %1668 = vadd.xlane.f32.xlu0 %v1667_v6 }
 0x52f   : > { %1704 = vrot.lane.b32.xlu1 %v10104_v9, %s13138_s29 }
 0x538   : > { %1706 = vrot.lane.b32.xlu0 %v10106_v8, %s13138_s29 }
 0x543   : > { %v1618_v51 = vpop.xlane.xlu1 %1617  ;;  %v1621_v52 = vpop.xlane.xlu0 %1620 }
 0x544   : > { %v1633_v54 = vsub.f32 %v10389_v2, %v1618_v51  ;;  %v1634_v47 = vsub.f32 %v10391_v36, %v1621_v52 }
 0x546   : > { %v1647_v57 = vmul.f32 1.442695, %v1633_v54  ;;  %v1649_v58 = vmul.f32 1.442695, %v1634_v47 }
 0x547   : > { %v1627_v5 = vpop.xlane.xlu0 %1626  ;;  %v1624_v27 = vpop.xlane.xlu1 %1623 }
 0x548   : > { %9325 = vpow2.f32 %v1647_v57  ;;  %v1636_v11 = vsub.f32 %v10397_v18, %v1627_v5  ;;  %v1635_v43 = vsub.f32 %v10393_v10, %v1624_v27 }
 0x549   : > { %9327 = vpow2.f32 %v1649_v58 }
 0x54a   : > { %v1653_v12 = vmul.f32 1.442695, %v1636_v11  ;;  %v1651_v17 = vmul.f32 1.442695, %v1635_v43 }
 0x54c   : > { %9329 = vpow2.f32 %v1653_v12 }
 0x555   : > { %v10496_v63 = vpop.eup %9325 }
 0x556   : > { %v10498_v21 = vpop.eup %9327  ;;  %v1670_v53 = vsel %vm1153_vm6, %v10496_v63, 0.0 }
 0x557   : > { %1671 = vadd.xlane.f32.xlu1 %v1670_v53  ;;  %v1673_v2 = vsel %vm1153_vm6, %v10498_v21, 0.0 }
 0x558   : > { %1674 = vadd.xlane.f32.xlu0 %v1673_v2 }
 0x559   : > { %v10504_v36 = vpop.eup %9329 }
 0x55a   : > { %v1679_v18 = vsel %vm1178_vm7, %v10504_v36, 0.0 }
 0x55c   : > { %1680 = vadd.xlane.f32.xlu0 %v1679_v18 }
 0x568   : > { %1702 = vrot.lane.b32.xlu1 %v10102_v7, %s13138_s29 }
 0x56c   : > { %1700 = vrot.lane.b32.xlu1 %v10100_v4, %s13138_s29  ;;  %s13142_s29 = smov 48  }
 0x572   : > { %2173 = vrot.lane.b32.xlu0 %v10118_v26, %s13134_s18 }
 0x576   : > { %2169 = vrot.lane.b32.xlu0 %v10112_v19, %s13134_s18 }
 0x577   : > { %v1211_v32 = vpop.xlane.xlu1 %1210 }
 0x578   : > { %9331 = vrcp.f32 %v1211_v32 }
 0x57a   : > { %2167 = vrot.lane.b32.xlu0 %v10110_v16, %s13134_s18 }
 0x57b   : > { %v1214_v60 = vpop.xlane.xlu0 %1213 }
 0x57c   : > { %9333 = vrcp.f32 %v1214_v60 }
 0x57d   : > { %9335 = vpow2.f32 %v1651_v17 }
 0x57e   : > { %2165 = vrot.lane.b32.xlu0 %v10108_v14, %s13134_s18 }
 0x57f   : > { %v1217_v28 = vpop.xlane.xlu1 %1216 }
 0x580   : > { %9337 = vrcp.f32 %v1217_v28 }
 0x582   : > { %2163 = vrot.lane.b32.xlu0 %v10106_v8, %s13134_s18 }
 0x583   : > { %v1220_v0 = vpop.xlane.xlu1 %1219 }
 0x584   : > { %9339 = vrcp.f32 %v1220_v0 }
 0x585   : > { %v9332_v10 = vpop.eup %9331 }
 0x586   : > { %v1245_v38 = vmul.f32 %v9332_v10, %v10420_v23  ;;  %2159 = vrot.lane.b32.xlu0 %v10102_v7, %s13134_s18  ;;  %v975_v10 = vld [vmem:[%s13122_s6] sm:$0xff] }
 0x587   : > { %v1223_v41 = vpop.xlane.xlu0 %1222 }
 0x588   : > { %9341 = vrcp.f32 %v1223_v41  ;;  %8086 = vmatmul.mubr.msk.f32.vlgmr.msra.gmra.mxu1 %vm1153_vm6, %v1245_v38 }
 0x589   : > { %v9334_v6 = vpop.eup %9333  ;;  %8158 = vmatpush3.msk.msra.mxu1 %vm568_vm0, %v10413_v37  ;;  %8088 = vmatprep.mubr.msk.f32.mxu1 %vm9706_vm1, %v9705_v1 }
 0x58a   : > { %8159 = vmatprep.subr.mxu1 %v9705_v1  ;;  %2139 = vrot.lane.b32.xlu0 %v10100_v4, %s13136_s23  ;;  %v1246_v23 = vmul.f32 %v9334_v6, %v10425_v29  ;;  %v10536_v52 = vpop.eup %9335 }
 0x58b   : > { %8160 = vmatpush3.msra.mxu1 %v10411_v34  ;;  %v1226_v51 = vpop.xlane.xlu1 %1225  ;;  %v1676_v54 = vsel %vm1153_vm6, %v10536_v52, 0.0 }
 0x58c   : > { %8161 = vmatprep.subr.mxu1 %v9705_v1  ;;  %9343 = vrcp.f32 %v1226_v51  ;;  %8089 = vmatmul.mubr.msk.f32.gmra.mxu1 %vm1153_vm6, %v1246_v23 }
 0x58d   : > { %v9338_v37 = vpop.eup %9337  ;;  %8162 = vmatpush3.msra.mxu1 %v1713_v44  ;;  %8091 = vmatprep.mubr.msk.f32.mxu1 %vm9706_vm1, %v9705_v1 }
 0x58e   : > { %8163 = vmatprep.subr.mxu1 %v9705_v1  ;;  %2143 = vrot.lane.b32.xlu0 %v10104_v9, %s13136_s23  ;;  %v1247_v34 = vmul.f32 %v9338_v37, %v10430_v13 }
 0x58f   : > { %8164 = vmatpush3.msra.mxu1 %v10489_v46  ;;  %v1229_v29 = vpop.xlane.xlu0 %1228 }
 0x590   : > { %8165 = vmatprep.subr.mxu1 %v9705_v1  ;;  %9345 = vrcp.f32 %v1229_v29  ;;  %1677 = vadd.xlane.f32.xlu1 %v1676_v54 }
 0x591   : > { %v9340_v44 = vpop.eup %9339  ;;  %8092 = vmatmul.mubr.msk.f32.gmra.mxu1 %vm1153_vm6, %v1247_v34 }
 0x592   : > { %8166 = vmatpush3.msra.mxu1 %v10491_v48  ;;  %2147 = vrot.lane.b32.xlu0 %v10108_v14, %s13136_s23  ;;  %v1248_v13 = vmul.f32 %v9340_v44, %v10435_v31 }
 0x593   : > { %v1232_v47 = vpop.xlane.xlu1 %1231  ;;  %8094 = vmatprep.mubr.msk.f32.mxu1 %vm9706_vm1, %v9705_v1  ;;  %8167 = vmatprep.subr.mxu1 %v9705_v1 }
 0x594   : > { %9347 = vrcp.f32 %v1232_v47 }
 0x595   : > { %v9342_v46 = vpop.eup %9341  ;;  %8095 = vmatmul.mubr.msk.f32.gmra.mxu1 %vm1153_vm6, %v1248_v13 }
 0x596   : > { %2151 = vrot.lane.b32.xlu0 %v10112_v19, %s13136_s23  ;;  %8097 = vmatprep.mubr.msk.f32.mxu1 %vm9706_vm1, %v9705_v1  ;;  %v1249_v48 = vmul.f32 %v9342_v46, %v10440_v42 }
 0x597   : > { %v1235_v57 = vpop.xlane.xlu0 %1234 }
 0x598   : > { %9349 = vrcp.f32 %v1235_v57 }
 0x599   : > { %v9344_v31 = vpop.eup %9343  ;;  %8098 = vmatmul.mubr.msk.f32.gmra.mxu1 %vm1153_vm6, %v1249_v48 }
 0x59a   : > { %2155 = vrot.lane.b32.xlu0 %v10118_v26, %s13136_s23  ;;  %8100 = vmatprep.mubr.msk.f32.mxu1 %vm9706_vm1, %v9705_v1  ;;  %v1250_v58 = vmul.f32 %v9344_v31, %v10445_v49 }
 0x59b   : > { %v1657_v5 = vpop.xlane.xlu0 %1656 }
 0x59c   : > { %9351 = vrcp.f32 %v1657_v5 }
 0x59d   : > { %v9346_v11 = vpop.eup %9345  ;;  %8101 = vmatmul.mubr.msk.f32.gmra.mxu1 %vm1153_vm6, %v1250_v58 }
 0x59e   : > { %8103 = vmatprep.mubr.msk.f32.mxu1 %vm9706_vm1, %v9705_v1  ;;  %v1251_v42 = vmul.f32 %v9346_v11, %v10450_v56 }
 0x59f   : > { %v1660_v53 = vpop.xlane.xlu0 %1659 }
 0x5a0   : > { %9353 = vrcp.f32 %v1660_v53 }
 0x5a1   : > { %v9348_v12 = vpop.eup %9347  ;;  %8104 = vmatmul.mubr.msk.f32.gmra.mxu1 %vm1153_vm6, %v1251_v42  ;;  %2171 = vrot.lane.b32.xlu1 %v10114_v22, %s13134_s18 }
 0x5a2   : > { %8106 = vmatprep.mubr.msk.f32.mxu1 %vm9706_vm1, %v9705_v1  ;;  %v1252_v49 = vmul.f32 %v9348_v12, %v10455_v61 }
 0x5a3   : > { %v1663_v18 = vpop.xlane.xlu0 %1662 }
 0x5a4   : > { %9355 = vrcp.f32 %v1663_v18 }
 0x5a5   : > { %v9350_v2 = vpop.eup %9349  ;;  %8107 = vmatmul.mubr.msk.f32.gmra.mxu1 %vm1153_vm6, %v1252_v49  ;;  %2161 = vrot.lane.b32.xlu1 %v10104_v9, %s13134_s18 }
 0x5a6   : > { %8109 = vmatprep.mubr.msk.f32.mxu1 %vm9706_vm1, %v9705_v1  ;;  %v1253_v56 = vmul.f32 %v9350_v2, %v10460_v3 }
 0x5a7   : > { %v1666_v61 = vpop.xlane.xlu1 %1665 }
 0x5a8   : > { %9357 = vrcp.f32 %v1666_v61 }
 0x5a9   : > { %8110 = vmatmul.mubr.msk.f32.gmra.mxu1 %vm1153_vm6, %v1253_v56  ;;  %2157 = vrot.lane.b32.xlu1 %v10100_v4, %s13134_s18  ;;  %v9352_v60 = vpop.eup %9351  ;;  %s13140_s18 = smov 72  }
 0x5aa   : > { %8175 = vmatprep.mubr.msk.f32.mxu1 %vm9706_vm1, %v9705_v1  ;;  %v1691_v28 = vmul.f32 %v9352_v60, %v10465_v24  ;;  %v976_v24 = vld [vmem:[%s13122_s6 + $0x8] sm:$0xff] }
 0x5ab   : > { %v1669_v27 = vpop.xlane.xlu0 %1668  ;;  %v1705_v32 = vpop.permute.xlu1 %1704  ;;  %8203 = vmatpush3.msra.mxu0 %v976_v24 }
 0x5ac   : > { %9359 = vrcp.f32 %v1669_v27  ;;  %8260 = vmatprep.subr.mxu0 %v9705_v1 }
 0x5ad   : > { %2141 = vrot.lane.b32.xlu1 %v10102_v7, %s13136_s23  ;;  %v9354_v38 = vpop.eup %9353 }
 0x5ae   : > { %v1692_v41 = vmul.f32 %v9354_v38, %v10469_v59 }
 0x5af   : > { %v1707_v43 = vpop.permute.xlu0 %1706 }
 0x5b0   : > { %8168 = vmatpush3.msra.mxu1 %v1707_v43 }
 0x5b1   : > { %2145 = vrot.lane.b32.xlu1 %v10106_v8, %s13136_s23  ;;  %8169 = vmatprep.subr.mxu1 %v9705_v1  ;;  %v9356_v6 = vpop.eup %9355 }
 0x5b2   : > { %8170 = vmatpush3.msra.mxu1 %v1705_v32  ;;  %v1693_v51 = vmul.f32 %v9356_v6, %v10473_v33 }
 0x5b3   : > { %8171 = vmatprep.subr.mxu1 %v9705_v1 }
 0x5b5   : > { %2149 = vrot.lane.b32.xlu1 %v10110_v16, %s13136_s23  ;;  %v9358_v37 = vpop.eup %9357 }
 0x5b6   : > { %v1694_v59 = vmul.f32 %v9358_v37, %v10477_v62 }
 0x5b9   : > { %2153 = vrot.lane.b32.xlu1 %v10114_v22, %s13136_s23  ;;  %v9360_v34 = vpop.eup %9359  ;;  %s13146_s23 = smov 104  }
 0x5ba   : > { %v1695_v29 = vmul.f32 %v9360_v34, %v10481_v39 }
 0x5e0   : > { %v1672_v3 = vpop.xlane.xlu1 %1671 }
 0x5e1   : > { %9361 = vrcp.f32 %v1672_v3  ;;  %v1675_v23 = vpop.xlane.xlu0 %1674 }
 0x5e2   : > { %9363 = vrcp.f32 %v1675_v23 }
 0x5e4   : > { %v1703_v17 = vpop.permute.xlu1 %1702 }
 0x5e5   : > { %8172 = vmatpush3.msra.mxu1 %v1703_v17  ;;  %v1681_v39 = vpop.xlane.xlu0 %1680 }
 0x5e6   : > { %8173 = vmatprep.subr.mxu1 %v9705_v1 }
 0x5e8   : > { %v1701_v0 = vpop.permute.xlu1 %1700 }
 0x5e9   : > { %8174 = vmatpush3.msra.mxu1 %v1701_v0  ;;  %v2174_v32 = vpop.permute.xlu0 %2173 }
 0x5ea   : > { %8176 = vmatmul.mubr.msk.f32.vlgmr.msra.gmra.mxu1 %vm1153_vm6, %v1691_v28  ;;  %8231 = vmatprep.subr.mxu1 %v9705_v1 }
 0x5eb   : > { %8178 = vmatprep.mubr.msk.f32.mxu1 %vm9706_vm1, %v9705_v1  ;;  %8232 = vmatpush3.msra.mxu1 %v975_v10 }
 0x5ec   : > { %8305 = vmatprep.subr.mxu1 %v9705_v1 }
 0x5ed   : > { %v2170_v60 = vpop.permute.xlu0 %2169 }
 0x5ee   : > { %8179 = vmatmul.mubr.msk.f32.gmra.mxu1 %vm1153_vm6, %v1692_v41  ;;  %v9362_v54 = vpop.eup %9361 }
 0x5ef   : > { %8181 = vmatprep.mubr.msk.f32.mxu1 %vm9706_vm1, %v9705_v1  ;;  %v1696_v33 = vmul.f32 %v9362_v54, %v10496_v63  ;;  %v9364_v44 = vpop.eup %9363 }
 0x5f0   : > { %v1697_v62 = vmul.f32 %v9364_v44, %v10498_v21 }
 0x5f1   : > { %v2168_v24 = vpop.permute.xlu0 %2167 }
 0x5f2   : > { %8182 = vmatmul.mubr.msk.f32.gmra.mxu1 %vm1153_vm6, %v1693_v51 }
 0x5f3   : > { %8184 = vmatprep.mubr.msk.f32.mxu1 %vm9706_vm1, %v9705_v1 }
 0x5f5   : > { %v2166_v51 = vpop.permute.xlu0 %2165 }
 0x5f6   : > { %8185 = vmatmul.mubr.msk.f32.gmra.mxu1 %vm1153_vm6, %v1694_v59 }
 0x5f7   : > { %8187 = vmatprep.mubr.msk.f32.mxu1 %vm9706_vm1, %v9705_v1 }
 0x5fa   : > { %8188 = vmatmul.mubr.msk.f32.gmra.mxu1 %vm1153_vm6, %v1695_v29  ;;  %v2164_v29 = vpop.permute.xlu0 %2163 }
 0x5fb   : > { %8190 = vmatprep.mubr.msk.f32.mxu1 %vm9706_vm1, %v9705_v1 }
 0x5fe   : > { %8191 = vmatmul.mubr.msk.f32.gmra.mxu1 %vm1153_vm6, %v1696_v33 }
 0x5ff   : > { %8193 = vmatprep.mubr.msk.f32.mxu1 %vm9706_vm1, %v9705_v1 }
 0x602   : > { %8194 = vmatmul.mubr.msk.f32.gmra.mxu1 %vm1153_vm6, %v1697_v62 }
 0x603   : > { %8196 = vmatprep.mubr.msk.f32.mxu1 %vm9706_vm1, %v9705_v1 }
 0x619   : > { %v1678_v13 = vpop.xlane.xlu1 %1677 }
 0x61a   : > { %9365 = vrcp.f32 %v1678_v13 }
 0x61b   : > { %9367 = vrcp.f32 %v1681_v39  ;;  %v2160_v39 = vpop.permute.xlu0 %2159 }
 0x61d   : > { %v2172_v0 = vpop.permute.xlu1 %2171 }
 0x621   : > { %v2162_v44 = vpop.permute.xlu1 %2161 }
 0x625   : > { %v2158_v13 = vpop.permute.xlu1 %2157 }
 0x627   : > { %v9366_v47 = vpop.eup %9365 }
 0x628   : > { %v1698_v63 = vmul.f32 %v9366_v47, %v10536_v52  ;;  %v9368_v46 = vpop.eup %9367 }
 0x629   : > { %v1699_v21 = vmul.f32 %v9368_v46, %v10504_v36 }
 0x62a   : > { %8197 = vmatmul.mubr.msk.f32.gmra.mxu1 %vm1153_vm6, %v1698_v63 }
 0x62b   : > { %8199 = vmatprep.mubr.msk.f32.mxu1 %vm9706_vm1, %v9705_v1 }
 0x62e   : > { %8200 = vmatmul.mubr.msk.f32.gmra.mxu1 %vm1153_vm6, %v1699_v21 }
 0x62f   : > { %8233 = vmatprep.mubr.msk.f32.mxu1 %vm9706_vm1, %v9705_v1 }
 0x648   : > { %v1375_v48 = vpop.f32.mrf.mxu1 }
 0x649   : > { %8234 = vmatmul.mubr.msk.f32.vlgmr.msra.gmra.mxu1 %vm1006_vm5, %v1375_v48  ;;  %v2140_v48 = vpop.permute.xlu0 %2139 }
 0x64a   : > { %v8087_v57 = vpop.f32.mrf.mxu1  ;;  %8236 = vmatprep.mubr.msk.f32.mxu1 %vm9706_vm1, %v9705_v1 }
 0x64b   : > { %v2142_v57 = vpop.permute.xlu1 %2141 }
 0x64c   : > { %v1380_v52 = vpop.f32.mrf.mxu1 }
 0x64d   : > { %8237 = vmatmul.mubr.msk.f32.gmra.mxu1 %vm1006_vm5, %v1380_v52  ;;  %v2144_v52 = vpop.permute.xlu0 %2143 }
 0x64e   : > { %v8090_v31 = vpop.f32.mrf.mxu1  ;;  %8239 = vmatprep.mubr.msk.f32.mxu1 %vm9706_vm1, %v9705_v1 }
 0x64f   : > { %v2146_v31 = vpop.permute.xlu1 %2145 }
 0x651   : > { %v1385_v36 = vpop.f32.mrf.mxu1 }
 0x652   : > { %8240 = vmatmul.mubr.msk.f32.gmra.mxu1 %vm1006_vm5, %v1385_v36  ;;  %v2148_v36 = vpop.permute.xlu0 %2147 }
 0x653   : > { %v8093_v58 = vpop.f32.mrf.mxu1  ;;  %8242 = vmatprep.mubr.msk.f32.mxu1 %vm9706_vm1, %v9705_v1 }
 0x654   : > { %v2150_v58 = vpop.permute.xlu1 %2149 }
 0x655   : > { %v1390_v5 = vpop.f32.mrf.mxu1 }
 0x656   : > { %8243 = vmatmul.mubr.msk.f32.gmra.mxu1 %vm1006_vm5, %v1390_v5 }
 0x657   : > { %v8096_v11 = vpop.f32.mrf.mxu1  ;;  %8245 = vmatprep.mubr.msk.f32.mxu1 %vm9706_vm1, %v9705_v1 }
 0x658   : > { %v2152_v11 = vpop.permute.xlu0 %2151 }
 0x659   : > { %v1395_v42 = vpop.f32.mrf.mxu1 }
 0x65a   : > { %8246 = vmatmul.mubr.msk.f32.gmra.mxu1 %vm1006_vm5, %v1395_v42 }
 0x65b   : > { %v8099_v12 = vpop.f32.mrf.mxu1  ;;  %8248 = vmatprep.mubr.msk.f32.mxu1 %vm9706_vm1, %v9705_v1 }
 0x65d   : > { %v1400_v53 = vpop.f32.mrf.mxu1 }
 0x65e   : > { %8249 = vmatmul.mubr.msk.f32.gmra.mxu1 %vm1006_vm5, %v1400_v53  ;;  %v2154_v53 = vpop.permute.xlu1 %2153 }
 0x65f   : > { %v8102_v49 = vpop.f32.mrf.mxu1  ;;  %8251 = vmatprep.mubr.msk.f32.mxu1 %vm9706_vm1, %v9705_v1 }
 0x661   : > { %v1405_v2 = vpop.f32.mrf.mxu1 }
 0x662   : > { %8252 = vmatmul.mubr.msk.f32.gmra.mxu1 %vm1006_vm5, %v1405_v2  ;;  %v2156_v2 = vpop.permute.xlu0 %2155 }
 0x663   : > { %v8105_v56 = vpop.f32.mrf.mxu1  ;;  %8254 = vmatprep.mubr.msk.f32.mxu1 %vm9706_vm1, %v9705_v1 }
 0x665   : > { %v1410_v18 = vpop.f32.mrf.mxu1 }
 0x666   : > { %8255 = vmatmul.mubr.msk.f32.gmra.mxu1 %vm1006_vm5, %v1410_v18 }
 0x667   : > { %v8108_v61 = vpop.f32.mrf.mxu1  ;;  %8257 = vmatprep.mubr.msk.f32.mxu1 %vm9706_vm1, %v9705_v1 }
 0x669   : > { %v1415_v27 = vpop.f32.mrf.mxu1 }
 0x66a   : > { %8258 = vmatmul.mubr.msk.f32.gmra.mxu1 %vm1006_vm5, %v1415_v27 }
 0x66b   : > { %v8111_v43 = vpop.f32.mrf.mxu1  ;;  %8323 = vmatprep.mubr.msk.f32.mxu1 %vm9706_vm1, %v9705_v1 }
 0x6aa   : > { %v1821_v3 = vpop.f32.mrf.mxu1 }
 0x6ab   : > { %8205 = vmatmul.mubr.msk.f32.vlgmr.msra.gmra.mxu0 %vm1006_vm5, %v1821_v3 }
 0x6ac   : > { %8261 = vmatpush3.xpose.msk.msra.mxu0 %vm1006_vm5, %v2174_v32  ;;  %v8177_v17 = vpop.f32.mrf.mxu1  ;;  %8207 = vmatprep.mubr.msk.f32.mxu0 %vm9706_vm1, %v9705_v1 }
 0x6ad   : > { %8262 = vmatprep.subr.mxu0 %v9705_v1 }
 0x6ae   : > { %v1826_v28 = vpop.f32.mrf.mxu1 }
 0x6af   : > { %8208 = vmatmul.mubr.msk.f32.gmra.mxu0 %vm1006_vm5, %v1826_v28 }
 0x6b0   : > { %8263 = vmatpush3.xpose.msk.msra.mxu0 %vm1006_vm5, %v2172_v0  ;;  %v8180_v10 = vpop.f32.mrf.mxu1  ;;  %8210 = vmatprep.mubr.msk.f32.mxu0 %vm9706_vm1, %v9705_v1 }
 0x6b1   : > { %8264 = vmatprep.subr.mxu0 %v9705_v1 }
 0x6b2   : > { %v1831_v38 = vpop.f32.mrf.mxu1 }
 0x6b3   : > { %8211 = vmatmul.mubr.msk.f32.gmra.mxu0 %vm1006_vm5, %v1831_v38 }
 0x6b4   : > { %8265 = vmatpush3.xpose.msk.msra.mxu0 %vm1006_vm5, %v2170_v60  ;;  %v8183_v41 = vpop.f32.mrf.mxu1  ;;  %8213 = vmatprep.mubr.msk.f32.mxu0 %vm9706_vm1, %v9705_v1 }
 0x6b5   : > { %8266 = vmatprep.subr.mxu0 %v9705_v1 }
 0x6b6   : > { %v1836_v6 = vpop.f32.mrf.mxu1 }
 0x6b7   : > { %8214 = vmatmul.mubr.msk.f32.gmra.mxu0 %vm1006_vm5, %v1836_v6 }
 0x6b8   : > { %8267 = vmatpush3.xpose.msk.msra.mxu0 %vm1006_vm5, %v2168_v24  ;;  %v8186_v23 = vpop.f32.mrf.mxu1  ;;  %8216 = vmatprep.mubr.msk.f32.mxu0 %vm9706_vm1, %v9705_v1 }
 0x6b9   : > { %8268 = vmatprep.subr.mxu0 %v9705_v1 }
 0x6ba   : > { %v1841_v37 = vpop.f32.mrf.mxu1 }
 0x6bb   : > { %8217 = vmatmul.mubr.msk.f32.gmra.mxu0 %vm1006_vm5, %v1841_v37 }
 0x6bc   : > { %8269 = vmatpush3.xpose.msk.msra.mxu0 %vm1006_vm5, %v2166_v51  ;;  %v8189_v59 = vpop.f32.mrf.mxu1  ;;  %8219 = vmatprep.mubr.msk.f32.mxu0 %vm9706_vm1, %v9705_v1 }
 0x6bd   : > { %8270 = vmatprep.subr.mxu0 %v9705_v1 }
 0x6be   : > { %v1846_v34 = vpop.f32.mrf.mxu1 }
 0x6bf   : > { %8220 = vmatmul.mubr.msk.f32.gmra.mxu0 %vm1006_vm5, %v1846_v34 }
 0x6c0   : > { %8271 = vmatpush3.xpose.msk.msra.mxu0 %vm1006_vm5, %v2164_v29  ;;  %v8192_v54 = vpop.f32.mrf.mxu1  ;;  %8222 = vmatprep.mubr.msk.f32.mxu0 %vm9706_vm1, %v9705_v1 }
 0x6c1   : > { %8272 = vmatprep.subr.mxu0 %v9705_v1 }
 0x6c2   : > { %v1851_v33 = vpop.f32.mrf.mxu1 }
 0x6c3   : > { %8223 = vmatmul.mubr.msk.f32.gmra.mxu0 %vm1006_vm5, %v1851_v33 }
 0x6c4   : > { %8273 = vmatpush3.xpose.msk.msra.mxu0 %vm1006_vm5, %v2162_v44  ;;  %v8195_v62 = vpop.f32.mrf.mxu1  ;;  %8225 = vmatprep.mubr.msk.f32.mxu0 %vm9706_vm1, %v9705_v1 }
 0x6c5   : > { %8274 = vmatprep.subr.mxu0 %v9705_v1 }
 0x6c8   : > { %8275 = vmatpush3.xpose.msk.msra.mxu0 %vm1006_vm5, %v2160_v39 }
 0x6c9   : > { %8276 = vmatprep.subr.mxu0 %v9705_v1 }
 0x6cc   : > { %8277 = vmatpush3.xpose.msk.msra.mxu0 %vm1006_vm5, %v2158_v13 }
 0x6cd   : > { %8350 = vmatprep.subr.mxu0 %v9705_v1 }
 0x6ea   : > { %v1856_v47 = vpop.f32.mrf.mxu1 }
 0x6eb   : > { %8226 = vmatmul.mubr.msk.f32.gmra.mxu0 %vm1006_vm5, %v1856_v47 }
 0x6ec   : > { %v8198_v63 = vpop.f32.mrf.mxu1  ;;  %8228 = vmatprep.mubr.msk.f32.mxu0 %vm9706_vm1, %v9705_v1 }
 0x6ee   : > { %v1861_v46 = vpop.f32.mrf.mxu1 }
 0x6ef   : > { %8229 = vmatmul.mubr.msk.f32.gmra.mxu0 %vm1006_vm5, %v1861_v46 }
 0x6f0   : > { %v8201_v21 = vpop.f32.mrf.mxu1  ;;  %8278 = vmatprep.mubr.msk.f32.mxu0 %vm9706_vm1, %v9705_v1 }
 0x6f3   : > { %8279 = vmatmul.mubr.msk.f32.vlgmr.msra.gmra.mxu0 %vm1006_vm5, %v2140_v48 }
 0x6f4   : > { %8281 = vmatprep.mubr.msk.f32.mxu0 %vm9706_vm1, %v9705_v1 }
 0x6f7   : > { %8282 = vmatmul.mubr.msk.f32.gmra.mxu0 %vm1006_vm5, %v2142_v57 }
 0x6f8   : > { %8284 = vmatprep.mubr.msk.f32.mxu0 %vm9706_vm1, %v9705_v1 }
 0x6fb   : > { %8285 = vmatmul.mubr.msk.f32.gmra.mxu0 %vm1006_vm5, %v2144_v52 }
 0x6fc   : > { %8287 = vmatprep.mubr.msk.f32.mxu0 %vm9706_vm1, %v9705_v1 }
 0x6ff   : > { %8288 = vmatmul.mubr.msk.f32.gmra.mxu0 %vm1006_vm5, %v2146_v31 }
 0x700   : > { %8290 = vmatprep.mubr.msk.f32.mxu0 %vm9706_vm1, %v9705_v1 }
 0x703   : > { %8291 = vmatmul.mubr.msk.f32.gmra.mxu0 %vm1006_vm5, %v2148_v36 }
 0x704   : > { %8293 = vmatprep.mubr.msk.f32.mxu0 %vm9706_vm1, %v9705_v1 }
 0x707   : > { %8294 = vmatmul.mubr.msk.f32.gmra.mxu0 %vm1006_vm5, %v2150_v58 }
 0x708   : > { %8296 = vmatprep.mubr.msk.f32.mxu0 %vm9706_vm1, %v9705_v1 }
 0x709   : > { %v10737_v5 = vpop.f32.mrf.mxu1 }
 0x70b   : > { %v8235_v42 = vpop.f32.mrf.mxu1  ;;  %8297 = vmatmul.mubr.msk.f32.gmra.mxu0 %vm1006_vm5, %v2152_v11 }
 0x70c   : > { %8299 = vmatprep.mubr.msk.f32.mxu0 %vm9706_vm1, %v9705_v1 }
 0x70d   : > { %v10742_v12 = vpop.f32.mrf.mxu1 }
 0x70f   : > { %v8238_v49 = vpop.f32.mrf.mxu1  ;;  %8300 = vmatmul.mubr.msk.f32.gmra.mxu0 %vm1006_vm5, %v2154_v53 }
 0x710   : > { %8302 = vmatprep.mubr.msk.f32.mxu0 %vm9706_vm1, %v9705_v1 }
 0x712   : > { %v10747_v56 = vpop.f32.mrf.mxu1 }
 0x713   : > { %8303 = vmatmul.mubr.msk.f32.gmra.mxu0 %vm1006_vm5, %v2156_v2 }
 0x714   : > { %v8241_v18 = vpop.f32.mrf.mxu1  ;;  %8352 = vmatprep.mubr.msk.f32.mxu0 %vm9706_vm1, %v9705_v1 }
 0x716   : > { %v10752_v61 = vpop.f32.mrf.mxu1 }
 0x718   : > { %v8244_v27 = vpop.f32.mrf.mxu1 }
 0x71a   : > { %v10754_v43 = vpop.f32.mrf.mxu1 }
 0x71c   : > { %v8247_v32 = vpop.f32.mrf.mxu1 }
 0x71e   : > { %v10756_v3 = vpop.f32.mrf.mxu1 }
 0x720   : > { %v8250_v17 = vpop.f32.mrf.mxu1 }
 0x722   : > { %v10758_v60 = vpop.f32.mrf.mxu1 }
 0x724   : > { %v8253_v28 = vpop.f32.mrf.mxu1 }
 0x726   : > { %v10760_v0 = vpop.f32.mrf.mxu1 }
 0x728   : > { %v8256_v10 = vpop.f32.mrf.mxu1 }
 0x72a   : > { %v10762_v38 = vpop.f32.mrf.mxu1 }
 0x72c   : > { %v8259_v24 = vpop.f32.mrf.mxu1 }
 0x76b   : > { %v10764_v41 = vpop.f32.mrf.mxu0 }
 0x76d   : > { %v8206_v6 = vpop.f32.mrf.mxu0 }
 0x76f   : > { %v10766_v23 = vpop.f32.mrf.mxu0 }
 0x771   : > { %v8209_v51 = vpop.f32.mrf.mxu0 }
 0x773   : > { %v10768_v37 = vpop.f32.mrf.mxu0 }
 0x775   : > { %v8212_v59 = vpop.f32.mrf.mxu0 }
 0x777   : > { %v10770_v34 = vpop.f32.mrf.mxu0 }
 0x779   : > { %v8215_v29 = vpop.f32.mrf.mxu0 }
 0x77b   : > { %v10772_v54 = vpop.f32.mrf.mxu0 }
 0x77d   : > { %v8218_v33 = vpop.f32.mrf.mxu0 }
 0x77f   : > { %v10774_v44 = vpop.f32.mrf.mxu0 }
 0x781   : > { %v8221_v62 = vpop.f32.mrf.mxu0 }
 0x783   : > { %v10776_v39 = vpop.f32.mrf.mxu0 }
 0x785   : > { %v8224_v13 = vpop.f32.mrf.mxu0 }
 0x7ab   : > { %v10778_v47 = vpop.f32.mrf.mxu0 }
 0x7ad   : > { %v8227_v63 = vpop.f32.mrf.mxu0 }
 0x7af   : > { %v10780_v46 = vpop.f32.mrf.mxu0 }
 0x7b1   : > { %v8230_v21 = vpop.f32.mrf.mxu0 }
 0x7b3   : > { %v2277_v48 = vpop.f32.mrf.mxu0 }
 0x7b4   : > { %v2321_v57 = vsel %vm1153_vm6, %v2277_v48, -inf }
 0x7b5   : > { %2322 = vmax.xlane.f32.xlu1 %v2321_v57  ;;  %v8280_v52 = vpop.f32.mrf.mxu0 }
 0x7b7   : > { %v2282_v31 = vpop.f32.mrf.mxu0 }
 0x7b8   : > { %v2324_v36 = vsel %vm1153_vm6, %v2282_v31, -inf }
 0x7b9   : > { %2325 = vmax.xlane.f32.xlu0 %v2324_v36  ;;  %v8283_v58 = vpop.f32.mrf.mxu0 }
 0x7bb   : > { %v2287_v11 = vpop.f32.mrf.mxu0 }
 0x7bc   : > { %v2327_v42 = vsel %vm1153_vm6, %v2287_v11, -inf }
 0x7bd   : > { %2328 = vmax.xlane.f32.xlu0 %v2327_v42  ;;  %v8286_v53 = vpop.f32.mrf.mxu0 }
 0x7bf   : > { %v2292_v49 = vpop.f32.mrf.mxu0 }
 0x7c0   : > { %v2330_v2 = vsel %vm1153_vm6, %v2292_v49, -inf }
 0x7c1   : > { %2331 = vmax.xlane.f32.xlu0 %v2330_v2  ;;  %v8289_v18 = vpop.f32.mrf.mxu0 }
 0x7c3   : > { %v2297_v27 = vpop.f32.mrf.mxu0 }
 0x7c4   : > { %v2333_v32 = vsel %vm1153_vm6, %v2297_v27, -inf }
 0x7c5   : > { %2334 = vmax.xlane.f32.xlu1 %v2333_v32  ;;  %v8292_v17 = vpop.f32.mrf.mxu0 }
 0x7c7   : > { %v10787_v28 = vpop.f32.mrf.mxu0 }
 0x7c8   : > { %v2336_v10 = vsel %vm1153_vm6, %v10787_v28, -inf }
 0x7c9   : > { %2337 = vmax.xlane.f32.xlu0 %v2336_v10  ;;  %v8295_v24 = vpop.f32.mrf.mxu0 }
 0x7cb   : > { %v2307_v6 = vpop.f32.mrf.mxu0 }
 0x7cc   : > { %v2339_v51 = vsel %vm1153_vm6, %v2307_v6, -inf }
 0x7cd   : > { %2340 = vmax.xlane.f32.xlu1 %v2339_v51  ;;  %v8298_v59 = vpop.f32.mrf.mxu0 }
 0x7cf   : > { %v10792_v29 = vpop.f32.mrf.mxu0 }
 0x7d0   : > { %v2342_v63 = vsel %vm1153_vm6, %v10792_v29, -inf }
 0x7d1   : > { %v8301_v33 = vpop.f32.mrf.mxu0 }
 0x7d3   : > { %v10794_v62 = vpop.f32.mrf.mxu0 }
 0x7d4   : > { %v2345_v21 = vsel %vm1178_vm7, %v10794_v62, -inf }
 0x7d5   : > { %v8304_v13 = vpop.f32.mrf.mxu0 }
 0x7de   : > { %2436 = vrot.lane.b32.xlu1 %v10118_v26, %s13142_s29 }
 0x7df   : > { %2434 = vrot.lane.b32.xlu0 %v10114_v22, %s13142_s29 }
 0x7fe   : > { %2343 = vmax.xlane.f32.xlu0 %v2342_v63 }
 0x802   : > { %2346 = vmax.xlane.f32.xlu1 %v2345_v21 }
 0x813   : > { %2432 = vrot.lane.b32.xlu1 %v10112_v19, %s13142_s29 }
 0x814   : > { %2430 = vrot.lane.b32.xlu0 %v10110_v16, %s13142_s29 }
 0x817   : > { %2426 = vrot.lane.b32.xlu1 %v10106_v8, %s13142_s29 }
 0x818   : > { %2428 = vrot.lane.b32.xlu0 %v10108_v14, %s13142_s29 }
 0x81b   : > { %2765 = vrot.lane.b32.xlu1 %v10118_v26, %s13140_s18 }
 0x81c   : > { %2424 = vrot.lane.b32.xlu0 %v10104_v9, %s13142_s29 }
 0x820   : > { %2422 = vrot.lane.b32.xlu0 %v10102_v7, %s13142_s29 }
 0x824   : > { %2420 = vrot.lane.b32.xlu0 %v10100_v4, %s13142_s29  ;;  %s13173_s29 = smov 64  }
 0x828   : > { %2763 = vrot.lane.b32.xlu0 %v10114_v22, %s13140_s18 }
 0x82c   : > { %2761 = vrot.lane.b32.xlu0 %v10112_v19, %s13140_s18 }
 0x830   : > { %2759 = vrot.lane.b32.xlu0 %v10110_v16, %s13140_s18 }
 0x83e   : > { %v2323_v57 = vpop.xlane.xlu1 %2322 }
 0x83f   : > { %v2348_v52 = vsub.f32 %v2277_v48, %v2323_v57 }
 0x841   : > { %v2357_v36 = vmul.f32 1.442695, %v2348_v52 }
 0x842   : > { %v2326_v58 = vpop.xlane.xlu0 %2325 }
 0x843   : > { %9369 = vpow2.f32 %v2357_v36  ;;  %v2349_v42 = vsub.f32 %v2282_v31, %v2326_v58 }
 0x845   : > { %v2359_v53 = vmul.f32 1.442695, %v2349_v42 }
 0x846   : > { %v2329_v2 = vpop.xlane.xlu0 %2328 }
 0x847   : > { %9371 = vpow2.f32 %v2359_v53  ;;  %v2350_v18 = vsub.f32 %v2287_v11, %v2329_v2 }
 0x849   : > { %v2361_v32 = vmul.f32 1.442695, %v2350_v18 }
 0x84a   : > { %v2332_v17 = vpop.xlane.xlu0 %2331 }
 0x84b   : > { %9373 = vpow2.f32 %v2361_v32  ;;  %v2351_v10 = vsub.f32 %v2292_v49, %v2332_v17 }
 0x84d   : > { %v2363_v24 = vmul.f32 1.442695, %v2351_v10 }
 0x84e   : > { %v2335_v51 = vpop.xlane.xlu1 %2334 }
 0x84f   : > { %9375 = vpow2.f32 %v2363_v24  ;;  %v2352_v59 = vsub.f32 %v2297_v27, %v2335_v51 }
 0x850   : > { %v10826_v33 = vpop.eup %9369 }
 0x851   : > { %v2365_v13 = vmul.f32 1.442695, %v2352_v59  ;;  %v2375_v48 = vsel %vm1153_vm6, %v10826_v33, 0.0 }
 0x852   : > { %2376 = vadd.xlane.f32.xlu0 %v2375_v48  ;;  %v2338_v63 = vpop.xlane.xlu0 %2337 }
 0x853   : > { %9377 = vpow2.f32 %v2365_v13  ;;  %v2353_v17 = vsub.f32 %v10787_v28, %v2338_v63 }
 0x854   : > { %v10830_v31 = vpop.eup %9371 }
 0x855   : > { %v2378_v11 = vsel %vm1153_vm6, %v10830_v31, 0.0  ;;  %v2367_v10 = vmul.f32 1.442695, %v2353_v17 }
 0x856   : > { %v2341_v21 = vpop.xlane.xlu1 %2340  ;;  %2379 = vadd.xlane.f32.xlu1 %v2378_v11  ;;  %v2435_v42 = vpop.permute.xlu0 %2434 }
 0x857   : > { %v2354_v49 = vsub.f32 %v2307_v6, %v2341_v21 }
 0x858   : > { %v10834_v57 = vpop.eup %9373 }
 0x859   : > { %v2369_v27 = vmul.f32 1.442695, %v2354_v49  ;;  %v2381_v52 = vsel %vm1153_vm6, %v10834_v57, 0.0 }
 0x85a   : > { %v2437_v36 = vpop.permute.xlu1 %2436  ;;  %2382 = vadd.xlane.f32.xlu0 %v2381_v52 }
 0x85b   : > { %9379 = vpow2.f32 %v2369_v27  ;;  %8306 = vmatpush3.msk.msra.mxu1 %vm568_vm0, %v2437_v36 }
 0x85c   : > { %v10839_v58 = vpop.eup %9375  ;;  %8307 = vmatprep.subr.mxu1 %v9705_v1  ;;  %9381 = vpow2.f32 %v2367_v10 }
 0x85d   : > { %8308 = vmatpush3.msra.mxu1 %v2435_v42  ;;  %v2384_v6 = vsel %vm1153_vm6, %v10839_v58, 0.0 }
 0x85e   : > { %2385 = vadd.xlane.f32.xlu0 %v2384_v6  ;;  %8309 = vmatprep.subr.mxu1 %v9705_v1 }
 0x860   : > { %v10845_v53 = vpop.eup %9377 }
 0x861   : > { %v2387_v2 = vsel %vm1153_vm6, %v10845_v53, 0.0 }
 0x862   : > { %2388 = vadd.xlane.f32.xlu1 %v2387_v2 }
 0x868   : > { %v10849_v18 = vpop.eup %9379 }
 0x869   : > { %v2393_v32 = vsel %vm1153_vm6, %v10849_v18, 0.0  ;;  %v10858_v49 = vpop.eup %9381 }
 0x86a   : > { %2394 = vadd.xlane.f32.xlu1 %v2393_v32  ;;  %v2390_v28 = vsel %vm1153_vm6, %v10858_v49, 0.0 }
 0x874   : > { %2757 = vrot.lane.b32.xlu0 %v10108_v14, %s13140_s18 }
 0x887   : > { %v2344_v24 = vpop.xlane.xlu0 %2343 }
 0x888   : > { %v2355_v51 = vsub.f32 %v10792_v29, %v2344_v24 }
 0x88a   : > { %v2371_v59 = vmul.f32 1.442695, %v2355_v51 }
 0x88b   : > { %v2431_v13 = vpop.permute.xlu0 %2430  ;;  %v2347_v48 = vpop.xlane.xlu1 %2346 }
 0x88c   : > { %9383 = vpow2.f32 %v2371_v59  ;;  %v2356_v11 = vsub.f32 %v10794_v62, %v2347_v48 }
 0x88e   : > { %v2373_v21 = vmul.f32 1.442695, %v2356_v11 }
 0x88f   : > { %v2429_v27 = vpop.permute.xlu0 %2428  ;;  %v2433_v52 = vpop.permute.xlu1 %2432 }
 0x890   : > { %9385 = vpow2.f32 %v2373_v21  ;;  %8310 = vmatpush3.msra.mxu1 %v2433_v52 }
 0x891   : > { %8311 = vmatprep.subr.mxu1 %v9705_v1 }
 0x892   : > { %8312 = vmatpush3.msra.mxu1 %v2431_v13 }
 0x893   : > { %2391 = vadd.xlane.f32.xlu0 %v2390_v28  ;;  %v2425_v29 = vpop.permute.xlu0 %2424  ;;  %8313 = vmatprep.subr.mxu1 %v9705_v1  ;;  %v2427_v63 = vpop.permute.xlu1 %2426 }
 0x894   : > { %8314 = vmatpush3.msra.mxu1 %v2429_v27 }
 0x895   : > { %8315 = vmatprep.subr.mxu1 %v9705_v1 }
 0x896   : > { %8316 = vmatpush3.msra.mxu1 %v2427_v63 }
 0x897   : > { %v2423_v62 = vpop.permute.xlu0 %2422  ;;  %8317 = vmatprep.subr.mxu1 %v9705_v1  ;;  %v2766_v51 = vpop.permute.xlu1 %2765 }
 0x898   : > { %8318 = vmatpush3.msra.mxu1 %v2425_v29 }
 0x899   : > { %v10866_v36 = vpop.eup %9383  ;;  %8319 = vmatprep.subr.mxu1 %v9705_v1 }
 0x89a   : > { %8320 = vmatpush3.msra.mxu1 %v2423_v62  ;;  %v2396_v42 = vsel %vm1153_vm6, %v10866_v36, 0.0 }
 0x89b   : > { %2397 = vadd.xlane.f32.xlu0 %v2396_v42  ;;  %v2421_v6 = vpop.permute.xlu0 %2420  ;;  %8321 = vmatprep.subr.mxu1 %v9705_v1 }
 0x89c   : > { %8322 = vmatpush3.msra.mxu1 %v2421_v6 }
 0x89d   : > { %v10872_v2 = vpop.eup %9385  ;;  %8379 = vmatprep.subr.mxu1 %v9705_v1 }
 0x89e   : > { %v2399_v32 = vsel %vm1178_vm7, %v10872_v2, 0.0 }
 0x89f   : > { %2400 = vadd.xlane.f32.xlu1 %v2399_v32  ;;  %v2764_v17 = vpop.permute.xlu0 %2763 }
 0x8a3   : > { %v2762_v10 = vpop.permute.xlu0 %2761 }
 0x8a7   : > { %v2760_v24 = vpop.permute.xlu0 %2759 }
 0x8b0   : > { %2755 = vrot.lane.b32.xlu1 %v10106_v8, %s13140_s18 }
 0x8b1   : > { %2753 = vrot.lane.b32.xlu0 %v10104_v9, %s13140_s18 }
 0x8b4   : > { %2735 = vrot.lane.b32.xlu1 %v10104_v9, %s13146_s23 }
 0x8b5   : > { %2751 = vrot.lane.b32.xlu0 %v10102_v7, %s13140_s18 }
 0x8b8   : > { %2739 = vrot.lane.b32.xlu1 %v10108_v14, %s13146_s23 }
 0x8b9   : > { %2749 = vrot.lane.b32.xlu0 %v10100_v4, %s13140_s18  ;;  %s13172_s18 = smov 120  }
 0x8bc   : > { %2743 = vrot.lane.b32.xlu1 %v10112_v19, %s13146_s23 }
 0x8bd   : > { %2731 = vrot.lane.b32.xlu0 %v10100_v4, %s13146_s23 }
 0x8c0   : > { %2747 = vrot.lane.b32.xlu1 %v10118_v26, %s13146_s23 }
 0x8c1   : > { %2733 = vrot.lane.b32.xlu0 %v10102_v7, %s13146_s23 }
 0x8c4   : > { %3028 = vrot.lane.b32.xlu1 %v10118_v26, %s13144_s19  ;;  %v977_v26 = vld [vmem:[%s13122_s6 + $0x10] sm:$0xff] }
 0x8c5   : > { %2737 = vrot.lane.b32.xlu0 %v10106_v8, %s13146_s23  ;;  %8351 = vmatpush3.msra.mxu0 %v977_v26 }
 0x8c6   : > { %8424 = vmatprep.subr.mxu0 %v9705_v1 }
 0x8c9   : > { %2741 = vrot.lane.b32.xlu0 %v10110_v16, %s13146_s23 }
 0x8cd   : > { %2745 = vrot.lane.b32.xlu0 %v10114_v22, %s13146_s23  ;;  %s13177_s23 = smov 48  }
 0x8d1   : > { %3026 = vrot.lane.b32.xlu0 %v10114_v22, %s13144_s19 }
 0x8db   : > { %v2377_v59 = vpop.xlane.xlu0 %2376 }
 0x8dc   : > { %9387 = vrcp.f32 %v2377_v59 }
 0x8df   : > { %v2380_v13 = vpop.xlane.xlu1 %2379 }
 0x8e0   : > { %9389 = vrcp.f32 %v2380_v13 }
 0x8e3   : > { %v2383_v48 = vpop.xlane.xlu0 %2382 }
 0x8e4   : > { %9391 = vrcp.f32 %v2383_v48 }
 0x8e7   : > { %v2386_v11 = vpop.xlane.xlu0 %2385 }
 0x8e8   : > { %9393 = vrcp.f32 %v2386_v11 }
 0x8e9   : > { %v9388_v21 = vpop.eup %9387 }
 0x8ea   : > { %v2411_v22 = vmul.f32 %v9388_v21, %v10826_v33 }
 0x8eb   : > { %v2389_v27 = vpop.xlane.xlu1 %2388  ;;  %v2758_v42 = vpop.permute.xlu0 %2757 }
 0x8ec   : > { %9395 = vrcp.f32 %v2389_v27  ;;  %8324 = vmatmul.mubr.msk.f32.vlgmr.msra.gmra.mxu1 %vm1153_vm6, %v2411_v22 }
 0x8ed   : > { %v9390_v52 = vpop.eup %9389  ;;  %8380 = vmatpush3.xpose.msk.msra.mxu1 %vm1006_vm5, %v2766_v51  ;;  %8326 = vmatprep.mubr.msk.f32.mxu1 %vm9706_vm1, %v9705_v1 }
 0x8ee   : > { %8381 = vmatprep.subr.mxu1 %v9705_v1  ;;  %v2412_v28 = vmul.f32 %v9390_v52, %v10830_v31 }
 0x8f0   : > { %8327 = vmatmul.mubr.msk.f32.gmra.mxu1 %vm1153_vm6, %v2412_v28 }
 0x8f1   : > { %v9392_v29 = vpop.eup %9391  ;;  %8382 = vmatpush3.xpose.msk.msra.mxu1 %vm1006_vm5, %v2764_v17  ;;  %8329 = vmatprep.mubr.msk.f32.mxu1 %vm9706_vm1, %v9705_v1 }
 0x8f2   : > { %8383 = vmatprep.subr.mxu1 %v9705_v1  ;;  %v2413_v33 = vmul.f32 %v9392_v29, %v10834_v57 }
 0x8f4   : > { %8330 = vmatmul.mubr.msk.f32.gmra.mxu1 %vm1153_vm6, %v2413_v33 }
 0x8f5   : > { %v9394_v63 = vpop.eup %9393  ;;  %8384 = vmatpush3.xpose.msk.msra.mxu1 %vm1006_vm5, %v2762_v10  ;;  %8332 = vmatprep.mubr.msk.f32.mxu1 %vm9706_vm1, %v9705_v1 }
 0x8f6   : > { %8385 = vmatprep.subr.mxu1 %v9705_v1  ;;  %v2414_v31 = vmul.f32 %v9394_v63, %v10839_v58  ;;  %v2395_v58 = vpop.xlane.xlu1 %2394 }
 0x8f8   : > { %8333 = vmatmul.mubr.msk.f32.gmra.mxu1 %vm1153_vm6, %v2414_v31 }
 0x8f9   : > { %v9396_v62 = vpop.eup %9395  ;;  %8386 = vmatpush3.xpose.msk.msra.mxu1 %vm1006_vm5, %v2760_v24  ;;  %8335 = vmatprep.mubr.msk.f32.mxu1 %vm9706_vm1, %v9705_v1 }
 0x8fa   : > { %8387 = vmatprep.subr.mxu1 %v9705_v1  ;;  %v2415_v57 = vmul.f32 %v9396_v62, %v10845_v53 }
 0x8fc   : > { %8336 = vmatmul.mubr.msk.f32.gmra.mxu1 %vm1153_vm6, %v2415_v57 }
 0x8fd   : > { %8388 = vmatpush3.xpose.msk.msra.mxu1 %vm1006_vm5, %v2758_v42  ;;  %8338 = vmatprep.mubr.msk.f32.mxu1 %vm9706_vm1, %v9705_v1 }
 0x8fe   : > { %8389 = vmatprep.subr.mxu1 %v9705_v1 }
 0x91c   : > { %v2392_v6 = vpop.xlane.xlu0 %2391 }
 0x91d   : > { %9397 = vrcp.f32 %v2392_v6 }
 0x91e   : > { %9399 = vrcp.f32 %v2395_v58 }
 0x924   : > { %v2398_v32 = vpop.xlane.xlu0 %2397 }
 0x925   : > { %9401 = vrcp.f32 %v2398_v32 }
 0x928   : > { %v2754_v17 = vpop.permute.xlu0 %2753  ;;  %v2401_v10 = vpop.xlane.xlu1 %2400 }
 0x929   : > { %9403 = vrcp.f32 %v2401_v10 }
 0x92a   : > { %v9398_v53 = vpop.eup %9397 }
 0x92b   : > { %v2416_v24 = vmul.f32 %v9398_v53, %v10858_v49  ;;  %v9400_v51 = vpop.eup %9399 }
 0x92c   : > { %v2752_v59 = vpop.permute.xlu0 %2751  ;;  %v2756_v26 = vpop.permute.xlu1 %2755  ;;  %v2417_v13 = vmul.f32 %v9400_v51, %v10849_v18 }
 0x92d   : > { %8339 = vmatmul.mubr.msk.f32.gmra.mxu1 %vm1153_vm6, %v2416_v24 }
 0x92e   : > { %8390 = vmatpush3.xpose.msk.msra.mxu1 %vm1006_vm5, %v2756_v26  ;;  %8341 = vmatprep.mubr.msk.f32.mxu1 %vm9706_vm1, %v9705_v1 }
 0x92f   : > { %8391 = vmatprep.subr.mxu1 %v9705_v1 }
 0x930   : > { %v2750_v48 = vpop.permute.xlu0 %2749  ;;  %v2736_v11 = vpop.permute.xlu1 %2735 }
 0x931   : > { %8342 = vmatmul.mubr.msk.f32.gmra.mxu1 %vm1153_vm6, %v2417_v13 }
 0x932   : > { %v9402_v21 = vpop.eup %9401  ;;  %8392 = vmatpush3.xpose.msk.msra.mxu1 %vm1006_vm5, %v2754_v17  ;;  %8344 = vmatprep.mubr.msk.f32.mxu1 %vm9706_vm1, %v9705_v1 }
 0x933   : > { %8393 = vmatprep.subr.mxu1 %v9705_v1  ;;  %v2418_v49 = vmul.f32 %v9402_v21, %v10866_v36 }
 0x934   : > { %v2732_v22 = vpop.permute.xlu0 %2731  ;;  %v2740_v27 = vpop.permute.xlu1 %2739 }
 0x935   : > { %8345 = vmatmul.mubr.msk.f32.gmra.mxu1 %vm1153_vm6, %v2418_v49 }
 0x936   : > { %v9404_v52 = vpop.eup %9403  ;;  %8394 = vmatpush3.xpose.msk.msra.mxu1 %vm1006_vm5, %v2752_v59  ;;  %8347 = vmatprep.mubr.msk.f32.mxu1 %vm9706_vm1, %v9705_v1 }
 0x937   : > { %8395 = vmatprep.subr.mxu1 %v9705_v1  ;;  %v2419_v18 = vmul.f32 %v9404_v52, %v10872_v2 }
 0x938   : > { %v2734_v28 = vpop.permute.xlu0 %2733  ;;  %v2744_v29 = vpop.permute.xlu1 %2743 }
 0x939   : > { %8348 = vmatmul.mubr.msk.f32.gmra.mxu1 %vm1153_vm6, %v2419_v18 }
 0x93a   : > { %8396 = vmatpush3.xpose.msk.msra.mxu1 %vm1006_vm5, %v2750_v48  ;;  %8397 = vmatprep.mubr.msk.f32.mxu1 %vm9706_vm1, %v9705_v1 }
 0x93b   : > { %9208 = vmatprep.subr.mxu1 %v9705_v1 }
 0x93c   : > { %v2738_v36 = vpop.permute.xlu0 %2737  ;;  %v2748_v33 = vpop.permute.xlu1 %2747 }
 0x93d   : > { %8398 = vmatmul.mubr.msk.f32.vlgmr.msra.gmra.mxu1 %vm1006_vm5, %v2732_v22 }
 0x93e   : > { %8400 = vmatprep.mubr.msk.f32.mxu1 %vm9706_vm1, %v9705_v1 }
 0x940   : > { %v2742_v63 = vpop.permute.xlu0 %2741  ;;  %v3029_v2 = vpop.permute.xlu1 %3028 }
 0x941   : > { %8401 = vmatmul.mubr.msk.f32.gmra.mxu1 %vm1006_vm5, %v2734_v28 }
 0x942   : > { %9217 = vmatpush3.msk.msra.mxu1 %vm568_vm0, %v3029_v2  ;;  %8403 = vmatprep.mubr.msk.f32.mxu1 %vm9706_vm1, %v9705_v1 }
 0x943   : > { %9209 = vmatprep.subr.mxu1 %v9705_v1 }
 0x944   : > { %v2746_v31 = vpop.permute.xlu0 %2745 }
 0x945   : > { %8404 = vmatmul.mubr.msk.f32.gmra.mxu1 %vm1006_vm5, %v2736_v11 }
 0x946   : > { %8406 = vmatprep.mubr.msk.f32.mxu1 %vm9706_vm1, %v9705_v1 }
 0x948   : > { %v3027_v62 = vpop.permute.xlu0 %3026 }
 0x949   : > { %8407 = vmatmul.mubr.msk.f32.gmra.mxu1 %vm1006_vm5, %v2738_v36 }
 0x94a   : > { %9218 = vmatpush3.msra.mxu1 %v3027_v62  ;;  %8409 = vmatprep.mubr.msk.f32.mxu1 %vm9706_vm1, %v9705_v1 }
 0x94b   : > { %9210 = vmatprep.subr.mxu1 %v9705_v1 }
 0x94d   : > { %8410 = vmatmul.mubr.msk.f32.gmra.mxu1 %vm1006_vm5, %v2740_v27 }
 0x94e   : > { %8412 = vmatprep.mubr.msk.f32.mxu1 %vm9706_vm1, %v9705_v1 }
 0x951   : > { %8413 = vmatmul.mubr.msk.f32.gmra.mxu1 %vm1006_vm5, %v2742_v63 }
 0x952   : > { %8415 = vmatprep.mubr.msk.f32.mxu1 %vm9706_vm1, %v9705_v1 }
 0x955   : > { %8416 = vmatmul.mubr.msk.f32.gmra.mxu1 %vm1006_vm5, %v2744_v29 }
 0x956   : > { %8418 = vmatprep.mubr.msk.f32.mxu1 %vm9706_vm1, %v9705_v1 }
 0x959   : > { %8419 = vmatmul.mubr.msk.f32.gmra.mxu1 %vm1006_vm5, %v2746_v31 }
 0x95a   : > { %8421 = vmatprep.mubr.msk.f32.mxu1 %vm9706_vm1, %v9705_v1 }
 0x95d   : > { %8422 = vmatmul.mubr.msk.f32.gmra.mxu1 %vm1006_vm5, %v2748_v33 }
 0x95e   : > { %8460 = vmatprep.mubr.msk.f32.mxu1 %vm9706_vm1, %v9705_v1 }
 0x9ac   : > { %v2541_v57 = vpop.f32.mrf.mxu1 }
 0x9ad   : > { %8353 = vmatmul.mubr.msk.f32.vlgmr.msra.gmra.mxu0 %vm1006_vm5, %v2541_v57 }
 0x9ae   : > { %8425 = vmatpush3.msk.msra.mxu0 %vm568_vm0, %v3029_v2  ;;  %v8325_v42 = vpop.f32.mrf.mxu1  ;;  %8355 = vmatprep.mubr.msk.f32.mxu0 %vm9706_vm1, %v9705_v1 }
 0x9af   : > { %8426 = vmatprep.subr.mxu0 %v9705_v1 }
 0x9b0   : > { %8427 = vmatpush3.msra.mxu0 %v3027_v62  ;;  %v2546_v58 = vpop.f32.mrf.mxu1 }
 0x9b1   : > { %8356 = vmatmul.mubr.msk.f32.gmra.mxu0 %vm1006_vm5, %v2546_v58  ;;  %8428 = vmatprep.subr.mxu0 %v9705_v1 }
 0x9b2   : > { %v8328_v6 = vpop.f32.mrf.mxu1  ;;  %8358 = vmatprep.mubr.msk.f32.mxu0 %vm9706_vm1, %v9705_v1 }
 0x9b4   : > { %v2551_v32 = vpop.f32.mrf.mxu1 }
 0x9b5   : > { %8359 = vmatmul.mubr.msk.f32.gmra.mxu0 %vm1006_vm5, %v2551_v32 }
 0x9b6   : > { %v8331_v17 = vpop.f32.mrf.mxu1  ;;  %8361 = vmatprep.mubr.msk.f32.mxu0 %vm9706_vm1, %v9705_v1 }
 0x9b8   : > { %v2556_v10 = vpop.f32.mrf.mxu1 }
 0x9b9   : > { %8362 = vmatmul.mubr.msk.f32.gmra.mxu0 %vm1006_vm5, %v2556_v10 }
 0x9ba   : > { %v8334_v53 = vpop.f32.mrf.mxu1  ;;  %8364 = vmatprep.mubr.msk.f32.mxu0 %vm9706_vm1, %v9705_v1 }
 0x9bc   : > { %v2561_v24 = vpop.f32.mrf.mxu1 }
 0x9bd   : > { %8365 = vmatmul.mubr.msk.f32.gmra.mxu0 %vm1006_vm5, %v2561_v24 }
 0x9be   : > { %v8337_v51 = vpop.f32.mrf.mxu1  ;;  %8367 = vmatprep.mubr.msk.f32.mxu0 %vm9706_vm1, %v9705_v1 }
 0x9ed   : > { %v2566_v59 = vpop.f32.mrf.mxu1 }
 0x9ee   : > { %8368 = vmatmul.mubr.msk.f32.gmra.mxu0 %vm1006_vm5, %v2566_v59 }
 0x9ef   : > { %v8340_v26 = vpop.f32.mrf.mxu1  ;;  %8370 = vmatprep.mubr.msk.f32.mxu0 %vm9706_vm1, %v9705_v1 }
 0x9f1   : > { %v2571_v13 = vpop.f32.mrf.mxu1 }
 0x9f2   : > { %8371 = vmatmul.mubr.msk.f32.gmra.mxu0 %vm1006_vm5, %v2571_v13 }
 0x9f3   : > { %v8343_v48 = vpop.f32.mrf.mxu1  ;;  %8373 = vmatprep.mubr.msk.f32.mxu0 %vm9706_vm1, %v9705_v1 }
 0x9f5   : > { %v2576_v11 = vpop.f32.mrf.mxu1 }
 0x9f6   : > { %8374 = vmatmul.mubr.msk.f32.gmra.mxu0 %vm1006_vm5, %v2576_v11 }
 0x9f7   : > { %v8346_v21 = vpop.f32.mrf.mxu1  ;;  %8376 = vmatprep.mubr.msk.f32.mxu0 %vm9706_vm1, %v9705_v1 }
 0x9f9   : > { %v2581_v49 = vpop.f32.mrf.mxu1 }
 0x9fa   : > { %8377 = vmatmul.mubr.msk.f32.gmra.mxu0 %vm1006_vm5, %v2581_v49  ;;  %v2096_v49 = vadd.f32 %v10737_v5, %v10764_v41  ;;  %v2111_v5 = vadd.f32 %v10752_v61, %v10770_v34 }
 0x9fb   : > { %v8349_v22 = vpop.f32.mrf.mxu1  ;;  %8442 = vmatprep.mubr.msk.f32.mxu0 %vm9706_vm1, %v9705_v1 }
 0x9fd   : > { %v2869_v27 = vpop.f32.mrf.mxu1 }
 0x9fe   : > { %v2913_v52 = vsel %vm1153_vm6, %v2869_v27, -inf }
 0x9ff   : > { %2914 = vmax.xlane.f32.xlu0 %v2913_v52  ;;  %v8399_v18 = vpop.f32.mrf.mxu1 }
 0xa01   : > { %v2874_v28 = vpop.f32.mrf.mxu1 }
 0xa02   : > { %v2916_v29 = vsel %vm1153_vm6, %v2874_v28, -inf }
 0xa03   : > { %2917 = vmax.xlane.f32.xlu1 %v2916_v29  ;;  %v8402_v36 = vpop.f32.mrf.mxu1  ;;  %v2101_v29 = vadd.f32 %v10742_v12, %v10766_v23  ;;  %v2116_v12 = vadd.f32 %v10754_v43, %v10772_v54 }
 0xa05   : > { %v2879_v33 = vpop.f32.mrf.mxu1 }
 0xa06   : > { %v2919_v63 = vsel %vm1153_vm6, %v2879_v33, -inf }
 0xa07   : > { %2920 = vmax.xlane.f32.xlu0 %v2919_v63  ;;  %v8405_v2 = vpop.f32.mrf.mxu1 }
 0xa09   : > { %v2884_v31 = vpop.f32.mrf.mxu1 }
 0xa0a   : > { %v2922_v62 = vsel %vm1153_vm6, %v2884_v31, -inf }
 0xa0b   : > { %2923 = vmax.xlane.f32.xlu0 %v2922_v62  ;;  %v8408_v57 = vpop.f32.mrf.mxu1 }
 0xa0d   : > { %v2889_v42 = vpop.f32.mrf.mxu1 }
 0xa0e   : > { %v2925_v58 = vsel %vm1153_vm6, %v2889_v42, -inf }
 0xa0f   : > { %2926 = vmax.xlane.f32.xlu1 %v2925_v58  ;;  %v8411_v6 = vpop.f32.mrf.mxu1 }
 0xa11   : > { %v11030_v32 = vpop.f32.mrf.mxu1 }
 0xa12   : > { %v2928_v17 = vsel %vm1153_vm6, %v11030_v32, -inf }
 0xa13   : > { %2929 = vmax.xlane.f32.xlu0 %v2928_v17  ;;  %v8414_v10 = vpop.f32.mrf.mxu1 }
 0xa15   : > { %v11034_v53 = vpop.f32.mrf.mxu1 }
 0xa16   : > { %v2931_v24 = vsel %vm1153_vm6, %v11034_v53, -inf }
 0xa17   : > { %2932 = vmax.xlane.f32.xlu1 %v2931_v24  ;;  %v8417_v51 = vpop.f32.mrf.mxu1 }
 0xa19   : > { %v11038_v59 = vpop.f32.mrf.mxu1 }
 0xa1a   : > { %v2934_v26 = vsel %vm1153_vm6, %v11038_v59, -inf }
 0xa1b   : > { %2935 = vmax.xlane.f32.xlu0 %v2934_v26  ;;  %v8420_v13 = vpop.f32.mrf.mxu1 }
 0xa1d   : > { %v11042_v48 = vpop.f32.mrf.mxu1 }
 0xa1e   : > { %v2937_v11 = vsel %vm1178_vm7, %v11042_v48, -inf }
 0xa1f   : > { %2938 = vmax.xlane.f32.xlu1 %v2937_v11  ;;  %v8423_v21 = vpop.f32.mrf.mxu1 }
 0xa30   : > { %3024 = vrot.lane.b32.xlu1 %v10112_v19, %s13144_s19 }
 0xa31   : > { %3022 = vrot.lane.b32.xlu0 %v10110_v16, %s13144_s19  ;;  %v2106_v16 = vadd.f32 %v10747_v56, %v10768_v37 }
 0xa35   : > { %3020 = vrot.lane.b32.xlu0 %v10108_v14, %s13144_s19 }
 0xa6d   : > { %v2678_v22 = vpop.f32.mrf.mxu0 }
 0xa6e   : > { %v11054_v52 = vadd.f32 %v2678_v22, %v2096_v49 }
 0xa6f   : > { %v8354_v18 = vpop.f32.mrf.mxu0 }
 0xa71   : > { %v2683_v36 = vpop.f32.mrf.mxu0 }
 0xa72   : > { %v11058_v63 = vadd.f32 %v2683_v36, %v2101_v29 }
 0xa73   : > { %v8357_v19 = vpop.f32.mrf.mxu0 }
 0xa75   : > { %v2688_v2 = vpop.f32.mrf.mxu0 }
 0xa76   : > { %v11062_v62 = vadd.f32 %v2688_v2, %v2106_v16 }
 0xa77   : > { %v8360_v14 = vpop.f32.mrf.mxu0 }
 0xa79   : > { %v2693_v41 = vpop.f32.mrf.mxu0 }
 0xa7a   : > { %v11066_v57 = vadd.f32 %v2693_v41, %v2111_v5 }
 0xa7b   : > { %v8363_v58 = vpop.f32.mrf.mxu0 }
 0xa7d   : > { %v2698_v23 = vpop.f32.mrf.mxu0 }
 0xa7e   : > { %v11070_v6 = vadd.f32 %v2698_v23, %v2116_v12  ;;  %v2121_v23 = vadd.f32 %v10756_v3, %v10774_v44  ;;  %v2126_v3 = vadd.f32 %v10758_v60, %v10776_v39  ;;  %v2136_v60 = vadd.f32 %v10762_v38, %v10780_v46 }
 0xa7f   : > { %v8366_v17 = vpop.f32.mrf.mxu0 }
 0xa88   : > { %v2915_v10 = vpop.xlane.xlu0 %2914 }
 0xa89   : > { %v2940_v56 = vsub.f32 %v2869_v27, %v2915_v10 }
 0xa8b   : > { %v2949_v37 = vmul.f32 1.442695, %v2940_v56 }
 0xa8c   : > { %v2918_v24 = vpop.xlane.xlu1 %2917 }
 0xa8d   : > { %9405 = vpow2.f32 %v2949_v37  ;;  %v2941_v51 = vsub.f32 %v2874_v28, %v2918_v24 }
 0xa8f   : > { %v2951_v26 = vmul.f32 1.442695, %v2941_v51 }
 0xa90   : > { %v2921_v13 = vpop.xlane.xlu0 %2920 }
 0xa91   : > { %9407 = vpow2.f32 %v2951_v26  ;;  %v2942_v61 = vsub.f32 %v2879_v33, %v2921_v13  ;;  %v2131_v26 = vadd.f32 %v10760_v0, %v10778_v47 }
 0xa93   : > { %v2953_v34 = vmul.f32 1.442695, %v2942_v61 }
 0xa94   : > { %v2924_v11 = vpop.xlane.xlu0 %2923 }
 0xa95   : > { %9409 = vpow2.f32 %v2953_v34  ;;  %v2943_v21 = vsub.f32 %v2884_v31, %v2924_v11 }
 0xa97   : > { %v2955_v49 = vmul.f32 1.442695, %v2943_v21 }
 0xa98   : > { %v2927_v43 = vpop.xlane.xlu1 %2926 }
 0xa99   : > { %9411 = vpow2.f32 %v2955_v49  ;;  %v2944_v54 = vsub.f32 %v2889_v42, %v2927_v43 }
 0xa9a   : > { %v11072_v22 = vpop.eup %9405 }
 0xa9b   : > { %v2957_v18 = vmul.f32 1.442695, %v2944_v54  ;;  %v2967_v27 = vsel %vm1153_vm6, %v11072_v22, 0.0 }
 0xa9c   : > { %2968 = vadd.xlane.f32.xlu0 %v2967_v27  ;;  %v2930_v29 = vpop.xlane.xlu0 %2929 }
 0xa9d   : > { %9413 = vpow2.f32 %v2957_v18  ;;  %v2945_v49 = vsub.f32 %v11030_v32, %v2930_v29 }
 0xa9e   : > { %v11076_v28 = vpop.eup %9407 }
 0xa9f   : > { %v2970_v33 = vsel %vm1153_vm6, %v11076_v28, 0.0  ;;  %v2959_v0 = vmul.f32 1.442695, %v2945_v49 }
 0xaa0   : > { %2971 = vadd.xlane.f32.xlu1 %v2970_v33  ;;  %v2933_v36 = vpop.xlane.xlu1 %2932 }
 0xaa1   : > { %v2946_v47 = vsub.f32 %v11034_v53, %v2933_v36  ;;  %9415 = vpow2.f32 %v2959_v0  ;;  %v978_v0 = vld [vmem:[%s13122_s6 + $0x18] sm:$0xff] }
 0xaa2   : > { %v11080_v31 = vpop.eup %9409 }
 0xaa3   : > { %v2973_v42 = vsel %vm1153_vm6, %v11080_v31, 0.0  ;;  %v2961_v43 = vmul.f32 1.442695, %v2946_v47 }
 0xaa4   : > { %2974 = vadd.xlane.f32.xlu0 %v2973_v42  ;;  %v2936_v19 = vpop.xlane.xlu0 %2935 }
 0xaa5   : > { %9417 = vpow2.f32 %v2961_v43 }
 0xaa6   : > { %v11084_v16 = vpop.eup %9411 }
 0xaa7   : > { %v2976_v2 = vsel %vm1153_vm6, %v11084_v16, 0.0 }
 0xaa8   : > { %2977 = vadd.xlane.f32.xlu0 %v2976_v2  ;;  %v2939_v14 = vpop.xlane.xlu1 %2938  ;;  %v3023_v41 = vpop.permute.xlu0 %3022 }
 0xaa9   : > { %v2948_v54 = vsub.f32 %v11042_v48, %v2939_v14  ;;  %v2947_v48 = vsub.f32 %v11038_v59, %v2936_v19 }
 0xaaa   : > { %v11088_v5 = vpop.eup %9413 }
 0xaab   : > { %v2979_v58 = vsel %vm1153_vm6, %v11088_v5, 0.0  ;;  %v2965_v38 = vmul.f32 1.442695, %v2948_v54  ;;  %v2963_v27 = vmul.f32 1.442695, %v2947_v48 }
 0xaac   : > { %2980 = vadd.xlane.f32.xlu1 %v2979_v58  ;;  %v3025_v12 = vpop.permute.xlu1 %3024  ;;  %v3021_v56 = vpop.permute.xlu0 %3020 }
 0xaad   : > { %8429 = vmatpush3.msra.mxu0 %v3025_v12  ;;  %9219 = vmatpush3.msra.mxu1 %v3025_v12  ;;  %9419 = vpow2.f32 %v2965_v38 }
 0xaae   : > { %v2703_v17 = vpop.f32.mrf.mxu0  ;;  %8430 = vmatprep.subr.mxu0 %v9705_v1  ;;  %9211 = vmatprep.subr.mxu1 %v9705_v1  ;;  %v11121_v46 = vpop.eup %9415  ;;  %9421 = vpow2.f32 %v2963_v27 }
 0xaaf   : > { %v11096_v10 = vadd.f32 %v2703_v17, %v2121_v23  ;;  %8431 = vmatpush3.msra.mxu0 %v3023_v41  ;;  %9220 = vmatpush3.msra.mxu1 %v3023_v41 }
 0xab0   : > { %v8369_v37 = vpop.f32.mrf.mxu0  ;;  %8432 = vmatprep.subr.mxu0 %v9705_v1  ;;  %9212 = vmatprep.subr.mxu1 %v9705_v1 }
 0xab1   : > { %8433 = vmatpush3.msra.mxu0 %v3021_v56  ;;  %9221 = vmatpush3.msra.mxu1 %v3021_v56 }
 0xab2   : > { %v2708_v44 = vpop.f32.mrf.mxu0  ;;  %8434 = vmatprep.subr.mxu0 %v9705_v1  ;;  %9213 = vmatprep.subr.mxu1 %v9705_v1  ;;  %v9418_v18 = vpop.eup %9417 }
 0xab3   : > { %v11104_v24 = vadd.f32 %v2708_v44, %v2126_v3 }
 0xab4   : > { %v8372_v51 = vpop.f32.mrf.mxu0 }
 0xab6   : > { %v2713_v13 = vpop.f32.mrf.mxu0 }
 0xab7   : > { %v11108_v61 = vadd.f32 %v2713_v13, %v2131_v26 }
 0xab8   : > { %v8375_v34 = vpop.f32.mrf.mxu0 }
 0xaba   : > { %v2718_v39 = vpop.f32.mrf.mxu0  ;;  %v11126_v32 = vpop.eup %9419 }
 0xabb   : > { %v11112_v11 = vadd.f32 %v2718_v39, %v2136_v60  ;;  %v2991_v53 = vsel %vm1178_vm7, %v11126_v32, 0.0  ;;  %v11135_v33 = vpop.eup %9421 }
 0xabc   : > { %v8378_v21 = vpop.f32.mrf.mxu0  ;;  %v2988_v29 = vsel %vm1153_vm6, %v11135_v33, 0.0 }
 0xabd   : > { %3018 = vrot.lane.b32.xlu1 %v10106_v8, %s13144_s19  ;;  %v2982_v8 = vsel %vm1153_vm6, %v11121_v46, 0.0 }
 0xabe   : > { %3016 = vrot.lane.b32.xlu0 %v10104_v9, %s13144_s19  ;;  %v2985_v9 = vsel %vm1153_vm6, %v9418_v18, 0.0 }
 0xadd   : > { %2983 = vadd.xlane.f32.xlu0 %v2982_v8 }
 0xae1   : > { %2986 = vadd.xlane.f32.xlu1 %v2985_v9 }
 0xae5   : > { %2992 = vadd.xlane.f32.xlu1 %v2991_v53 }
 0xaf3   : > { %3014 = vrot.lane.b32.xlu0 %v10102_v7, %s13144_s19 }
 0xaf7   : > { %3012 = vrot.lane.b32.xlu0 %v10100_v4, %s13144_s19  ;;  %s13170_s19 = smov 96  }
 0xb16   : > { %2989 = vadd.xlane.f32.xlu0 %v2988_v29 }
 0xb25   : > { %v2969_v42 = vpop.xlane.xlu0 %2968 }
 0xb26   : > { %9423 = vrcp.f32 %v2969_v42 }
 0xb29   : > { %v2972_v2 = vpop.xlane.xlu1 %2971 }
 0xb2a   : > { %9425 = vrcp.f32 %v2972_v2 }
 0xb2d   : > { %v2975_v36 = vpop.xlane.xlu0 %2974 }
 0xb2e   : > { %9427 = vrcp.f32 %v2975_v36 }
 0xb31   : > { %v2978_v14 = vpop.xlane.xlu0 %2977 }
 0xb32   : > { %9429 = vrcp.f32 %v2978_v14 }
 0xb33   : > { %v9424_v12 = vpop.eup %9423 }
 0xb34   : > { %v3003_v23 = vmul.f32 %v9424_v12, %v11072_v22 }
 0xb35   : > { %v2981_v41 = vpop.xlane.xlu1 %2980  ;;  %v3017_v7 = vpop.permute.xlu0 %3016 }
 0xb37   : > { %v9426_v56 = vpop.eup %9425 }
 0xb38   : > { %v3004_v37 = vmul.f32 %v9426_v56, %v11076_v28 }
 0xb39   : > { %v3019_v58 = vpop.permute.xlu1 %3018 }
 0xb3a   : > { %8435 = vmatpush3.msra.mxu0 %v3019_v58  ;;  %9222 = vmatpush3.msra.mxu1 %v3019_v58 }
 0xb3b   : > { %8436 = vmatprep.subr.mxu0 %v9705_v1  ;;  %9214 = vmatprep.subr.mxu1 %v9705_v1  ;;  %v9428_v3 = vpop.eup %9427 }
 0xb3c   : > { %8437 = vmatpush3.msra.mxu0 %v3017_v7  ;;  %9223 = vmatpush3.msra.mxu1 %v3017_v7  ;;  %v3005_v22 = vmul.f32 %v9428_v3, %v11080_v31 }
 0xb3d   : > { %8438 = vmatprep.subr.mxu0 %v9705_v1  ;;  %9215 = vmatprep.subr.mxu1 %v9705_v1 }
 0xb3f   : > { %v9430_v44 = vpop.eup %9429 }
 0xb40   : > { %v3006_v13 = vmul.f32 %v9430_v44, %v11084_v16 }
 0xb66   : > { %v2984_v4 = vpop.xlane.xlu0 %2983 }
 0xb6a   : > { %v3015_v59 = vpop.permute.xlu0 %3014  ;;  %v2987_v19 = vpop.xlane.xlu1 %2986 }
 0xb6b   : > { %9431 = vrcp.f32 %v2987_v19  ;;  %8439 = vmatpush3.msra.mxu0 %v3015_v59  ;;  %9224 = vmatpush3.msra.mxu1 %v3015_v59 }
 0xb6c   : > { %8440 = vmatprep.subr.mxu0 %v9705_v1  ;;  %9216 = vmatprep.subr.mxu1 %v9705_v1  ;;  %9433 = vrcp.f32 %v2981_v41 }
 0xb6d   : > { %9435 = vrcp.f32 %v2984_v4  ;;  %v7241_v4 = vld [vmem:[%s13123_s7] ss:$0 sm:$0xff] }
 0xb6e   : > { %v3013_v17 = vpop.permute.xlu0 %3012  ;;  %v2993_v60 = vpop.xlane.xlu1 %2992 }
 0xb6f   : > { %8441 = vmatpush3.msra.mxu0 %v3013_v17  ;;  %9225 = vmatpush3.msra.mxu1 %v3013_v17 }
 0xb70   : > { %8443 = vmatmul.mubr.msk.f32.vlgmr.msra.gmra.mxu0 %vm1153_vm6, %v3003_v23  ;;  %8469 = vmatprep.subr.mxu1 %v9705_v1 }
 0xb71   : > { %8445 = vmatprep.mubr.msk.f32.mxu0 %vm9706_vm1, %v9705_v1  ;;  %8498 = vmatprep.subr.mxu0 %v9705_v1 }
 0xb74   : > { %8446 = vmatmul.mubr.msk.f32.gmra.mxu0 %vm1153_vm6, %v3004_v37 }
 0xb75   : > { %8448 = vmatprep.mubr.msk.f32.mxu0 %vm9706_vm1, %v9705_v1 }
 0xb78   : > { %v9432_v51 = vpop.eup %9431  ;;  %8449 = vmatmul.mubr.msk.f32.gmra.mxu0 %vm1153_vm6, %v3005_v22 }
 0xb79   : > { %v3009_v26 = vmul.f32 %v9432_v51, %v9418_v18  ;;  %8451 = vmatprep.mubr.msk.f32.mxu0 %vm9706_vm1, %v9705_v1  ;;  %v9434_v34 = vpop.eup %9433 }
 0xb7a   : > { %v3007_v28 = vmul.f32 %v9434_v34, %v11088_v5  ;;  %v9436_v31 = vpop.eup %9435 }
 0xb7b   : > { %8461 = vmatmul.mubr.msk.f32.vlgmr.msra.gmra.mxu1 %vm1153_vm6, %v3009_v26  ;;  %v3008_v16 = vmul.f32 %v9436_v31, %v11121_v46 }
 0xb7c   : > { %8452 = vmatmul.mubr.msk.f32.gmra.mxu0 %vm1153_vm6, %v3006_v13  ;;  %8463 = vmatprep.mubr.msk.f32.mxu1 %vm9706_vm1, %v9705_v1 }
 0xb7d   : > { %8454 = vmatprep.mubr.msk.f32.mxu0 %vm9706_vm1, %v9705_v1  ;;  %8470 = vmatpush3.msra.mxu1 %v978_v0 }
 0xb7e   : > { %8533 = vmatprep.subr.mxu1 %v9705_v1 }
 0xb80   : > { %8455 = vmatmul.mubr.msk.f32.gmra.mxu0 %vm1153_vm6, %v3007_v28 }
 0xb81   : > { %8457 = vmatprep.mubr.msk.f32.mxu0 %vm9706_vm1, %v9705_v1 }
 0xb84   : > { %8458 = vmatmul.mubr.msk.f32.gmra.mxu0 %vm1153_vm6, %v3008_v16 }
 0xb85   : > { %8506 = vmatprep.mubr.msk.f32.mxu0 %vm9706_vm1, %v9705_v1 }
 0xb9f   : > { %v2990_v39 = vpop.xlane.xlu0 %2989 }
 0xba0   : > { %9437 = vrcp.f32 %v2990_v39 }
 0xba1   : > { %9439 = vrcp.f32 %v2993_v60 }
 0xbad   : > { %v9438_v21 = vpop.eup %9437 }
 0xbae   : > { %v3010_v5 = vmul.f32 %v9438_v21, %v11135_v33  ;;  %v9440_v49 = vpop.eup %9439 }
 0xbaf   : > { %v3011_v47 = vmul.f32 %v9440_v49, %v11126_v32 }
 0xbb0   : > { %8464 = vmatmul.mubr.msk.f32.gmra.mxu1 %vm1153_vm6, %v3010_v5 }
 0xbb1   : > { %8466 = vmatprep.mubr.msk.f32.mxu1 %vm9706_vm1, %v9705_v1 }
 0xbb4   : > { %8467 = vmatmul.mubr.msk.f32.gmra.mxu1 %vm1153_vm6, %v3011_v47 }
 0xbb5   : > { %8471 = vmatprep.mubr.msk.f32.mxu1 %vm9706_vm1, %v9705_v1 }
 0xc30   : > { %v3133_v43 = vpop.f32.mrf.mxu0 }
 0xc31   : > { %8472 = vmatmul.mubr.msk.f32.vlgmr.msra.gmra.mxu1 %vm1006_vm5, %v3133_v43 }
 0xc32   : > { %v8444_v54 = vpop.f32.mrf.mxu0  ;;  %8474 = vmatprep.mubr.msk.f32.mxu1 %vm9706_vm1, %v9705_v1 }
 0xc34   : > { %v3138_v38 = vpop.f32.mrf.mxu0 }
 0xc35   : > { %8475 = vmatmul.mubr.msk.f32.gmra.mxu1 %vm1006_vm5, %v3138_v38 }
 0xc36   : > { %v8447_v46 = vpop.f32.mrf.mxu0  ;;  %8477 = vmatprep.mubr.msk.f32.mxu1 %vm9706_vm1, %v9705_v1 }
 0xc38   : > { %v3143_v8 = vpop.f32.mrf.mxu0 }
 0xc39   : > { %8478 = vmatmul.mubr.msk.f32.gmra.mxu1 %vm1006_vm5, %v3143_v8 }
 0xc3a   : > { %v8450_v18 = vpop.f32.mrf.mxu0  ;;  %8480 = vmatprep.mubr.msk.f32.mxu1 %vm9706_vm1, %v9705_v1 }
 0xc3b   : > { %v3163_v9 = vpop.f32.mrf.mxu1 }
 0xc3c   : > { %v3148_v32 = vpop.f32.mrf.mxu0 }
 0xc3d   : > { %v8462_v53 = vpop.f32.mrf.mxu1  ;;  %8481 = vmatmul.mubr.msk.f32.gmra.mxu1 %vm1006_vm5, %v3148_v32 }
 0xc3e   : > { %v8453_v48 = vpop.f32.mrf.mxu0  ;;  %8483 = vmatprep.mubr.msk.f32.mxu1 %vm9706_vm1, %v9705_v1 }
 0xc40   : > { %v3153_v27 = vpop.f32.mrf.mxu0 }
 0xc41   : > { %8484 = vmatmul.mubr.msk.f32.gmra.mxu1 %vm1006_vm5, %v3153_v27 }
 0xc42   : > { %v8456_v33 = vpop.f32.mrf.mxu0  ;;  %8486 = vmatprep.mubr.msk.f32.mxu1 %vm9706_vm1, %v9705_v1 }
 0xc44   : > { %v3158_v29 = vpop.f32.mrf.mxu0 }
 0xc45   : > { %8487 = vmatmul.mubr.msk.f32.gmra.mxu1 %vm1006_vm5, %v3158_v29 }
 0xc46   : > { %v8459_v42 = vpop.f32.mrf.mxu0  ;;  %8489 = vmatprep.mubr.msk.f32.mxu1 %vm9706_vm1, %v9705_v1 }
 0xc49   : > { %8490 = vmatmul.mubr.msk.f32.gmra.mxu1 %vm1006_vm5, %v3163_v9 }
 0xc4a   : > { %8492 = vmatprep.mubr.msk.f32.mxu1 %vm9706_vm1, %v9705_v1 }
 0xc70   : > { %v3168_v36 = vpop.f32.mrf.mxu1 }
 0xc71   : > { %8493 = vmatmul.mubr.msk.f32.gmra.mxu1 %vm1006_vm5, %v3168_v36 }
 0xc72   : > { %v8465_v2 = vpop.f32.mrf.mxu1  ;;  %8495 = vmatprep.mubr.msk.f32.mxu1 %vm9706_vm1, %v9705_v1 }
 0xc74   : > { %v3173_v14 = vpop.f32.mrf.mxu1 }
 0xc75   : > { %8496 = vmatmul.mubr.msk.f32.gmra.mxu1 %vm1006_vm5, %v3173_v14 }
 0xc76   : > { %v8468_v41 = vpop.f32.mrf.mxu1  ;;  %8565 = vmatprep.mubr.msk.f32.mxu1 %vm9706_vm1, %v9705_v1 }
 0xcf1   : > { %v3270_v58 = vpop.f32.mrf.mxu1 }
 0xcf2   : > { %v3314_v7 = vadd.f32 %v3270_v58, %v11054_v52 }
 0xcf3   : > { %v8473_v59 = vpop.f32.mrf.mxu1 }
 0xcf4   : > { %v3323_v19 = vadd.f32 %v3314_v7, %v9906_v15 }
 0xcf5   : > { %v3275_v12 = vpop.f32.mrf.mxu1 }
 0xcf6   : > { %v11218_v23 = vadd.f32 %v7241_v4, %v3323_v19  ;;  %v3315_v17 = vadd.f32 %v3275_v12, %v11058_v63 }
 0xcf7   : > { %v8476_v56 = vpop.f32.mrf.mxu1 }
 0xcf8   : > { %v3324_v37 = vadd.f32 %v3315_v17, %v9913_v20  ;;  %v3350_v3 = vsel %vm684_vm3, %v11218_v23, 0.0 }
 0xcf9   : > { %3351 = vadd.xlane.f32.xlu1 %v3350_v3  ;;  %v3280_v52 = vpop.f32.mrf.mxu1 }
 0xcfa   : > { %v11224_v22 = vadd.f32 %v7241_v4, %v3324_v37  ;;  %v3316_v44 = vadd.f32 %v3280_v52, %v11062_v62 }
 0xcfb   : > { %v8479_v51 = vpop.f32.mrf.mxu1 }
 0xcfc   : > { %v3325_v15 = vadd.f32 %v3316_v44, %v9920_v25  ;;  %v3353_v26 = vsel %vm684_vm3, %v11224_v22, 0.0 }
 0xcfd   : > { %3354 = vadd.xlane.f32.xlu1 %v3353_v26  ;;  %v3285_v63 = vpop.f32.mrf.mxu1 }
 0xcfe   : > { %v11230_v13 = vadd.f32 %v7241_v4, %v3325_v15  ;;  %v3317_v20 = vadd.f32 %v3285_v63, %v11066_v57 }
 0xcff   : > { %v8482_v34 = vpop.f32.mrf.mxu1 }
 0xd00   : > { %v3326_v28 = vadd.f32 %v3317_v20, %v9927_v30  ;;  %v3356_v31 = vsel %vm684_vm3, %v11230_v13, 0.0 }
 0xd01   : > { %3357 = vadd.xlane.f32.xlu1 %v3356_v31  ;;  %v3290_v62 = vpop.f32.mrf.mxu1 }
 0xd02   : > { %v11236_v16 = vadd.f32 %v7241_v4, %v3326_v28  ;;  %v3318_v25 = vadd.f32 %v3290_v62, %v11070_v6 }
 0xd03   : > { %v8485_v60 = vpop.f32.mrf.mxu1 }
 0xd04   : > { %v3327_v39 = vadd.f32 %v3318_v25, %v9934_v35  ;;  %v3359_v21 = vsel %vm684_vm3, %v11236_v16, 0.0 }
 0xd05   : > { %3360 = vadd.xlane.f32.xlu1 %v3359_v21  ;;  %v3295_v57 = vpop.f32.mrf.mxu1 }
 0xd06   : > { %v11242_v5 = vadd.f32 %v7241_v4, %v3327_v39  ;;  %v3319_v30 = vadd.f32 %v3295_v57, %v11096_v10 }
 0xd07   : > { %v8488_v49 = vpop.f32.mrf.mxu1 }
 0xd08   : > { %v3328_v0 = vadd.f32 %v3319_v30, %v9941_v40  ;;  %v3362_v47 = vsel %vm684_vm3, %v11242_v5, 0.0  ;;  %v3500_v49 = vld [vmem:[%s13126_s10 + $0x18] sm:$0xff] }
 0xd09   : > { %3363 = vadd.xlane.f32.xlu0 %v3362_v47  ;;  %v3300_v6 = vpop.f32.mrf.mxu1  ;;  %8499 = vmatpush3.msra.mxu0 %v3500_v49  ;;  %v3498_v47 = vld [vmem:[%s13126_s10 + $0x8] sm:$0xff] }
 0xd0a   : > { %v11248_v43 = vadd.f32 %v7241_v4, %v3328_v0  ;;  %v3320_v35 = vadd.f32 %v3300_v6, %v11104_v24  ;;  %8500 = vmatprep.subr.mxu0 %v9705_v1  ;;  %v3499_v0 = vld [vmem:[%s13126_s10 + $0x10] sm:$0xff]  ;;  %v3497_v6 = vld [vmem:[%s13126_s10] sm:$0xff] }
 0xd0b   : > { %v8491_v54 = vpop.f32.mrf.mxu1  ;;  %8501 = vmatpush3.msra.mxu0 %v3499_v0 }
 0xd0c   : > { %v3329_v38 = vadd.f32 %v3320_v35, %v9948_v45  ;;  %v3365_v46 = vsel %vm684_vm3, %v11248_v43, 0.0  ;;  %8502 = vmatprep.subr.mxu0 %v9705_v1 }
 0xd0d   : > { %3366 = vadd.xlane.f32.xlu1 %v3365_v46  ;;  %8503 = vmatpush3.msra.mxu0 %v3498_v47 }
 0xd0e   : > { %v11254_v10 = vadd.f32 %v7241_v4, %v3329_v38  ;;  %8504 = vmatprep.subr.mxu0 %v9705_v1 }
 0xd0f   : > { %8505 = vmatpush3.msra.mxu0 %v3497_v6 }
 0xd10   : > { %v3368_v40 = vsel %vm684_vm3, %v11254_v10, 0.0  ;;  %8592 = vmatprep.subr.mxu0 %v9705_v1 }
 0xd11   : > { %3369 = vadd.xlane.f32.xlu0 %v3368_v40 }
 0xd31   : > { %v3305_v8 = vpop.f32.mrf.mxu1 }
 0xd32   : > { %v3321_v18 = vadd.f32 %v3305_v8, %v11108_v61 }
 0xd33   : > { %v8494_v9 = vpop.f32.mrf.mxu1 }
 0xd34   : > { %v3330_v32 = vadd.f32 %v3321_v18, %v9955_v50 }
 0xd35   : > { %v3310_v24 = vpop.f32.mrf.mxu1 }
 0xd36   : > { %v11260_v53 = vadd.f32 %v7241_v4, %v3330_v32  ;;  %v3322_v45 = vadd.f32 %v3310_v24, %v11112_v11 }
 0xd37   : > { %v8497_v48 = vpop.f32.mrf.mxu1 }
 0xd38   : > { %v3331_v27 = vadd.f32 %v3322_v45, %v9962_v55  ;;  %v3371_v33 = vsel %vm684_vm3, %v11260_v53, 0.0  ;;  %v3669_v45 = vld [vmem:[%s13128_s12 + $0x78] sm:$0xff]  ;;  %v3668_v48 = vld [vmem:[%s13128_s12 + $0x70] sm:$0xff] }
 0xd39   : > { %3372 = vadd.xlane.f32.xlu1 %v3371_v33  ;;  %8534 = vmatpush3.msra.mxu1 %v3669_v45  ;;  %v3666_v33 = vld [vmem:[%s13128_s12 + $0x60] sm:$0xff] }
 0xd3a   : > { %v11266_v29 = vadd.f32 %v7241_v4, %v3331_v27  ;;  %8535 = vmatprep.subr.mxu1 %v9705_v1  ;;  %v3667_v27 = vld [vmem:[%s13128_s12 + $0x68] sm:$0xff] }
 0xd3b   : > { %8536 = vmatpush3.msra.mxu1 %v3668_v48 }
 0xd3c   : > { %v3374_v61 = vsel %vm709_vm4, %v11266_v29, 0.0  ;;  %8537 = vmatprep.subr.mxu1 %v9705_v1 }
 0xd3d   : > { %3375 = vadd.xlane.f32.xlu0 %v3374_v61  ;;  %8538 = vmatpush3.msra.mxu1 %v3667_v27  ;;  %v3665_v61 = vld [vmem:[%s13128_s12 + $0x58] sm:$0xff] }
 0xd3e   : > { %8539 = vmatprep.subr.mxu1 %v9705_v1 }
 0xd3f   : > { %8540 = vmatpush3.msra.mxu1 %v3666_v33 }
 0xd40   : > { %8541 = vmatprep.subr.mxu1 %v9705_v1 }
 0xd41   : > { %8542 = vmatpush3.msra.mxu1 %v3665_v61 }
 0xd42   : > { %8543 = vmatprep.subr.mxu1 %v9705_v1 }
 0xd82   : > { %v3352_v42 = vpop.xlane.xlu1 %3351 }
 0xd83   : > { %v3377_v50 = vmul.f32 0.03125, %v3352_v42  ;;  %v3664_v42 = vld [vmem:[%s13128_s12 + $0x50] sm:$0xff] }
 0xd84   : > { %8544 = vmatpush3.msra.mxu1 %v3664_v42 }
 0xd85   : > { %v11271_v36 = vsub.f32 %v11218_v23, %v3377_v50  ;;  %v3663_v50 = vld [vmem:[%s13128_s12 + $0x48] sm:$0xff]  ;;  %8545 = vmatprep.subr.mxu1 %v9705_v1 }
 0xd86   : > { %v3355_v2 = vpop.xlane.xlu1 %3354  ;;  %8546 = vmatpush3.msra.mxu1 %v3663_v50 }
 0xd87   : > { %v3378_v11 = vmul.f32 0.03125, %v3355_v2  ;;  %v3395_v55 = vmul.f32 %v11271_v36, %v11271_v36  ;;  %v3662_v2 = vld [vmem:[%s13128_s12 + $0x40] sm:$0xff]  ;;  %8547 = vmatprep.subr.mxu1 %v9705_v1 }
 0xd88   : > { %8548 = vmatpush3.msra.mxu1 %v3662_v2 }
 0xd89   : > { %v11276_v14 = vsub.f32 %v11224_v22, %v3378_v11  ;;  %v3404_v41 = vsel %vm684_vm3, %v3395_v55, 0.0  ;;  %v3661_v11 = vld [vmem:[%s13128_s12 + $0x38] sm:$0xff]  ;;  %8549 = vmatprep.subr.mxu1 %v9705_v1  ;;  %v3660_v55 = vld [vmem:[%s13128_s12 + $0x30] sm:$0xff] }
 0xd8a   : > { %v3358_v58 = vpop.xlane.xlu1 %3357  ;;  %3405 = vadd.xlane.f32.xlu1 %v3404_v41  ;;  %8550 = vmatpush3.msra.mxu1 %v3661_v11  ;;  %v3659_v41 = vld [vmem:[%s13128_s12 + $0x28] sm:$0xff] }
 0xd8b   : > { %v3379_v7 = vmul.f32 0.03125, %v3358_v58  ;;  %v3396_v4 = vmul.f32 %v11276_v14, %v11276_v14  ;;  %8551 = vmatprep.subr.mxu1 %v9705_v1  ;;  %v3658_v58 = vld [vmem:[%s13128_s12 + $0x20] sm:$0xff] }
 0xd8c   : > { %8552 = vmatpush3.msra.mxu1 %v3660_v55 }
 0xd8d   : > { %v11282_v59 = vsub.f32 %v11230_v13, %v3379_v7  ;;  %v3407_v19 = vsel %vm684_vm3, %v3396_v4, 0.0  ;;  %8553 = vmatprep.subr.mxu1 %v9705_v1  ;;  %v3657_v7 = vld [vmem:[%s13128_s12 + $0x18] sm:$0xff] }
 0xd8e   : > { %v3361_v12 = vpop.xlane.xlu1 %3360  ;;  %3408 = vadd.xlane.f32.xlu0 %v3407_v19  ;;  %8554 = vmatpush3.msra.mxu1 %v3659_v41 }
 0xd8f   : > { %v3380_v17 = vmul.f32 0.03125, %v3361_v12  ;;  %v3397_v56 = vmul.f32 %v11282_v59, %v11282_v59  ;;  %8555 = vmatprep.subr.mxu1 %v9705_v1 }
 0xd90   : > { %8556 = vmatpush3.msra.mxu1 %v3658_v58 }
 0xd91   : > { %v11288_v37 = vsub.f32 %v11236_v16, %v3380_v17  ;;  %v3410_v3 = vsel %vm684_vm3, %v3397_v56, 0.0  ;;  %8557 = vmatprep.subr.mxu1 %v9705_v1 }
 0xd92   : > { %v3364_v52 = vpop.xlane.xlu0 %3363  ;;  %3411 = vadd.xlane.f32.xlu1 %v3410_v3  ;;  %8558 = vmatpush3.msra.mxu1 %v3657_v7 }
 0xd93   : > { %v3381_v44 = vmul.f32 0.03125, %v3364_v52  ;;  %v3398_v51 = vmul.f32 %v11288_v37, %v11288_v37  ;;  %8559 = vmatprep.subr.mxu1 %v9705_v1 }
 0xd95   : > { %v11294_v15 = vsub.f32 %v11242_v5, %v3381_v44  ;;  %v3413_v26 = vsel %vm684_vm3, %v3398_v51, 0.0 }
 0xd96   : > { %v3367_v63 = vpop.xlane.xlu1 %3366  ;;  %3414 = vadd.xlane.f32.xlu0 %v3413_v26 }
 0xd97   : > { %v3382_v20 = vmul.f32 0.03125, %v3367_v63  ;;  %v3399_v34 = vmul.f32 %v11294_v15, %v11294_v15 }
 0xd99   : > { %v11300_v28 = vsub.f32 %v11248_v43, %v3382_v20  ;;  %v3416_v31 = vsel %vm684_vm3, %v3399_v34, 0.0 }
 0xd9a   : > { %v3370_v62 = vpop.xlane.xlu0 %3369  ;;  %3417 = vadd.xlane.f32.xlu1 %v3416_v31 }
 0xd9b   : > { %v3383_v25 = vmul.f32 0.03125, %v3370_v62  ;;  %v3400_v60 = vmul.f32 %v11300_v28, %v11300_v28 }
 0xd9d   : > { %v11306_v39 = vsub.f32 %v11254_v10, %v3383_v25  ;;  %v3419_v21 = vsel %vm684_vm3, %v3400_v60, 0.0  ;;  %v11395_v25 = vld [vmem:[%s13124_s8] ss:$0 sm:$0xff] }
 0xd9e   : > { %3420 = vadd.xlane.f32.xlu0 %v3419_v21 }
 0xd9f   : > { %v3401_v57 = vmul.f32 %v11306_v39, %v11306_v39 }
 0xda1   : > { %v3422_v30 = vsel %vm684_vm3, %v3401_v57, 0.0  ;;  %v11401_v57 = vld [vmem:[%s13125_s9] ss:$0 sm:$0xff] }
 0xda2   : > { %3423 = vadd.xlane.f32.xlu1 %v3422_v30 }
 0xdc2   : > { %v3373_v35 = vpop.xlane.xlu1 %3372 }
 0xdc3   : > { %v3384_v54 = vmul.f32 0.03125, %v3373_v35 }
 0xdc5   : > { %v11329_v38 = vsub.f32 %v11260_v53, %v3384_v54 }
 0xdc6   : > { %v3376_v46 = vpop.xlane.xlu0 %3375 }
 0xdc7   : > { %v3385_v40 = vmul.f32 0.03125, %v3376_v46  ;;  %v3402_v8 = vmul.f32 %v11329_v38, %v11329_v38 }
 0xdc9   : > { %v11334_v18 = vsub.f32 %v11266_v29, %v3385_v40  ;;  %v3425_v9 = vsel %vm684_vm3, %v3402_v8, 0.0 }
 0xdca   : > { %3426 = vadd.xlane.f32.xlu0 %v3425_v9 }
 0xdcb   : > { %v3403_v32 = vmul.f32 %v11334_v18, %v11334_v18 }
 0xdcd   : > { %v3428_v24 = vsel %vm709_vm4, %v3403_v32, 0.0 }
 0xdce   : > { %3429 = vadd.xlane.f32.xlu1 %v3428_v24 }
 0xe13   : > { %v3406_v4 = vpop.xlane.xlu1 %3405 }
 0xe14   : > { %v3431_v19 = vmul.f32 0.03125, %v3406_v4 }
 0xe16   : > { %v3440_v12 = vadd.f32 1e-05, %v3431_v19 }
 0xe17   : > { %v3409_v17 = vpop.xlane.xlu0 %3408 }
 0xe18   : > { %9441 = vrsqrt.f32 %v3440_v12  ;;  %v3432_v56 = vmul.f32 0.03125, %v3409_v17 }
 0xe1a   : > { %v3441_v3 = vadd.f32 1e-05, %v3432_v56 }
 0xe1b   : > { %v3412_v52 = vpop.xlane.xlu1 %3411 }
 0xe1c   : > { %9443 = vrsqrt.f32 %v3441_v3  ;;  %v3433_v44 = vmul.f32 0.03125, %v3412_v52 }
 0xe1e   : > { %v3442_v51 = vadd.f32 1e-05, %v3433_v44 }
 0xe1f   : > { %v3415_v26 = vpop.xlane.xlu0 %3414 }
 0xe20   : > { %9445 = vrsqrt.f32 %v3442_v51  ;;  %v3434_v63 = vmul.f32 0.03125, %v3415_v26 }
 0xe22   : > { %v3443_v20 = vadd.f32 1e-05, %v3434_v63 }
 0xe23   : > { %v3418_v34 = vpop.xlane.xlu1 %3417 }
 0xe24   : > { %9447 = vrsqrt.f32 %v3443_v20  ;;  %v3435_v31 = vmul.f32 0.03125, %v3418_v34  ;;  %v3656_v34 = vld [vmem:[%s13128_s12 + $0x10] sm:$0xff] }
 0xe25   : > { %v9442_v62 = vpop.eup %9441  ;;  %8560 = vmatpush3.msra.mxu1 %v3656_v34 }
 0xe26   : > { %v3458_v60 = vmul.f32 %v9442_v62, %v11271_v36  ;;  %v3444_v21 = vadd.f32 1e-05, %v3435_v31  ;;  %8561 = vmatprep.subr.mxu1 %v9705_v1  ;;  %v3654_v31 = vld [vmem:[%s13128_s12] sm:$0xff] }
 0xe27   : > { %v3421_v30 = vpop.xlane.xlu0 %3420  ;;  %v7244_v62 = vld [vmem:[%s13127_s11] ss:$0 sm:$0xff] }
 0xe28   : > { %v3473_v49 = vmul.f32 %v11395_v25, %v3458_v60  ;;  %9449 = vrsqrt.f32 %v3444_v21  ;;  %v3436_v0 = vmul.f32 0.03125, %v3421_v30 }
 0xe29   : > { %v9444_v47 = vpop.eup %9443 }
 0xe2a   : > { %v3488_v6 = vadd.f32 %v11401_v57, %v3473_v49  ;;  %v3445_v35 = vadd.f32 1e-05, %v3436_v0  ;;  %v3459_v54 = vmul.f32 %v9444_v47, %v11276_v14 }
 0xe2b   : > { %v3424_v46 = vpop.xlane.xlu1 %3423 }
 0xe2c   : > { %9451 = vrsqrt.f32 %v3445_v35  ;;  %v3437_v36 = vmul.f32 0.03125, %v3424_v46  ;;  %8507 = vmatmul.mubr.msk.f32.vlgmr.msra.gmra.mxu0 %vm684_vm3, %v3488_v6  ;;  %v3474_v40 = vmul.f32 %v11395_v25, %v3459_v54 }
 0xe2d   : > { %v9446_v8 = vpop.eup %9445  ;;  %8509 = vmatprep.mubr.msk.f32.mxu0 %vm9706_vm1, %v9705_v1 }
 0xe2e   : > { %v3446_v9 = vadd.f32 1e-05, %v3437_v36  ;;  %v3489_v32 = vadd.f32 %v11401_v57, %v3474_v40  ;;  %v3460_v24 = vmul.f32 %v9446_v8, %v11282_v59 }
 0xe30   : > { %9453 = vrsqrt.f32 %v3446_v9  ;;  %8510 = vmatmul.mubr.msk.f32.gmra.mxu0 %vm684_vm3, %v3489_v32  ;;  %v3475_v14 = vmul.f32 %v11395_v25, %v3460_v24 }
 0xe31   : > { %v9448_v45 = vpop.eup %9447  ;;  %8512 = vmatprep.mubr.msk.f32.mxu0 %vm9706_vm1, %v9705_v1 }
 0xe32   : > { %v3490_v48 = vadd.f32 %v11401_v57, %v3475_v14  ;;  %v3461_v27 = vmul.f32 %v9448_v45, %v11288_v37 }
 0xe34   : > { %8513 = vmatmul.mubr.msk.f32.gmra.mxu0 %vm684_vm3, %v3490_v48  ;;  %v3476_v33 = vmul.f32 %v11395_v25, %v3461_v27 }
 0xe35   : > { %v9450_v61 = vpop.eup %9449  ;;  %8515 = vmatprep.mubr.msk.f32.mxu0 %vm9706_vm1, %v9705_v1 }
 0xe36   : > { %v3491_v59 = vadd.f32 %v11401_v57, %v3476_v33  ;;  %v3462_v42 = vmul.f32 %v9450_v61, %v11294_v15 }
 0xe38   : > { %8516 = vmatmul.mubr.msk.f32.gmra.mxu0 %vm684_vm3, %v3491_v59  ;;  %v3477_v50 = vmul.f32 %v11395_v25, %v3462_v42 }
 0xe39   : > { %v9452_v2 = vpop.eup %9451  ;;  %8518 = vmatprep.mubr.msk.f32.mxu0 %vm9706_vm1, %v9705_v1 }
 0xe3a   : > { %v3492_v37 = vadd.f32 %v11401_v57, %v3477_v50  ;;  %v3463_v11 = vmul.f32 %v9452_v2, %v11300_v28 }
 0xe3c   : > { %8519 = vmatmul.mubr.msk.f32.gmra.mxu0 %vm684_vm3, %v3492_v37  ;;  %v3478_v55 = vmul.f32 %v11395_v25, %v3463_v11 }
 0xe3d   : > { %v9454_v41 = vpop.eup %9453  ;;  %8521 = vmatprep.mubr.msk.f32.mxu0 %vm9706_vm1, %v9705_v1 }
 0xe3e   : > { %v3493_v15 = vadd.f32 %v11401_v57, %v3478_v55  ;;  %v3464_v58 = vmul.f32 %v9454_v41, %v11306_v39 }
 0xe40   : > { %8522 = vmatmul.mubr.msk.f32.gmra.mxu0 %vm684_vm3, %v3493_v15  ;;  %v3479_v7 = vmul.f32 %v11395_v25, %v3464_v58 }
 0xe41   : > { %8524 = vmatprep.mubr.msk.f32.mxu0 %vm9706_vm1, %v9705_v1 }
 0xe42   : > { %v3494_v28 = vadd.f32 %v11401_v57, %v3479_v7 }
 0xe44   : > { %8525 = vmatmul.mubr.msk.f32.gmra.mxu0 %vm684_vm3, %v3494_v28 }
 0xe45   : > { %8527 = vmatprep.mubr.msk.f32.mxu0 %vm9706_vm1, %v9705_v1 }
 0xe53   : > { %v3427_v4 = vpop.xlane.xlu0 %3426 }
 0xe54   : > { %v3438_v19 = vmul.f32 0.03125, %v3427_v4 }
 0xe56   : > { %v3447_v12 = vadd.f32 1e-05, %v3438_v19  ;;  %v7254_v19 = vld [vmem:[%s13129_s13] ss:$0 sm:$0xff] }
 0xe57   : > { %v3430_v17 = vpop.xlane.xlu1 %3429 }
 0xe58   : > { %9455 = vrsqrt.f32 %v3447_v12  ;;  %v3439_v39 = vmul.f32 0.03125, %v3430_v17 }
 0xe5a   : > { %v3448_v56 = vadd.f32 1e-05, %v3439_v39 }
 0xe5c   : > { %9457 = vrsqrt.f32 %v3448_v56 }
 0xe65   : > { %v9456_v3 = vpop.eup %9455 }
 0xe66   : > { %v3465_v52 = vmul.f32 %v9456_v3, %v11329_v38 }
 0xe68   : > { %v3480_v44 = vmul.f32 %v11395_v25, %v3465_v52 }
 0xe69   : > { %v9458_v51 = vpop.eup %9457 }
 0xe6a   : > { %v3495_v26 = vadd.f32 %v11401_v57, %v3480_v44  ;;  %v3466_v63 = vmul.f32 %v9458_v51, %v11334_v18  ;;  %v3655_v18 = vld [vmem:[%s13128_s12 + $0x8] sm:$0xff] }
 0xe6b   : > { %8562 = vmatpush3.msra.mxu1 %v3655_v18 }
 0xe6c   : > { %8528 = vmatmul.mubr.msk.f32.gmra.mxu0 %vm684_vm3, %v3495_v26  ;;  %v3481_v20 = vmul.f32 %v11395_v25, %v3466_v63  ;;  %8563 = vmatprep.subr.mxu1 %v9705_v1 }
 0xe6d   : > { %8530 = vmatprep.mubr.msk.f32.mxu0 %vm9706_vm1, %v9705_v1  ;;  %8564 = vmatpush3.msra.mxu1 %v3654_v31 }
 0xe6e   : > { %v3496_v38 = vadd.f32 %v11401_v57, %v3481_v20  ;;  %8627 = vmatprep.subr.mxu1 %v9705_v1 }
 0xe70   : > { %8531 = vmatmul.mubr.msk.f32.gmra.mxu0 %vm684_vm3, %v3496_v38 }
 0xe71   : > { %8600 = vmatprep.mubr.msk.f32.mxu0 %vm9706_vm1, %v9705_v1 }
 0xeec   : > { %v3601_v25 = vpop.f32.mrf.mxu0 }
 0xeed   : > { %v3602_v60 = vadd.f32 %v7244_v62, %v3601_v25 }
 0xeee   : > { %v8508_v21 = vpop.f32.mrf.mxu0 }
 0xeef   : > { %v3645_v57 = vmax.f32 %v3602_v60, 0.0 }
 0xef0   : > { %v3606_v30 = vpop.f32.mrf.mxu0 }
 0xef1   : > { %v3607_v49 = vadd.f32 %v7244_v62, %v3606_v30  ;;  %8566 = vmatmul.mubr.f32.vlgmr.msra.gmra.mxu1 %v3645_v57 }
 0xef2   : > { %v8511_v0 = vpop.f32.mrf.mxu0  ;;  %8568 = vmatprep.mubr.msk.f32.mxu1 %vm9706_vm1, %v9705_v1 }
 0xef3   : > { %v3646_v47 = vmax.f32 %v3607_v49, 0.0 }
 0xef4   : > { %v3611_v6 = vpop.f32.mrf.mxu0 }
 0xef5   : > { %v3612_v35 = vadd.f32 %v7244_v62, %v3611_v6  ;;  %8569 = vmatmul.mubr.f32.gmra.mxu1 %v3646_v47 }
 0xef6   : > { %v8514_v54 = vpop.f32.mrf.mxu0  ;;  %8571 = vmatprep.mubr.msk.f32.mxu1 %vm9706_vm1, %v9705_v1 }
 0xef7   : > { %v3647_v46 = vmax.f32 %v3612_v35, 0.0 }
 0xef8   : > { %v3616_v36 = vpop.f32.mrf.mxu0 }
 0xef9   : > { %v3617_v40 = vadd.f32 %v7244_v62, %v3616_v36  ;;  %8572 = vmatmul.mubr.f32.gmra.mxu1 %v3647_v46 }
 0xefa   : > { %v8517_v8 = vpop.f32.mrf.mxu0  ;;  %8574 = vmatprep.mubr.msk.f32.mxu1 %vm9706_vm1, %v9705_v1 }
 0xefb   : > { %v3648_v9 = vmax.f32 %v3617_v40, 0.0 }
 0xefc   : > { %v3621_v32 = vpop.f32.mrf.mxu0 }
 0xefd   : > { %v3622_v24 = vadd.f32 %v7244_v62, %v3621_v32  ;;  %8575 = vmatmul.mubr.f32.gmra.mxu1 %v3648_v9 }
 0xefe   : > { %v8520_v14 = vpop.f32.mrf.mxu0  ;;  %8577 = vmatprep.mubr.msk.f32.mxu1 %vm9706_vm1, %v9705_v1 }
 0xeff   : > { %v3649_v45 = vmax.f32 %v3622_v24, 0.0 }
 0xf00   : > { %v3626_v48 = vpop.f32.mrf.mxu0 }
 0xf01   : > { %v3627_v27 = vadd.f32 %v7244_v62, %v3626_v48  ;;  %8578 = vmatmul.mubr.f32.gmra.mxu1 %v3649_v45 }
 0xf02   : > { %v8523_v33 = vpop.f32.mrf.mxu0  ;;  %8580 = vmatprep.mubr.msk.f32.mxu1 %vm9706_vm1, %v9705_v1 }
 0xf03   : > { %v3650_v61 = vmax.f32 %v3627_v27, 0.0 }
 0xf04   : > { %v3631_v59 = vpop.f32.mrf.mxu0 }
 0xf05   : > { %v3632_v42 = vadd.f32 %v7244_v62, %v3631_v59  ;;  %8581 = vmatmul.mubr.f32.gmra.mxu1 %v3650_v61 }
 0xf06   : > { %v8526_v50 = vpop.f32.mrf.mxu0  ;;  %8583 = vmatprep.mubr.msk.f32.mxu1 %vm9706_vm1, %v9705_v1 }
 0xf07   : > { %v3651_v2 = vmax.f32 %v3632_v42, 0.0 }
 0xf09   : > { %8584 = vmatmul.mubr.f32.gmra.mxu1 %v3651_v2 }
 0xf0a   : > { %8586 = vmatprep.mubr.msk.f32.mxu1 %vm9706_vm1, %v9705_v1 }
 0xf2c   : > { %v3636_v37 = vpop.f32.mrf.mxu0 }
 0xf2d   : > { %v3637_v11 = vadd.f32 %v7244_v62, %v3636_v37 }
 0xf2e   : > { %v8529_v55 = vpop.f32.mrf.mxu0 }
 0xf2f   : > { %v3652_v41 = vmax.f32 %v3637_v11, 0.0 }
 0xf30   : > { %v3641_v15 = vpop.f32.mrf.mxu0 }
 0xf31   : > { %v3642_v58 = vadd.f32 %v7244_v62, %v3641_v15  ;;  %8587 = vmatmul.mubr.f32.gmra.mxu1 %v3652_v41 }
 0xf32   : > { %v8532_v7 = vpop.f32.mrf.mxu0  ;;  %8589 = vmatprep.mubr.msk.f32.mxu1 %vm9706_vm1, %v9705_v1 }
 0xf33   : > { %v3653_v28 = vmax.f32 %v3642_v58, 0.0 }
 0xf35   : > { %8590 = vmatmul.mubr.f32.gmra.mxu1 %v3653_v28 }
 0xf36   : > { %8645 = vmatprep.mubr.msk.f32.mxu1 %vm9706_vm1, %v9705_v1 }
 0xfb1   : > { %v3736_v4 = vpop.f32.mrf.mxu1 }
 0xfb2   : > { %v3780_v12 = vadd.f32 %v3736_v4, %v11218_v23 }
 0xfb3   : > { %v8567_v17 = vpop.f32.mrf.mxu1 }
 0xfb4   : > { %v11493_v39 = vadd.f32 %v7254_v19, %v3780_v12 }
 0xfb5   : > { %v3741_v56 = vpop.f32.mrf.mxu1 }
 0xfb6   : > { %v3781_v3 = vadd.f32 %v3741_v56, %v11224_v22  ;;  %v3809_v52 = vsel %vm684_vm3, %v11493_v39, 0.0 }
 0xfb7   : > { %3810 = vadd.xlane.f32.xlu0 %v3809_v52  ;;  %v8570_v44 = vpop.f32.mrf.mxu1 }
 0xfb8   : > { %v11498_v51 = vadd.f32 %v7254_v19, %v3781_v3 }
 0xfb9   : > { %v3746_v26 = vpop.f32.mrf.mxu1 }
 0xfba   : > { %v3782_v63 = vadd.f32 %v3746_v26, %v11230_v13  ;;  %v3812_v20 = vsel %vm684_vm3, %v11498_v51, 0.0 }
 0xfbb   : > { %3813 = vadd.xlane.f32.xlu1 %v3812_v20  ;;  %v8573_v23 = vpop.f32.mrf.mxu1 }
 0xfbc   : > { %v11503_v34 = vadd.f32 %v7254_v19, %v3782_v63 }
 0xfbd   : > { %v3751_v38 = vpop.f32.mrf.mxu1 }
 0xfbe   : > { %v3783_v22 = vadd.f32 %v3751_v38, %v11236_v16  ;;  %v3815_v18 = vsel %vm684_vm3, %v11503_v34, 0.0 }
 0xfbf   : > { %3816 = vadd.xlane.f32.xlu0 %v3815_v18  ;;  %v8576_v31 = vpop.f32.mrf.mxu1 }
 0xfc0   : > { %v11508_v62 = vadd.f32 %v7254_v19, %v3783_v22 }
 0xfc1   : > { %v3756_v25 = vpop.f32.mrf.mxu1 }
 0xfc2   : > { %v3784_v13 = vadd.f32 %v3756_v25, %v11242_v5  ;;  %v3818_v60 = vsel %vm684_vm3, %v11508_v62, 0.0 }
 0xfc3   : > { %3819 = vadd.xlane.f32.xlu1 %v3818_v60  ;;  %v8579_v21 = vpop.f32.mrf.mxu1  ;;  %v7262_v60 = vld [vmem:[%s13121_s5 + $0x38] sm:$0xff] }
 0xfc4   : > { %v11513_v57 = vadd.f32 %v7254_v19, %v3784_v13  ;;  %8593 = vmatpush3.msra.mxu0 %v7262_v60  ;;  %v7261_v21 = vld [vmem:[%s13121_s5 + $0x30] sm:$0xff] }
 0xfc5   : > { %v3761_v30 = vpop.f32.mrf.mxu1  ;;  %8594 = vmatprep.subr.mxu0 %v9705_v1 }
 0xfc6   : > { %v3785_v16 = vadd.f32 %v3761_v30, %v11248_v43  ;;  %v3821_v49 = vsel %vm684_vm3, %v11513_v57, 0.0  ;;  %8595 = vmatpush3.msra.mxu0 %v7261_v21  ;;  %v7260_v30 = vld [vmem:[%s13121_s5 + $0x28] sm:$0xff] }
 0xfc7   : > { %3822 = vadd.xlane.f32.xlu0 %v3821_v49  ;;  %v8582_v0 = vpop.f32.mrf.mxu1  ;;  %8596 = vmatprep.subr.mxu0 %v9705_v1 }
 0xfc8   : > { %v11518_v47 = vadd.f32 %v7254_v19, %v3785_v16  ;;  %8597 = vmatpush3.msra.mxu0 %v7260_v30  ;;  %v7259_v16 = vld [vmem:[%s13121_s5 + $0x20] sm:$0xff] }
 0xfc9   : > { %v3766_v6 = vpop.f32.mrf.mxu1  ;;  %8598 = vmatprep.subr.mxu0 %v9705_v1 }
 0xfca   : > { %v3786_v5 = vadd.f32 %v3766_v6, %v11254_v10  ;;  %v3824_v35 = vsel %vm684_vm3, %v11518_v47, 0.0  ;;  %8599 = vmatpush3.msra.mxu0 %v7259_v16 }
 0xfcb   : > { %3825 = vadd.xlane.f32.xlu1 %v3824_v35  ;;  %v8585_v54 = vpop.f32.mrf.mxu1  ;;  %8672 = vmatprep.subr.mxu0 %v9705_v1 }
 0xfcc   : > { %v11523_v46 = vadd.f32 %v7254_v19, %v3786_v5 }
 0xfce   : > { %v3827_v43 = vsel %vm684_vm3, %v11523_v46, 0.0 }
 0xfcf   : > { %3828 = vadd.xlane.f32.xlu0 %v3827_v43 }
 0xff1   : > { %v3771_v36 = vpop.f32.mrf.mxu1 }
 0xff2   : > { %v3787_v40 = vadd.f32 %v3771_v36, %v11260_v53 }
 0xff3   : > { %v8588_v8 = vpop.f32.mrf.mxu1 }
 0xff4   : > { %v11528_v9 = vadd.f32 %v7254_v19, %v3787_v40 }
 0xff5   : > { %v3776_v32 = vpop.f32.mrf.mxu1 }
 0xff6   : > { %v3788_v10 = vadd.f32 %v3776_v32, %v11266_v29  ;;  %v3830_v24 = vsel %vm684_vm3, %v11528_v9, 0.0 }
 0xff7   : > { %3831 = vadd.xlane.f32.xlu1 %v3830_v24  ;;  %v8591_v14 = vpop.f32.mrf.mxu1 }
 0xff8   : > { %v11533_v45 = vadd.f32 %v7254_v19, %v3788_v10 }
 0xffa   : > { %v3833_v48 = vsel %vm709_vm4, %v11533_v45, 0.0 }
 0xffb   : > { %3834 = vadd.xlane.f32.xlu0 %v3833_v48 }
0x1040   : > { %v3811_v27 = vpop.xlane.xlu0 %3810 }
0x1041   : > { %v3836_v33 = vmul.f32 0.03125, %v3811_v27 }
0x1043   : > { %v11538_v53 = vsub.f32 %v11493_v39, %v3836_v33 }
0x1044   : > { %v3814_v61 = vpop.xlane.xlu1 %3813 }
0x1045   : > { %v3837_v59 = vmul.f32 0.03125, %v3814_v61  ;;  %v3854_v29 = vmul.f32 %v11538_v53, %v11538_v53 }
0x1047   : > { %v11543_v42 = vsub.f32 %v11498_v51, %v3837_v59  ;;  %v3863_v50 = vsel %vm684_vm3, %v3854_v29, 0.0 }
0x1048   : > { %v3817_v2 = vpop.xlane.xlu0 %3816  ;;  %3864 = vadd.xlane.f32.xlu1 %v3863_v50 }
0x1049   : > { %v3838_v37 = vmul.f32 0.03125, %v3817_v2  ;;  %v3855_v11 = vmul.f32 %v11543_v42, %v11543_v42 }
0x104b   : > { %v11549_v55 = vsub.f32 %v11503_v34, %v3838_v37  ;;  %v3866_v41 = vsel %vm684_vm3, %v3855_v11, 0.0 }
0x104c   : > { %v3820_v15 = vpop.xlane.xlu1 %3819  ;;  %3867 = vadd.xlane.f32.xlu0 %v3866_v41 }
0x104d   : > { %v3839_v58 = vmul.f32 0.03125, %v3820_v15  ;;  %v3856_v7 = vmul.f32 %v11549_v55, %v11549_v55  ;;  %v11610_v15 = vld [vmem:[%s13168_s3 + $0x1] ss:$0 sm:$0xff]  ;;  %s9647_s3 = sshll.u32 %s9718_s2, 4  ;;  %s9648_s3 = int_to_ptr.vmem [resolvable:$false] %s9647_s3 }
0x104f   : > { %v11555_v28 = vsub.f32 %v11508_v62, %v3839_v58  ;;  %v3869_v4 = vsel %vm684_vm3, %v3856_v7, 0.0 }
0x1050   : > { %v3823_v19 = vpop.xlane.xlu0 %3822  ;;  %3870 = vadd.xlane.f32.xlu1 %v3869_v4  ;;  %v11616_v4 = vld [vmem:[%s13169_s4 + $0x1] ss:$0 sm:$0xff] }
0x1051   : > { %v3840_v12 = vmul.f32 0.03125, %v3823_v19  ;;  %v3857_v17 = vmul.f32 %v11555_v28, %v11555_v28 }
0x1053   : > { %v11561_v56 = vsub.f32 %v11513_v57, %v3840_v12  ;;  %v3872_v3 = vsel %vm684_vm3, %v3857_v17, 0.0 }
0x1054   : > { %v3826_v52 = vpop.xlane.xlu1 %3825  ;;  %3873 = vadd.xlane.f32.xlu0 %v3872_v3 }
0x1055   : > { %v3841_v44 = vmul.f32 0.03125, %v3826_v52  ;;  %v3858_v26 = vmul.f32 %v11561_v56, %v11561_v56 }
0x1057   : > { %v11567_v63 = vsub.f32 %v11518_v47, %v3841_v44  ;;  %v3875_v20 = vsel %vm684_vm3, %v3858_v26, 0.0 }
0x1058   : > { %v3829_v23 = vpop.xlane.xlu0 %3828  ;;  %3876 = vadd.xlane.f32.xlu1 %v3875_v20 }
0x1059   : > { %v3842_v38 = vmul.f32 0.03125, %v3829_v23  ;;  %v3859_v22 = vmul.f32 %v11567_v63, %v11567_v63 }
0x105b   : > { %v11573_v18 = vsub.f32 %v11523_v46, %v3842_v38  ;;  %v3878_v31 = vsel %vm684_vm3, %v3859_v22, 0.0 }
0x105c   : > { %3879 = vadd.xlane.f32.xlu0 %v3878_v31 }
0x105d   : > { %v3860_v25 = vmul.f32 %v11573_v18, %v11573_v18 }
0x105f   : > { %v3881_v13 = vsel %vm684_vm3, %v3860_v25, 0.0 }
0x1060   : > { %3882 = vadd.xlane.f32.xlu1 %v3881_v13 }
0x1080   : > { %v3832_v49 = vpop.xlane.xlu1 %3831 }
0x1081   : > { %v3843_v0 = vmul.f32 0.03125, %v3832_v49 }
0x1083   : > { %v11596_v6 = vsub.f32 %v11528_v9, %v3843_v0 }
0x1084   : > { %v3835_v5 = vpop.xlane.xlu0 %3834 }
0x1085   : > { %v3844_v35 = vmul.f32 0.03125, %v3835_v5  ;;  %v3861_v54 = vmul.f32 %v11596_v6, %v11596_v6 }
0x1087   : > { %v11601_v43 = vsub.f32 %v11533_v45, %v3844_v35  ;;  %v3884_v36 = vsel %vm684_vm3, %v3861_v54, 0.0 }
0x1088   : > { %3885 = vadd.xlane.f32.xlu0 %v3884_v36 }
0x1089   : > { %v3862_v40 = vmul.f32 %v11601_v43, %v11601_v43 }
0x108b   : > { %v3887_v8 = vsel %vm709_vm4, %v3862_v40, 0.0 }
0x108c   : > { %3888 = vadd.xlane.f32.xlu1 %v3887_v8 }
0x10d1   : > { %v3865_v32 = vpop.xlane.xlu1 %3864 }
0x10d2   : > { %v3890_v10 = vmul.f32 0.03125, %v3865_v32 }
0x10d4   : > { %v3899_v24 = vadd.f32 1e-05, %v3890_v10 }
0x10d5   : > { %v3868_v14 = vpop.xlane.xlu0 %3867 }
0x10d6   : > { %9459 = vrsqrt.f32 %v3899_v24  ;;  %v3891_v48 = vmul.f32 0.03125, %v3868_v14 }
0x10d8   : > { %v3900_v27 = vadd.f32 1e-05, %v3891_v48 }
0x10d9   : > { %v3871_v33 = vpop.xlane.xlu1 %3870 }
0x10da   : > { %9461 = vrsqrt.f32 %v3900_v27  ;;  %v3892_v61 = vmul.f32 0.03125, %v3871_v33 }
0x10dc   : > { %v3901_v59 = vadd.f32 1e-05, %v3892_v61 }
0x10dd   : > { %v3874_v29 = vpop.xlane.xlu0 %3873 }
0x10de   : > { %9463 = vrsqrt.f32 %v3901_v59  ;;  %v3893_v50 = vmul.f32 0.03125, %v3874_v29 }
0x10e0   : > { %v3902_v2 = vadd.f32 1e-05, %v3893_v50 }
0x10e1   : > { %v3877_v37 = vpop.xlane.xlu1 %3876 }
0x10e2   : > { %9465 = vrsqrt.f32 %v3902_v2  ;;  %v3894_v11 = vmul.f32 0.03125, %v3877_v37 }
0x10e3   : > { %v9460_v41 = vpop.eup %9459 }
0x10e4   : > { %v3917_v58 = vmul.f32 %v9460_v41, %v11538_v53  ;;  %v3903_v7 = vadd.f32 1e-05, %v3894_v11 }
0x10e5   : > { %v3880_v19 = vpop.xlane.xlu0 %3879 }
0x10e6   : > { %v3932_v12 = vmul.f32 %v11610_v15, %v3917_v58  ;;  %9467 = vrsqrt.f32 %v3903_v7  ;;  %v3895_v17 = vmul.f32 0.03125, %v3880_v19 }
0x10e7   : > { %v9462_v3 = vpop.eup %9461 }
0x10e8   : > { %v3947_v52 = vadd.f32 %v11616_v4, %v3932_v12  ;;  %v3904_v44 = vadd.f32 1e-05, %v3895_v17  ;;  %v3918_v26 = vmul.f32 %v9462_v3, %v11543_v42 }
0x10e9   : > { %v3883_v20 = vpop.xlane.xlu1 %3882 }
0x10ea   : > { %9469 = vrsqrt.f32 %v3904_v44  ;;  %v3896_v53 = vmul.f32 0.03125, %v3883_v20  ;;  %8601 = vmatmul.mubr.msk.f32.vlgmr.msra.gmra.mxu0 %vm684_vm3, %v3947_v52  ;;  %v3933_v23 = vmul.f32 %v11610_v15, %v3918_v26 }
0x10eb   : > { %v9464_v38 = vpop.eup %9463  ;;  %8603 = vmatprep.mubr.msk.f32.mxu0 %vm9706_vm1, %v9705_v1 }
0x10ec   : > { %v3905_v22 = vadd.f32 1e-05, %v3896_v53  ;;  %v3948_v31 = vadd.f32 %v11616_v4, %v3933_v23  ;;  %v3919_v25 = vmul.f32 %v9464_v38, %v11549_v55 }
0x10ee   : > { %9471 = vrsqrt.f32 %v3905_v22  ;;  %8604 = vmatmul.mubr.msk.f32.gmra.mxu0 %vm684_vm3, %v3948_v31  ;;  %v3934_v42 = vmul.f32 %v11610_v15, %v3919_v25 }
0x10ef   : > { %v9466_v13 = vpop.eup %9465  ;;  %8606 = vmatprep.mubr.msk.f32.mxu0 %vm9706_vm1, %v9705_v1 }
0x10f0   : > { %v3949_v60 = vadd.f32 %v11616_v4, %v3934_v42  ;;  %v3920_v21 = vmul.f32 %v9466_v13, %v11555_v28 }
0x10f2   : > { %8607 = vmatmul.mubr.msk.f32.gmra.mxu0 %vm684_vm3, %v3949_v60  ;;  %v3935_v30 = vmul.f32 %v11610_v15, %v3920_v21 }
0x10f3   : > { %v9468_v16 = vpop.eup %9467  ;;  %8609 = vmatprep.mubr.msk.f32.mxu0 %vm9706_vm1, %v9705_v1 }
0x10f4   : > { %v3950_v55 = vadd.f32 %v11616_v4, %v3935_v30  ;;  %v3921_v49 = vmul.f32 %v9468_v16, %v11561_v56 }
0x10f6   : > { %8610 = vmatmul.mubr.msk.f32.gmra.mxu0 %vm684_vm3, %v3950_v55  ;;  %v3936_v0 = vmul.f32 %v11610_v15, %v3921_v49 }
0x10f7   : > { %v9470_v5 = vpop.eup %9469  ;;  %8612 = vmatprep.mubr.msk.f32.mxu0 %vm9706_vm1, %v9705_v1 }
0x10f8   : > { %v3951_v28 = vadd.f32 %v11616_v4, %v3936_v0  ;;  %v3922_v35 = vmul.f32 %v9470_v5, %v11567_v63 }
0x10fa   : > { %8613 = vmatmul.mubr.msk.f32.gmra.mxu0 %vm684_vm3, %v3951_v28  ;;  %v3937_v54 = vmul.f32 %v11610_v15, %v3922_v35 }
0x10fb   : > { %v9472_v36 = vpop.eup %9471  ;;  %8615 = vmatprep.mubr.msk.f32.mxu0 %vm9706_vm1, %v9705_v1 }
0x10fc   : > { %v3952_v56 = vadd.f32 %v11616_v4, %v3937_v54  ;;  %v3923_v40 = vmul.f32 %v9472_v36, %v11573_v18 }
0x10fe   : > { %8616 = vmatmul.mubr.msk.f32.gmra.mxu0 %vm684_vm3, %v3952_v56  ;;  %v3938_v8 = vmul.f32 %v11610_v15, %v3923_v40 }
0x10ff   : > { %8618 = vmatprep.mubr.msk.f32.mxu0 %vm9706_vm1, %v9705_v1 }
0x1100   : > { %v3953_v63 = vadd.f32 %v11616_v4, %v3938_v8 }
0x1102   : > { %8619 = vmatmul.mubr.msk.f32.gmra.mxu0 %vm684_vm3, %v3953_v63 }
0x1103   : > { %8621 = vmatprep.mubr.msk.f32.mxu0 %vm9706_vm1, %v9705_v1 }
0x1111   : > { %v3886_v32 = vpop.xlane.xlu0 %3885 }
0x1112   : > { %v3897_v10 = vmul.f32 0.03125, %v3886_v32 }
0x1114   : > { %v3906_v24 = vadd.f32 1e-05, %v3897_v10 }
0x1115   : > { %v3889_v14 = vpop.xlane.xlu1 %3888 }
0x1116   : > { %9473 = vrsqrt.f32 %v3906_v24  ;;  %v3898_v18 = vmul.f32 0.03125, %v3889_v14 }
0x1118   : > { %v3907_v48 = vadd.f32 1e-05, %v3898_v18 }
0x111a   : > { %9475 = vrsqrt.f32 %v3907_v48 }
0x1123   : > { %v9474_v27 = vpop.eup %9473 }
0x1124   : > { %v3924_v33 = vmul.f32 %v9474_v27, %v11596_v6 }
0x1126   : > { %v3939_v61 = vmul.f32 %v11610_v15, %v3924_v33 }
0x1127   : > { %v9476_v59 = vpop.eup %9475 }
0x1128   : > { %v3954_v29 = vadd.f32 %v11616_v4, %v3939_v61  ;;  %v3925_v50 = vmul.f32 %v9476_v59, %v11601_v43 }
0x112a   : > { %8622 = vmatmul.mubr.msk.f32.gmra.mxu0 %vm684_vm3, %v3954_v29  ;;  %v3940_v2 = vmul.f32 %v11610_v15, %v3925_v50 }
0x112b   : > { %8624 = vmatprep.mubr.msk.f32.mxu0 %vm9706_vm1, %v9705_v1 }
0x112c   : > { %v3955_v37 = vadd.f32 %v11616_v4, %v3940_v2 }
0x112e   : > { %8625 = vmatmul.mubr.msk.f32.gmra.mxu0 %vm684_vm3, %v3955_v37 }
0x112f   : > { %8690 = vmatprep.mubr.msk.f32.mxu0 %vm9706_vm1, %v9705_v1 }
0x11aa   : > { %v11671_v6 = vpop.f32.mrf.mxu0 }
0x11ac   : > { %v8602_v11 = vpop.f32.mrf.mxu0 }
0x11ae   : > { %v11673_v41 = vpop.f32.mrf.mxu0 }
0x11b0   : > { %v8605_v43 = vpop.f32.mrf.mxu0 }
0x11b2   : > { %v11675_v58 = vpop.f32.mrf.mxu0 }
0x11b4   : > { %v8608_v7 = vpop.f32.mrf.mxu0 }
0x11b6   : > { %v11677_v15 = vpop.f32.mrf.mxu0 }
0x11b8   : > { %v8611_v19 = vpop.f32.mrf.mxu0 }
0x11ba   : > { %v11679_v12 = vpop.f32.mrf.mxu0 }
0x11bc   : > { %v8614_v4 = vpop.f32.mrf.mxu0 }
0x11be   : > { %v11681_v17 = vpop.f32.mrf.mxu0 }
0x11c0   : > { %v8617_v3 = vpop.f32.mrf.mxu0 }
0x11c2   : > { %v11683_v52 = vpop.f32.mrf.mxu0 }
0x11c4   : > { %v8620_v44 = vpop.f32.mrf.mxu0 }
0x11ea   : > { %v11685_v26 = vpop.f32.mrf.mxu0 }
0x11eb   : > { %4126 = vrot.lane.b32.xlu1 %v11685_v26, %s13170_s19 }
0x11ec   : > { %v8623_v20 = vpop.f32.mrf.mxu0 }
0x11ee   : > { %v11689_v53 = vpop.f32.mrf.mxu0 }
0x11ef   : > { %4124 = vrot.lane.b32.xlu1 %v11683_v52, %s13170_s19  ;;  %4128 = vrot.lane.b32.xlu0 %v11689_v53, %s13170_s19 }
0x11f0   : > { %v8626_v23 = vpop.f32.mrf.mxu0 }
0x11f3   : > { %4120 = vrot.lane.b32.xlu1 %v11679_v12, %s13170_s19  ;;  %4122 = vrot.lane.b32.xlu0 %v11681_v17, %s13170_s19 }
0x11f7   : > { %4116 = vrot.lane.b32.xlu1 %v11675_v58, %s13170_s19  ;;  %4118 = vrot.lane.b32.xlu0 %v11677_v15, %s13170_s19 }
0x11fb   : > { %4112 = vrot.lane.b32.xlu1 %v11671_v6, %s13170_s19  ;;  %4114 = vrot.lane.b32.xlu0 %v11673_v41, %s13170_s19  ;;  %s7464_s19 = sshll.u32 %s9825_s25, 4  ;;  %s9649_s25 = scalar_lea.vmem %s9648_s3, 32 }
0x11ff   : > { %4572 = vrot.lane.b32.xlu1 %v11685_v26, %s13171_s20  ;;  %4574 = vrot.lane.b32.xlu0 %v11689_v53, %s13171_s20 }
0x1203   : > { %4568 = vrot.lane.b32.xlu1 %v11681_v17, %s13171_s20  ;;  %4570 = vrot.lane.b32.xlu0 %v11683_v52, %s13171_s20 }
0x1207   : > { %4564 = vrot.lane.b32.xlu1 %v11677_v15, %s13171_s20  ;;  %4566 = vrot.lane.b32.xlu0 %v11679_v12, %s13171_s20 }
0x120b   : > { %4560 = vrot.lane.b32.xlu1 %v11673_v41, %s13171_s20  ;;  %4562 = vrot.lane.b32.xlu0 %v11675_v58, %s13171_s20 }
0x120f   : > { %4540 = vrot.lane.b32.xlu1 %v11671_v6, %s13172_s18  ;;  %4558 = vrot.lane.b32.xlu0 %v11671_v6, %s13171_s20 }
0x1213   : > { %4544 = vrot.lane.b32.xlu1 %v11675_v58, %s13172_s18  ;;  %4542 = vrot.lane.b32.xlu0 %v11673_v41, %s13172_s18 }
0x1217   : > { %4548 = vrot.lane.b32.xlu1 %v11679_v12, %s13172_s18  ;;  %4546 = vrot.lane.b32.xlu0 %v11677_v15, %s13172_s18 }
0x121b   : > { %4552 = vrot.lane.b32.xlu1 %v11683_v52, %s13172_s18  ;;  %4550 = vrot.lane.b32.xlu0 %v11681_v17, %s13172_s18 }
0x121f   : > { %4556 = vrot.lane.b32.xlu1 %v11689_v53, %s13172_s18  ;;  %4554 = vrot.lane.b32.xlu0 %v11685_v26, %s13172_s18 }
0x1223   : > { %4389 = vrot.lane.b32.xlu1 %v11685_v26, %s13173_s29  ;;  %4387 = vrot.lane.b32.xlu0 %v11683_v52, %s13173_s29 }
0x1227   : > { %4381 = vrot.lane.b32.xlu1 %v11677_v15, %s13173_s29  ;;  %4385 = vrot.lane.b32.xlu0 %v11681_v17, %s13173_s29 }
0x122b   : > { %4383 = vrot.lane.b32.xlu0 %v11679_v12, %s13173_s29 }
0x122f   : > { %4379 = vrot.lane.b32.xlu0 %v11675_v58, %s13173_s29 }
0x1233   : > { %4377 = vrot.lane.b32.xlu0 %v11673_v41, %s13173_s29 }
0x1237   : > { %4375 = vrot.lane.b32.xlu0 %v11671_v6, %s13173_s29 }
0x123b   : > { %4391 = vrot.lane.b32.xlu0 %v11689_v53, %s13173_s29 }
0x123f   : > { %4837 = vrot.lane.b32.xlu0 %v11689_v53, %s13174_s26 }
0x125d   : > { %v4127_v38 = vpop.permute.xlu1 %4126 }
0x1261   : > { %v4125_v22 = vpop.permute.xlu1 %4124  ;;  %v4129_v31 = vpop.permute.xlu0 %4128 }
0x1262   : > { %8628 = vmatpush3.xpose.msk.msra.mxu1 %vm1006_vm5, %v4129_v31 }
0x1263   : > { %8629 = vmatprep.subr.mxu1 %v9705_v1 }
0x1265   : > { %v4123_v25 = vpop.permute.xlu0 %4122  ;;  %v4121_v42 = vpop.permute.xlu1 %4120 }
0x1266   : > { %8630 = vmatpush3.xpose.msk.msra.mxu1 %vm1006_vm5, %v4127_v38 }
0x1267   : > { %8631 = vmatprep.subr.mxu1 %v9705_v1 }
0x1269   : > { %v4119_v13 = vpop.permute.xlu0 %4118  ;;  %v4117_v60 = vpop.permute.xlu1 %4116 }
0x126a   : > { %8632 = vmatpush3.xpose.msk.msra.mxu1 %vm1006_vm5, %v4125_v22 }
0x126b   : > { %8633 = vmatprep.subr.mxu1 %v9705_v1 }
0x126d   : > { %v4115_v21 = vpop.permute.xlu0 %4114  ;;  %v4113_v16 = vpop.permute.xlu1 %4112 }
0x126e   : > { %8634 = vmatpush3.xpose.msk.msra.mxu1 %vm1006_vm5, %v4123_v25 }
0x126f   : > { %8635 = vmatprep.subr.mxu1 %v9705_v1 }
0x1271   : > { %v4575_v30 = vpop.permute.xlu0 %4574  ;;  %v4573_v49 = vpop.permute.xlu1 %4572 }
0x1272   : > { %8636 = vmatpush3.xpose.msk.msra.mxu1 %vm1006_vm5, %v4121_v42 }
0x1273   : > { %8637 = vmatprep.subr.mxu1 %v9705_v1 }
0x1275   : > { %v4571_v55 = vpop.permute.xlu0 %4570  ;;  %v4569_v28 = vpop.permute.xlu1 %4568 }
0x1276   : > { %8638 = vmatpush3.xpose.msk.msra.mxu1 %vm1006_vm5, %v4119_v13 }
0x1277   : > { %8639 = vmatprep.subr.mxu1 %v9705_v1 }
0x1279   : > { %v4567_v0 = vpop.permute.xlu0 %4566  ;;  %v4565_v54 = vpop.permute.xlu1 %4564 }
0x127a   : > { %8640 = vmatpush3.xpose.msk.msra.mxu1 %vm1006_vm5, %v4117_v60 }
0x127b   : > { %8641 = vmatprep.subr.mxu1 %v9705_v1 }
0x127d   : > { %v4563_v5 = vpop.permute.xlu0 %4562  ;;  %v4561_v40 = vpop.permute.xlu1 %4560 }
0x127e   : > { %8642 = vmatpush3.xpose.msk.msra.mxu1 %vm1006_vm5, %v4115_v21 }
0x127f   : > { %8643 = vmatprep.subr.mxu1 %v9705_v1 }
0x1281   : > { %v4559_v35 = vpop.permute.xlu0 %4558  ;;  %v4541_v63 = vpop.permute.xlu1 %4540 }
0x1282   : > { %8644 = vmatpush3.xpose.msk.msra.mxu1 %vm1006_vm5, %v4113_v16 }
0x1283   : > { %8717 = vmatprep.subr.mxu1 %v9705_v1 }
0x1285   : > { %8646 = vmatmul.mubr.msk.f32.vlgmr.msra.gmra.mxu1 %vm1006_vm5, %v11671_v6  ;;  %v4543_v36 = vpop.permute.xlu0 %4542  ;;  %v4545_v24 = vpop.permute.xlu1 %4544 }
0x1286   : > { %8718 = vmatpush3.xpose.msk.msra.mxu1 %vm1006_vm5, %v4575_v30  ;;  %8648 = vmatprep.mubr.msk.f32.mxu1 %vm9706_vm1, %v9705_v1 }
0x1287   : > { %8719 = vmatprep.subr.mxu1 %v9705_v1 }
0x1289   : > { %8649 = vmatmul.mubr.msk.f32.gmra.mxu1 %vm1006_vm5, %v11673_v41  ;;  %v4547_v56 = vpop.permute.xlu0 %4546  ;;  %v4549_v18 = vpop.permute.xlu1 %4548 }
0x128a   : > { %8720 = vmatpush3.xpose.msk.msra.mxu1 %vm1006_vm5, %v4573_v49  ;;  %8651 = vmatprep.mubr.msk.f32.mxu1 %vm9706_vm1, %v9705_v1 }
0x128b   : > { %8721 = vmatprep.subr.mxu1 %v9705_v1 }
0x128d   : > { %8652 = vmatmul.mubr.msk.f32.gmra.mxu1 %vm1006_vm5, %v11675_v58  ;;  %v11795_v8 = vpop.permute.xlu0 %4550  ;;  %v4553_v33 = vpop.permute.xlu1 %4552 }
0x128e   : > { %8722 = vmatpush3.xpose.msk.msra.mxu1 %vm1006_vm5, %v4571_v55  ;;  %8654 = vmatprep.mubr.msk.f32.mxu1 %vm9706_vm1, %v9705_v1 }
0x128f   : > { %8723 = vmatprep.subr.mxu1 %v9705_v1 }
0x1291   : > { %8655 = vmatmul.mubr.msk.f32.gmra.mxu1 %vm1006_vm5, %v11677_v15  ;;  %v11803_v32 = vpop.permute.xlu0 %4554  ;;  %v4557_v59 = vpop.permute.xlu1 %4556 }
0x1292   : > { %8724 = vmatpush3.xpose.msk.msra.mxu1 %vm1006_vm5, %v4569_v28  ;;  %8657 = vmatprep.mubr.msk.f32.mxu1 %vm9706_vm1, %v9705_v1 }
0x1293   : > { %8725 = vmatprep.subr.mxu1 %v9705_v1 }
0x1295   : > { %8658 = vmatmul.mubr.msk.f32.gmra.mxu1 %vm1006_vm5, %v11679_v12  ;;  %v4388_v10 = vpop.permute.xlu0 %4387  ;;  %v4390_v2 = vpop.permute.xlu1 %4389 }
0x1296   : > { %8726 = vmatpush3.xpose.msk.msra.mxu1 %vm1006_vm5, %v4567_v0  ;;  %8660 = vmatprep.mubr.msk.f32.mxu1 %vm9706_vm1, %v9705_v1 }
0x1297   : > { %8727 = vmatprep.subr.mxu1 %v9705_v1 }
0x1299   : > { %8661 = vmatmul.mubr.msk.f32.gmra.mxu1 %vm1006_vm5, %v11681_v17  ;;  %v4386_v14 = vpop.permute.xlu0 %4385  ;;  %v4382_v37 = vpop.permute.xlu1 %4381 }
0x129a   : > { %8728 = vmatpush3.xpose.msk.msra.mxu1 %vm1006_vm5, %v4565_v54  ;;  %8663 = vmatprep.mubr.msk.f32.mxu1 %vm9706_vm1, %v9705_v1 }
0x129b   : > { %8729 = vmatprep.subr.mxu1 %v9705_v1 }
0x129d   : > { %8664 = vmatmul.mubr.msk.f32.gmra.mxu1 %vm1006_vm5, %v11683_v52  ;;  %v4384_v48 = vpop.permute.xlu0 %4383 }
0x129e   : > { %8730 = vmatpush3.xpose.msk.msra.mxu1 %vm1006_vm5, %v4563_v5  ;;  %8666 = vmatprep.mubr.msk.f32.mxu1 %vm9706_vm1, %v9705_v1 }
0x129f   : > { %8731 = vmatprep.subr.mxu1 %v9705_v1 }
0x12a1   : > { %8667 = vmatmul.mubr.msk.f32.gmra.mxu1 %vm1006_vm5, %v11685_v26  ;;  %v4380_v27 = vpop.permute.xlu0 %4379 }
0x12a2   : > { %8732 = vmatpush3.xpose.msk.msra.mxu1 %vm1006_vm5, %v4561_v40  ;;  %8669 = vmatprep.mubr.msk.f32.mxu1 %vm9706_vm1, %v9705_v1 }
0x12a3   : > { %8733 = vmatprep.subr.mxu1 %v9705_v1 }
0x12a5   : > { %8670 = vmatmul.mubr.msk.f32.gmra.mxu1 %vm1006_vm5, %v11689_v53  ;;  %v4378_v61 = vpop.permute.xlu0 %4377 }
0x12a6   : > { %8734 = vmatpush3.xpose.msk.msra.mxu1 %vm1006_vm5, %v4559_v35  ;;  %8735 = vmatprep.mubr.msk.f32.mxu1 %vm9706_vm1, %v9705_v1 }
0x12a7   : > { %8807 = vmatprep.subr.mxu1 %v9705_v1 }
0x12a9   : > { %8736 = vmatmul.mubr.msk.f32.vlgmr.msra.gmra.mxu1 %vm1006_vm5, %v4541_v63  ;;  %v4376_v29 = vpop.permute.xlu0 %4375 }
0x12aa   : > { %8738 = vmatprep.mubr.msk.f32.mxu1 %vm9706_vm1, %v9705_v1 }
0x12ad   : > { %8739 = vmatmul.mubr.msk.f32.gmra.mxu1 %vm1006_vm5, %v4543_v36  ;;  %v4392_v50 = vpop.permute.xlu0 %4391 }
0x12ae   : > { %8673 = vmatpush3.msk.msra.mxu0 %vm568_vm0, %v4392_v50  ;;  %8741 = vmatprep.mubr.msk.f32.mxu1 %vm9706_vm1, %v9705_v1 }
0x12af   : > { %8674 = vmatprep.subr.mxu0 %v9705_v1 }
0x12b0   : > { %8675 = vmatpush3.msra.mxu0 %v4390_v2 }
0x12b1   : > { %8676 = vmatprep.subr.mxu0 %v9705_v1  ;;  %8742 = vmatmul.mubr.msk.f32.gmra.mxu1 %vm1006_vm5, %v4545_v24 }
0x12b2   : > { %8677 = vmatpush3.msra.mxu0 %v4388_v10  ;;  %8744 = vmatprep.mubr.msk.f32.mxu1 %vm9706_vm1, %v9705_v1 }
0x12b3   : > { %8678 = vmatprep.subr.mxu0 %v9705_v1 }
0x12b4   : > { %8679 = vmatpush3.msra.mxu0 %v4386_v14 }
0x12b5   : > { %8680 = vmatprep.subr.mxu0 %v9705_v1  ;;  %8745 = vmatmul.mubr.msk.f32.gmra.mxu1 %vm1006_vm5, %v4547_v56 }
0x12b6   : > { %8681 = vmatpush3.msra.mxu0 %v4384_v48  ;;  %8747 = vmatprep.mubr.msk.f32.mxu1 %vm9706_vm1, %v9705_v1 }
0x12b7   : > { %8682 = vmatprep.subr.mxu0 %v9705_v1 }
0x12b8   : > { %8683 = vmatpush3.msra.mxu0 %v4382_v37 }
0x12b9   : > { %8684 = vmatprep.subr.mxu0 %v9705_v1  ;;  %8748 = vmatmul.mubr.msk.f32.gmra.mxu1 %vm1006_vm5, %v4549_v18 }
0x12ba   : > { %8685 = vmatpush3.msra.mxu0 %v4380_v27  ;;  %8750 = vmatprep.mubr.msk.f32.mxu1 %vm9706_vm1, %v9705_v1 }
0x12bb   : > { %8686 = vmatprep.subr.mxu0 %v9705_v1 }
0x12bc   : > { %8687 = vmatpush3.msra.mxu0 %v4378_v61 }
0x12bd   : > { %8688 = vmatprep.subr.mxu0 %v9705_v1  ;;  %8751 = vmatmul.mubr.msk.f32.gmra.mxu1 %vm1006_vm5, %v11795_v8 }
0x12be   : > { %8689 = vmatpush3.msra.mxu0 %v4376_v29  ;;  %8753 = vmatprep.mubr.msk.f32.mxu1 %vm9706_vm1, %v9705_v1 }
0x12bf   : > { %8762 = vmatprep.subr.mxu0 %v9705_v1 }
0x12c1   : > { %8754 = vmatmul.mubr.msk.f32.gmra.mxu1 %vm1006_vm5, %v4553_v33 }
0x12c2   : > { %8756 = vmatprep.mubr.msk.f32.mxu1 %vm9706_vm1, %v9705_v1 }
0x12c5   : > { %8757 = vmatmul.mubr.msk.f32.gmra.mxu1 %vm1006_vm5, %v11803_v32 }
0x12c6   : > { %8759 = vmatprep.mubr.msk.f32.mxu1 %vm9706_vm1, %v9705_v1 }
0x12c9   : > { %8760 = vmatmul.mubr.msk.f32.gmra.mxu1 %vm1006_vm5, %v4557_v59 }
0x12ca   : > { %8809 = vmatprep.mubr.msk.f32.mxu1 %vm9706_vm1, %v9705_v1 }
0x1345   : > { %v11878_v11 = vpop.f32.mrf.mxu1 }
0x1346   : > { %v4276_v43 = vsel %vm1153_vm6, %v11878_v11, -inf }
0x1347   : > { %4277 = vmax.xlane.f32.xlu0 %v4276_v43  ;;  %v8647_v7 = vpop.f32.mrf.mxu1 }
0x1349   : > { %v11882_v19 = vpop.f32.mrf.mxu1 }
0x134a   : > { %v4279_v4 = vsel %vm1153_vm6, %v11882_v19, -inf }
0x134b   : > { %4280 = vmax.xlane.f32.xlu1 %v4279_v4  ;;  %v8650_v3 = vpop.f32.mrf.mxu1 }
0x134d   : > { %v11886_v44 = vpop.f32.mrf.mxu1 }
0x134e   : > { %v4282_v20 = vsel %vm1153_vm6, %v11886_v44, -inf }
0x134f   : > { %4283 = vmax.xlane.f32.xlu0 %v4282_v20  ;;  %v8653_v23 = vpop.f32.mrf.mxu1 }
0x1351   : > { %v11890_v38 = vpop.f32.mrf.mxu1 }
0x1352   : > { %v4285_v22 = vsel %vm1153_vm6, %v11890_v38, -inf }
0x1353   : > { %4286 = vmax.xlane.f32.xlu0 %v4285_v22  ;;  %v8656_v31 = vpop.f32.mrf.mxu1 }
0x1355   : > { %v11894_v25 = vpop.f32.mrf.mxu1 }
0x1356   : > { %v4288_v42 = vsel %vm1153_vm6, %v11894_v25, -inf }
0x1357   : > { %4289 = vmax.xlane.f32.xlu1 %v4288_v42  ;;  %v8659_v13 = vpop.f32.mrf.mxu1 }
0x1358   : > { %v11958_v13 = vpop.permute.xlu0 %4837 }
0x1359   : > { %v11898_v60 = vpop.f32.mrf.mxu1 }
0x135a   : > { %v4291_v21 = vsel %vm1153_vm6, %v11898_v60, -inf }
0x135b   : > { %4292 = vmax.xlane.f32.xlu0 %v4291_v21  ;;  %v8662_v30 = vpop.f32.mrf.mxu1 }
0x135d   : > { %v11902_v16 = vpop.f32.mrf.mxu1 }
0x135e   : > { %v4294_v55 = vsel %vm1153_vm6, %v11902_v16, -inf }
0x135f   : > { %4295 = vmax.xlane.f32.xlu1 %v4294_v55  ;;  %v8665_v49 = vpop.f32.mrf.mxu1 }
0x1361   : > { %v11906_v0 = vpop.f32.mrf.mxu1 }
0x1362   : > { %v4297_v5 = vsel %vm1153_vm6, %v11906_v0, -inf }
0x1363   : > { %4298 = vmax.xlane.f32.xlu0 %v4297_v5  ;;  %v8668_v28 = vpop.f32.mrf.mxu1 }
0x1365   : > { %v11910_v35 = vpop.f32.mrf.mxu1 }
0x1366   : > { %v4300_v54 = vsel %vm1178_vm7, %v11910_v35, -inf }
0x1367   : > { %4301 = vmax.xlane.f32.xlu1 %v4300_v54  ;;  %v8671_v36 = vpop.f32.mrf.mxu1 }
0x1369   : > { %v11914_v56 = vpop.f32.mrf.mxu1 }
0x136a   : > { %v4722_v7 = vsel %vm1153_vm6, %v11914_v56, -inf }
0x136b   : > { %v8737_v40 = vpop.f32.mrf.mxu1 }
0x136d   : > { %v11916_v8 = vpop.f32.mrf.mxu1 }
0x136e   : > { %v4725_v43 = vsel %vm1153_vm6, %v11916_v8, -inf }
0x136f   : > { %v8740_v63 = vpop.f32.mrf.mxu1 }
0x1371   : > { %v11918_v32 = vpop.f32.mrf.mxu1 }
0x1372   : > { %v4728_v3 = vsel %vm1153_vm6, %v11918_v32, -inf }
0x1373   : > { %v8743_v10 = vpop.f32.mrf.mxu1 }
0x1375   : > { %v11920_v24 = vpop.f32.mrf.mxu1 }
0x1376   : > { %v4731_v4 = vsel %vm1153_vm6, %v11920_v24, -inf }
0x1377   : > { %v8746_v14 = vpop.f32.mrf.mxu1 }
0x1378   : > { %4835 = vrot.lane.b32.xlu1 %v11685_v26, %s13174_s26 }
0x1379   : > { %4833 = vrot.lane.b32.xlu0 %v11683_v52, %s13174_s26  ;;  %v11926_v18 = vpop.f32.mrf.mxu1 }
0x137a   : > { %v4734_v23 = vsel %vm1153_vm6, %v11926_v18, -inf }
0x137b   : > { %v8749_v48 = vpop.f32.mrf.mxu1 }
0x137d   : > { %4831 = vrot.lane.b32.xlu0 %v11681_v17, %s13174_s26  ;;  %v11930_v27 = vpop.f32.mrf.mxu1 }
0x137e   : > { %v4737_v20 = vsel %vm1153_vm6, %v11930_v27, -inf }
0x137f   : > { %v8752_v33 = vpop.f32.mrf.mxu1 }
0x1381   : > { %4829 = vrot.lane.b32.xlu0 %v11679_v12, %s13174_s26  ;;  %v11934_v61 = vpop.f32.mrf.mxu1 }
0x1382   : > { %v4740_v31 = vsel %vm1153_vm6, %v11934_v61, -inf }
0x1383   : > { %v8755_v59 = vpop.f32.mrf.mxu1 }
0x1385   : > { %v11936_v29 = vpop.f32.mrf.mxu1 }
0x1386   : > { %v4743_v22 = vsel %vm1153_vm6, %v11936_v29, -inf }
0x1387   : > { %v8758_v50 = vpop.f32.mrf.mxu1 }
0x1389   : > { %v11938_v2 = vpop.f32.mrf.mxu1 }
0x138a   : > { %v4746_v42 = vsel %vm1178_vm7, %v11938_v2, -inf }
0x138b   : > { %v8761_v37 = vpop.f32.mrf.mxu1 }
0x139c   : > { %4726 = vmax.xlane.f32.xlu1 %v4725_v43 }
0x13a0   : > { %4723 = vmax.xlane.f32.xlu0 %v4722_v7  ;;  %4732 = vmax.xlane.f32.xlu1 %v4731_v4 }
0x13a4   : > { %4729 = vmax.xlane.f32.xlu0 %v4728_v3  ;;  %4738 = vmax.xlane.f32.xlu1 %v4737_v20 }
0x13a8   : > { %4735 = vmax.xlane.f32.xlu0 %v4734_v23  ;;  %4744 = vmax.xlane.f32.xlu1 %v4743_v22 }
0x13ac   : > { %4741 = vmax.xlane.f32.xlu0 %v4740_v31 }
0x13b0   : > { %4747 = vmax.xlane.f32.xlu0 %v4746_v42 }
0x13d0   : > { %v4278_v21 = vpop.xlane.xlu0 %4277 }
0x13d1   : > { %v4303_v30 = vsub.f32 %v11878_v11, %v4278_v21 }
0x13d3   : > { %v4312_v55 = vmul.f32 1.442695, %v4303_v30 }
0x13d4   : > { %v4281_v49 = vpop.xlane.xlu1 %4280 }
0x13d5   : > { %9477 = vpow2.f32 %v4312_v55  ;;  %v4304_v5 = vsub.f32 %v11882_v19, %v4281_v49 }
0x13d7   : > { %v4314_v28 = vmul.f32 1.442695, %v4304_v5 }
0x13d8   : > { %v4284_v54 = vpop.xlane.xlu0 %4283 }
0x13d9   : > { %9479 = vpow2.f32 %v4314_v28  ;;  %v4305_v36 = vsub.f32 %v11886_v44, %v4284_v54 }
0x13db   : > { %v4316_v40 = vmul.f32 1.442695, %v4305_v36 }
0x13dc   : > { %v4287_v63 = vpop.xlane.xlu0 %4286 }
0x13dd   : > { %9481 = vpow2.f32 %v4316_v40  ;;  %v4306_v10 = vsub.f32 %v11890_v38, %v4287_v63 }
0x13df   : > { %v4318_v14 = vmul.f32 1.442695, %v4306_v10 }
0x13e0   : > { %v4290_v48 = vpop.xlane.xlu1 %4289 }
0x13e1   : > { %9483 = vpow2.f32 %v4318_v14  ;;  %v4307_v11 = vsub.f32 %v11894_v25, %v4290_v48 }
0x13e2   : > { %v11965_v33 = vpop.eup %9477 }
0x13e3   : > { %v4320_v59 = vmul.f32 1.442695, %v4307_v11  ;;  %v4330_v19 = vsel %vm1153_vm6, %v11965_v33, 0.0 }
0x13e4   : > { %4331 = vadd.xlane.f32.xlu1 %v4330_v19  ;;  %v4293_v50 = vpop.xlane.xlu0 %4292 }
0x13e5   : > { %9485 = vpow2.f32 %v4320_v59  ;;  %v4308_v44 = vsub.f32 %v11898_v60, %v4293_v50 }
0x13e6   : > { %v11970_v37 = vpop.eup %9479 }
0x13e7   : > { %v4322_v43 = vmul.f32 1.442695, %v4308_v44  ;;  %v4333_v38 = vsel %vm1153_vm6, %v11970_v37, 0.0 }
0x13e8   : > { %v4296_v7 = vpop.xlane.xlu1 %4295  ;;  %4334 = vadd.xlane.f32.xlu0 %v4333_v38 }
0x13e9   : > { %9487 = vpow2.f32 %v4322_v43  ;;  %v4309_v25 = vsub.f32 %v11902_v16, %v4296_v7 }
0x13ea   : > { %v11975_v4 = vpop.eup %9481 }
0x13eb   : > { %v4324_v3 = vmul.f32 1.442695, %v4309_v25  ;;  %v4336_v20 = vsel %vm1153_vm6, %v11975_v4, 0.0 }
0x13ec   : > { %4337 = vadd.xlane.f32.xlu1 %v4336_v20  ;;  %v4299_v23 = vpop.xlane.xlu0 %4298 }
0x13ed   : > { %9489 = vpow2.f32 %v4324_v3  ;;  %v4310_v60 = vsub.f32 %v11906_v0, %v4299_v23 }
0x13ee   : > { %v11980_v22 = vpop.eup %9483 }
0x13ef   : > { %v4326_v31 = vmul.f32 1.442695, %v4310_v60  ;;  %v4339_v42 = vsel %vm1153_vm6, %v11980_v22, 0.0 }
0x13f0   : > { %v4302_v21 = vpop.xlane.xlu1 %4301  ;;  %4340 = vadd.xlane.f32.xlu1 %v4339_v42  ;;  %v12007_v10 = vpop.permute.xlu0 %4833 }
0x13f1   : > { %9491 = vpow2.f32 %v4326_v31  ;;  %v4311_v16 = vsub.f32 %v11910_v35, %v4302_v21 }
0x13f2   : > { %v11985_v30 = vpop.eup %9485 }
0x13f3   : > { %v4328_v55 = vmul.f32 1.442695, %v4311_v16  ;;  %v4342_v49 = vsel %vm1153_vm6, %v11985_v30, 0.0 }
0x13f4   : > { %4343 = vadd.xlane.f32.xlu1 %v4342_v49  ;;  %v12009_v14 = vpop.permute.xlu0 %4831  ;;  %v12011_v48 = vpop.permute.xlu1 %4835 }
0x13f5   : > { %9493 = vpow2.f32 %v4328_v55 }
0x13f6   : > { %v11989_v0 = vpop.eup %9487 }
0x13f7   : > { %v4345_v5 = vsel %vm1153_vm6, %v11989_v0, 0.0 }
0x13f8   : > { %4346 = vadd.xlane.f32.xlu0 %v4345_v5  ;;  %v12013_v11 = vpop.permute.xlu0 %4829 }
0x13fa   : > { %v11993_v28 = vpop.eup %9489 }
0x13fb   : > { %v4348_v54 = vsel %vm1153_vm6, %v11993_v28, 0.0 }
0x13fc   : > { %4349 = vadd.xlane.f32.xlu1 %v4348_v54 }
0x13fe   : > { %v11997_v35 = vpop.eup %9491 }
0x13ff   : > { %v4351_v36 = vsel %vm1153_vm6, %v11997_v35, 0.0 }
0x1400   : > { %4352 = vadd.xlane.f32.xlu0 %v4351_v36 }
0x1402   : > { %v12001_v40 = vpop.eup %9493 }
0x1403   : > { %v4354_v63 = vsel %vm1178_vm7, %v12001_v40, 0.0 }
0x1404   : > { %4355 = vadd.xlane.f32.xlu1 %v4354_v63 }
0x1416   : > { %4825 = vrot.lane.b32.xlu0 %v11675_v58, %s13174_s26 }
0x1425   : > { %v4727_v59 = vpop.xlane.xlu1 %4726 }
0x1426   : > { %v4750_v19 = vsub.f32 %v11916_v8, %v4727_v59 }
0x1428   : > { %v4760_v7 = vmul.f32 1.442695, %v4750_v19 }
0x1429   : > { %v4733_v50 = vpop.xlane.xlu1 %4732  ;;  %v4724_v44 = vpop.xlane.xlu0 %4723 }
0x142a   : > { %v4749_v43 = vsub.f32 %v11914_v56, %v4724_v44  ;;  %v4752_v31 = vsub.f32 %v11920_v24, %v4733_v50 }
0x142c   : > { %v4758_v38 = vmul.f32 1.442695, %v4749_v43  ;;  %v4764_v21 = vmul.f32 1.442695, %v4752_v31 }
0x142d   : > { %v4739_v25 = vpop.xlane.xlu1 %4738  ;;  %v4730_v3 = vpop.xlane.xlu0 %4729 }
0x142e   : > { %v4754_v20 = vsub.f32 %v11930_v27, %v4739_v25  ;;  %v4751_v23 = vsub.f32 %v11918_v32, %v4730_v3  ;;  %9495 = vpow2.f32 %v4758_v38 }
0x142f   : > { %9497 = vpow2.f32 %v4760_v7 }
0x1430   : > { %v4768_v60 = vmul.f32 1.442695, %v4754_v20  ;;  %v4762_v42 = vmul.f32 1.442695, %v4751_v23 }
0x1431   : > { %v4736_v8 = vpop.xlane.xlu0 %4735  ;;  %v4745_v50 = vpop.xlane.xlu1 %4744 }
0x1432   : > { %9499 = vpow2.f32 %v4768_v60  ;;  %v4753_v56 = vsub.f32 %v11926_v18, %v4736_v8  ;;  %v4756_v44 = vsub.f32 %v11936_v29, %v4745_v50 }
0x1433   : > { %9501 = vpow2.f32 %v4762_v42 }
0x1434   : > { %9503 = vpow2.f32 %v4764_v21  ;;  %v4766_v16 = vmul.f32 1.442695, %v4753_v56  ;;  %v4772_v38 = vmul.f32 1.442695, %v4756_v44 }
0x1435   : > { %v4742_v43 = vpop.xlane.xlu0 %4741 }
0x1436   : > { %9505 = vpow2.f32 %v4766_v16  ;;  %v4755_v7 = vsub.f32 %v11934_v61, %v4742_v43 }
0x1437   : > { %9507 = vpow2.f32 %v4772_v38 }
0x1438   : > { %v4770_v3 = vmul.f32 1.442695, %v4755_v7 }
0x1439   : > { %v4748_v25 = vpop.xlane.xlu0 %4747 }
0x143a   : > { %v4757_v20 = vsub.f32 %v11938_v2, %v4748_v25 }
0x143b   : > { %v12021_v55 = vpop.eup %9495 }
0x143c   : > { %v4776_v32 = vsel %vm1153_vm6, %v12021_v55, 0.0  ;;  %v12025_v27 = vpop.eup %9497  ;;  %v4774_v60 = vmul.f32 1.442695, %v4757_v20 }
0x143d   : > { %4777 = vadd.xlane.f32.xlu1 %v4776_v32  ;;  %v4779_v18 = vsel %vm1153_vm6, %v12025_v27, 0.0 }
0x143f   : > { %v12027_v49 = vpop.eup %9499 }
0x1440   : > { %v4791_v24 = vsel %vm1153_vm6, %v12027_v49, 0.0  ;;  %v12033_v5 = vpop.eup %9501 }
0x1441   : > { %4792 = vadd.xlane.f32.xlu0 %v4791_v24  ;;  %4780 = vadd.xlane.f32.xlu1 %v4779_v18  ;;  %v4782_v54 = vsel %vm1153_vm6, %v12033_v5, 0.0  ;;  %v12037_v36 = vpop.eup %9503 }
0x1442   : > { %v4785_v63 = vsel %vm1153_vm6, %v12037_v36, 0.0 }
0x1443   : > { %v12041_v59 = vpop.eup %9505 }
0x1444   : > { %v4788_v19 = vsel %vm1153_vm6, %v12041_v59, 0.0  ;;  %v12054_v8 = vpop.eup %9507 }
0x1445   : > { %4783 = vadd.xlane.f32.xlu1 %v4782_v54  ;;  %v4797_v21 = vsel %vm1153_vm6, %v12054_v8, 0.0 }
0x1449   : > { %4786 = vadd.xlane.f32.xlu1 %v4785_v63 }
0x144d   : > { %4789 = vadd.xlane.f32.xlu1 %v4788_v19 }
0x1457   : > { %4823 = vrot.lane.b32.xlu0 %v11673_v41, %s13174_s26 }
0x145b   : > { %4821 = vrot.lane.b32.xlu0 %v11671_v6, %s13174_s26 }
0x145e   : > { %4827 = vrot.lane.b32.xlu1 %v11677_v15, %s13174_s26  ;;  %s13178_s26 = smov 72  }
0x146d   : > { %v4332_v23 = vpop.xlane.xlu1 %4331 }
0x146e   : > { %9509 = vrcp.f32 %v4332_v23 }
0x146f   : > { %9511 = vpow2.f32 %v4770_v3 }
0x1471   : > { %v4335_v31 = vpop.xlane.xlu0 %4334 }
0x1472   : > { %9513 = vrcp.f32 %v4335_v31 }
0x1473   : > { %9515 = vpow2.f32 %v4774_v60 }
0x1475   : > { %v4338_v42 = vpop.xlane.xlu1 %4337 }
0x1476   : > { %9517 = vrcp.f32 %v4338_v42 }
0x1479   : > { %v4341_v29 = vpop.xlane.xlu1 %4340 }
0x147a   : > { %9519 = vrcp.f32 %v4341_v29  ;;  %4798 = vadd.xlane.f32.xlu0 %v4797_v21  ;;  %v7273_v21 = vld [vmem:[%s13122_s6 + $0x28] sm:$0xff] }
0x147b   : > { %v9510_v61 = vpop.eup %9509  ;;  %8808 = vmatpush3.msra.mxu1 %v7273_v21 }
0x147c   : > { %v4366_v2 = vmul.f32 %v9510_v61, %v11965_v33  ;;  %v12059_v16 = vpop.eup %9511  ;;  %8865 = vmatprep.subr.mxu1 %v9705_v1 }
0x147d   : > { %v4344_v56 = vpop.xlane.xlu1 %4343  ;;  %v4794_v54 = vsel %vm1153_vm6, %v12059_v16, 0.0 }
0x147e   : > { %9521 = vrcp.f32 %v4344_v56  ;;  %8691 = vmatmul.mubr.msk.f32.vlgmr.msra.gmra.mxu0 %vm1153_vm6, %v4366_v2  ;;  %v7272_v56 = vld [vmem:[%s13122_s6 + $0x20] sm:$0xff] }
0x147f   : > { %v9514_v32 = vpop.eup %9513  ;;  %8763 = vmatpush3.msk.msra.mxu0 %vm568_vm0, %v11958_v13  ;;  %8693 = vmatprep.mubr.msk.f32.mxu0 %vm9706_vm1, %v9705_v1 }
0x1480   : > { %8764 = vmatprep.subr.mxu0 %v9705_v1  ;;  %v4367_v24 = vmul.f32 %v9514_v32, %v11970_v37  ;;  %v12069_v18 = vpop.eup %9515 }
0x1481   : > { %8765 = vmatpush3.msra.mxu0 %v12011_v48  ;;  %v4347_v33 = vpop.xlane.xlu0 %4346  ;;  %v4800_v63 = vsel %vm1178_vm7, %v12069_v18, 0.0 }
0x1482   : > { %8766 = vmatprep.subr.mxu0 %v9705_v1  ;;  %9523 = vrcp.f32 %v4347_v33  ;;  %8694 = vmatmul.mubr.msk.f32.gmra.mxu0 %vm1153_vm6, %v4367_v24 }
0x1483   : > { %v9518_v13 = vpop.eup %9517  ;;  %8767 = vmatpush3.msra.mxu0 %v12007_v10  ;;  %4795 = vadd.xlane.f32.xlu1 %v4794_v54 }
0x1484   : > { %8768 = vmatprep.subr.mxu0 %v9705_v1  ;;  %8696 = vmatprep.mubr.msk.f32.mxu0 %vm9706_vm1, %v9705_v1  ;;  %v4368_v37 = vmul.f32 %v9518_v13, %v11975_v4 }
0x1485   : > { %8769 = vmatpush3.msra.mxu0 %v12009_v14  ;;  %v4350_v48 = vpop.xlane.xlu1 %4349 }
0x1486   : > { %9525 = vrcp.f32 %v4350_v48  ;;  %8770 = vmatprep.subr.mxu0 %v9705_v1  ;;  %8697 = vmatmul.mubr.msk.f32.gmra.mxu0 %vm1153_vm6, %v4368_v37 }
0x1487   : > { %v9520_v10 = vpop.eup %9519  ;;  %8771 = vmatpush3.msra.mxu0 %v12013_v11  ;;  %4801 = vadd.xlane.f32.xlu1 %v4800_v63 }
0x1488   : > { %8699 = vmatprep.mubr.msk.f32.mxu0 %vm9706_vm1, %v9705_v1  ;;  %v4369_v4 = vmul.f32 %v9520_v10, %v11980_v22  ;;  %8772 = vmatprep.subr.mxu0 %v9705_v1 }
0x1489   : > { %v4353_v14 = vpop.xlane.xlu0 %4352 }
0x148a   : > { %9527 = vrcp.f32 %v4353_v14  ;;  %8700 = vmatmul.mubr.msk.f32.gmra.mxu0 %vm1153_vm6, %v4369_v4 }
0x148b   : > { %v9522_v19 = vpop.eup %9521  ;;  %8702 = vmatprep.mubr.msk.f32.mxu0 %vm9706_vm1, %v9705_v1 }
0x148c   : > { %v4370_v50 = vmul.f32 %v9522_v19, %v11985_v30 }
0x148d   : > { %v4356_v44 = vpop.xlane.xlu1 %4355  ;;  %v4826_v3 = vpop.permute.xlu0 %4825 }
0x148e   : > { %9529 = vrcp.f32 %v4356_v44  ;;  %8703 = vmatmul.mubr.msk.f32.gmra.mxu0 %vm1153_vm6, %v4370_v50 }
0x148f   : > { %v9524_v11 = vpop.eup %9523  ;;  %8705 = vmatprep.mubr.msk.f32.mxu0 %vm9706_vm1, %v9705_v1 }
0x1490   : > { %5292 = vrot.lane.b32.xlu0 %v11685_v26, %s13175_s30  ;;  %v4371_v22 = vmul.f32 %v9524_v11, %v11989_v0 }
0x1492   : > { %8706 = vmatmul.mubr.msk.f32.gmra.mxu0 %vm1153_vm6, %v4371_v22 }
0x1493   : > { %v9526_v43 = vpop.eup %9525  ;;  %8708 = vmatprep.mubr.msk.f32.mxu0 %vm9706_vm1, %v9705_v1 }
0x1494   : > { %5282 = vrot.lane.b32.xlu0 %v11675_v58, %s13175_s30  ;;  %v4372_v30 = vmul.f32 %v9526_v43, %v11993_v28 }
0x1496   : > { %8709 = vmatmul.mubr.msk.f32.gmra.mxu0 %vm1153_vm6, %v4372_v30 }
0x1497   : > { %v9528_v38 = vpop.eup %9527  ;;  %8711 = vmatprep.mubr.msk.f32.mxu0 %vm9706_vm1, %v9705_v1 }
0x1498   : > { %5294 = vrot.lane.b32.xlu1 %v11689_v53, %s13175_s30  ;;  %5278 = vrot.lane.b32.xlu0 %v11671_v6, %s13175_s30  ;;  %v4373_v0 = vmul.f32 %v9528_v38, %v11997_v35 }
0x149a   : > { %8712 = vmatmul.mubr.msk.f32.gmra.mxu0 %vm1153_vm6, %v4373_v0 }
0x149b   : > { %v9530_v7 = vpop.eup %9529  ;;  %8714 = vmatprep.mubr.msk.f32.mxu0 %vm9706_vm1, %v9705_v1 }
0x149c   : > { %5290 = vrot.lane.b32.xlu1 %v11683_v52, %s13175_s30  ;;  %5262 = vrot.lane.b32.xlu0 %v11673_v41, %s13176_s28  ;;  %v4374_v28 = vmul.f32 %v9530_v7, %v12001_v40 }
0x149e   : > { %8715 = vmatmul.mubr.msk.f32.gmra.mxu0 %vm1153_vm6, %v4374_v28 }
0x149f   : > { %8780 = vmatprep.mubr.msk.f32.mxu0 %vm9706_vm1, %v9705_v1 }
0x14a0   : > { %5288 = vrot.lane.b32.xlu1 %v11681_v17, %s13175_s30  ;;  %5266 = vrot.lane.b32.xlu0 %v11677_v15, %s13176_s28 }
0x14a4   : > { %5286 = vrot.lane.b32.xlu1 %v11679_v12, %s13175_s30  ;;  %5270 = vrot.lane.b32.xlu0 %v11681_v17, %s13176_s28 }
0x14a8   : > { %5284 = vrot.lane.b32.xlu1 %v11677_v15, %s13175_s30  ;;  %5274 = vrot.lane.b32.xlu0 %v11685_v26, %s13176_s28 }
0x14ac   : > { %5280 = vrot.lane.b32.xlu1 %v11673_v41, %s13175_s30  ;;  %5555 = vrot.lane.b32.xlu0 %v11685_v26, %s13177_s23  ;;  %s13179_s30 = smov 104  }
0x14b0   : > { %5260 = vrot.lane.b32.xlu1 %v11671_v6, %s13176_s28  ;;  %5551 = vrot.lane.b32.xlu0 %v11681_v17, %s13177_s23 }
0x14b4   : > { %5264 = vrot.lane.b32.xlu1 %v11675_v58, %s13176_s28  ;;  %5549 = vrot.lane.b32.xlu0 %v11679_v12, %s13177_s23 }
0x14b8   : > { %5268 = vrot.lane.b32.xlu1 %v11679_v12, %s13176_s28 }
0x14bc   : > { %5272 = vrot.lane.b32.xlu1 %v11683_v52, %s13176_s28 }
0x14c0   : > { %5276 = vrot.lane.b32.xlu1 %v11689_v53, %s13176_s28  ;;  %s13180_s28 = smov 40  }
0x14c4   : > { %5557 = vrot.lane.b32.xlu1 %v11689_v53, %s13177_s23 }
0x14c6   : > { %v4778_v35 = vpop.xlane.xlu1 %4777 }
0x14c7   : > { %9531 = vrcp.f32 %v4778_v35 }
0x14c8   : > { %5553 = vrot.lane.b32.xlu1 %v11683_v52, %s13177_s23 }
0x14ca   : > { %v4781_v40 = vpop.xlane.xlu1 %4780  ;;  %v4793_v23 = vpop.xlane.xlu0 %4792 }
0x14cb   : > { %9533 = vrcp.f32 %v4781_v40 }
0x14ce   : > { %v4784_v25 = vpop.xlane.xlu1 %4783  ;;  %v4824_v31 = vpop.permute.xlu0 %4823 }
0x14cf   : > { %9535 = vrcp.f32 %v4784_v25 }
0x14d2   : > { %v4787_v20 = vpop.xlane.xlu1 %4786  ;;  %v4822_v2 = vpop.permute.xlu0 %4821 }
0x14d3   : > { %9537 = vrcp.f32 %v4787_v20 }
0x14d4   : > { %v9532_v29 = vpop.eup %9531 }
0x14d5   : > { %v4812_v61 = vmul.f32 %v9532_v29, %v12021_v55 }
0x14d6   : > { %v4790_v60 = vpop.xlane.xlu1 %4789 }
0x14d7   : > { %9539 = vrcp.f32 %v4790_v60 }
0x14d8   : > { %v9534_v32 = vpop.eup %9533  ;;  %9541 = vrcp.f32 %v4793_v23 }
0x14d9   : > { %v4813_v55 = vmul.f32 %v9534_v32, %v12025_v27 }
0x14da   : > { %v4828_v42 = vpop.permute.xlu1 %4827 }
0x14db   : > { %8773 = vmatpush3.msra.mxu0 %v4828_v42 }
0x14dc   : > { %8774 = vmatprep.subr.mxu0 %v9705_v1  ;;  %v9536_v24 = vpop.eup %9535 }
0x14dd   : > { %8775 = vmatpush3.msra.mxu0 %v4826_v3  ;;  %v4814_v33 = vmul.f32 %v9536_v24, %v12033_v5 }
0x14de   : > { %8776 = vmatprep.subr.mxu0 %v9705_v1 }
0x14df   : > { %8777 = vmatpush3.msra.mxu0 %v4824_v31 }
0x14e0   : > { %8778 = vmatprep.subr.mxu0 %v9705_v1  ;;  %v9538_v54 = vpop.eup %9537 }
0x14e1   : > { %8779 = vmatpush3.msra.mxu0 %v4822_v2  ;;  %v4815_v13 = vmul.f32 %v9538_v54, %v12037_v36 }
0x14e2   : > { %8781 = vmatmul.mubr.msk.f32.vlgmr.msra.gmra.mxu0 %vm1153_vm6, %v4812_v61  ;;  %8836 = vmatprep.subr.mxu0 %v9705_v1 }
0x14e3   : > { %8783 = vmatprep.mubr.msk.f32.mxu0 %vm9706_vm1, %v9705_v1  ;;  %8837 = vmatpush3.msra.mxu0 %v7272_v56 }
0x14e4   : > { %8910 = vmatprep.subr.mxu0 %v9705_v1  ;;  %v9540_v37 = vpop.eup %9539 }
0x14e5   : > { %v4816_v27 = vmul.f32 %v9540_v37, %v12041_v59  ;;  %v9542_v48 = vpop.eup %9541 }
0x14e6   : > { %8784 = vmatmul.mubr.msk.f32.gmra.mxu0 %vm1153_vm6, %v4813_v55  ;;  %v4817_v5 = vmul.f32 %v9542_v48, %v12027_v49 }
0x14e7   : > { %8786 = vmatprep.mubr.msk.f32.mxu0 %vm9706_vm1, %v9705_v1 }
0x14ea   : > { %8787 = vmatmul.mubr.msk.f32.gmra.mxu0 %vm1153_vm6, %v4814_v33 }
0x14eb   : > { %8789 = vmatprep.mubr.msk.f32.mxu0 %vm9706_vm1, %v9705_v1 }
0x14ee   : > { %8790 = vmatmul.mubr.msk.f32.gmra.mxu0 %vm1153_vm6, %v4815_v13 }
0x14ef   : > { %8792 = vmatprep.mubr.msk.f32.mxu0 %vm9706_vm1, %v9705_v1 }
0x14f2   : > { %8793 = vmatmul.mubr.msk.f32.gmra.mxu0 %vm1153_vm6, %v4816_v27 }
0x14f3   : > { %8795 = vmatprep.mubr.msk.f32.mxu0 %vm9706_vm1, %v9705_v1 }
0x14f6   : > { %8796 = vmatmul.mubr.msk.f32.gmra.mxu0 %vm1153_vm6, %v4817_v5 }
0x14f7   : > { %8798 = vmatprep.mubr.msk.f32.mxu0 %vm9706_vm1, %v9705_v1 }
0x1503   : > { %v4799_v36 = vpop.xlane.xlu0 %4798 }
0x1507   : > { %v12195_v4 = vpop.permute.xlu0 %5292 }
0x150b   : > { %v12199_v14 = vpop.permute.xlu0 %5282 }
0x150c   : > { %v4796_v63 = vpop.xlane.xlu1 %4795 }
0x150d   : > { %9543 = vrcp.f32 %v4796_v63 }
0x150e   : > { %9545 = vrcp.f32 %v4799_v36 }
0x150f   : > { %v12207_v22 = vpop.permute.xlu0 %5278 }
0x1510   : > { %v4802_v10 = vpop.xlane.xlu1 %4801 }
0x1511   : > { %9547 = vrcp.f32 %v4802_v10 }
0x1513   : > { %v12218_v0 = vpop.permute.xlu0 %5262 }
0x1514   : > { %v12197_v59 = vpop.permute.xlu1 %5294 }
0x1517   : > { %v12227_v28 = vpop.permute.xlu0 %5266 }
0x1518   : > { %v12201_v19 = vpop.permute.xlu1 %5290 }
0x151a   : > { %v9544_v49 = vpop.eup %9543 }
0x151b   : > { %v4818_v50 = vmul.f32 %v9544_v49, %v12059_v16  ;;  %v9546_v44 = vpop.eup %9545  ;;  %v12231_v40 = vpop.permute.xlu0 %5270 }
0x151c   : > { %v12204_v11 = vpop.permute.xlu1 %5288  ;;  %v4819_v43 = vmul.f32 %v9546_v44, %v12054_v8 }
0x151d   : > { %8799 = vmatmul.mubr.msk.f32.gmra.mxu0 %vm1153_vm6, %v4818_v50 }
0x151e   : > { %8801 = vmatprep.mubr.msk.f32.mxu0 %vm9706_vm1, %v9705_v1  ;;  %v9548_v30 = vpop.eup %9547 }
0x151f   : > { %v4820_v16 = vmul.f32 %v9548_v30, %v12069_v18  ;;  %v12237_v3 = vpop.permute.xlu0 %5274 }
0x1520   : > { %v12212_v38 = vpop.permute.xlu1 %5286 }
0x1521   : > { %8802 = vmatmul.mubr.msk.f32.gmra.mxu0 %vm1153_vm6, %v4819_v43 }
0x1522   : > { %8804 = vmatprep.mubr.msk.f32.mxu0 %vm9706_vm1, %v9705_v1 }
0x1523   : > { %v5556_v23 = vpop.permute.xlu0 %5555 }
0x1524   : > { %v12220_v7 = vpop.permute.xlu1 %5284 }
0x1525   : > { %8805 = vmatmul.mubr.msk.f32.gmra.mxu0 %vm1153_vm6, %v4820_v16 }
0x1526   : > { %8838 = vmatprep.mubr.msk.f32.mxu0 %vm9706_vm1, %v9705_v1 }
0x1527   : > { %v5552_v21 = vpop.permute.xlu0 %5551 }
0x1528   : > { %v12225_v8 = vpop.permute.xlu1 %5280 }
0x152b   : > { %v5550_v55 = vpop.permute.xlu0 %5549 }
0x152c   : > { %v12229_v35 = vpop.permute.xlu1 %5260 }
0x1530   : > { %v12233_v25 = vpop.permute.xlu1 %5264 }
0x1534   : > { %v12235_v18 = vpop.permute.xlu1 %5268 }
0x1538   : > { %v12239_v20 = vpop.permute.xlu1 %5272 }
0x153c   : > { %v12241_v60 = vpop.permute.xlu1 %5276 }
0x153e   : > { %v4496_v31 = vpop.f32.mrf.mxu0 }
0x153f   : > { %8839 = vmatmul.mubr.msk.f32.vlgmr.msra.gmra.mxu0 %vm1006_vm5, %v4496_v31 }
0x1540   : > { %v5558_v42 = vpop.permute.xlu1 %5557  ;;  %v8692_v29 = vpop.f32.mrf.mxu0  ;;  %8841 = vmatprep.mubr.msk.f32.mxu0 %vm9706_vm1, %v9705_v1 }
0x1541   : > { %8911 = vmatpush3.msk.msra.mxu0 %vm568_vm0, %v5558_v42 }
0x1542   : > { %8912 = vmatprep.subr.mxu0 %v9705_v1  ;;  %v4501_v61 = vpop.f32.mrf.mxu0 }
0x1543   : > { %8913 = vmatpush3.msra.mxu0 %v5556_v23 }
0x1544   : > { %v5554_v2 = vpop.permute.xlu1 %5553  ;;  %8842 = vmatmul.mubr.msk.f32.gmra.mxu0 %vm1006_vm5, %v4501_v61  ;;  %8914 = vmatprep.subr.mxu0 %v9705_v1  ;;  %v8695_v56 = vpop.f32.mrf.mxu0 }
0x1545   : > { %8915 = vmatpush3.msra.mxu0 %v5554_v2  ;;  %8844 = vmatprep.mubr.msk.f32.mxu0 %vm9706_vm1, %v9705_v1 }
0x1546   : > { %8916 = vmatprep.subr.mxu0 %v9705_v1  ;;  %v4506_v32 = vpop.f32.mrf.mxu0 }
0x1547   : > { %8917 = vmatpush3.msra.mxu0 %v5552_v21 }
0x1548   : > { %8845 = vmatmul.mubr.msk.f32.gmra.mxu0 %vm1006_vm5, %v4506_v32  ;;  %8918 = vmatprep.subr.mxu0 %v9705_v1  ;;  %v8698_v24 = vpop.f32.mrf.mxu0 }
0x1549   : > { %8919 = vmatpush3.msra.mxu0 %v5550_v55  ;;  %8847 = vmatprep.mubr.msk.f32.mxu0 %vm9706_vm1, %v9705_v1 }
0x154a   : > { %v4511_v33 = vpop.f32.mrf.mxu0  ;;  %8920 = vmatprep.subr.mxu0 %v9705_v1 }
0x154c   : > { %8848 = vmatmul.mubr.msk.f32.gmra.mxu0 %vm1006_vm5, %v4511_v33  ;;  %v8701_v54 = vpop.f32.mrf.mxu0 }
0x154d   : > { %8850 = vmatprep.mubr.msk.f32.mxu0 %vm9706_vm1, %v9705_v1 }
0x154e   : > { %v4516_v13 = vpop.f32.mrf.mxu0 }
0x1550   : > { %8851 = vmatmul.mubr.msk.f32.gmra.mxu0 %vm1006_vm5, %v4516_v13  ;;  %v8704_v37 = vpop.f32.mrf.mxu0 }
0x1551   : > { %8853 = vmatprep.mubr.msk.f32.mxu0 %vm9706_vm1, %v9705_v1 }
0x1552   : > { %v4521_v27 = vpop.f32.mrf.mxu0 }
0x1554   : > { %8854 = vmatmul.mubr.msk.f32.gmra.mxu0 %vm1006_vm5, %v4521_v27  ;;  %v8707_v48 = vpop.f32.mrf.mxu0 }
0x1555   : > { %8856 = vmatprep.mubr.msk.f32.mxu0 %vm9706_vm1, %v9705_v1 }
0x1556   : > { %v4526_v5 = vpop.f32.mrf.mxu0 }
0x1558   : > { %8857 = vmatmul.mubr.msk.f32.gmra.mxu0 %vm1006_vm5, %v4526_v5  ;;  %v8710_v36 = vpop.f32.mrf.mxu0 }
0x1559   : > { %8859 = vmatprep.mubr.msk.f32.mxu0 %vm9706_vm1, %v9705_v1 }
0x155a   : > { %v4531_v63 = vpop.f32.mrf.mxu0 }
0x155c   : > { %8860 = vmatmul.mubr.msk.f32.gmra.mxu0 %vm1006_vm5, %v4531_v63  ;;  %v8713_v10 = vpop.f32.mrf.mxu0 }
0x155d   : > { %8862 = vmatprep.mubr.msk.f32.mxu0 %vm9706_vm1, %v9705_v1 }
0x155e   : > { %v4536_v49 = vpop.f32.mrf.mxu0 }
0x1560   : > { %8863 = vmatmul.mubr.msk.f32.gmra.mxu0 %vm1006_vm5, %v4536_v49  ;;  %v8716_v50 = vpop.f32.mrf.mxu0 }
0x1561   : > { %8928 = vmatprep.mubr.msk.f32.mxu0 %vm9706_vm1, %v9705_v1 }
0x15a2   : > { %v4942_v44 = vpop.f32.mrf.mxu0 }
0x15a3   : > { %8810 = vmatmul.mubr.msk.f32.vlgmr.msra.gmra.mxu1 %vm1006_vm5, %v4942_v44 }
0x15a4   : > { %8866 = vmatpush3.xpose.msk.msra.mxu1 %vm1006_vm5, %v12197_v59  ;;  %v8782_v43 = vpop.f32.mrf.mxu0  ;;  %8812 = vmatprep.mubr.msk.f32.mxu1 %vm9706_vm1, %v9705_v1 }
0x15a5   : > { %8867 = vmatprep.subr.mxu1 %v9705_v1 }
0x15a6   : > { %v4947_v30 = vpop.f32.mrf.mxu0 }
0x15a7   : > { %8813 = vmatmul.mubr.msk.f32.gmra.mxu1 %vm1006_vm5, %v4947_v30 }
0x15a8   : > { %8868 = vmatpush3.xpose.msk.msra.mxu1 %vm1006_vm5, %v12195_v4  ;;  %v8785_v16 = vpop.f32.mrf.mxu0  ;;  %8815 = vmatprep.mubr.msk.f32.mxu1 %vm9706_vm1, %v9705_v1 }
0x15a9   : > { %8869 = vmatprep.subr.mxu1 %v9705_v1 }
0x15aa   : > { %v4952_v23 = vpop.f32.mrf.mxu0 }
0x15ab   : > { %8816 = vmatmul.mubr.msk.f32.gmra.mxu1 %vm1006_vm5, %v4952_v23 }
0x15ac   : > { %8870 = vmatpush3.xpose.msk.msra.mxu1 %vm1006_vm5, %v12201_v19  ;;  %v8788_v59 = vpop.f32.mrf.mxu0  ;;  %8818 = vmatprep.mubr.msk.f32.mxu1 %vm9706_vm1, %v9705_v1 }
0x15ad   : > { %8871 = vmatprep.subr.mxu1 %v9705_v1 }
0x15ae   : > { %v4957_v31 = vpop.f32.mrf.mxu0 }
0x15af   : > { %8819 = vmatmul.mubr.msk.f32.gmra.mxu1 %vm1006_vm5, %v4957_v31 }
0x15b0   : > { %8872 = vmatpush3.xpose.msk.msra.mxu1 %vm1006_vm5, %v12204_v11  ;;  %v8791_v4 = vpop.f32.mrf.mxu0  ;;  %8821 = vmatprep.mubr.msk.f32.mxu1 %vm9706_vm1, %v9705_v1 }
0x15b1   : > { %8873 = vmatprep.subr.mxu1 %v9705_v1 }
0x15b2   : > { %v4962_v42 = vpop.f32.mrf.mxu0 }
0x15b3   : > { %8822 = vmatmul.mubr.msk.f32.gmra.mxu1 %vm1006_vm5, %v4962_v42 }
0x15b4   : > { %8874 = vmatpush3.xpose.msk.msra.mxu1 %vm1006_vm5, %v12212_v38  ;;  %v8794_v19 = vpop.f32.mrf.mxu0  ;;  %8824 = vmatprep.mubr.msk.f32.mxu1 %vm9706_vm1, %v9705_v1 }
0x15b5   : > { %8875 = vmatprep.subr.mxu1 %v9705_v1 }
0x15b6   : > { %v4967_v29 = vpop.f32.mrf.mxu0 }
0x15b7   : > { %8825 = vmatmul.mubr.msk.f32.gmra.mxu1 %vm1006_vm5, %v4967_v29 }
0x15b8   : > { %8876 = vmatpush3.xpose.msk.msra.mxu1 %vm1006_vm5, %v12220_v7  ;;  %v8797_v11 = vpop.f32.mrf.mxu0  ;;  %8827 = vmatprep.mubr.msk.f32.mxu1 %vm9706_vm1, %v9705_v1 }
0x15b9   : > { %8877 = vmatprep.subr.mxu1 %v9705_v1 }
0x15bc   : > { %8878 = vmatpush3.xpose.msk.msra.mxu1 %vm1006_vm5, %v12199_v14 }
0x15bd   : > { %8879 = vmatprep.subr.mxu1 %v9705_v1 }
0x15c0   : > { %8880 = vmatpush3.xpose.msk.msra.mxu1 %vm1006_vm5, %v12225_v8 }
0x15c1   : > { %8881 = vmatprep.subr.mxu1 %v9705_v1 }
0x15c4   : > { %8882 = vmatpush3.xpose.msk.msra.mxu1 %vm1006_vm5, %v12207_v22 }
0x15c5   : > { %8955 = vmatprep.subr.mxu1 %v9705_v1 }
0x15dd   : > { %v4972_v38 = vpop.f32.mrf.mxu0 }
0x15de   : > { %8828 = vmatmul.mubr.msk.f32.gmra.mxu1 %vm1006_vm5, %v4972_v38 }
0x15df   : > { %v8800_v7 = vpop.f32.mrf.mxu0  ;;  %8830 = vmatprep.mubr.msk.f32.mxu1 %vm9706_vm1, %v9705_v1 }
0x15e1   : > { %v4977_v14 = vpop.f32.mrf.mxu0 }
0x15e2   : > { %8831 = vmatmul.mubr.msk.f32.gmra.mxu1 %vm1006_vm5, %v4977_v14 }
0x15e3   : > { %v8803_v21 = vpop.f32.mrf.mxu0  ;;  %8833 = vmatprep.mubr.msk.f32.mxu1 %vm9706_vm1, %v9705_v1 }
0x15e5   : > { %v4982_v8 = vpop.f32.mrf.mxu0 }
0x15e6   : > { %8834 = vmatmul.mubr.msk.f32.gmra.mxu1 %vm1006_vm5, %v4982_v8 }
0x15e7   : > { %v8806_v22 = vpop.f32.mrf.mxu0  ;;  %8883 = vmatprep.mubr.msk.f32.mxu1 %vm9706_vm1, %v9705_v1 }
0x15ea   : > { %8884 = vmatmul.mubr.msk.f32.vlgmr.msra.gmra.mxu1 %vm1006_vm5, %v12229_v35 }
0x15eb   : > { %8886 = vmatprep.mubr.msk.f32.mxu1 %vm9706_vm1, %v9705_v1 }
0x15ee   : > { %8887 = vmatmul.mubr.msk.f32.gmra.mxu1 %vm1006_vm5, %v12218_v0 }
0x15ef   : > { %8889 = vmatprep.mubr.msk.f32.mxu1 %vm9706_vm1, %v9705_v1 }
0x15f2   : > { %8890 = vmatmul.mubr.msk.f32.gmra.mxu1 %vm1006_vm5, %v12233_v25 }
0x15f3   : > { %8892 = vmatprep.mubr.msk.f32.mxu1 %vm9706_vm1, %v9705_v1 }
0x15f6   : > { %8893 = vmatmul.mubr.msk.f32.gmra.mxu1 %vm1006_vm5, %v12227_v28 }
0x15f7   : > { %8895 = vmatprep.mubr.msk.f32.mxu1 %vm9706_vm1, %v9705_v1 }
0x15fa   : > { %8896 = vmatmul.mubr.msk.f32.gmra.mxu1 %vm1006_vm5, %v12235_v18 }
0x15fb   : > { %8898 = vmatprep.mubr.msk.f32.mxu1 %vm9706_vm1, %v9705_v1 }
0x15fe   : > { %8899 = vmatmul.mubr.msk.f32.gmra.mxu1 %vm1006_vm5, %v12231_v40 }
0x15ff   : > { %v12352_v0 = vpop.f32.mrf.mxu0  ;;  %8901 = vmatprep.mubr.msk.f32.mxu1 %vm9706_vm1, %v9705_v1 }
0x1601   : > { %v8840_v35 = vpop.f32.mrf.mxu0 }
0x1602   : > { %8902 = vmatmul.mubr.msk.f32.gmra.mxu1 %vm1006_vm5, %v12239_v20 }
0x1603   : > { %8904 = vmatprep.mubr.msk.f32.mxu1 %vm9706_vm1, %v9705_v1 }
0x1604   : > { %v12360_v28 = vpop.f32.mrf.mxu0 }
0x1606   : > { %v8843_v25 = vpop.f32.mrf.mxu0  ;;  %8905 = vmatmul.mubr.msk.f32.gmra.mxu1 %vm1006_vm5, %v12237_v3 }
0x1607   : > { %8907 = vmatprep.mubr.msk.f32.mxu1 %vm9706_vm1, %v9705_v1 }
0x1608   : > { %v12366_v40 = vpop.f32.mrf.mxu0 }
0x160a   : > { %v8846_v18 = vpop.f32.mrf.mxu0  ;;  %8908 = vmatmul.mubr.msk.f32.gmra.mxu1 %vm1006_vm5, %v12241_v60 }
0x160b   : > { %8957 = vmatprep.mubr.msk.f32.mxu1 %vm9706_vm1, %v9705_v1 }
0x160c   : > { %v12372_v20 = vpop.f32.mrf.mxu0 }
0x160e   : > { %v8849_v61 = vpop.f32.mrf.mxu0 }
0x1610   : > { %v12374_v2 = vpop.f32.mrf.mxu0 }
0x1612   : > { %v8852_v56 = vpop.f32.mrf.mxu0 }
0x1614   : > { %v12376_v32 = vpop.f32.mrf.mxu0 }
0x1616   : > { %v8855_v3 = vpop.f32.mrf.mxu0 }
0x1618   : > { %v12378_v55 = vpop.f32.mrf.mxu0 }
0x161a   : > { %v8858_v24 = vpop.f32.mrf.mxu0 }
0x161c   : > { %v12380_v33 = vpop.f32.mrf.mxu0 }
0x161e   : > { %v8861_v54 = vpop.f32.mrf.mxu0 }
0x1620   : > { %v12382_v13 = vpop.f32.mrf.mxu0 }
0x1622   : > { %v8864_v60 = vpop.f32.mrf.mxu0 }
0x1663   : > { %v12384_v37 = vpop.f32.mrf.mxu1 }
0x1665   : > { %v8811_v27 = vpop.f32.mrf.mxu1 }
0x1667   : > { %v12386_v48 = vpop.f32.mrf.mxu1 }
0x1669   : > { %v8814_v5 = vpop.f32.mrf.mxu1 }
0x166b   : > { %v12388_v36 = vpop.f32.mrf.mxu1 }
0x166d   : > { %v8817_v63 = vpop.f32.mrf.mxu1 }
0x166f   : > { %v12390_v10 = vpop.f32.mrf.mxu1 }
0x1671   : > { %v8820_v49 = vpop.f32.mrf.mxu1 }
0x1673   : > { %v12392_v50 = vpop.f32.mrf.mxu1 }
0x1675   : > { %v8823_v44 = vpop.f32.mrf.mxu1 }
0x1677   : > { %v12394_v43 = vpop.f32.mrf.mxu1 }
0x1679   : > { %v8826_v30 = vpop.f32.mrf.mxu1 }
0x169e   : > { %v12396_v16 = vpop.f32.mrf.mxu1 }
0x16a0   : > { %v8829_v23 = vpop.f32.mrf.mxu1 }
0x16a2   : > { %v12398_v59 = vpop.f32.mrf.mxu1 }
0x16a4   : > { %v8832_v31 = vpop.f32.mrf.mxu1 }
0x16a6   : > { %v12400_v4 = vpop.f32.mrf.mxu1 }
0x16a8   : > { %v8835_v42 = vpop.f32.mrf.mxu1 }
0x16aa   : > { %v5398_v19 = vpop.f32.mrf.mxu1 }
0x16ab   : > { %v5442_v29 = vsel %vm1153_vm6, %v5398_v19, -inf }
0x16ac   : > { %5443 = vmax.xlane.f32.xlu0 %v5442_v29  ;;  %v8885_v11 = vpop.f32.mrf.mxu1 }
0x16ae   : > { %v5403_v38 = vpop.f32.mrf.mxu1 }
0x16af   : > { %v5445_v7 = vsel %vm1153_vm6, %v5403_v38, -inf }
0x16b0   : > { %5446 = vmax.xlane.f32.xlu1 %v5445_v7  ;;  %v8888_v14 = vpop.f32.mrf.mxu1 }
0x16b2   : > { %v12404_v21 = vpop.f32.mrf.mxu1 }
0x16b3   : > { %v5448_v8 = vsel %vm1153_vm6, %v12404_v21, -inf }
0x16b4   : > { %5449 = vmax.xlane.f32.xlu0 %v5448_v8  ;;  %v8891_v22 = vpop.f32.mrf.mxu1 }
0x16b6   : > { %v12408_v35 = vpop.f32.mrf.mxu1 }
0x16b7   : > { %v5451_v25 = vsel %vm1153_vm6, %v12408_v35, -inf }
0x16b8   : > { %5452 = vmax.xlane.f32.xlu0 %v5451_v25  ;;  %v8894_v18 = vpop.f32.mrf.mxu1 }
0x16ba   : > { %v12412_v61 = vpop.f32.mrf.mxu1 }
0x16bb   : > { %v5454_v56 = vsel %vm1153_vm6, %v12412_v61, -inf }
0x16bc   : > { %5455 = vmax.xlane.f32.xlu1 %v5454_v56  ;;  %v8897_v3 = vpop.f32.mrf.mxu1 }
0x16be   : > { %v12416_v24 = vpop.f32.mrf.mxu1 }
0x16bf   : > { %v5457_v54 = vsel %vm1153_vm6, %v12416_v24, -inf }
0x16c0   : > { %5458 = vmax.xlane.f32.xlu0 %v5457_v54  ;;  %v8900_v60 = vpop.f32.mrf.mxu1 }
0x16c2   : > { %v5428_v27 = vpop.f32.mrf.mxu1 }
0x16c3   : > { %v5460_v5 = vsel %vm1153_vm6, %v5428_v27, -inf }
0x16c4   : > { %5461 = vmax.xlane.f32.xlu1 %v5460_v5  ;;  %v8903_v63 = vpop.f32.mrf.mxu1 }
0x16c6   : > { %v12421_v49 = vpop.f32.mrf.mxu1 }
0x16c7   : > { %v5463_v44 = vsel %vm1153_vm6, %v12421_v49, -inf }
0x16c8   : > { %5464 = vmax.xlane.f32.xlu0 %v5463_v44  ;;  %v8906_v30 = vpop.f32.mrf.mxu1 }
0x16ca   : > { %v5438_v23 = vpop.f32.mrf.mxu1 }
0x16cb   : > { %v5466_v31 = vsel %vm1178_vm7, %v5438_v23, -inf }
0x16cc   : > { %5467 = vmax.xlane.f32.xlu1 %v5466_v31  ;;  %v8909_v42 = vpop.f32.mrf.mxu1 }
0x16dd   : > { %5547 = vrot.lane.b32.xlu1 %v11677_v15, %s13177_s23 }
0x16de   : > { %5545 = vrot.lane.b32.xlu0 %v11675_v58, %s13177_s23 }
0x16e2   : > { %5543 = vrot.lane.b32.xlu0 %v11673_v41, %s13177_s23 }
0x16e6   : > { %5541 = vrot.lane.b32.xlu0 %v11671_v6, %s13177_s23  ;;  %s512_s23 = sand.u32 1, %s9695_s22  }
0x16e7   : > { %s513_s20 = scalar_lea.vmem [#allocation2], %s512_s23 }
0x16e8   : > { %s7012_s18 = sshll.u32 %s513_s20, 4  ;;  %s7013_s18 = int_to_ptr.vmem [resolvable:$true] %s7012_s18 }
0x16e9   : > { %s9643_s1 = scalar_lea.vmem %s7013_s18, 16  ;;  %p9650_p0 = scmp.lt.s32.totalorder %s7013_s18, %s9648_s3 }
0x16ea   : > { %p9644_p11 = scmp.ne.s32.totalorder %s7013_s18, %s9643_s1  ;;  %p9651_p1 = scmp.lt.s32.totalorder %s9649_s25, %s9643_s1 }
0x16ec   : > { %p9645_p12 = pnand %p9644_p11, %p9842_p5  ;;  %p9652_p2 = por %p9651_p1, %p9650_p0 }
0x16ee   : > { %p9646_p13 = pneg %p9645_p12 }
0x16f0   : > { %p9653_p3 = pnand %p9652_p2, %p9646_p13 }
0x1735   : > { %v5444_v29 = vpop.xlane.xlu0 %5443 }
0x1736   : > { %v5469_v11 = vsub.f32 %v5398_v19, %v5444_v29 }
0x1738   : > { %v5478_v7 = vmul.f32 1.442695, %v5469_v11 }
0x1739   : > { %v5447_v14 = vpop.xlane.xlu1 %5446 }
0x173a   : > { %9549 = vpow2.f32 %v5478_v7  ;;  %v5470_v8 = vsub.f32 %v5403_v38, %v5447_v14 }
0x173c   : > { %v5480_v22 = vmul.f32 1.442695, %v5470_v8 }
0x173d   : > { %v5450_v25 = vpop.xlane.xlu0 %5449 }
0x173e   : > { %9551 = vpow2.f32 %v5480_v22  ;;  %v5471_v8 = vsub.f32 %v12404_v21, %v5450_v25 }
0x1741   : > { %v5453_v3 = vpop.xlane.xlu0 %5452 }
0x1745   : > { %v5456_v19 = vpop.xlane.xlu1 %5455 }
0x1746   : > { %v5473_v11 = vsub.f32 %v12412_v61, %v5456_v19 }
0x1747   : > { %v12434_v18 = vpop.eup %9549 }
0x1748   : > { %v5496_v56 = vsel %vm1153_vm6, %v12434_v18, 0.0  ;;  %v5486_v7 = vmul.f32 1.442695, %v5473_v11 }
0x1749   : > { %5497 = vadd.xlane.f32.xlu0 %v5496_v56  ;;  %v5459_v5 = vpop.xlane.xlu0 %5458 }
0x174a   : > { %9553 = vpow2.f32 %v5486_v7 }
0x174b   : > { %v12438_v54 = vpop.eup %9551 }
0x174c   : > { %v5499_v60 = vsel %vm1153_vm6, %v12438_v54, 0.0 }
0x174d   : > { %5500 = vadd.xlane.f32.xlu1 %v5499_v60  ;;  %v5462_v63 = vpop.xlane.xlu1 %5461  ;;  %v5482_v60 = vmul.f32 1.442695, %v5471_v8 }
0x174e   : > { %v5475_v14 = vsub.f32 %v5428_v27, %v5462_v63 }
0x1750   : > { %v5490_v22 = vmul.f32 1.442695, %v5475_v14 }
0x1751   : > { %v12442_v38 = vpop.xlane.xlu0 %5464 }
0x1752   : > { %9555 = vpow2.f32 %v5490_v22  ;;  %v5476_v7 = vsub.f32 %v12421_v49, %v12442_v38 }
0x1753   : > { %9557 = vpow2.f32 %v5482_v60 }
0x1754   : > { %v5492_v14 = vmul.f32 1.442695, %v5476_v7 }
0x1755   : > { %v5546_v44 = vpop.permute.xlu0 %5545  ;;  %v5468_v30 = vpop.xlane.xlu1 %5467 }
0x1756   : > { %v5477_v56 = vsub.f32 %v5438_v23, %v5468_v30 }
0x1757   : > { %v12462_v19 = vpop.eup %9553 }
0x1758   : > { %v5508_v21 = vsel %vm1153_vm6, %v12462_v19, 0.0 }
0x1759   : > { %v5544_v31 = vpop.permute.xlu0 %5543  ;;  %v5548_v42 = vpop.permute.xlu1 %5547 }
0x175a   : > { %8921 = vmatpush3.msra.mxu0 %v5548_v42 }
0x175b   : > { %8922 = vmatprep.subr.mxu0 %v9705_v1 }
0x175c   : > { %8923 = vmatpush3.msra.mxu0 %v5546_v44  ;;  %v5472_v44 = vsub.f32 %v12408_v35, %v5453_v3 }
0x175d   : > { %8924 = vmatprep.subr.mxu0 %v9705_v1  ;;  %v5542_v29 = vpop.permute.xlu0 %5541 }
0x175e   : > { %5886 = vrot.lane.b32.xlu1 %v11689_v53, %s13178_s26  ;;  %8925 = vmatpush3.msra.mxu0 %v5544_v31  ;;  %v5494_v31 = vmul.f32 1.442695, %v5477_v56  ;;  %v5484_v42 = vmul.f32 1.442695, %v5472_v44 }
0x175f   : > { %5884 = vrot.lane.b32.xlu0 %v11685_v26, %s13178_s26  ;;  %8926 = vmatprep.subr.mxu0 %v9705_v1  ;;  %v12466_v27 = vpop.eup %9555 }
0x1760   : > { %8927 = vmatpush3.msra.mxu0 %v5542_v29  ;;  %v5474_v29 = vsub.f32 %v12416_v24, %v5459_v5  ;;  %9559 = vpow2.f32 %v5494_v31  ;;  %v12468_v23 = vpop.eup %9557  ;;  %v5514_v35 = vsel %vm1153_vm6, %v12466_v27, 0.0 }
0x1761   : > { %8984 = vmatprep.subr.mxu0 %v9705_v1  ;;  %9561 = vpow2.f32 %v5484_v42  ;;  %v5502_v24 = vsel %vm1153_vm6, %v12468_v23, 0.0 }
0x1762   : > { %v5488_v61 = vmul.f32 1.442695, %v5474_v29 }
0x1763   : > { %5882 = vrot.lane.b32.xlu0 %v11683_v52, %s13178_s26 }
0x1764   : > { %9563 = vpow2.f32 %v5488_v61 }
0x1765   : > { %9565 = vpow2.f32 %v5492_v14  ;;  %v7274_v14 = vld [vmem:[%s13122_s6 + $0x30] sm:$0xff] }
0x1766   : > { %8956 = vmatpush3.msra.mxu1 %v7274_v14 }
0x1767   : > { %5880 = vrot.lane.b32.xlu0 %v11681_v17, %s13178_s26  ;;  %9029 = vmatprep.subr.mxu1 %v9705_v1 }
0x176b   : > { %5878 = vrot.lane.b32.xlu0 %v11679_v12, %s13178_s26 }
0x176d   : > { %v12472_v25 = vpop.eup %9559 }
0x176e   : > { %v5520_v3 = vsel %vm1178_vm7, %v12472_v25, 0.0  ;;  %v12478_v5 = vpop.eup %9561 }
0x176f   : > { %v5505_v63 = vsel %vm1153_vm6, %v12478_v5, 0.0 }
0x1771   : > { %v12482_v30 = vpop.eup %9563 }
0x1772   : > { %v5511_v11 = vsel %vm1153_vm6, %v12482_v30, 0.0  ;;  %v12506_v8 = vpop.eup %9565 }
0x1773   : > { %v5517_v22 = vsel %vm1153_vm6, %v12506_v8, 0.0 }
0x1782   : > { %5509 = vadd.xlane.f32.xlu1 %v5508_v21 }
0x1786   : > { %5515 = vadd.xlane.f32.xlu1 %v5514_v35 }
0x178a   : > { %5503 = vadd.xlane.f32.xlu0 %v5502_v24  ;;  %5521 = vadd.xlane.f32.xlu1 %v5520_v3 }
0x178e   : > { %5506 = vadd.xlane.f32.xlu0 %v5505_v63 }
0x1792   : > { %5512 = vadd.xlane.f32.xlu0 %v5511_v11 }
0x179b   : > { %5874 = vrot.lane.b32.xlu1 %v11675_v58, %s13178_s26 }
0x179f   : > { %5856 = vrot.lane.b32.xlu1 %v11675_v58, %s13179_s30 }
0x17a3   : > { %6147 = vrot.lane.b32.xlu1 %v11685_v26, %s13180_s28 }
0x17a7   : > { %6145 = vrot.lane.b32.xlu1 %v11683_v52, %s13180_s28 }
0x17a8   : > { %5876 = vrot.lane.b32.xlu0 %v11677_v15, %s13178_s26 }
0x17ab   : > { %5860 = vrot.lane.b32.xlu1 %v11679_v12, %s13179_s30 }
0x17af   : > { %6139 = vrot.lane.b32.xlu1 %v11677_v15, %s13180_s28 }
0x17b3   : > { %6137 = vrot.lane.b32.xlu1 %v11675_v58, %s13180_s28 }
0x17b7   : > { %5864 = vrot.lane.b32.xlu1 %v11683_v52, %s13179_s30 }
0x17c7   : > { %5518 = vadd.xlane.f32.xlu0 %v5517_v22 }
0x17d2   : > { %v5498_v56 = vpop.xlane.xlu0 %5497 }
0x17d3   : > { %9567 = vrcp.f32 %v5498_v56 }
0x17d6   : > { %v5501_v49 = vpop.xlane.xlu1 %5500  ;;  %v5885_v60 = vpop.permute.xlu0 %5884 }
0x17d7   : > { %9569 = vrcp.f32 %v5501_v49 }
0x17da   : > { %v5887_v52 = vpop.permute.xlu1 %5886  ;;  %v5883_v31 = vpop.permute.xlu0 %5882 }
0x17dd   : > { %5872 = vrot.lane.b32.xlu0 %v11673_v41, %s13178_s26 }
0x17de   : > { %v5881_v42 = vpop.permute.xlu0 %5880 }
0x17e0   : > { %v9568_v38 = vpop.eup %9567 }
0x17e1   : > { %v5532_v58 = vmul.f32 %v9568_v38, %v12434_v18  ;;  %5870 = vrot.lane.b32.xlu0 %v11671_v6, %s13178_s26 }
0x17e3   : > { %8929 = vmatmul.mubr.msk.f32.vlgmr.msra.gmra.mxu0 %vm1153_vm6, %v5532_v58 }
0x17e4   : > { %v9570_v44 = vpop.eup %9569  ;;  %8985 = vmatpush3.xpose.msk.msra.mxu0 %vm1006_vm5, %v5887_v52  ;;  %8931 = vmatprep.mubr.msk.f32.mxu0 %vm9706_vm1, %v9705_v1 }
0x17e5   : > { %5852 = vrot.lane.b32.xlu0 %v11671_v6, %s13179_s30  ;;  %8986 = vmatprep.subr.mxu0 %v9705_v1  ;;  %v5533_v18 = vmul.f32 %v9570_v44, %v12438_v54  ;;  %v5879_v54 = vpop.permute.xlu0 %5878 }
0x17e7   : > { %8932 = vmatmul.mubr.msk.f32.gmra.mxu0 %vm1153_vm6, %v5533_v18 }
0x17e8   : > { %8987 = vmatpush3.xpose.msk.msra.mxu0 %vm1006_vm5, %v5885_v60  ;;  %8934 = vmatprep.mubr.msk.f32.mxu0 %vm9706_vm1, %v9705_v1 }
0x17e9   : > { %8988 = vmatprep.subr.mxu0 %v9705_v1 }
0x17ec   : > { %8989 = vmatpush3.xpose.msk.msra.mxu0 %vm1006_vm5, %v5883_v31 }
0x17ed   : > { %8990 = vmatprep.subr.mxu0 %v9705_v1 }
0x17f0   : > { %8991 = vmatpush3.xpose.msk.msra.mxu0 %vm1006_vm5, %v5881_v42 }
0x17f1   : > { %8992 = vmatprep.subr.mxu0 %v9705_v1 }
0x17f4   : > { %8993 = vmatpush3.xpose.msk.msra.mxu0 %vm1006_vm5, %v5879_v54 }
0x17f5   : > { %8994 = vmatprep.subr.mxu0 %v9705_v1 }
0x180b   : > { %v5510_v29 = vpop.xlane.xlu1 %5509 }
0x180f   : > { %v5516_v35 = vpop.xlane.xlu1 %5515 }
0x1813   : > { %v5504_v61 = vpop.xlane.xlu0 %5503  ;;  %v5522_v3 = vpop.xlane.xlu1 %5521 }
0x1814   : > { %9571 = vrcp.f32 %v5504_v61 }
0x1817   : > { %v5507_v21 = vpop.xlane.xlu0 %5506  ;;  %v5875_v22 = vpop.permute.xlu1 %5874 }
0x1818   : > { %9573 = vrcp.f32 %v5507_v21 }
0x1819   : > { %9575 = vrcp.f32 %v5510_v29 }
0x181b   : > { %v5513_v24 = vpop.xlane.xlu0 %5512 }
0x181c   : > { %9577 = vrcp.f32 %v5513_v24 }
0x181d   : > { %9579 = vrcp.f32 %v5516_v35 }
0x181f   : > { %v5877_v63 = vpop.permute.xlu0 %5876 }
0x1820   : > { %8995 = vmatpush3.xpose.msk.msra.mxu0 %vm1006_vm5, %v5877_v63 }
0x1821   : > { %v9572_v11 = vpop.eup %9571  ;;  %8996 = vmatprep.subr.mxu0 %v9705_v1 }
0x1822   : > { %v5534_v7 = vmul.f32 %v9572_v11, %v12468_v23 }
0x1824   : > { %8935 = vmatmul.mubr.msk.f32.gmra.mxu0 %vm1153_vm6, %v5534_v7 }
0x1825   : > { %v9574_v56 = vpop.eup %9573  ;;  %8997 = vmatpush3.xpose.msk.msra.mxu0 %vm1006_vm5, %v5875_v22  ;;  %8937 = vmatprep.mubr.msk.f32.mxu0 %vm9706_vm1, %v9705_v1 }
0x1826   : > { %v5535_v49 = vmul.f32 %v9574_v56, %v12478_v5  ;;  %8998 = vmatprep.subr.mxu0 %v9705_v1  ;;  %v9576_v23 = vpop.eup %9575 }
0x1827   : > { %v5536_v38 = vmul.f32 %v9576_v23, %v12462_v19 }
0x1828   : > { %8938 = vmatmul.mubr.msk.f32.gmra.mxu0 %vm1153_vm6, %v5535_v49 }
0x1829   : > { %8940 = vmatprep.mubr.msk.f32.mxu0 %vm9706_vm1, %v9705_v1  ;;  %v9578_v58 = vpop.eup %9577 }
0x182a   : > { %v5537_v5 = vmul.f32 %v9578_v58, %v12482_v30  ;;  %v9580_v60 = vpop.eup %9579 }
0x182b   : > { %v5538_v52 = vmul.f32 %v9580_v60, %v12466_v27 }
0x182c   : > { %8941 = vmatmul.mubr.msk.f32.gmra.mxu0 %vm1153_vm6, %v5536_v38 }
0x182d   : > { %8943 = vmatprep.mubr.msk.f32.mxu0 %vm9706_vm1, %v9705_v1 }
0x1830   : > { %8944 = vmatmul.mubr.msk.f32.gmra.mxu0 %vm1153_vm6, %v5537_v5 }
0x1831   : > { %8946 = vmatprep.mubr.msk.f32.mxu0 %vm9706_vm1, %v9705_v1 }
0x1834   : > { %8947 = vmatmul.mubr.msk.f32.gmra.mxu0 %vm1153_vm6, %v5538_v52 }
0x1835   : > { %8949 = vmatprep.mubr.msk.f32.mxu0 %vm9706_vm1, %v9705_v1 }
0x1850   : > { %v5519_v19 = vpop.xlane.xlu0 %5518 }
0x1851   : > { %9581 = vrcp.f32 %v5519_v19 }
0x1852   : > { %9583 = vrcp.f32 %v5522_v3 }
0x1854   : > { %v5873_v44 = vpop.permute.xlu0 %5872 }
0x1855   : > { %8999 = vmatpush3.xpose.msk.msra.mxu0 %vm1006_vm5, %v5873_v44 }
0x1856   : > { %9000 = vmatprep.subr.mxu0 %v9705_v1 }
0x1858   : > { %v5871_v30 = vpop.permute.xlu0 %5870 }
0x1859   : > { %9001 = vmatpush3.xpose.msk.msra.mxu0 %vm1006_vm5, %v5871_v30 }
0x185a   : > { %9074 = vmatprep.subr.mxu0 %v9705_v1 }
0x185c   : > { %v5853_v54 = vpop.permute.xlu0 %5852 }
0x185e   : > { %v9582_v18 = vpop.eup %9581 }
0x185f   : > { %v5539_v27 = vmul.f32 %v9582_v18, %v12506_v8  ;;  %v9584_v31 = vpop.eup %9583 }
0x1860   : > { %v5540_v42 = vmul.f32 %v9584_v31, %v12472_v25 }
0x1861   : > { %8950 = vmatmul.mubr.msk.f32.gmra.mxu0 %vm1153_vm6, %v5539_v27 }
0x1862   : > { %8952 = vmatprep.mubr.msk.f32.mxu0 %vm9706_vm1, %v9705_v1 }
0x1865   : > { %8953 = vmatmul.mubr.msk.f32.gmra.mxu0 %vm1153_vm6, %v5540_v42 }
0x1866   : > { %9002 = vmatprep.mubr.msk.f32.mxu0 %vm9706_vm1, %v9705_v1 }
0x1869   : > { %9003 = vmatmul.mubr.msk.f32.vlgmr.msra.gmra.mxu0 %vm1006_vm5, %v5853_v54 }
0x186a   : > { %9005 = vmatprep.mubr.msk.f32.mxu0 %vm9706_vm1, %v9705_v1 }
0x18a3   : > { %v5662_v8 = vpop.f32.mrf.mxu0 }
0x18a4   : > { %8958 = vmatmul.mubr.msk.f32.vlgmr.msra.gmra.mxu1 %vm1006_vm5, %v5662_v8 }
0x18a5   : > { %v8930_v29 = vpop.f32.mrf.mxu0  ;;  %8960 = vmatprep.mubr.msk.f32.mxu1 %vm9706_vm1, %v9705_v1 }
0x18a7   : > { %v5667_v61 = vpop.f32.mrf.mxu0 }
0x18a8   : > { %8961 = vmatmul.mubr.msk.f32.gmra.mxu1 %vm1006_vm5, %v5667_v61 }
0x18a9   : > { %v8933_v25 = vpop.f32.mrf.mxu0  ;;  %8963 = vmatprep.mubr.msk.f32.mxu1 %vm9706_vm1, %v9705_v1 }
0x18e4   : > { %v5672_v21 = vpop.f32.mrf.mxu0 }
0x18e5   : > { %8964 = vmatmul.mubr.msk.f32.gmra.mxu1 %vm1006_vm5, %v5672_v21 }
0x18e6   : > { %v8936_v35 = vpop.f32.mrf.mxu0  ;;  %8966 = vmatprep.mubr.msk.f32.mxu1 %vm9706_vm1, %v9705_v1 }
0x18e8   : > { %v5677_v24 = vpop.f32.mrf.mxu0 }
0x18e9   : > { %8967 = vmatmul.mubr.msk.f32.gmra.mxu1 %vm1006_vm5, %v5677_v24 }
0x18ea   : > { %v8939_v3 = vpop.f32.mrf.mxu0  ;;  %8969 = vmatprep.mubr.msk.f32.mxu1 %vm9706_vm1, %v9705_v1 }
0x18ec   : > { %v5682_v63 = vpop.f32.mrf.mxu0 }
0x18ed   : > { %8970 = vmatmul.mubr.msk.f32.gmra.mxu1 %vm1006_vm5, %v5682_v63 }
0x18ee   : > { %v8942_v11 = vpop.f32.mrf.mxu0  ;;  %8972 = vmatprep.mubr.msk.f32.mxu1 %vm9706_vm1, %v9705_v1 }
0x18f0   : > { %v5687_v7 = vpop.f32.mrf.mxu0 }
0x18f1   : > { %8973 = vmatmul.mubr.msk.f32.gmra.mxu1 %vm1006_vm5, %v5687_v7 }
0x18f2   : > { %v8945_v14 = vpop.f32.mrf.mxu0  ;;  %8975 = vmatprep.mubr.msk.f32.mxu1 %vm9706_vm1, %v9705_v1 }
0x18f4   : > { %v5692_v22 = vpop.f32.mrf.mxu0 }
0x18f5   : > { %8976 = vmatmul.mubr.msk.f32.gmra.mxu1 %vm1006_vm5, %v5692_v22 }
0x18f6   : > { %v8948_v56 = vpop.f32.mrf.mxu0  ;;  %8978 = vmatprep.mubr.msk.f32.mxu1 %vm9706_vm1, %v9705_v1 }
0x1921   : > { %v5697_v49 = vpop.f32.mrf.mxu0 }
0x1922   : > { %8979 = vmatmul.mubr.msk.f32.gmra.mxu1 %vm1006_vm5, %v5697_v49 }
0x1923   : > { %v8951_v23 = vpop.f32.mrf.mxu0  ;;  %8981 = vmatprep.mubr.msk.f32.mxu1 %vm9706_vm1, %v9705_v1 }
0x1925   : > { %v5702_v38 = vpop.f32.mrf.mxu0 }
0x1926   : > { %8982 = vmatmul.mubr.msk.f32.gmra.mxu1 %vm1006_vm5, %v5702_v38 }
0x1927   : > { %v8954_v58 = vpop.f32.mrf.mxu0  ;;  %9047 = vmatprep.mubr.msk.f32.mxu1 %vm9706_vm1, %v9705_v1 }
0x1929   : > { %v5990_v5 = vpop.f32.mrf.mxu0 }
0x192a   : > { %v6034_v60 = vsel %vm1153_vm6, %v5990_v5, -inf }
0x192b   : > { %6035 = vmax.xlane.f32.xlu0 %v6034_v60  ;;  %v9004_v52 = vpop.f32.mrf.mxu0 }
0x192c   : > { %v5252_v52 = vadd.f32 %v12380_v33, %v12398_v59 }
0x1941   : > { %5854 = vrot.lane.b32.xlu0 %v11673_v41, %s13179_s30 }
0x1945   : > { %6149 = vrot.lane.b32.xlu0 %v11689_v53, %s13180_s28 }
0x1949   : > { %5858 = vrot.lane.b32.xlu0 %v11677_v15, %s13179_s30  ;;  %v5217_v15 = vadd.f32 %v12352_v0, %v12384_v37  ;;  %v5232_v0 = vadd.f32 %v12372_v20, %v12390_v10  ;;  %v5247_v10 = vadd.f32 %v12378_v55, %v12396_v16 }
0x194d   : > { %6143 = vrot.lane.b32.xlu0 %v11681_v17, %s13180_s28 }
0x1951   : > { %6141 = vrot.lane.b32.xlu0 %v11679_v12, %s13180_s28  ;;  %v5222_v12 = vadd.f32 %v12360_v28, %v12386_v48  ;;  %v5237_v28 = vadd.f32 %v12374_v2, %v12392_v50  ;;  %v5857_v48 = vpop.permute.xlu1 %5856 }
0x1955   : > { %5862 = vrot.lane.b32.xlu0 %v11681_v17, %s13179_s30  ;;  %v6148_v25 = vpop.permute.xlu1 %6147 }
0x1959   : > { %6135 = vrot.lane.b32.xlu0 %v11673_v41, %s13180_s28  ;;  %v6146_v11 = vpop.permute.xlu1 %6145 }
0x195d   : > { %6133 = vrot.lane.b32.xlu0 %v11671_v6, %s13180_s28  ;;  %v5227_v6 = vadd.f32 %v12366_v40, %v12388_v36  ;;  %v5242_v40 = vadd.f32 %v12376_v32, %v12394_v43  ;;  %v5861_v55 = vpop.permute.xlu1 %5860  ;;  %s7000_s28 = scalar_lea.sflag [#allocation3], %s512_s23 }
0x1961   : > { %5868 = vrot.lane.b32.xlu0 %v11689_v53, %s13179_s30  ;;  %v6140_v16 = vpop.permute.xlu1 %6139 }
0x1964   : > { %v5799_v19 = vpop.f32.mrf.mxu1 }
0x1965   : > { %v12625_v44 = vadd.f32 %v5799_v19, %v5217_v15  ;;  %v6138_v23 = vpop.permute.xlu1 %6137 }
0x1966   : > { %v8959_v30 = vpop.f32.mrf.mxu1 }
0x1968   : > { %v5804_v17 = vpop.f32.mrf.mxu1 }
0x1969   : > { %v12629_v18 = vadd.f32 %v5804_v17, %v5222_v12  ;;  %v5865_v58 = vpop.permute.xlu1 %5864  ;;  %v5257_v12 = vadd.f32 %v12382_v13, %v12400_v4 }
0x196a   : > { %v8962_v41 = vpop.f32.mrf.mxu1 }
0x19a5   : > { %v5809_v27 = vpop.f32.mrf.mxu1 }
0x19a6   : > { %v12633_v31 = vadd.f32 %v5809_v27, %v5227_v6 }
0x19a7   : > { %v8965_v53 = vpop.f32.mrf.mxu1 }
0x19a9   : > { %v5814_v37 = vpop.f32.mrf.mxu1 }
0x19aa   : > { %v12637_v42 = vadd.f32 %v5814_v37, %v5232_v0 }
0x19ab   : > { %v8968_v54 = vpop.f32.mrf.mxu1 }
0x19ad   : > { %v5819_v8 = vpop.f32.mrf.mxu1 }
0x19ae   : > { %v12641_v29 = vadd.f32 %v5819_v8, %v5237_v28 }
0x19af   : > { %v8971_v61 = vpop.f32.mrf.mxu1 }
0x19b1   : > { %v5824_v36 = vpop.f32.mrf.mxu1 }
0x19b2   : > { %v12645_v21 = vadd.f32 %v5824_v36, %v5242_v40 }
0x19b3   : > { %v8974_v20 = vpop.f32.mrf.mxu1 }
0x19b4   : > { %v6036_v35 = vpop.xlane.xlu0 %6035 }
0x19b5   : > { %v6061_v24 = vsub.f32 %v5990_v5, %v6036_v35  ;;  %v5829_v3 = vpop.f32.mrf.mxu1 }
0x19b6   : > { %v12649_v2 = vadd.f32 %v5829_v3, %v5247_v10 }
0x19b7   : > { %v6070_v50 = vmul.f32 1.442695, %v6061_v24  ;;  %v8977_v63 = vpop.f32.mrf.mxu1 }
0x19b8   : > { %v5855_v7 = vpop.permute.xlu0 %5854  ;;  %v7275_v63 = vld [vmem:[%s13122_s6 + $0x38] sm:$0xff] }
0x19b9   : > { %9585 = vpow2.f32 %v6070_v50  ;;  %9006 = vmatmul.mubr.msk.f32.gmra.mxu0 %vm1006_vm5, %v5855_v7 }
0x19ba   : > { %9008 = vmatprep.mubr.msk.f32.mxu0 %vm9706_vm1, %v9705_v1  ;;  %9075 = vmatpush3.msra.mxu0 %v7275_v63 }
0x19bb   : > { %9138 = vmatprep.subr.mxu0 %v9705_v1 }
0x19bc   : > { %v6150_v32 = vpop.permute.xlu0 %6149 }
0x19bd   : > { %9009 = vmatmul.mubr.msk.f32.gmra.mxu0 %vm1006_vm5, %v5857_v48  ;;  %9030 = vmatpush3.msk.msra.mxu1 %vm568_vm0, %v6150_v32 }
0x19be   : > { %9031 = vmatprep.subr.mxu1 %v9705_v1  ;;  %9011 = vmatprep.mubr.msk.f32.mxu0 %vm9706_vm1, %v9705_v1 }
0x19bf   : > { %9032 = vmatpush3.msra.mxu1 %v6148_v25 }
0x19c0   : > { %9033 = vmatprep.subr.mxu1 %v9705_v1  ;;  %v5859_v43 = vpop.permute.xlu0 %5858 }
0x19c1   : > { %9012 = vmatmul.mubr.msk.f32.gmra.mxu0 %vm1006_vm5, %v5859_v43  ;;  %9034 = vmatpush3.msra.mxu1 %v6146_v11 }
0x19c2   : > { %9014 = vmatprep.mubr.msk.f32.mxu0 %vm9706_vm1, %v9705_v1  ;;  %9035 = vmatprep.subr.mxu1 %v9705_v1 }
0x19c4   : > { %v6144_v14 = vpop.permute.xlu0 %6143 }
0x19c5   : > { %9015 = vmatmul.mubr.msk.f32.gmra.mxu0 %vm1006_vm5, %v5861_v55  ;;  %9036 = vmatpush3.msra.mxu1 %v6144_v14 }
0x19c6   : > { %v9586_v22 = vpop.eup %9585  ;;  %9037 = vmatprep.subr.mxu1 %v9705_v1  ;;  %9017 = vmatprep.mubr.msk.f32.mxu0 %vm9706_vm1, %v9705_v1 }
0x19c7   : > { %v6088_v56 = vsel %vm1153_vm6, %v9586_v22, 0.0 }
0x19c8   : > { %6089 = vadd.xlane.f32.xlu1 %v6088_v56  ;;  %v6142_v49 = vpop.permute.xlu0 %6141 }
0x19c9   : > { %9038 = vmatpush3.msra.mxu1 %v6142_v49 }
0x19ca   : > { %9039 = vmatprep.subr.mxu1 %v9705_v1 }
0x19cb   : > { %9040 = vmatpush3.msra.mxu1 %v6140_v16 }
0x19cc   : > { %9041 = vmatprep.subr.mxu1 %v9705_v1  ;;  %v5863_v38 = vpop.permute.xlu0 %5862 }
0x19cd   : > { %9018 = vmatmul.mubr.msk.f32.gmra.mxu0 %vm1006_vm5, %v5863_v38  ;;  %9042 = vmatpush3.msra.mxu1 %v6138_v23 }
0x19ce   : > { %9020 = vmatprep.mubr.msk.f32.mxu0 %vm9706_vm1, %v9705_v1  ;;  %9043 = vmatprep.subr.mxu1 %v9705_v1 }
0x19d0   : > { %v6136_v5 = vpop.permute.xlu0 %6135 }
0x19d1   : > { %9021 = vmatmul.mubr.msk.f32.gmra.mxu0 %vm1006_vm5, %v5865_v58  ;;  %9044 = vmatpush3.msra.mxu1 %v6136_v5 }
0x19d2   : > { %9045 = vmatprep.subr.mxu1 %v9705_v1  ;;  %9023 = vmatprep.mubr.msk.f32.mxu0 %vm9706_vm1, %v9705_v1 }
0x19d4   : > { %v6134_v60 = vpop.permute.xlu0 %6133 }
0x19d5   : > { %9046 = vmatpush3.msra.mxu1 %v6134_v60 }
0x19d6   : > { %9103 = vmatprep.subr.mxu1 %v9705_v1 }
0x19d9   : > { %5866 = vrot.lane.b32.xlu1 %v11685_v26, %s13179_s30  ;;  %v5869_v26 = vpop.permute.xlu0 %5868  ;;  %s7010_s30 = scalar_lea.hbm %s13132_s16, %s7464_s19 }
0x19e2   : > { %v5834_v15 = vpop.f32.mrf.mxu1 }
0x19e3   : > { %v12684_v19 = vadd.f32 %v5834_v15, %v5252_v52 }
0x19e4   : > { %v8980_v30 = vpop.f32.mrf.mxu1 }
0x19e6   : > { %v5839_v17 = vpop.f32.mrf.mxu1 }
0x19e7   : > { %v12688_v41 = vadd.f32 %v5839_v17, %v5257_v12 }
0x19e8   : > { %v8983_v6 = vpop.f32.mrf.mxu1 }
0x1a51   : > { %v6090_v27 = vpop.xlane.xlu1 %6089 }
0x1a52   : > { %9587 = vrcp.f32 %v6090_v27 }
0x1a55   : > { %v5867_v53 = vpop.permute.xlu1 %5866 }
0x1a56   : > { %9024 = vmatmul.mubr.msk.f32.gmra.mxu0 %vm1006_vm5, %v5867_v53 }
0x1a57   : > { %9026 = vmatprep.mubr.msk.f32.mxu0 %vm9706_vm1, %v9705_v1 }
0x1a5a   : > { %9027 = vmatmul.mubr.msk.f32.gmra.mxu0 %vm1006_vm5, %v5869_v26 }
0x1a5b   : > { %9076 = vmatprep.mubr.msk.f32.mxu0 %vm9706_vm1, %v9705_v1 }
0x1a5f   : > { %v9588_v33 = vpop.eup %9587 }
0x1a60   : > { %v6124_v13 = vmul.f32 %v9588_v33, %v9586_v22 }
0x1a62   : > { %9048 = vmatmul.mubr.msk.f32.vlgmr.msra.gmra.mxu1 %vm1153_vm6, %v6124_v13 }
0x1a63   : > { %9050 = vmatprep.mubr.msk.f32.mxu1 %vm9706_vm1, %v9705_v1 }
0x1a79   : > { %v5995_v59 = vpop.f32.mrf.mxu0 }
0x1a7a   : > { %v6037_v4 = vsel %vm1153_vm6, %v5995_v59, -inf }
0x1a7b   : > { %6038 = vmax.xlane.f32.xlu1 %v6037_v4  ;;  %v9007_v0 = vpop.f32.mrf.mxu0 }
0x1a7d   : > { %v6000_v37 = vpop.f32.mrf.mxu0 }
0x1a7e   : > { %v6040_v54 = vsel %vm1153_vm6, %v6000_v37, -inf }
0x1a7f   : > { %6041 = vmax.xlane.f32.xlu0 %v6040_v54  ;;  %v9010_v28 = vpop.f32.mrf.mxu0 }
0x1a81   : > { %v6005_v48 = vpop.f32.mrf.mxu0 }
0x1a82   : > { %v6043_v8 = vsel %vm1153_vm6, %v6005_v48, -inf }
0x1a83   : > { %6044 = vmax.xlane.f32.xlu0 %v6043_v8  ;;  %v9013_v61 = vpop.f32.mrf.mxu0 }
0x1a85   : > { %v6010_v40 = vpop.f32.mrf.mxu0 }
0x1a86   : > { %v6046_v36 = vsel %vm1153_vm6, %v6010_v40, -inf }
0x1a87   : > { %6047 = vmax.xlane.f32.xlu1 %v6046_v36  ;;  %v9016_v25 = vpop.f32.mrf.mxu0 }
0x1a8d   : > { %v6015_v20 = vpop.f32.mrf.mxu0 }
0x1a8e   : > { %v6049_v10 = vsel %vm1153_vm6, %v6015_v20, -inf }
0x1a8f   : > { %6050 = vmax.xlane.f32.xlu0 %v6049_v10  ;;  %v9019_v35 = vpop.f32.mrf.mxu0 }
0x1a91   : > { %v6020_v24 = vpop.f32.mrf.mxu0 }
0x1a92   : > { %v6052_v3 = vsel %vm1153_vm6, %v6020_v24, -inf }
0x1a93   : > { %6053 = vmax.xlane.f32.xlu1 %v6052_v3  ;;  %v9022_v50 = vpop.f32.mrf.mxu0 }
0x1b04   : > { %v6039_v11 = vpop.xlane.xlu1 %6038 }
0x1b05   : > { %v6062_v7 = vsub.f32 %v5995_v59, %v6039_v11 }
0x1b07   : > { %v6072_v32 = vmul.f32 1.442695, %v6062_v7 }
0x1b08   : > { %v6042_v55 = vpop.xlane.xlu0 %6041 }
0x1b09   : > { %v6063_v43 = vsub.f32 %v6000_v37, %v6042_v55  ;;  %9589 = vpow2.f32 %v6072_v32 }
0x1b0b   : > { %v6074_v16 = vmul.f32 1.442695, %v6063_v43 }
0x1b0c   : > { %v6045_v14 = vpop.xlane.xlu0 %6044 }
0x1b0d   : > { %v6064_v22 = vsub.f32 %v6005_v48, %v6045_v14  ;;  %9591 = vpow2.f32 %v6074_v16 }
0x1b0f   : > { %v6076_v56 = vmul.f32 1.442695, %v6064_v22 }
0x1b10   : > { %v6048_v49 = vpop.xlane.xlu1 %6047 }
0x1b11   : > { %9593 = vpow2.f32 %v6076_v56  ;;  %v6065_v23 = vsub.f32 %v6010_v40, %v6048_v49 }
0x1b13   : > { %v6078_v38 = vmul.f32 1.442695, %v6065_v23 }
0x1b15   : > { %9595 = vpow2.f32 %v6078_v38 }
0x1b16   : > { %v6025_v58 = vpop.f32.mrf.mxu0  ;;  %v9590_v60 = vpop.eup %9589 }
0x1b17   : > { %v6055_v5 = vsel %vm1153_vm6, %v6025_v58, -inf  ;;  %v6091_v6 = vsel %vm1153_vm6, %v9590_v60, 0.0 }
0x1b18   : > { %v6051_v52 = vpop.xlane.xlu0 %6050  ;;  %6056 = vmax.xlane.f32.xlu0 %v6055_v5  ;;  %v9025_v15 = vpop.f32.mrf.mxu0 }
0x1b19   : > { %v6066_v30 = vsub.f32 %v6015_v20, %v6051_v52 }
0x1b1a   : > { %v6030_v12 = vpop.f32.mrf.mxu0  ;;  %v9592_v53 = vpop.eup %9591 }
0x1b1b   : > { %v6080_v17 = vmul.f32 1.442695, %v6066_v30  ;;  %v6058_v27 = vsel %vm1178_vm7, %v6030_v12, -inf  ;;  %v6094_v37 = vsel %vm1153_vm6, %v9592_v53, 0.0 }
0x1b1c   : > { %v6054_v26 = vpop.xlane.xlu1 %6053  ;;  %6092 = vadd.xlane.f32.xlu0 %v6091_v6  ;;  %6059 = vmax.xlane.f32.xlu1 %v6058_v27  ;;  %v9028_v33 = vpop.f32.mrf.mxu0 }
0x1b1d   : > { %9597 = vpow2.f32 %v6080_v17  ;;  %v6067_v13 = vsub.f32 %v6020_v24, %v6054_v26  ;;  %v12744_v26 = vld [vmem:[%s13123_s7 + $0x1] ss:$0 sm:$0xff] }
0x1b1e   : > { %v9594_v59 = vpop.eup %9593 }
0x1b1f   : > { %v6082_v4 = vmul.f32 1.442695, %v6067_v13  ;;  %v6097_v0 = vsel %vm1153_vm6, %v9594_v59, 0.0 }
0x1b20   : > { %6098 = vadd.xlane.f32.xlu0 %v6097_v0  ;;  %6095 = vadd.xlane.f32.xlu1 %v6094_v37 }
0x1b21   : > { %9599 = vpow2.f32 %v6082_v4 }
0x1b22   : > { %v9596_v54 = vpop.eup %9595  ;;  %v6254_v28 = vpop.f32.mrf.mxu1 }
0x1b23   : > { %9077 = vmatmul.mubr.msk.f32.vlgmr.msra.gmra.mxu0 %vm1006_vm5, %v6254_v28  ;;  %v6100_v48 = vsel %vm1153_vm6, %v9596_v54, 0.0 }
0x1b24   : > { %v9049_v8 = vpop.f32.mrf.mxu1  ;;  %6101 = vadd.xlane.f32.xlu1 %v6100_v48  ;;  %9079 = vmatprep.mubr.msk.f32.mxu0 %vm9706_vm1, %v9705_v1 }
0x1b2a   : > { %v9598_v61 = vpop.eup %9597 }
0x1b2b   : > { %v6103_v40 = vsel %vm1153_vm6, %v9598_v61, 0.0 }
0x1b2c   : > { %6104 = vadd.xlane.f32.xlu0 %v6103_v40 }
0x1b2e   : > { %v9600_v36 = vpop.eup %9599 }
0x1b2f   : > { %v6106_v25 = vsel %vm1153_vm6, %v9600_v36, 0.0 }
0x1b30   : > { %6107 = vadd.xlane.f32.xlu1 %v6106_v25 }
0x1ba1   : > { %v6057_v20 = vpop.xlane.xlu0 %6056 }
0x1ba2   : > { %v6068_v10 = vsub.f32 %v6025_v58, %v6057_v20 }
0x1ba4   : > { %v6084_v35 = vmul.f32 1.442695, %v6068_v10 }
0x1ba5   : > { %v6093_v24 = vpop.xlane.xlu0 %6092  ;;  %v6060_v3 = vpop.xlane.xlu1 %6059 }
0x1ba6   : > { %9601 = vpow2.f32 %v6084_v35  ;;  %v6069_v50 = vsub.f32 %v6030_v12, %v6060_v3 }
0x1ba7   : > { %9603 = vrcp.f32 %v6093_v24 }
0x1ba8   : > { %v6086_v63 = vmul.f32 1.442695, %v6069_v50 }
0x1ba9   : > { %v6096_v11 = vpop.xlane.xlu1 %6095  ;;  %v6099_v7 = vpop.xlane.xlu0 %6098 }
0x1baa   : > { %9605 = vpow2.f32 %v6086_v63 }
0x1bab   : > { %9607 = vrcp.f32 %v6096_v11 }
0x1bac   : > { %9609 = vrcp.f32 %v6099_v7 }
0x1bad   : > { %v6102_v32 = vpop.xlane.xlu1 %6101 }
0x1bae   : > { %9611 = vrcp.f32 %v6102_v32 }
0x1bb3   : > { %v9602_v55 = vpop.eup %9601 }
0x1bb4   : > { %v9604_v43 = vpop.eup %9603  ;;  %v6109_v16 = vsel %vm1153_vm6, %v9602_v55, 0.0 }
0x1bb5   : > { %6110 = vadd.xlane.f32.xlu0 %v6109_v16  ;;  %v6105_v14 = vpop.xlane.xlu0 %6104  ;;  %v6125_v22 = vmul.f32 %v9604_v43, %v9590_v60  ;;  %v7433_v43 = vld [vmem:[%s13126_s10 + $0x38] sm:$0xff]  ;;  %v7432_v16 = vld [vmem:[%s13126_s10 + $0x30] sm:$0xff] }
0x1bb6   : > { %9613 = vrcp.f32 %v6105_v14  ;;  %9104 = vmatpush3.msra.mxu1 %v7433_v43  ;;  %v7431_v14 = vld [vmem:[%s13126_s10 + $0x28] sm:$0xff] }
0x1bb7   : > { %v9606_v56 = vpop.eup %9605  ;;  %9051 = vmatmul.mubr.msk.f32.gmra.mxu1 %vm1153_vm6, %v6125_v22  ;;  %9105 = vmatprep.subr.mxu1 %v9705_v1  ;;  %v7430_v22 = vld [vmem:[%s13126_s10 + $0x20] sm:$0xff] }
0x1bb8   : > { %9053 = vmatprep.mubr.msk.f32.mxu1 %vm9706_vm1, %v9705_v1  ;;  %v6112_v49 = vsel %vm1178_vm7, %v9606_v56, 0.0  ;;  %v9608_v23 = vpop.eup %9607  ;;  %9106 = vmatpush3.msra.mxu1 %v7432_v16 }
0x1bb9   : > { %6113 = vadd.xlane.f32.xlu1 %v6112_v49  ;;  %v6108_v38 = vpop.xlane.xlu1 %6107  ;;  %v6126_v58 = vmul.f32 %v9608_v23, %v9592_v53  ;;  %v9610_v5 = vpop.eup %9609  ;;  %9107 = vmatprep.subr.mxu1 %v9705_v1  ;;  %v7459_v49 = vld [vmem:[%s13128_s12 + $0xf0] sm:$0xff]  ;;  %v7458_v23 = vld [vmem:[%s13128_s12 + $0xe8] sm:$0xff] }
0x1bba   : > { %9615 = vrcp.f32 %v6108_v38  ;;  %v6127_v60 = vmul.f32 %v9610_v5, %v9594_v59  ;;  %9108 = vmatpush3.msra.mxu1 %v7431_v14 }
0x1bbb   : > { %9054 = vmatmul.mubr.msk.f32.gmra.mxu1 %vm1153_vm6, %v6126_v58  ;;  %v9612_v52 = vpop.eup %9611  ;;  %9109 = vmatprep.subr.mxu1 %v9705_v1 }
0x1bbc   : > { %9056 = vmatprep.mubr.msk.f32.mxu1 %vm9706_vm1, %v9705_v1  ;;  %v6128_v15 = vmul.f32 %v9612_v52, %v9596_v54  ;;  %9110 = vmatpush3.msra.mxu1 %v7430_v22 }
0x1bbd   : > { %9197 = vmatprep.subr.mxu1 %v9705_v1 }
0x1bbf   : > { %9057 = vmatmul.mubr.msk.f32.gmra.mxu1 %vm1153_vm6, %v6127_v60 }
0x1bc0   : > { %9059 = vmatprep.mubr.msk.f32.mxu1 %vm9706_vm1, %v9705_v1 }
0x1bc3   : > { %v9614_v30 = vpop.eup %9613  ;;  %9060 = vmatmul.mubr.msk.f32.gmra.mxu1 %vm1153_vm6, %v6128_v15 }
0x1bc4   : > { %v6129_v12 = vmul.f32 %v9614_v30, %v9598_v61  ;;  %9062 = vmatprep.mubr.msk.f32.mxu1 %vm9706_vm1, %v9705_v1 }
0x1bc7   : > { %v9616_v17 = vpop.eup %9615  ;;  %9063 = vmatmul.mubr.msk.f32.gmra.mxu1 %vm1153_vm6, %v6129_v12 }
0x1bc8   : > { %v6130_v6 = vmul.f32 %v9616_v17, %v9600_v36  ;;  %9065 = vmatprep.mubr.msk.f32.mxu1 %vm9706_vm1, %v9705_v1  ;;  %v12819_v17 = vld [vmem:[%s13124_s8 + $0x1] ss:$0 sm:$0xff] }
0x1bcb   : > { %9066 = vmatmul.mubr.msk.f32.gmra.mxu1 %vm1153_vm6, %v6130_v6 }
0x1bcc   : > { %9068 = vmatprep.mubr.msk.f32.mxu1 %vm9706_vm1, %v9705_v1 }
0x1be3   : > { %v6391_v27 = vpop.f32.mrf.mxu0 }
0x1be4   : > { %v6435_v53 = vadd.f32 %v6391_v27, %v12625_v44  ;;  %v12825_v27 = vld [vmem:[%s13125_s9 + $0x1] ss:$0 sm:$0xff] }
0x1be5   : > { %v9078_v33 = vpop.f32.mrf.mxu0 }
0x1be6   : > { %v6444_v13 = vadd.f32 %v6435_v53, %v11493_v39 }
0x1be8   : > { %v12748_v59 = vadd.f32 %v12744_v26, %v6444_v13 }
0x1bea   : > { %v6474_v4 = vsel %vm684_vm3, %v12748_v59, 0.0 }
0x1beb   : > { %6475 = vadd.xlane.f32.xlu0 %v6474_v4 }
0x1c3e   : > { %v6111_v0 = vpop.xlane.xlu0 %6110 }
0x1c3f   : > { %9617 = vrcp.f32 %v6111_v0 }
0x1c42   : > { %v6114_v37 = vpop.xlane.xlu1 %6113 }
0x1c43   : > { %9619 = vrcp.f32 %v6114_v37 }
0x1c4c   : > { %v9618_v44 = vpop.eup %9617 }
0x1c4d   : > { %v6131_v54 = vmul.f32 %v9618_v44, %v9602_v55 }
0x1c4f   : > { %9069 = vmatmul.mubr.msk.f32.gmra.mxu1 %vm1153_vm6, %v6131_v54 }
0x1c50   : > { %v9620_v28 = vpop.eup %9619  ;;  %9071 = vmatprep.mubr.msk.f32.mxu1 %vm9706_vm1, %v9705_v1 }
0x1c51   : > { %v6132_v39 = vmul.f32 %v9620_v28, %v9606_v56  ;;  %v7460_v56 = vld [vmem:[%s13128_s12 + $0xf8] sm:$0xff] }
0x1c52   : > { %9139 = vmatpush3.msra.mxu0 %v7460_v56  ;;  %v7452_v56 = vld [vmem:[%s13128_s12 + $0xb8] sm:$0xff] }
0x1c53   : > { %9072 = vmatmul.mubr.msk.f32.gmra.mxu1 %vm1153_vm6, %v6132_v39  ;;  %9140 = vmatprep.subr.mxu0 %v9705_v1 }
0x1c54   : > { %9111 = vmatprep.mubr.msk.f32.mxu1 %vm9706_vm1, %v9705_v1  ;;  %9141 = vmatpush3.msra.mxu0 %v7459_v49  ;;  %v7451_v49 = vld [vmem:[%s13128_s12 + $0xb0] sm:$0xff] }
0x1c55   : > { %9142 = vmatprep.subr.mxu0 %v9705_v1 }
0x1c56   : > { %9143 = vmatpush3.msra.mxu0 %v7458_v23  ;;  %v7450_v23 = vld [vmem:[%s13128_s12 + $0xa8] sm:$0xff] }
0x1c57   : > { %9144 = vmatprep.subr.mxu0 %v9705_v1 }
0x1c74   : > { %v6476_v48 = vpop.xlane.xlu0 %6475 }
0x1c75   : > { %v6501_v8 = vmul.f32 0.03125, %v6476_v48 }
0x1c77   : > { %v12759_v61 = vsub.f32 %v12748_v59, %v6501_v8  ;;  %v6259_v40 = vpop.f32.mrf.mxu1 }
0x1c78   : > { %9080 = vmatmul.mubr.msk.f32.gmra.mxu0 %vm1006_vm5, %v6259_v40 }
0x1c79   : > { %v9052_v36 = vpop.f32.mrf.mxu1  ;;  %9082 = vmatprep.mubr.msk.f32.mxu0 %vm9706_vm1, %v9705_v1  ;;  %v6519_v25 = vmul.f32 %v12759_v61, %v12759_v61 }
0x1c7b   : > { %v6528_v20 = vsel %vm684_vm3, %v6519_v25, 0.0  ;;  %v6264_v10 = vpop.f32.mrf.mxu1 }
0x1c7c   : > { %6529 = vadd.xlane.f32.xlu1 %v6528_v20  ;;  %9083 = vmatmul.mubr.msk.f32.gmra.mxu0 %vm1006_vm5, %v6264_v10 }
0x1c7d   : > { %v9055_v35 = vpop.f32.mrf.mxu1  ;;  %9085 = vmatprep.mubr.msk.f32.mxu0 %vm9706_vm1, %v9705_v1 }
0x1c7f   : > { %v6269_v24 = vpop.f32.mrf.mxu1 }
0x1c80   : > { %9086 = vmatmul.mubr.msk.f32.gmra.mxu0 %vm1006_vm5, %v6269_v24 }
0x1c81   : > { %v9058_v3 = vpop.f32.mrf.mxu1  ;;  %9088 = vmatprep.mubr.msk.f32.mxu0 %vm9706_vm1, %v9705_v1 }
0x1c83   : > { %v6274_v50 = vpop.f32.mrf.mxu1 }
0x1c84   : > { %9089 = vmatmul.mubr.msk.f32.gmra.mxu0 %vm1006_vm5, %v6274_v50 }
0x1c85   : > { %v9061_v63 = vpop.f32.mrf.mxu1  ;;  %9091 = vmatprep.mubr.msk.f32.mxu0 %vm9706_vm1, %v9705_v1 }
0x1c87   : > { %v6279_v11 = vpop.f32.mrf.mxu1 }
0x1c88   : > { %9092 = vmatmul.mubr.msk.f32.gmra.mxu0 %vm1006_vm5, %v6279_v11  ;;  %v7456_v11 = vld [vmem:[%s13128_s12 + $0xd8] sm:$0xff] }
0x1c89   : > { %v9064_v7 = vpop.f32.mrf.mxu1  ;;  %9094 = vmatprep.mubr.msk.f32.mxu0 %vm9706_vm1, %v9705_v1 }
0x1c8b   : > { %v6284_v32 = vpop.f32.mrf.mxu1 }
0x1c8c   : > { %9095 = vmatmul.mubr.msk.f32.gmra.mxu0 %vm1006_vm5, %v6284_v32 }
0x1c8d   : > { %v9067_v55 = vpop.f32.mrf.mxu1  ;;  %9097 = vmatprep.mubr.msk.f32.mxu0 %vm9706_vm1, %v9705_v1 }
0x1d05   : > { %v6530_v38 = vpop.xlane.xlu1 %6529 }
0x1d06   : > { %v6555_v58 = vmul.f32 0.03125, %v6530_v38  ;;  %v7449_v38 = vld [vmem:[%s13128_s12 + $0xa0] sm:$0xff] }
0x1d08   : > { %v6564_v5 = vadd.f32 1e-05, %v6555_v58  ;;  %v7448_v58 = vld [vmem:[%s13128_s12 + $0x98] sm:$0xff] }
0x1d0a   : > { %9621 = vrsqrt.f32 %v6564_v5  ;;  %v7447_v5 = vld [vmem:[%s13128_s12 + $0x90] sm:$0xff] }
0x1d0f   : > { %v6289_v60 = vpop.f32.mrf.mxu1 }
0x1d10   : > { %9098 = vmatmul.mubr.msk.f32.gmra.mxu0 %vm1006_vm5, %v6289_v60  ;;  %v7446_v60 = vld [vmem:[%s13128_s12 + $0x88] sm:$0xff] }
0x1d11   : > { %v9070_v52 = vpop.f32.mrf.mxu1  ;;  %9100 = vmatprep.mubr.msk.f32.mxu0 %vm9706_vm1, %v9705_v1 }
0x1d12   : > { %v7445_v52 = vld [vmem:[%s13128_s12 + $0x80] sm:$0xff] }
0x1d13   : > { %v6294_v15 = vpop.f32.mrf.mxu1 }
0x1d14   : > { %9101 = vmatmul.mubr.msk.f32.gmra.mxu0 %vm1006_vm5, %v6294_v15 }
0x1d15   : > { %v9073_v30 = vpop.f32.mrf.mxu1  ;;  %9170 = vmatprep.mubr.msk.f32.mxu0 %vm9706_vm1, %v9705_v1 }
0x1d17   : > { %v9622_v12 = vpop.eup %9621 }
0x1d18   : > { %v6582_v6 = vmul.f32 %v9622_v12, %v12759_v61 }
0x1d1a   : > { %v6597_v53 = vmul.f32 %v12819_v17, %v6582_v6 }
0x1d1c   : > { %v6612_v33 = vadd.f32 %v12825_v27, %v6597_v53 }
0x1d1e   : > { %9112 = vmatmul.mubr.msk.f32.vlgmr.msra.gmra.mxu1 %vm684_vm3, %v6612_v33 }
0x1d1f   : > { %9114 = vmatprep.mubr.msk.f32.mxu1 %vm9706_vm1, %v9705_v1 }
0x1d38   : > { %v6396_v13 = vpop.f32.mrf.mxu0 }
0x1d39   : > { %v6436_v4 = vadd.f32 %v6396_v13, %v12629_v18 }
0x1d3a   : > { %v9081_v0 = vpop.f32.mrf.mxu0 }
0x1d3b   : > { %v6445_v37 = vadd.f32 %v6436_v4, %v11498_v51 }
0x1d3c   : > { %v6401_v44 = vpop.f32.mrf.mxu0 }
0x1d3d   : > { %v12835_v54 = vadd.f32 %v12744_v26, %v6445_v37  ;;  %v6437_v28 = vadd.f32 %v6401_v44, %v12633_v31 }
0x1d3e   : > { %v9084_v39 = vpop.f32.mrf.mxu0 }
0x1d3f   : > { %v6477_v48 = vsel %vm684_vm3, %v12835_v54, 0.0  ;;  %v6446_v8 = vadd.f32 %v6437_v28, %v11503_v34 }
0x1d40   : > { %6478 = vadd.xlane.f32.xlu0 %v6477_v48  ;;  %v6406_v61 = vpop.f32.mrf.mxu0 }
0x1d41   : > { %v6438_v40 = vadd.f32 %v6406_v61, %v12637_v42  ;;  %v12843_v18 = vadd.f32 %v12744_v26, %v6446_v8 }
0x1d42   : > { %v9087_v51 = vpop.f32.mrf.mxu0 }
0x1d43   : > { %v6447_v36 = vadd.f32 %v6438_v40, %v11508_v62  ;;  %v6480_v25 = vsel %vm684_vm3, %v12843_v18, 0.0 }
0x1d44   : > { %6481 = vadd.xlane.f32.xlu1 %v6480_v25  ;;  %v6411_v31 = vpop.f32.mrf.mxu0 }
0x1d45   : > { %v6439_v20 = vadd.f32 %v6411_v31, %v12641_v29  ;;  %v12850_v10 = vadd.f32 %v12744_v26, %v6447_v36  ;;  %v7457_v29 = vld [vmem:[%s13128_s12 + $0xe0] sm:$0xff] }
0x1d46   : > { %v9090_v34 = vpop.f32.mrf.mxu0  ;;  %9145 = vmatpush3.msra.mxu0 %v7457_v29 }
0x1d47   : > { %v6448_v35 = vadd.f32 %v6439_v20, %v11513_v57  ;;  %v6483_v42 = vsel %vm684_vm3, %v12850_v10, 0.0  ;;  %9146 = vmatprep.subr.mxu0 %v9705_v1 }
0x1d48   : > { %6484 = vadd.xlane.f32.xlu0 %v6483_v42  ;;  %v6416_v24 = vpop.f32.mrf.mxu0  ;;  %9147 = vmatpush3.msra.mxu0 %v7456_v11 }
0x1d49   : > { %v6440_v62 = vadd.f32 %v6416_v24, %v12645_v21  ;;  %v12857_v3 = vadd.f32 %v12744_v26, %v6448_v35  ;;  %9148 = vmatprep.subr.mxu0 %v9705_v1 }
0x1d4a   : > { %v9093_v50 = vpop.f32.mrf.mxu0 }
0x1d4b   : > { %v6449_v63 = vadd.f32 %v6440_v62, %v11518_v47  ;;  %v6486_v57 = vsel %vm684_vm3, %v12857_v3, 0.0  ;;  %v7455_v47 = vld [vmem:[%s13128_s12 + $0xd0] sm:$0xff] }
0x1d4c   : > { %6487 = vadd.xlane.f32.xlu1 %v6486_v57  ;;  %v6421_v21 = vpop.f32.mrf.mxu0  ;;  %9149 = vmatpush3.msra.mxu0 %v7455_v47 }
0x1d4d   : > { %v6441_v7 = vadd.f32 %v6421_v21, %v12649_v2  ;;  %v12871_v32 = vadd.f32 %v12744_v26, %v6449_v63  ;;  %9150 = vmatprep.subr.mxu0 %v9705_v1  ;;  %v7454_v2 = vld [vmem:[%s13128_s12 + $0xc8] sm:$0xff] }
0x1d4e   : > { %v9096_v55 = vpop.f32.mrf.mxu0  ;;  %9151 = vmatpush3.msra.mxu0 %v7454_v2 }
0x1d4f   : > { %v6450_v43 = vadd.f32 %v6441_v7, %v11523_v46  ;;  %v6489_v16 = vsel %vm684_vm3, %v12871_v32, 0.0  ;;  %9152 = vmatprep.subr.mxu0 %v9705_v1  ;;  %v7453_v46 = vld [vmem:[%s13128_s12 + $0xc0] sm:$0xff] }
0x1d50   : > { %6490 = vadd.xlane.f32.xlu0 %v6489_v16  ;;  %9153 = vmatpush3.msra.mxu0 %v7453_v46  ;;  %v6912_v16 = vld [vmem:[%s13130_s14 + $0x18] sm:$0xff] }
0x1d51   : > { %v12885_v14 = vadd.f32 %v12744_v26, %v6450_v43  ;;  %9154 = vmatprep.subr.mxu0 %v9705_v1  ;;  %9198 = vmatpush3.msra.mxu1 %v6912_v16 }
0x1d52   : > { %9155 = vmatpush3.msra.mxu0 %v7452_v56  ;;  %9199 = vmatprep.subr.mxu1 %v9705_v1 }
0x1d53   : > { %v6492_v22 = vsel %vm684_vm3, %v12885_v14, 0.0  ;;  %9156 = vmatprep.subr.mxu0 %v9705_v1 }
0x1d54   : > { %6493 = vadd.xlane.f32.xlu1 %v6492_v22  ;;  %9157 = vmatpush3.msra.mxu0 %v7451_v49 }
0x1d55   : > { %9158 = vmatprep.subr.mxu0 %v9705_v1 }
0x1d56   : > { %9159 = vmatpush3.msra.mxu0 %v7450_v23 }
0x1d57   : > { %9160 = vmatprep.subr.mxu0 %v9705_v1 }
0x1d58   : > { %9161 = vmatpush3.msra.mxu0 %v7449_v38 }
0x1d59   : > { %9162 = vmatprep.subr.mxu0 %v9705_v1 }
0x1d5a   : > { %9163 = vmatpush3.msra.mxu0 %v7448_v58 }
0x1d5b   : > { %9164 = vmatprep.subr.mxu0 %v9705_v1 }
0x1d5c   : > { %9165 = vmatpush3.msra.mxu0 %v7447_v5 }
0x1d5d   : > { %9166 = vmatprep.subr.mxu0 %v9705_v1 }
0x1d5e   : > { %9167 = vmatpush3.msra.mxu0 %v7446_v60 }
0x1d5f   : > { %9168 = vmatprep.subr.mxu0 %v9705_v1 }
0x1d60   : > { %9169 = vmatpush3.msra.mxu0 %v7445_v52 }
0x1dc9   : > { %v6479_v15 = vpop.xlane.xlu0 %6478 }
0x1dca   : > { %v6502_v30 = vmul.f32 0.03125, %v6479_v15 }
0x1dcc   : > { %v12927_v0 = vsub.f32 %v12835_v54, %v6502_v30 }
0x1dcd   : > { %v6482_v12 = vpop.xlane.xlu1 %6481 }
0x1dce   : > { %v6503_v33 = vmul.f32 0.03125, %v6482_v12 }
0x1dd0   : > { %v6426_v6 = vpop.f32.mrf.mxu0  ;;  %v12933_v8 = vsub.f32 %v12843_v18, %v6503_v33 }
0x1dd1   : > { %v6442_v53 = vadd.f32 %v6426_v6, %v12684_v19  ;;  %v6485_v13 = vpop.xlane.xlu0 %6484 }
0x1dd2   : > { %v9099_v4 = vpop.f32.mrf.mxu0  ;;  %v6504_v37 = vmul.f32 0.03125, %v6485_v13  ;;  %v6521_v31 = vmul.f32 %v12933_v8, %v12933_v8 }
0x1dd3   : > { %v6451_v44 = vadd.f32 %v6442_v53, %v11528_v9  ;;  %v6520_v9 = vmul.f32 %v12927_v0, %v12927_v0 }
0x1dd4   : > { %v6431_v28 = vpop.f32.mrf.mxu0  ;;  %v12936_v61 = vsub.f32 %v12850_v10, %v6504_v37 }
0x1dd5   : > { %v6443_v39 = vadd.f32 %v6431_v28, %v12688_v41  ;;  %v6468_v48 = vadd.f32 %v12744_v26, %v6451_v44  ;;  %v6488_v19 = vpop.xlane.xlu1 %6487 }
0x1dd6   : > { %v9102_v40 = vpop.f32.mrf.mxu0  ;;  %v6505_v51 = vmul.f32 0.03125, %v6488_v19  ;;  %v6522_v18 = vmul.f32 %v12936_v61, %v12936_v61 }
0x1dd7   : > { %v6452_v54 = vadd.f32 %v6443_v39, %v11533_v45  ;;  %v6495_v36 = vsel %vm684_vm3, %v6468_v48, 0.0  ;;  %v6531_v45 = vsel %vm684_vm3, %v6520_v9, 0.0 }
0x1dd8   : > { %6496 = vadd.xlane.f32.xlu0 %v6495_v36  ;;  %v12948_v20 = vsub.f32 %v12857_v3, %v6505_v51  ;;  %v6537_v62 = vsel %vm684_vm3, %v6522_v18, 0.0  ;;  %v6534_v3 = vsel %vm684_vm3, %v6521_v31, 0.0 }
0x1dd9   : > { %v6469_v41 = vadd.f32 %v12744_v26, %v6452_v54  ;;  %v6491_v25 = vpop.xlane.xlu0 %6490  ;;  %v12955_v26 = vld [vmem:[%s13127_s11 + $0x1] ss:$0 sm:$0xff] }
0x1dda   : > { %v6506_v10 = vmul.f32 0.03125, %v6491_v25  ;;  %v6523_v57 = vmul.f32 %v12948_v20, %v12948_v20 }
0x1ddb   : > { %v6498_v34 = vsel %vm709_vm4, %v6469_v41, 0.0 }
0x1ddc   : > { %6532 = vadd.xlane.f32.xlu0 %v6531_v45  ;;  %6499 = vadd.xlane.f32.xlu1 %v6498_v34  ;;  %v12958_v35 = vsub.f32 %v12871_v32, %v6506_v10  ;;  %v6540_v55 = vsel %vm684_vm3, %v6523_v57, 0.0  ;;  %v6910_v57 = vld [vmem:[%s13130_s14 + $0x8] sm:$0xff] }
0x1ddd   : > { %v6494_v42 = vpop.xlane.xlu1 %6493 }
0x1dde   : > { %v6727_v24 = vpop.f32.mrf.mxu1  ;;  %v6507_v50 = vmul.f32 0.03125, %v6494_v42  ;;  %v6524_v63 = vmul.f32 %v12958_v35, %v12958_v35 }
0x1ddf   : > { %v6728_v29 = vadd.f32 %v12955_v26, %v6727_v24 }
0x1de0   : > { %v9113_v11 = vpop.f32.mrf.mxu1  ;;  %6538 = vadd.xlane.f32.xlu0 %v6537_v62  ;;  %6535 = vadd.xlane.f32.xlu1 %v6534_v3  ;;  %v12968_v21 = vsub.f32 %v12885_v14, %v6507_v50  ;;  %v6543_v32 = vsel %vm684_vm3, %v6524_v63, 0.0 }
0x1de1   : > { %v6771_v7 = vmax.f32 %v6728_v29, 0.0  ;;  %v6909_v11 = vld [vmem:[%s13130_s14] sm:$0xff] }
0x1de2   : > { %v6525_v47 = vmul.f32 %v12968_v21, %v12968_v21 }
0x1de3   : > { %9171 = vmatmul.mubr.f32.vlgmr.msra.gmra.mxu0 %v6771_v7 }
0x1de4   : > { %6544 = vadd.xlane.f32.xlu0 %v6543_v32  ;;  %6541 = vadd.xlane.f32.xlu1 %v6540_v55  ;;  %v6546_v43 = vsel %vm684_vm3, %v6525_v47, 0.0 }
0x1de5   : > { %9173 = vmatprep.mubr.msk.f32.mxu0 %vm9706_vm1, %v9705_v1 }
0x1de8   : > { %6547 = vadd.xlane.f32.xlu1 %v6546_v43 }
0x1e61   : > { %v6497_v2 = vpop.xlane.xlu0 %6496 }
0x1e62   : > { %v6508_v14 = vmul.f32 0.03125, %v6497_v2 }
0x1e64   : > { %v12981_v46 = vsub.f32 %v6468_v48, %v6508_v14 }
0x1e65   : > { %v6533_v22 = vpop.xlane.xlu0 %6532  ;;  %v6500_v56 = vpop.xlane.xlu1 %6499 }
0x1e66   : > { %v6556_v49 = vmul.f32 0.03125, %v6533_v22  ;;  %v6509_v23 = vmul.f32 0.03125, %v6500_v56  ;;  %v6526_v38 = vmul.f32 %v12981_v46, %v12981_v46 }
0x1e68   : > { %v6565_v58 = vadd.f32 1e-05, %v6556_v49  ;;  %v12985_v5 = vsub.f32 %v6469_v41, %v6509_v23  ;;  %v6549_v60 = vsel %vm684_vm3, %v6526_v38, 0.0 }
0x1e69   : > { %6550 = vadd.xlane.f32.xlu0 %v6549_v60  ;;  %v6539_v52 = vpop.xlane.xlu0 %6538  ;;  %v6536_v15 = vpop.xlane.xlu1 %6535 }
0x1e6a   : > { %9623 = vrsqrt.f32 %v6565_v58  ;;  %v6558_v30 = vmul.f32 0.03125, %v6539_v52  ;;  %v6557_v12 = vmul.f32 0.03125, %v6536_v15  ;;  %v6527_v6 = vmul.f32 %v12985_v5, %v12985_v5 }
0x1e6c   : > { %v6567_v53 = vadd.f32 1e-05, %v6558_v30  ;;  %v6566_v33 = vadd.f32 1e-05, %v6557_v12  ;;  %v6552_v13 = vsel %vm709_vm4, %v6527_v6, 0.0 }
0x1e6d   : > { %v6545_v4 = vpop.xlane.xlu0 %6544  ;;  %6553 = vadd.xlane.f32.xlu1 %v6552_v13  ;;  %v6542_v37 = vpop.xlane.xlu1 %6541 }
0x1e6e   : > { %9625 = vrsqrt.f32 %v6567_v53  ;;  %v6560_v44 = vmul.f32 0.03125, %v6545_v4  ;;  %v6559_v28 = vmul.f32 0.03125, %v6542_v37 }
0x1e6f   : > { %9627 = vrsqrt.f32 %v6566_v33 }
0x1e70   : > { %v6568_v39 = vadd.f32 1e-05, %v6559_v28  ;;  %v6569_v48 = vadd.f32 1e-05, %v6560_v44 }
0x1e71   : > { %v6548_v19 = vpop.xlane.xlu1 %6547 }
0x1e72   : > { %v6561_v40 = vmul.f32 0.03125, %v6548_v19  ;;  %9629 = vrsqrt.f32 %v6568_v39 }
0x1e73   : > { %9631 = vrsqrt.f32 %v6569_v48 }
0x1e74   : > { %v6570_v51 = vadd.f32 1e-05, %v6561_v40 }
0x1e76   : > { %9633 = vrsqrt.f32 %v6570_v51 }
0x1e77   : > { %v9624_v54 = vpop.eup %9623 }
0x1e78   : > { %v6583_v36 = vmul.f32 %v9624_v54, %v12927_v0 }
0x1e7a   : > { %v6598_v9 = vmul.f32 %v12819_v17, %v6583_v36 }
0x1e7b   : > { %v9626_v41 = vpop.eup %9625 }
0x1e7c   : > { %v9628_v25 = vpop.eup %9627  ;;  %v6613_v18 = vadd.f32 %v12825_v27, %v6598_v9  ;;  %v6585_v31 = vmul.f32 %v9626_v41, %v12936_v61 }
0x1e7d   : > { %v6584_v10 = vmul.f32 %v9628_v25, %v12933_v8 }
0x1e7e   : > { %9115 = vmatmul.mubr.msk.f32.gmra.mxu1 %vm684_vm3, %v6613_v18  ;;  %v6600_v24 = vmul.f32 %v12819_v17, %v6585_v31 }
0x1e7f   : > { %9117 = vmatprep.mubr.msk.f32.mxu1 %vm9706_vm1, %v9705_v1  ;;  %v6599_v45 = vmul.f32 %v12819_v17, %v6584_v10  ;;  %v9630_v34 = vpop.eup %9629 }
0x1e80   : > { %v6586_v0 = vmul.f32 %v9630_v34, %v12948_v20  ;;  %v9632_v62 = vpop.eup %9631  ;;  %v6615_v61 = vadd.f32 %v12825_v27, %v6600_v24 }
0x1e81   : > { %v6614_v42 = vadd.f32 %v12825_v27, %v6599_v45  ;;  %v6587_v8 = vmul.f32 %v9632_v62, %v12958_v35  ;;  %v6911_v35 = vld [vmem:[%s13130_s14 + $0x10] sm:$0xff] }
0x1e82   : > { %v6601_v3 = vmul.f32 %v12819_v17, %v6586_v0  ;;  %9200 = vmatpush3.msra.mxu1 %v6911_v35 }
0x1e83   : > { %9118 = vmatmul.mubr.msk.f32.gmra.mxu1 %vm684_vm3, %v6614_v42  ;;  %v9634_v50 = vpop.eup %9633  ;;  %v6602_v63 = vmul.f32 %v12819_v17, %v6587_v8  ;;  %9201 = vmatprep.subr.mxu1 %v9705_v1 }
0x1e84   : > { %9120 = vmatprep.mubr.msk.f32.mxu1 %vm9706_vm1, %v9705_v1  ;;  %v6588_v20 = vmul.f32 %v9634_v50, %v12968_v21  ;;  %v6616_v29 = vadd.f32 %v12825_v27, %v6601_v3  ;;  %9202 = vmatpush3.msra.mxu1 %v6910_v57 }
0x1e85   : > { %v6617_v21 = vadd.f32 %v12825_v27, %v6602_v63  ;;  %9203 = vmatprep.subr.mxu1 %v9705_v1 }
0x1e86   : > { %v6603_v7 = vmul.f32 %v12819_v17, %v6588_v20  ;;  %9204 = vmatpush3.msra.mxu1 %v6909_v11 }
0x1e87   : > { %9121 = vmatmul.mubr.msk.f32.gmra.mxu1 %vm684_vm3, %v6615_v61  ;;  %v6913_v61 = vld [vmem:[%s13131_s15] sm:$0x1] }
0x1e88   : > { %9123 = vmatprep.mubr.msk.f32.mxu1 %vm9706_vm1, %v9705_v1  ;;  %v6618_v32 = vadd.f32 %v12825_v27, %v6603_v7 }
0x1e8b   : > { %9124 = vmatmul.mubr.msk.f32.gmra.mxu1 %vm684_vm3, %v6616_v29 }
0x1e8c   : > { %9126 = vmatprep.mubr.msk.f32.mxu1 %vm9706_vm1, %v9705_v1 }
0x1e8f   : > { %9127 = vmatmul.mubr.msk.f32.gmra.mxu1 %vm684_vm3, %v6617_v21 }
0x1e90   : > { %9129 = vmatprep.mubr.msk.f32.mxu1 %vm9706_vm1, %v9705_v1 }
0x1e93   : > { %9130 = vmatmul.mubr.msk.f32.gmra.mxu1 %vm684_vm3, %v6618_v32 }
0x1e94   : > { %9132 = vmatprep.mubr.msk.f32.mxu1 %vm9706_vm1, %v9705_v1 }
0x1ea3   : > { %v6863_v55 = vpop.f32.mrf.mxu0 }
0x1ea4   : > { %v6899_v30 = vadd.f32 %v6863_v55, %v12748_v59 }
0x1ea5   : > { %v9172_v47 = vpop.f32.mrf.mxu0 }
0x1ef2   : > { %v6551_v43 = vpop.xlane.xlu0 %6550 }
0x1ef3   : > { %v6562_v16 = vmul.f32 0.03125, %v6551_v43 }
0x1ef5   : > { %v6571_v2 = vadd.f32 1e-05, %v6562_v16 }
0x1ef6   : > { %v6554_v14 = vpop.xlane.xlu1 %6553 }
0x1ef7   : > { %9635 = vrsqrt.f32 %v6571_v2  ;;  %v6563_v22 = vmul.f32 0.03125, %v6554_v14 }
0x1ef9   : > { %v6572_v56 = vadd.f32 1e-05, %v6563_v22 }
0x1efb   : > { %9637 = vrsqrt.f32 %v6572_v56 }
0x1f04   : > { %v9636_v49 = vpop.eup %9635 }
0x1f05   : > { %v6589_v23 = vmul.f32 %v9636_v49, %v12981_v46  ;;  %v7462_v46 = vld [vmem:[%s13129_s13 + $0x1] ss:$0 sm:$0xff] }
0x1f07   : > { %v6604_v38 = vmul.f32 %v12819_v17, %v6589_v23 }
0x1f08   : > { %v9638_v58 = vpop.eup %9637 }
0x1f09   : > { %v6590_v60 = vmul.f32 %v9638_v58, %v12985_v5  ;;  %v6619_v52 = vadd.f32 %v12825_v27, %v6604_v38  ;;  %v6908_v5 = vadd.f32 %v7462_v46, %v6899_v30 }
0x1f0b   : > { %9133 = vmatmul.mubr.msk.f32.gmra.mxu1 %vm684_vm3, %v6619_v52  ;;  %v6605_v15 = vmul.f32 %v12819_v17, %v6590_v60 }
0x1f0c   : > { %9135 = vmatprep.mubr.msk.f32.mxu1 %vm9706_vm1, %v9705_v1 }
0x1f0d   : > { %v6620_v12 = vadd.f32 %v12825_v27, %v6605_v15 }
0x1f0f   : > { %9136 = vmatmul.mubr.msk.f32.gmra.mxu1 %vm684_vm3, %v6620_v12 }
0x1f10   : > { %9205 = vmatprep.mubr.msk.f32.mxu1 %vm9706_vm1, %v9705_v1 }
0x1f13   : > { %9206 = vmatmul.mubr.msk.f32.vlgmr.msra.gmra.mxu1 %vm684_vm3, %v6908_v5 }
0x1f3e   : > { %v6732_v17 = vpop.f32.mrf.mxu1 }
0x1f3f   : > { %v6733_v6 = vadd.f32 %v12955_v26, %v6732_v17 }
0x1f40   : > { %v9116_v53 = vpop.f32.mrf.mxu1 }
0x1f41   : > { %v6772_v33 = vmax.f32 %v6733_v6, 0.0 }
0x1f43   : > { %v6737_v59 = vpop.f32.mrf.mxu1  ;;  %9174 = vmatmul.mubr.f32.gmra.mxu0 %v6772_v33 }
0x1f44   : > { %v6738_v27 = vadd.f32 %v12955_v26, %v6737_v59  ;;  %9176 = vmatprep.mubr.msk.f32.mxu0 %vm9706_vm1, %v9705_v1 }
0x1f45   : > { %v9119_v13 = vpop.f32.mrf.mxu1 }
0x1f46   : > { %v6773_v4 = vmax.f32 %v6738_v27, 0.0 }
0x1f47   : > { %v6742_v37 = vpop.f32.mrf.mxu1 }
0x1f48   : > { %v6743_v44 = vadd.f32 %v12955_v26, %v6742_v37  ;;  %9177 = vmatmul.mubr.f32.gmra.mxu0 %v6773_v4 }
0x1f49   : > { %v9122_v28 = vpop.f32.mrf.mxu1  ;;  %9179 = vmatprep.mubr.msk.f32.mxu0 %vm9706_vm1, %v9705_v1 }
0x1f4a   : > { %v6774_v39 = vmax.f32 %v6743_v44, 0.0 }
0x1f4b   : > { %v6747_v48 = vpop.f32.mrf.mxu1 }
0x1f4c   : > { %v6748_v19 = vadd.f32 %v12955_v26, %v6747_v48  ;;  %9180 = vmatmul.mubr.f32.gmra.mxu0 %v6774_v39 }
0x1f4d   : > { %v9125_v40 = vpop.f32.mrf.mxu1  ;;  %9182 = vmatprep.mubr.msk.f32.mxu0 %vm9706_vm1, %v9705_v1 }
0x1f4e   : > { %v6775_v51 = vmax.f32 %v6748_v19, 0.0 }
0x1f4f   : > { %v6752_v54 = vpop.f32.mrf.mxu1 }
0x1f50   : > { %v6753_v36 = vadd.f32 %v12955_v26, %v6752_v54  ;;  %9183 = vmatmul.mubr.f32.gmra.mxu0 %v6775_v51 }
0x1f51   : > { %v9128_v9 = vpop.f32.mrf.mxu1  ;;  %9185 = vmatprep.mubr.msk.f32.mxu0 %vm9706_vm1, %v9705_v1 }
0x1f52   : > { %v6776_v41 = vmax.f32 %v6753_v36, 0.0 }
0x1f53   : > { %v6757_v25 = vpop.f32.mrf.mxu1 }
0x1f54   : > { %v6758_v18 = vadd.f32 %v12955_v26, %v6757_v25  ;;  %9186 = vmatmul.mubr.f32.gmra.mxu0 %v6776_v41 }
0x1f55   : > { %v9131_v31 = vpop.f32.mrf.mxu1  ;;  %9188 = vmatprep.mubr.msk.f32.mxu0 %vm9706_vm1, %v9705_v1 }
0x1f56   : > { %v6777_v10 = vmax.f32 %v6758_v18, 0.0 }
0x1f58   : > { %9189 = vmatmul.mubr.f32.gmra.mxu0 %v6777_v10 }
0x1f59   : > { %9191 = vmatprep.mubr.msk.f32.mxu0 %vm9706_vm1, %v9705_v1 }
0x1fcb   : > { %v6762_v45 = vpop.f32.mrf.mxu1 }
0x1fcc   : > { %v6763_v34 = vadd.f32 %v12955_v26, %v6762_v45 }
0x1fcd   : > { %v9134_v0 = vpop.f32.mrf.mxu1 }
0x1fce   : > { %v6778_v42 = vmax.f32 %v6763_v34, 0.0 }
0x1fcf   : > { %v6767_v24 = vpop.f32.mrf.mxu1 }
0x1fd0   : > { %v6768_v62 = vadd.f32 %v12955_v26, %v6767_v24  ;;  %9192 = vmatmul.mubr.f32.gmra.mxu0 %v6778_v42 }
0x1fd1   : > { %v9137_v8 = vpop.f32.mrf.mxu1  ;;  %9194 = vmatprep.mubr.msk.f32.mxu0 %vm9706_vm1, %v9705_v1 }
0x1fd2   : > { %v6779_v3 = vmax.f32 %v6768_v62, 0.0 }
0x1fd3   : > { %v6983_v50 = vpop.f32.mrf.mxu1 }
0x1fd4   : > { %v6984_v20 = vadd.f32 %v6983_v50, %v6913_v61  ;;  %9195 = vmatmul.mubr.f32.gmra.mxu0 %v6779_v3 }
0x1fd5   : > { %v9207_v29 = vpop.f32.mrf.mxu1 }
0x1fd6   : > { %v6987_v63 = vsel %vm568_vm0, %v6984_v20, -inf }
0x1fd7   : > { %6988 = vmax.xlane.f32.xlu0 %v6987_v63 }
0x2003   : > { %v6868_v35 = vpop.f32.mrf.mxu0 }
0x2005   : > { %v9175_v57 = vpop.f32.mrf.mxu0 }
0x2008   : > { %v6872_v26 = vpop.f32.mrf.mxu0 }
0x200a   : > { %v9178_v11 = vpop.f32.mrf.mxu0 }
0x200c   : > { %v6876_v21 = vpop.f32.mrf.mxu0 }
0x200e   : > { %v9181_v7 = vpop.f32.mrf.mxu0 }
0x2010   : > { %v6880_v32 = vpop.f32.mrf.mxu0 }
0x2012   : > { %v9184_v1 = vpop.f32.mrf.mxu0 }
0x2014   : > { %v6884_v55 = vpop.f32.mrf.mxu0 }
0x2016   : > { %v9187_v47 = vpop.f32.mrf.mxu0 }
0x2018   : > { %v6888_v43 = vpop.f32.mrf.mxu0 }
0x201a   : > { %v9190_v16 = vpop.f32.mrf.mxu0 }
0x2060   : > { %v6989_v2 = vpop.xlane.xlu0 %6988 }
0x2061   : > { %v6990_v14 = vsub.f32 %v6984_v20, %v6989_v2 }
0x2063   : > { %v6991_v22 = vmul.f32 1.442695, %v6990_v14 }
0x2065   : > { %9639 = vpow2.f32 %v6991_v22 }
0x2072   : > { %v9640_v56 = vpop.eup %9639 }
0x2073   : > { %v6993_v49 = vsel %vm568_vm0, %v9640_v56, 0.0 }
0x2074   : > { %6994 = vadd.xlane.f32.xlu1 %v6993_v49 }
0x2090   : > { %v6892_v23 = vpop.f32.mrf.mxu0 }
0x2092   : > { %v9193_v38 = vpop.f32.mrf.mxu0 }
0x2094   : > { %v6896_v58 = vpop.f32.mrf.mxu0 }
0x2096   : > { %v9196_v60 = vpop.f32.mrf.mxu0 }
0x20fd   : > { %v6995_v52 = vpop.xlane.xlu1 %6994 }
0x20fe   : > { %9641 = vrcp.f32 %v6995_v52 }
0x210b   : > { %v9642_v15 = vpop.eup %9641 }
0x210c   : > { %v6997_v30 = vmul.f32 %v9642_v15, %v9640_v56 }
0x210e   : > { %6998 = vst [vmem:[%s513_s20] sm:$0x1] %v6997_v30 }
0x210f   : > { %9656 = shalt.err (!%p9653_p3)
}
0x2110   : > { %s9657_s4 = scalar_lea.hbm %s7010_s30, 16  ;;  %s9661_s20 = scalar_lea.hbm %s13132_s16, 32 }
0x2111   : > { %p9658_p4 = scmp.ne.s32.totalorder %s7010_s30, %s9657_s4  ;;  %p9662_p9 = scmp.lt.s32.totalorder %s7010_s30, %s13132_s16 }
0x2112   : > { %p9663_p10 = scmp.lt.s32.totalorder %s9661_s20, %s9657_s4 }
0x2113   : > { %p9659_p7 = pnand %p9658_p4, %p9842_p5 }
0x2114   : > { %p9664_p11 = por %p9663_p10, %p9662_p9 }
0x2115   : > { %p9660_p8 = pneg %p9659_p7 }
0x2117   : > { %p9665_p12 = pnand %p9664_p11, %p9660_p8 }
0x2119   : > { %9668 = shalt.err (!%p9665_p12)
}
0x211a   : > { %9227 = dma.vmem_to_hbm [thread:$0]  (%p9842_p5), %s7013_s18, 16, %s7010_s30, %s7000_s28  }
0x211b PF: > { %p9233_p13 = scmp.ge.s32.totalorder %s9703_s24, 2  ;;  %s7024_s1 = sand.u32 1, %s9691_s21  }
0x211c   : > { %s7025_s2 = scalar_lea.sflag [#allocation3], %s7024_s1 }
0x211d   : > { %p9230_p0 = pnand %p9233_p13, %p9846_p6 }
0x211f   : > { %p9231_p1 = pneg %p9230_p0 }
0x2121   : > { %9686 = dma.done.wait (%p9231_p1), %s7025_s2, 16  }
0x2122   : > { %9688 = vsyncadd (%p9231_p1), %s7025_s2, 4294967280  ;;  %s13181_s3 = sld [smem:[#allocation5_spill]]  ;;  %p26_p2 = scmp.ge.s32.totalorder %s9829_s27, 4  }
0x2123   : > { %s13182_s23 = sld [smem:[#allocation6_spill]]  ;;  %s13183_s21 = smov %s9695_s22 }
0x2124   : > { %s13185_s24 = smov %s9829_s27  ;;  %28 = sbr.rel (!%p26_p2) target bundleno = 9 (0x9), region = 130 }
0x2128   : > { %s13184_s22 = smov %s13181_s3 }
0x2129   :  { %7029 = vsyncpa [#allocation3], 1 }
0x212a   :  { %7031 = vsyncpa [#allocation3 + $0x1], 1 }

</bundles_post_ra>
